<compile_context>
chip_gen: v7x
topology: tpu7x:2x2x1
jax: 0.10.0
libtpu: 0.0.40
codegen_flags: <defaults>
</compile_context>

<pallas_src>
import numpy as np
import jax
import jax.numpy as jnp
from jax import lax
from jax.experimental import pallas as pl
from jax.experimental.pallas import tpu as pltpu

_B = 16  # images per conv-stage grid step (batch tile)


# ----------------------------- conv-stage kernel -----------------------------

def _conv_stage_kernel(x_ref, k1_ref, b1t_ref, pe1_ref, po1_ref, re_ref, ro_ref,
                       m2_ref, b2t_ref, se_ref, so_ref, pe2_ref, po2_ref,
                       out_ref):
    # x_ref   : (B*32, 30)        f32   zero-padded images, 32 rows per image
    # k1_ref  : (3, 30, 448)      f32   conv1 banded weights (per dy)
    # b1t_ref : (1, 448)          f32   conv1 bias tiled over q
    # pe1/po1 : (448, 256)        bf16  stage-1 W-pool 0/1 selectors
    # re/ro   : (B*16+2, B*32-2)  bf16  stage-1 H-pool + re-block selectors
    # m2_ref  : (3, 256, 448)     bf16  conv2 banded weights (per dy)
    # b2t_ref : (1, 448)          f32   conv2 bias tiled over j
    # se/so   : (B*7, B*16)       bf16  stage-2 H-pool selectors
    # pe2/po2 : (448, 224)        bf16  stage-2 W-pool selectors
    # out_ref : (B*7, 224)        f32   pooled features, lanes = j'*32 + o
    f32 = jnp.float32
    bf16 = jnp.bfloat16
    rows1 = x_ref.shape[0] - 2        # B*32 - 2  conv1 rows (incl. garbage rows)
    rows2 = se_ref.shape[1]           # B*16      conv2 rows (incl. garbage rows)

    # ---- conv1 (1->16, 3x3, pad=1) + ReLU: banded matmuls over W -----------
    xin = x_ref[...]                                                # (B*32, 30)
    y1 = jnp.dot(xin[0:rows1, :], k1_ref[0], preferred_element_type=f32)
    y1 += jnp.dot(xin[1:rows1 + 1, :], k1_ref[1], preferred_element_type=f32)
    y1 += jnp.dot(xin[2:rows1 + 2, :], k1_ref[2], preferred_element_type=f32)
    y1 = jnp.maximum(y1 + b1t_ref[...], 0.0).astype(bf16)          # (510, 448)

    # ---- 2x2 maxpool #1 (exact 0/1 selection matmuls) ----------------------
    # lanes: q*16+c -> w*16+c (interior w = 1+v; border lanes stay 0)
    awq = jnp.maximum(
        jnp.dot(y1, pe1_ref[...], preferred_element_type=f32),
        jnp.dot(y1, po1_ref[...], preferred_element_type=f32)).astype(bf16)
    # rows: 32 rows/img -> 16 rows/img, already zero-padded for conv2
    xs2 = jnp.maximum(
        jnp.dot(re_ref[...], awq, preferred_element_type=f32),
        jnp.dot(ro_ref[...], awq, preferred_element_type=f32)).astype(bf16)
    # xs2: (B*16+2, 256), xs2[b*16+h, w*16+c] = zero-padded pool1

    # ---- conv2 (16->32, 3x3, pad=1) + ReLU: banded bf16 MXU matmuls --------
    y2 = jnp.dot(xs2[0:rows2, :], m2_ref[0], preferred_element_type=f32)
    y2 += jnp.dot(xs2[1:rows2 + 1, :], m2_ref[1], preferred_element_type=f32)
    y2 += jnp.dot(xs2[2:rows2 + 2, :], m2_ref[2], preferred_element_type=f32)
    y2 = jnp.maximum(y2 + b2t_ref[...], 0.0).astype(bf16)          # (B*16, 448)

    # ---- 2x2 maxpool #2 ------------------------------------------------------
    a2 = jnp.maximum(
        jnp.dot(se_ref[...], y2, preferred_element_type=f32),
        jnp.dot(so_ref[...], y2, preferred_element_type=f32)).astype(bf16)
    r = jnp.maximum(
        jnp.dot(a2, pe2_ref[...], preferred_element_type=f32),
        jnp.dot(a2, po2_ref[...], preferred_element_type=f32))
    out_ref[...] = r                                    # single lane-dense store


# ------------------------------- fc-stage kernel ------------------------------

def _fc_kernel(x_ref, w1_ref, b1_ref, w2_ref, b2_ref, o_ref):
    # x_ref: (TM, 1568) f32; w1_ref: (1568, 128) bf16; w2_ref: (128, 10) bf16
    x = x_ref[...].astype(jnp.bfloat16)
    h = jnp.dot(x, w1_ref[...], preferred_element_type=jnp.float32) + b1_ref[...]
    h = jnp.maximum(h, 0.0)                                   # (TM, 128) in VMEM
    y = jnp.dot(h.astype(jnp.bfloat16), w2_ref[...],
                preferred_element_type=jnp.float32)
    o_ref[...] = y + b2_ref[...]


# --------------------------------- wrappers -----------------------------------

def conv_stage(xin, p):
    bt = p["se"].shape[0] // 7
    n_tiles = xin.shape[0] // (bt * 32)
    rows_out = bt * 7
    return pl.pallas_call(
        _conv_stage_kernel,
        out_shape=jax.ShapeDtypeStruct((n_tiles * rows_out, 224), jnp.float32),
        grid=(n_tiles,),
        in_specs=[
            pl.BlockSpec((bt * 32, 30), lambda i: (i, 0)),
            pl.BlockSpec((3, 30, 448), lambda i: (0, 0, 0)),
            pl.BlockSpec((1, 448), lambda i: (0, 0)),
            pl.BlockSpec((448, 256), lambda i: (0, 0)),
            pl.BlockSpec((448, 256), lambda i: (0, 0)),
            pl.BlockSpec((bt * 16 + 2, bt * 32 - 2), lambda i: (0, 0)),
            pl.BlockSpec((bt * 16 + 2, bt * 32 - 2), lambda i: (0, 0)),
            pl.BlockSpec((3, 256, 448), lambda i: (0, 0, 0)),
            pl.BlockSpec((1, 448), lambda i: (0, 0)),
            pl.BlockSpec((bt * 7, bt * 16), lambda i: (0, 0)),
            pl.BlockSpec((bt * 7, bt * 16), lambda i: (0, 0)),
            pl.BlockSpec((448, 224), lambda i: (0, 0)),
            pl.BlockSpec((448, 224), lambda i: (0, 0)),
        ],
        out_specs=pl.BlockSpec((rows_out, 224), lambda i: (i, 0)),
        compiler_params=pltpu.CompilerParams(
            dimension_semantics=("parallel",),
            vmem_limit_bytes=32 * 1024 * 1024),
    )(xin, p["k1"], p["b1t"], p["pe1"], p["po1"], p["re"], p["ro"],
      p["m2"], p["b2t"], p["se"], p["so"], p["pe2"], p["po2"])


def _pick_tm(n):
    for c in (512, 256, 128, 64, 32, 16, 8):
        if n % c == 0:
            return c
    return n


def fc_stage(flat, p):
    n_pad, k = flat.shape
    tm = _pick_tm(n_pad)
    return pl.pallas_call(
        _fc_kernel,
        out_shape=jax.ShapeDtypeStruct((n_pad, 10), jnp.float32),
        grid=(n_pad // tm,),
        in_specs=[
            pl.BlockSpec((tm, k), lambda i: (i, 0)),
            pl.BlockSpec((k, 128), lambda i: (0, 0)),
            pl.BlockSpec((1, 128), lambda i: (0, 0)),
            pl.BlockSpec((128, 10), lambda i: (0, 0)),
            pl.BlockSpec((1, 10), lambda i: (0, 0)),
        ],
        out_specs=pl.BlockSpec((tm, 10), lambda i: (i, 0)),
        compiler_params=pltpu.CompilerParams(
            dimension_semantics=("parallel",),
            vmem_limit_bytes=32 * 1024 * 1024),
    )(flat, p["wf1"], p["bf1"], p["wf2"], p["bf2"])


def prepare_params(params, bt=_B):
    """One-time re-layout: banded conv weights, 0/1 pooling selectors, fc pads."""
    w1 = np.asarray(params["conv1_w"], np.float32)   # (16, 1, 3, 3)
    b1 = np.asarray(params["conv1_b"], np.float32)
    w2 = np.asarray(params["conv2_w"], np.float32)   # (32, 16, 3, 3)
    b2 = np.asarray(params["conv2_b"], np.float32)

    # conv1 banded: K[dy, w_in, q*16+c] = w1[c, 0, dy, w_in-q] for w_in-q in {0,1,2}
    k1 = np.zeros((3, 30, 28 * 16), np.float32)
    for dy in range(3):
        for q in range(28):
            for dx in range(3):
                k1[dy, q + dx, q * 16:(q + 1) * 16] = w1[:, 0, dy, dx]
    b1t = np.tile(b1, 28)[None, :]                   # (1, 448): lane q*16+c -> b1[c]

    # stage-1 W-pool selectors (lanes q*16+c -> w*16+c, interior w = 1+v)
    pe1 = np.zeros((448, 256), np.float32)
    po1 = np.zeros((448, 256), np.float32)
    for v in range(14):
        for c in range(16):
            pe1[(2 * v) * 16 + c, (1 + v) * 16 + c] = 1.0
            po1[(2 * v + 1) * 16 + c, (1 + v) * 16 + c] = 1.0

    # stage-1 H-pool + re-block selectors: conv1 row b*32+2p(+1) -> X row b*16+1+p;
    # all other X rows (pad rows 0/15 per image and the 2 tail rows) stay zero.
    re = np.zeros((bt * 16 + 2, bt * 32 - 2), np.float32)
    ro = np.zeros_like(re)
    for b in range(bt):
        for pp in range(14):
            re[b * 16 + 1 + pp, b * 32 + 2 * pp] = 1.0
            ro[b * 16 + 1 + pp, b * 32 + 2 * pp + 1] = 1.0

    # conv2 banded: M2[dy, w*16+c, j*32+o] = w2[o, c, dy, w-j] for w-j in {0,1,2}
    m2 = np.zeros((3, 256, 448), np.float32)
    for dy in range(3):
        for j in range(14):
            for dx in range(3):
                w = j + dx
                m2[dy, w * 16:(w + 1) * 16, j * 32:(j + 1) * 32] = w2[:, :, dy, dx].T
    b2t = np.tile(b2, 14)[None, :]                   # (1, 448): lane j*32+o -> b2[o]

    # stage-2 H-pool selectors: Y2 row b*16+2i'(+1) -> row b*7+i'
    se = np.zeros((bt * 7, bt * 16), np.float32)
    so = np.zeros_like(se)
    for b in range(bt):
        for ip in range(7):
            se[b * 7 + ip, b * 16 + 2 * ip] = 1.0
            so[b * 7 + ip, b * 16 + 2 * ip + 1] = 1.0

    # stage-2 W-pool selectors: lane j*32+o -> j'*32+o
    pe2 = np.zeros((448, 224), np.float32)
    po2 = np.zeros_like(pe2)
    for jp in range(7):
        for o in range(32):
            pe2[(2 * jp) * 32 + o, jp * 32 + o] = 1.0
            po2[(2 * jp + 1) * 32 + o, jp * 32 + o] = 1.0

    # fc1: fold the PyTorch NCHW flatten order (o*49 + i'*7 + j') into a row
    # permutation matching the kernel's (i', j', o) feature order; pad 100->128.
    wf1 = (np.asarray(params["fc1_w"], np.float32).reshape(100, 32, 7, 7)
           .transpose(2, 3, 1, 0).reshape(7 * 7 * 32, 100))
    wf1 = np.pad(wf1, ((0, 0), (0, 28)))
    bf1 = np.pad(np.asarray(params["fc1_b"], np.float32), (0, 28))[None, :]
    wf2 = np.pad(np.asarray(params["fc2_w"], np.float32).T, ((0, 28), (0, 0)))
    bf2 = np.asarray(params["fc2_b"], np.float32)[None, :]

    return {
        "k1": jnp.asarray(k1, jnp.float32),
        "b1t": jnp.asarray(b1t, jnp.float32),
        "pe1": jnp.asarray(pe1, jnp.bfloat16), "po1": jnp.asarray(po1, jnp.bfloat16),
        "re": jnp.asarray(re, jnp.bfloat16), "ro": jnp.asarray(ro, jnp.bfloat16),
        "m2": jnp.asarray(m2, jnp.bfloat16),
        "b2t": jnp.asarray(b2t, jnp.float32),
        "se": jnp.asarray(se, jnp.bfloat16), "so": jnp.asarray(so, jnp.bfloat16),
        "pe2": jnp.asarray(pe2, jnp.bfloat16), "po2": jnp.asarray(po2, jnp.bfloat16),
        "wf1": jnp.asarray(wf1, jnp.bfloat16), "bf1": jnp.asarray(bf1, jnp.float32),
        "wf2": jnp.asarray(wf2, jnp.bfloat16), "bf2": jnp.asarray(bf2, jnp.float32),
    }


@jax.jit
def cnn_forward(x_nchw, prepped):
    n = x_nchw.shape[0]
    n_pad = ((n + _B - 1) // _B) * _B
    x = x_nchw[:, 0, :, :]                               # (N, 28, 28)
    # 1 pad row/col for the conv, plus 2 extra zero rows per image (dy slack).
    x = jnp.pad(x, ((0, n_pad - n), (1, 3), (1, 1)))     # (n_pad, 32, 30)
    xin = x.reshape(n_pad * 32, 30)                      # contiguous, metadata-only
    pooled = conv_stage(xin, prepped)                    # (n_pad*7, 224)
    flat = pooled.reshape(n_pad, 7 * 224)                # metadata-only -> (n_pad, 1568)
    out = fc_stage(flat, prepped)                        # (n_pad, 10)
    return out[:n]


# ----------------------------- pure-JAX reference ------------------------------

def cnn_reference(x_nchw, params):
    def conv(x, w, b):
        dn = lax.conv_dimension_numbers(x.shape, w.shape, ("NCHW", "OIHW", "NCHW"))
        y = lax.conv_general_dilated(x, w, (1, 1), ((1, 1), (1, 1)),
                                     dimension_numbers=dn,
                                     precision=lax.Precision.HIGHEST)
        return jax.nn.relu(y + b[None, :, None, None])

    def pool(x):
        return lax.reduce_window(x, -jnp.inf, lax.max,
                                 (1, 1, 2, 2), (1, 1, 2, 2), "VALID")

    y = pool(conv(x_nchw, params["conv1_w"], params["conv1_b"]))
    y = pool(conv(y, params["conv2_w"], params["conv2_b"]))
    flat = y.reshape(y.shape[0], -1)
    h = jax.nn.relu(flat @ params["fc1_w"].T + params["fc1_b"])
    return h @ params["fc2_w"].T + params["fc2_b"]


if __name__ == "__main__":
    key = jax.random.PRNGKey(0)
    ks = jax.random.split(key, 9)
    params = {
        "conv1_w": 0.10 * jax.random.normal(ks[0], (16, 1, 3, 3), jnp.float32),
        "conv1_b": 0.10 * jax.random.normal(ks[1], (16,), jnp.float32),
        "conv2_w": 0.05 * jax.random.normal(ks[2], (32, 16, 3, 3), jnp.float32),
        "conv2_b": 0.05 * jax.random.normal(ks[3], (32,), jnp.float32),
        "fc1_w": 0.02 * jax.random.normal(ks[4], (100, 32 * 7 * 7), jnp.float32),
        "fc1_b": 0.02 * jax.random.normal(ks[5], (100,), jnp.float32),
        "fc2_w": 0.05 * jax.random.normal(ks[6], (10, 100), jnp.float32),
        "fc2_b": 0.05 * jax.random.normal(ks[7], (10,), jnp.float32),
    }
    # MNIST-shaped input (the FC layer requires 28x28x1); batch 32 = 2 conv tiles.
    x = jax.random.normal(ks[8], (32, 1, 28, 28), jnp.float32)   # NCHW like PyTorch

    prepped = jax.block_until_ready(prepare_params(params, _B))  # one-time prep
    out = jax.block_until_ready(cnn_forward(x, prepped))
    assert out.shape == (32, 10) and out.dtype == jnp.float32

    ref = jax.block_until_ready(cnn_reference(x, params))
    assert jnp.allclose(out, ref, rtol=2e-2, atol=2e-2), (
        f"max abs diff {jnp.max(jnp.abs(out - ref))}")

    print("KERNEL_OK")
</pallas_src>

<mosaic_0001>
module attributes {stable_mosaic.version = 11 : i64} {
  func.func @_conv_stage_kernel(%arg0: i32, %arg1: memref<512x30xf32, #tpu.memory_space<vmem>>, %arg2: memref<3x30x448xf32, #tpu.memory_space<vmem>>, %arg3: memref<1x448xf32, #tpu.memory_space<vmem>>, %arg4: memref<448x256xbf16, #tpu.memory_space<vmem>>, %arg5: memref<448x256xbf16, #tpu.memory_space<vmem>>, %arg6: memref<258x510xbf16, #tpu.memory_space<vmem>>, %arg7: memref<258x510xbf16, #tpu.memory_space<vmem>>, %arg8: memref<3x256x448xbf16, #tpu.memory_space<vmem>>, %arg9: memref<1x448xf32, #tpu.memory_space<vmem>>, %arg10: memref<112x256xbf16, #tpu.memory_space<vmem>>, %arg11: memref<112x256xbf16, #tpu.memory_space<vmem>>, %arg12: memref<448x224xbf16, #tpu.memory_space<vmem>>, %arg13: memref<448x224xbf16, #tpu.memory_space<vmem>>, %arg14: memref<112x224xf32, #tpu.memory_space<vmem>>) attributes {dimension_semantics = [#tpu.dimension_semantics<parallel>], iteration_bounds = array<i64: 2>, scalar_prefetch = 0 : i64, scratch_operands = 0 : i64, tpu.core_type = #tpu.core_type<tc>, window_params = [{transform_indices = @transform_0, window_bounds = array<i64: 512, 30>}, {pipeline_mode = #tpu.pipeline_mode<synchronous>, transform_indices = @transform_1, window_bounds = array<i64: 3, 30, 448>}, {pipeline_mode = #tpu.pipeline_mode<synchronous>, transform_indices = @transform_2, window_bounds = array<i64: 1, 448>}, {pipeline_mode = #tpu.pipeline_mode<synchronous>, transform_indices = @transform_3, window_bounds = array<i64: 448, 256>}, {pipeline_mode = #tpu.pipeline_mode<synchronous>, transform_indices = @transform_4, window_bounds = array<i64: 448, 256>}, {pipeline_mode = #tpu.pipeline_mode<synchronous>, transform_indices = @transform_5, window_bounds = array<i64: 258, 510>}, {pipeline_mode = #tpu.pipeline_mode<synchronous>, transform_indices = @transform_6, window_bounds = array<i64: 258, 510>}, {pipeline_mode = #tpu.pipeline_mode<synchronous>, transform_indices = @transform_7, window_bounds = array<i64: 3, 256, 448>}, {pipeline_mode = #tpu.pipeline_mode<synchronous>, transform_indices = @transform_8, window_bounds = array<i64: 1, 448>}, {pipeline_mode = #tpu.pipeline_mode<synchronous>, transform_indices = @transform_9, window_bounds = array<i64: 112, 256>}, {pipeline_mode = #tpu.pipeline_mode<synchronous>, transform_indices = @transform_10, window_bounds = array<i64: 112, 256>}, {pipeline_mode = #tpu.pipeline_mode<synchronous>, transform_indices = @transform_11, window_bounds = array<i64: 448, 224>}, {pipeline_mode = #tpu.pipeline_mode<synchronous>, transform_indices = @transform_12, window_bounds = array<i64: 448, 224>}, {transform_indices = @transform_13, window_bounds = array<i64: 112, 224>}]} {
    %c0 = arith.constant 0 : index
    %c0_0 = arith.constant 0 : index
    %0 = vector.load %arg1[%c0, %c0_0] : memref<512x30xf32, #tpu.memory_space<vmem>>, vector<512x30xf32>
    %1 = vector.extract_strided_slice %0 {offsets = [0, 0], sizes = [510, 30], strides = [1, 1]} : vector<512x30xf32> to vector<510x30xf32>
    %c0_1 = arith.constant 0 : index
    %c0_2 = arith.constant 0 : index
    %c0_3 = arith.constant 0 : index
    %2 = vector.load %arg2[%c0_1, %c0_2, %c0_3] : memref<3x30x448xf32, #tpu.memory_space<vmem>>, vector<1x30x448xf32>
    %3 = vector.shape_cast %2 : vector<1x30x448xf32> to vector<30x448xf32>
    %cst = arith.constant dense<0.000000e+00> : vector<510x448xf32>
    %4 = tpu.matmul %1, %3, %cst {dimension_numbers = #tpu.dot_dimension_numbers<[1], [0], [0], [1], [0, 0, 1, 1], [], []>} : vector<510x30xf32>, vector<30x448xf32>, vector<510x448xf32> -> vector<510x448xf32>
    %5 = vector.extract_strided_slice %0 {offsets = [1, 0], sizes = [510, 30], strides = [1, 1]} : vector<512x30xf32> to vector<510x30xf32>
    %c1 = arith.constant 1 : index
    %c0_4 = arith.constant 0 : index
    %c0_5 = arith.constant 0 : index
    %6 = vector.load %arg2[%c1, %c0_4, %c0_5] : memref<3x30x448xf32, #tpu.memory_space<vmem>>, vector<1x30x448xf32>
    %7 = vector.shape_cast %6 : vector<1x30x448xf32> to vector<30x448xf32>
    %cst_6 = arith.constant dense<0.000000e+00> : vector<510x448xf32>
    %8 = tpu.matmul %5, %7, %cst_6 {dimension_numbers = #tpu.dot_dimension_numbers<[1], [0], [0], [1], [0, 0, 1, 1], [], []>} : vector<510x30xf32>, vector<30x448xf32>, vector<510x448xf32> -> vector<510x448xf32>
    %9 = arith.addf %4, %8 : vector<510x448xf32>
    %10 = vector.extract_strided_slice %0 {offsets = [2, 0], sizes = [510, 30], strides = [1, 1]} : vector<512x30xf32> to vector<510x30xf32>
    %c2 = arith.constant 2 : index
    %c0_7 = arith.constant 0 : index
    %c0_8 = arith.constant 0 : index
    %11 = vector.load %arg2[%c2, %c0_7, %c0_8] : memref<3x30x448xf32, #tpu.memory_space<vmem>>, vector<1x30x448xf32>
    %12 = vector.shape_cast %11 : vector<1x30x448xf32> to vector<30x448xf32>
    %cst_9 = arith.constant dense<0.000000e+00> : vector<510x448xf32>
    %13 = tpu.matmul %10, %12, %cst_9 {dimension_numbers = #tpu.dot_dimension_numbers<[1], [0], [0], [1], [0, 0, 1, 1], [], []>} : vector<510x30xf32>, vector<30x448xf32>, vector<510x448xf32> -> vector<510x448xf32>
    %14 = arith.addf %9, %13 : vector<510x448xf32>
    %c0_10 = arith.constant 0 : index
    %c0_11 = arith.constant 0 : index
    %15 = vector.load %arg3[%c0_10, %c0_11] : memref<1x448xf32, #tpu.memory_space<vmem>>, vector<1x448xf32>
    %16 = vector.broadcast %15 : vector<1x448xf32> to vector<510x448xf32>
    %17 = arith.addf %14, %16 : vector<510x448xf32>
    %cst_12 = arith.constant 0.000000e+00 : f32
    %18 = vector.broadcast %cst_12 : f32 to vector<510x448xf32>
    %19 = arith.maximumf %17, %18 : vector<510x448xf32>
    %20 = arith.truncf %19 : vector<510x448xf32> to vector<510x448xbf16>
    %c0_13 = arith.constant 0 : index
    %c0_14 = arith.constant 0 : index
    %21 = vector.load %arg4[%c0_13, %c0_14] : memref<448x256xbf16, #tpu.memory_space<vmem>>, vector<448x256xbf16>
    %cst_15 = arith.constant dense<0.000000e+00> : vector<510x256xf32>
    %22 = tpu.matmul %20, %21, %cst_15 {dimension_numbers = #tpu.dot_dimension_numbers<[1], [0], [0], [1], [0, 0, 1, 1], [], []>} : vector<510x448xbf16>, vector<448x256xbf16>, vector<510x256xf32> -> vector<510x256xf32>
    %c0_16 = arith.constant 0 : index
    %c0_17 = arith.constant 0 : index
    %23 = vector.load %arg5[%c0_16, %c0_17] : memref<448x256xbf16, #tpu.memory_space<vmem>>, vector<448x256xbf16>
    %cst_18 = arith.constant dense<0.000000e+00> : vector<510x256xf32>
    %24 = tpu.matmul %20, %23, %cst_18 {dimension_numbers = #tpu.dot_dimension_numbers<[1], [0], [0], [1], [0, 0, 1, 1], [], []>} : vector<510x448xbf16>, vector<448x256xbf16>, vector<510x256xf32> -> vector<510x256xf32>
    %25 = arith.maximumf %22, %24 : vector<510x256xf32>
    %26 = arith.truncf %25 : vector<510x256xf32> to vector<510x256xbf16>
    %c0_19 = arith.constant 0 : index
    %c0_20 = arith.constant 0 : index
    %27 = vector.load %arg6[%c0_19, %c0_20] : memref<258x510xbf16, #tpu.memory_space<vmem>>, vector<258x510xbf16>
    %cst_21 = arith.constant dense<0.000000e+00> : vector<258x256xf32>
    %28 = tpu.matmul %27, %26, %cst_21 {dimension_numbers = #tpu.dot_dimension_numbers<[1], [0], [0], [1], [0, 0, 1, 1], [], []>} : vector<258x510xbf16>, vector<510x256xbf16>, vector<258x256xf32> -> vector<258x256xf32>
    %c0_22 = arith.constant 0 : index
    %c0_23 = arith.constant 0 : index
    %29 = vector.load %arg7[%c0_22, %c0_23] : memref<258x510xbf16, #tpu.memory_space<vmem>>, vector<258x510xbf16>
    %cst_24 = arith.constant dense<0.000000e+00> : vector<258x256xf32>
    %30 = tpu.matmul %29, %26, %cst_24 {dimension_numbers = #tpu.dot_dimension_numbers<[1], [0], [0], [1], [0, 0, 1, 1], [], []>} : vector<258x510xbf16>, vector<510x256xbf16>, vector<258x256xf32> -> vector<258x256xf32>
    %31 = arith.maximumf %28, %30 : vector<258x256xf32>
    %32 = arith.truncf %31 : vector<258x256xf32> to vector<258x256xbf16>
    %33 = vector.extract_strided_slice %32 {offsets = [0, 0], sizes = [256, 256], strides = [1, 1]} : vector<258x256xbf16> to vector<256x256xbf16>
    %c0_25 = arith.constant 0 : index
    %c0_26 = arith.constant 0 : index
    %c0_27 = arith.constant 0 : index
    %34 = vector.load %arg8[%c0_25, %c0_26, %c0_27] : memref<3x256x448xbf16, #tpu.memory_space<vmem>>, vector<1x256x448xbf16>
    %35 = vector.shape_cast %34 : vector<1x256x448xbf16> to vector<256x448xbf16>
    %cst_28 = arith.constant dense<0.000000e+00> : vector<256x448xf32>
    %36 = tpu.matmul %33, %35, %cst_28 {dimension_numbers = #tpu.dot_dimension_numbers<[1], [0], [0], [1], [0, 0, 1, 1], [], []>} : vector<256x256xbf16>, vector<256x448xbf16>, vector<256x448xf32> -> vector<256x448xf32>
    %37 = vector.extract_strided_slice %32 {offsets = [1, 0], sizes = [256, 256], strides = [1, 1]} : vector<258x256xbf16> to vector<256x256xbf16>
    %c1_29 = arith.constant 1 : index
    %c0_30 = arith.constant 0 : index
    %c0_31 = arith.constant 0 : index
    %38 = vector.load %arg8[%c1_29, %c0_30, %c0_31] : memref<3x256x448xbf16, #tpu.memory_space<vmem>>, vector<1x256x448xbf16>
    %39 = vector.shape_cast %38 : vector<1x256x448xbf16> to vector<256x448xbf16>
    %cst_32 = arith.constant dense<0.000000e+00> : vector<256x448xf32>
    %40 = tpu.matmul %37, %39, %cst_32 {dimension_numbers = #tpu.dot_dimension_numbers<[1], [0], [0], [1], [0, 0, 1, 1], [], []>} : vector<256x256xbf16>, vector<256x448xbf16>, vector<256x448xf32> -> vector<256x448xf32>
    %41 = arith.addf %36, %40 : vector<256x448xf32>
    %42 = vector.extract_strided_slice %32 {offsets = [2, 0], sizes = [256, 256], strides = [1, 1]} : vector<258x256xbf16> to vector<256x256xbf16>
    %c2_33 = arith.constant 2 : index
    %c0_34 = arith.constant 0 : index
    %c0_35 = arith.constant 0 : index
    %43 = vector.load %arg8[%c2_33, %c0_34, %c0_35] : memref<3x256x448xbf16, #tpu.memory_space<vmem>>, vector<1x256x448xbf16>
    %44 = vector.shape_cast %43 : vector<1x256x448xbf16> to vector<256x448xbf16>
    %cst_36 = arith.constant dense<0.000000e+00> : vector<256x448xf32>
    %45 = tpu.matmul %42, %44, %cst_36 {dimension_numbers = #tpu.dot_dimension_numbers<[1], [0], [0], [1], [0, 0, 1, 1], [], []>} : vector<256x256xbf16>, vector<256x448xbf16>, vector<256x448xf32> -> vector<256x448xf32>
    %46 = arith.addf %41, %45 : vector<256x448xf32>
    %c0_37 = arith.constant 0 : index
    %c0_38 = arith.constant 0 : index
    %47 = vector.load %arg9[%c0_37, %c0_38] : memref<1x448xf32, #tpu.memory_space<vmem>>, vector<1x448xf32>
    %48 = vector.broadcast %47 : vector<1x448xf32> to vector<256x448xf32>
    %49 = arith.addf %46, %48 : vector<256x448xf32>
    %cst_39 = arith.constant 0.000000e+00 : f32
    %50 = vector.broadcast %cst_39 : f32 to vector<256x448xf32>
    %51 = arith.maximumf %49, %50 : vector<256x448xf32>
    %52 = arith.truncf %51 : vector<256x448xf32> to vector<256x448xbf16>
    %c0_40 = arith.constant 0 : index
    %c0_41 = arith.constant 0 : index
    %53 = vector.load %arg10[%c0_40, %c0_41] : memref<112x256xbf16, #tpu.memory_space<vmem>>, vector<112x256xbf16>
    %cst_42 = arith.constant dense<0.000000e+00> : vector<112x448xf32>
    %54 = tpu.matmul %53, %52, %cst_42 {dimension_numbers = #tpu.dot_dimension_numbers<[1], [0], [0], [1], [0, 0, 1, 1], [], []>} : vector<112x256xbf16>, vector<256x448xbf16>, vector<112x448xf32> -> vector<112x448xf32>
    %c0_43 = arith.constant 0 : index
    %c0_44 = arith.constant 0 : index
    %55 = vector.load %arg11[%c0_43, %c0_44] : memref<112x256xbf16, #tpu.memory_space<vmem>>, vector<112x256xbf16>
    %cst_45 = arith.constant dense<0.000000e+00> : vector<112x448xf32>
    %56 = tpu.matmul %55, %52, %cst_45 {dimension_numbers = #tpu.dot_dimension_numbers<[1], [0], [0], [1], [0, 0, 1, 1], [], []>} : vector<112x256xbf16>, vector<256x448xbf16>, vector<112x448xf32> -> vector<112x448xf32>
    %57 = arith.maximumf %54, %56 : vector<112x448xf32>
    %58 = arith.truncf %57 : vector<112x448xf32> to vector<112x448xbf16>
    %c0_46 = arith.constant 0 : index
    %c0_47 = arith.constant 0 : index
    %59 = vector.load %arg12[%c0_46, %c0_47] : memref<448x224xbf16, #tpu.memory_space<vmem>>, vector<448x224xbf16>
    %cst_48 = arith.constant dense<0.000000e+00> : vector<112x224xf32>
    %60 = tpu.matmul %58, %59, %cst_48 {dimension_numbers = #tpu.dot_dimension_numbers<[1], [0], [0], [1], [0, 0, 1, 1], [], []>} : vector<112x448xbf16>, vector<448x224xbf16>, vector<112x224xf32> -> vector<112x224xf32>
    %c0_49 = arith.constant 0 : index
    %c0_50 = arith.constant 0 : index
    %61 = vector.load %arg13[%c0_49, %c0_50] : memref<448x224xbf16, #tpu.memory_space<vmem>>, vector<448x224xbf16>
    %cst_51 = arith.constant dense<0.000000e+00> : vector<112x224xf32>
    %62 = tpu.matmul %58, %61, %cst_51 {dimension_numbers = #tpu.dot_dimension_numbers<[1], [0], [0], [1], [0, 0, 1, 1], [], []>} : vector<112x448xbf16>, vector<448x224xbf16>, vector<112x224xf32> -> vector<112x224xf32>
    %63 = arith.maximumf %60, %62 : vector<112x224xf32>
    %c0_52 = arith.constant 0 : index
    %c0_53 = arith.constant 0 : index
    %64 = vector.load %arg14[%c0_52, %c0_53] : memref<112x224xf32, #tpu.memory_space<vmem>>, vector<112x224xf32>
    tpu.vector_store %arg14[%c0_52, %c0_53], %63 {strides = array<i32>} : memref<112x224xf32, #tpu.memory_space<vmem>>, vector<112x224xf32>,
    return
  }
  func.func @transform_0(%arg0: i32) -> (i32, i32) {
    %c0_i32 = arith.constant 0 : i32
    %c0_i32_0 = arith.constant 0 : i32
    return %arg0, %c0_i32 : i32, i32
  }
  func.func @transform_1(%arg0: i32) -> (i32, i32, i32) {
    %c0_i32 = arith.constant 0 : i32
    %c0_i32_0 = arith.constant 0 : i32
    %c0_i32_1 = arith.constant 0 : i32
    %c0_i32_2 = arith.constant 0 : i32
    return %c0_i32, %c0_i32_0, %c0_i32_1 : i32, i32, i32
  }
  func.func @transform_2(%arg0: i32) -> (i32, i32) {
    %c0_i32 = arith.constant 0 : i32
    %c0_i32_0 = arith.constant 0 : i32
    %c0_i32_1 = arith.constant 0 : i32
    return %c0_i32, %c0_i32_0 : i32, i32
  }
  func.func @transform_3(%arg0: i32) -> (i32, i32) {
    %c0_i32 = arith.constant 0 : i32
    %c0_i32_0 = arith.constant 0 : i32
    %c0_i32_1 = arith.constant 0 : i32
    return %c0_i32, %c0_i32_0 : i32, i32
  }
  func.func @transform_4(%arg0: i32) -> (i32, i32) {
    %c0_i32 = arith.constant 0 : i32
    %c0_i32_0 = arith.constant 0 : i32
    %c0_i32_1 = arith.constant 0 : i32
    return %c0_i32, %c0_i32_0 : i32, i32
  }
  func.func @transform_5(%arg0: i32) -> (i32, i32) {
    %c0_i32 = arith.constant 0 : i32
    %c0_i32_0 = arith.constant 0 : i32
    %c0_i32_1 = arith.constant 0 : i32
    return %c0_i32, %c0_i32_0 : i32, i32
  }
  func.func @transform_6(%arg0: i32) -> (i32, i32) {
    %c0_i32 = arith.constant 0 : i32
    %c0_i32_0 = arith.constant 0 : i32
    %c0_i32_1 = arith.constant 0 : i32
    return %c0_i32, %c0_i32_0 : i32, i32
  }
  func.func @transform_7(%arg0: i32) -> (i32, i32, i32) {
    %c0_i32 = arith.constant 0 : i32
    %c0_i32_0 = arith.constant 0 : i32
    %c0_i32_1 = arith.constant 0 : i32
    %c0_i32_2 = arith.constant 0 : i32
    return %c0_i32, %c0_i32_0, %c0_i32_1 : i32, i32, i32
  }
  func.func @transform_8(%arg0: i32) -> (i32, i32) {
    %c0_i32 = arith.constant 0 : i32
    %c0_i32_0 = arith.constant 0 : i32
    %c0_i32_1 = arith.constant 0 : i32
    return %c0_i32, %c0_i32_0 : i32, i32
  }
  func.func @transform_9(%arg0: i32) -> (i32, i32) {
    %c0_i32 = arith.constant 0 : i32
    %c0_i32_0 = arith.constant 0 : i32
    %c0_i32_1 = arith.constant 0 : i32
    return %c0_i32, %c0_i32_0 : i32, i32
  }
  func.func @transform_10(%arg0: i32) -> (i32, i32) {
    %c0_i32 = arith.constant 0 : i32
    %c0_i32_0 = arith.constant 0 : i32
    %c0_i32_1 = arith.constant 0 : i32
    return %c0_i32, %c0_i32_0 : i32, i32
  }
  func.func @transform_11(%arg0: i32) -> (i32, i32) {
    %c0_i32 = arith.constant 0 : i32
    %c0_i32_0 = arith.constant 0 : i32
    %c0_i32_1 = arith.constant 0 : i32
    return %c0_i32, %c0_i32_0 : i32, i32
  }
  func.func @transform_12(%arg0: i32) -> (i32, i32) {
    %c0_i32 = arith.constant 0 : i32
    %c0_i32_0 = arith.constant 0 : i32
    %c0_i32_1 = arith.constant 0 : i32
    return %c0_i32, %c0_i32_0 : i32, i32
  }
  func.func @transform_13(%arg0: i32) -> (i32, i32) {
    %c0_i32 = arith.constant 0 : i32
    %c0_i32_0 = arith.constant 0 : i32
    return %arg0, %c0_i32 : i32, i32
  }
}

module attributes {stable_mosaic.version = 11 : i64} {
  func.func @_fc_kernel(%arg0: i32, %arg1: memref<32x1568xf32, #tpu.memory_space<vmem>>, %arg2: memref<1568x128xbf16, #tpu.memory_space<vmem>>, %arg3: memref<1x128xf32, #tpu.memory_space<vmem>>, %arg4: memref<128x10xbf16, #tpu.memory_space<vmem>>, %arg5: memref<1x10xf32, #tpu.memory_space<vmem>>, %arg6: memref<32x10xf32, #tpu.memory_space<vmem>>) attributes {dimension_semantics = [#tpu.dimension_semantics<parallel>], iteration_bounds = array<i64: 1>, scalar_prefetch = 0 : i64, scratch_operands = 0 : i64, tpu.core_type = #tpu.core_type<tc>, window_params = [{transform_indices = @transform_0, window_bounds = array<i64: 32, 1568>}, {pipeline_mode = #tpu.pipeline_mode<synchronous>, transform_indices = @transform_1, window_bounds = array<i64: 1568, 128>}, {pipeline_mode = #tpu.pipeline_mode<synchronous>, transform_indices = @transform_2, window_bounds = array<i64: 1, 128>}, {pipeline_mode = #tpu.pipeline_mode<synchronous>, transform_indices = @transform_3, window_bounds = array<i64: 128, 10>}, {pipeline_mode = #tpu.pipeline_mode<synchronous>, transform_indices = @transform_4, window_bounds = array<i64: 1, 10>}, {transform_indices = @transform_5, window_bounds = array<i64: 32, 10>}]} {
    %c0 = arith.constant 0 : index
    %c0_0 = arith.constant 0 : index
    %0 = vector.load %arg1[%c0, %c0_0] : memref<32x1568xf32, #tpu.memory_space<vmem>>, vector<32x1568xf32>
    %1 = arith.truncf %0 : vector<32x1568xf32> to vector<32x1568xbf16>
    %c0_1 = arith.constant 0 : index
    %c0_2 = arith.constant 0 : index
    %2 = vector.load %arg2[%c0_1, %c0_2] : memref<1568x128xbf16, #tpu.memory_space<vmem>>, vector<1568x128xbf16>
    %cst = arith.constant dense<0.000000e+00> : vector<32x128xf32>
    %3 = tpu.matmul %1, %2, %cst {dimension_numbers = #tpu.dot_dimension_numbers<[1], [0], [0], [1], [0, 0, 1, 1], [], []>} : vector<32x1568xbf16>, vector<1568x128xbf16>, vector<32x128xf32> -> vector<32x128xf32>
    %c0_3 = arith.constant 0 : index
    %c0_4 = arith.constant 0 : index
    %4 = vector.load %arg3[%c0_3, %c0_4] : memref<1x128xf32, #tpu.memory_space<vmem>>, vector<1x128xf32>
    %5 = vector.broadcast %4 : vector<1x128xf32> to vector<32x128xf32>
    %6 = arith.addf %3, %5 : vector<32x128xf32>
    %cst_5 = arith.constant 0.000000e+00 : f32
    %7 = vector.broadcast %cst_5 : f32 to vector<32x128xf32>
    %8 = arith.maximumf %6, %7 : vector<32x128xf32>
    %9 = arith.truncf %8 : vector<32x128xf32> to vector<32x128xbf16>
    %c0_6 = arith.constant 0 : index
    %c0_7 = arith.constant 0 : index
    %10 = vector.load %arg4[%c0_6, %c0_7] : memref<128x10xbf16, #tpu.memory_space<vmem>>, vector<128x10xbf16>
    %cst_8 = arith.constant dense<0.000000e+00> : vector<32x10xf32>
    %11 = tpu.matmul %9, %10, %cst_8 {dimension_numbers = #tpu.dot_dimension_numbers<[1], [0], [0], [1], [0, 0, 1, 1], [], []>} : vector<32x128xbf16>, vector<128x10xbf16>, vector<32x10xf32> -> vector<32x10xf32>
    %c0_9 = arith.constant 0 : index
    %c0_10 = arith.constant 0 : index
    %12 = vector.load %arg5[%c0_9, %c0_10] : memref<1x10xf32, #tpu.memory_space<vmem>>, vector<1x10xf32>
    %13 = vector.broadcast %12 : vector<1x10xf32> to vector<32x10xf32>
    %14 = arith.addf %11, %13 : vector<32x10xf32>
    %c0_11 = arith.constant 0 : index
    %c0_12 = arith.constant 0 : index
    %15 = vector.load %arg6[%c0_11, %c0_12] : memref<32x10xf32, #tpu.memory_space<vmem>>, vector<32x10xf32>
    tpu.vector_store %arg6[%c0_11, %c0_12], %14 {strides = array<i32>} : memref<32x10xf32, #tpu.memory_space<vmem>>, vector<32x10xf32>,
    return
  }
  func.func @transform_0(%arg0: i32) -> (i32, i32) {
    %c0_i32 = arith.constant 0 : i32
    %c0_i32_0 = arith.constant 0 : i32
    return %arg0, %c0_i32 : i32, i32
  }
  func.func @transform_1(%arg0: i32) -> (i32, i32) {
    %c0_i32 = arith.constant 0 : i32
    %c0_i32_0 = arith.constant 0 : i32
    %c0_i32_1 = arith.constant 0 : i32
    return %c0_i32, %c0_i32_0 : i32, i32
  }
  func.func @transform_2(%arg0: i32) -> (i32, i32) {
    %c0_i32 = arith.constant 0 : i32
    %c0_i32_0 = arith.constant 0 : i32
    %c0_i32_1 = arith.constant 0 : i32
    return %c0_i32, %c0_i32_0 : i32, i32
  }
  func.func @transform_3(%arg0: i32) -> (i32, i32) {
    %c0_i32 = arith.constant 0 : i32
    %c0_i32_0 = arith.constant 0 : i32
    %c0_i32_1 = arith.constant 0 : i32
    return %c0_i32, %c0_i32_0 : i32, i32
  }
  func.func @transform_4(%arg0: i32) -> (i32, i32) {
    %c0_i32 = arith.constant 0 : i32
    %c0_i32_0 = arith.constant 0 : i32
    %c0_i32_1 = arith.constant 0 : i32
    return %c0_i32, %c0_i32_0 : i32, i32
  }
  func.func @transform_5(%arg0: i32) -> (i32, i32) {
    %c0_i32 = arith.constant 0 : i32
    %c0_i32_0 = arith.constant 0 : i32
    return %arg0, %c0_i32 : i32, i32
  }
}

</mosaic_0001>

<bundles_post_ra>
// kernel: cnn_forward.3
= control target key start
LH: loop header
LB: loop body
LE: loop exit
PB: predicated region body
PF: predicated region fallthrough
CT: control target
= control target key end

     0   :  { %vm890_vm0 = vcmask 261120   ;;  %vm1366_vm1 = vcmask 80896   ;;  %s2323_s1 = inlined_call_operand.vmem [shape: bf16[1568,128], index: 1, kind: input, shape index: {}]   ;;  %s2324_s0 = inlined_call_operand.vmem [shape: f32[32,1568], index: 0, kind: input, shape index: {}]   ;;  %s2325_s3 = inlined_call_operand.vmem [shape: bf16[128,10], index: 3, kind: input, shape index: {}]   ;;  %s2326_s2 = inlined_call_operand.vmem [shape: f32[1,128], index: 2, kind: input, shape index: {}]   ;;  %s2327_s4 = inlined_call_operand.vmem [shape: f32[1,10], index: 4, kind: input, shape index: {}]   ;;  %s2328_s5 = inlined_call_operand.vmem [shape: f32[32,10], index: 5, kind: output, shape index: {}]  }
   0x1   :  { %v1695_v0 = vld [vmem:[%s2323_s1 + $0x40] sm:$0xff]   ;;  %v1699_v4 = vld [vmem:[%s2323_s1 + $0x48] sm:$0xff]   ;;  %v1703_v8 = vld [vmem:[%s2323_s1 + $0x50] sm:$0xff]  }
   0x2   :  { %v1696_v1 = vld [vmem:[%s2323_s1] sm:$0xff]   ;;  %1485 = vmatprep.subr.bf16.mxu0 %v1695_v0  ;;  %v1700_v5 = vld [vmem:[%s2323_s1 + $0x8] sm:$0xff]   ;;  %v1704_v9 = vld [vmem:[%s2323_s1 + $0x10] sm:$0xff]  }
   0x3   :  { %v1697_v2 = vld [vmem:[%s2323_s1 + $0xc0] sm:$0xff]   ;;  %1486 = vmatpush3.bf16.msra.mxu0 %v1696_v1  ;;  %v1701_v6 = vld [vmem:[%s2323_s1 + $0xc8] sm:$0xff]   ;;  %v1705_v10 = vld [vmem:[%s2323_s1 + $0xd0] sm:$0xff]  }
   0x4   :  { %v1698_v3 = vld [vmem:[%s2323_s1 + $0x80] sm:$0xff]   ;;  %1513 = vmatprep.subr.bf16.mxu1 %v1697_v2  ;;  %1487 = vmatprep.subr.bf16.mxu0 %v1699_v4  ;;  %v1702_v7 = vld [vmem:[%s2323_s1 + $0x88] sm:$0xff]   ;;  %v1706_v11 = vld [vmem:[%s2323_s1 + $0x90] sm:$0xff]  }
   0x5   :  { %1514 = vmatpush3.bf16.msra.mxu1 %v1698_v3  ;;  %v1707_v12 = vld [vmem:[%s2323_s1 + $0x58] sm:$0xff]   ;;  %v1711_v16 = vld [vmem:[%s2323_s1 + $0x60] sm:$0xff]   ;;  %v1715_v20 = vld [vmem:[%s2323_s1 + $0x68] sm:$0xff]  }
   0x6   :  { %1515 = vmatprep.subr.bf16.mxu1 %v1701_v6  ;;  %v1708_v13 = vld [vmem:[%s2323_s1 + $0x18] sm:$0xff]   ;;  %v1712_v17 = vld [vmem:[%s2323_s1 + $0x20] sm:$0xff]   ;;  %v1716_v21 = vld [vmem:[%s2323_s1 + $0x28] sm:$0xff]  }
   0x7   :  { %1488 = vmatpush3.bf16.msra.mxu0 %v1700_v5  ;;  %v1709_v14 = vld [vmem:[%s2323_s1 + $0xd8] sm:$0xff]   ;;  %v1713_v18 = vld [vmem:[%s2323_s1 + $0xe0] sm:$0xff]   ;;  %v1717_v22 = vld [vmem:[%s2323_s1 + $0xe8] sm:$0xff]  }
   0x8   :  { %1489 = vmatprep.subr.bf16.mxu0 %v1703_v8  ;;  %v1710_v15 = vld [vmem:[%s2323_s1 + $0x98] sm:$0xff]   ;;  %v1714_v19 = vld [vmem:[%s2323_s1 + $0xa0] sm:$0xff]   ;;  %v1718_v23 = vld [vmem:[%s2323_s1 + $0xa8] sm:$0xff]  }
   0x9   :  { %1516 = vmatpush3.bf16.msra.mxu1 %v1702_v7  ;;  %v1719_v24 = vld [vmem:[%s2323_s1 + $0x70] sm:$0xff]   ;;  %v1723_v28 = vld [vmem:[%s2323_s1 + $0x78] sm:$0xff]   ;;  %v22_v31 = vld [vmem:[%s2324_s0 + $0x8] sm:$0xff] }
   0xa   :  { %1517 = vmatprep.subr.bf16.mxu1 %v1705_v10  ;;  %v1720_v25 = vld [vmem:[%s2323_s1 + $0x30] sm:$0xff]   ;;  %v1724_v29 = vld [vmem:[%s2323_s1 + $0x38] sm:$0xff]   ;;  %v21_v35 = vld [vmem:[%s2324_s0] sm:$0xff] }
   0xb   :  { %1490 = vmatpush3.bf16.msra.mxu0 %v1704_v9  ;;  %v1721_v26 = vld [vmem:[%s2323_s1 + $0xf0] sm:$0xff]   ;;  %v1725_v30 = vld [vmem:[%s2323_s1 + $0xf8] sm:$0xff]   ;;  %v34_v36 = vld [vmem:[%s2324_s0 + $0x68] sm:$0xff] }
   0xc   :  { %1491 = vmatprep.subr.bf16.mxu0 %v1707_v12  ;;  %v1722_v27 = vld [vmem:[%s2323_s1 + $0xb0] sm:$0xff]   ;;  %v1726_v34 = vld [vmem:[%s2323_s1 + $0xb8] sm:$0xff]   ;;  %v73_v37 = vpack.c.bf16 %v34_v36, %v21_v35  ;;  %v1727_v38 = vld [vmem:[%s2323_s1 + $0x140] sm:$0xff]  }
   0xd   :  { %1518 = vmatpush3.bf16.msra.mxu1 %v1706_v11  ;;  %v35_v32 = vld [vmem:[%s2324_s0 + $0x70] sm:$0xff]  ;;  %v24_v39 = vld [vmem:[%s2324_s0 + $0x18] sm:$0xff]  ;;  %v37_v40 = vld [vmem:[%s2324_s0 + $0x80] sm:$0xff] }
   0xe   :  { %1519 = vmatprep.subr.bf16.mxu1 %v1709_v14  ;;  %v74_v33 = vpack.c.bf16 %v35_v32, %v22_v31  ;;  %v76_v41 = vpack.c.bf16 %v37_v40, %v24_v39  ;;  %v1728_v42 = vld [vmem:[%s2323_s1 + $0x100] sm:$0xff]   ;;  %v23_v43 = vld [vmem:[%s2324_s0 + $0x10] sm:$0xff]  ;;  %v36_v44 = vld [vmem:[%s2324_s0 + $0x78] sm:$0xff] }
   0xf   :  { %1492 = vmatpush3.bf16.msra.mxu0 %v1708_v13  ;;  %v75_v45 = vpack.c.bf16 %v36_v44, %v23_v43  ;;  %v1729_v46 = vld [vmem:[%s2323_s1 + $0x1c0] sm:$0xff]   ;;  %v1731_v48 = vld [vmem:[%s2323_s1 + $0x148] sm:$0xff]   ;;  %v1735_v52 = vld [vmem:[%s2323_s1 + $0x150] sm:$0xff]  }
  0x10   :  { %1493 = vmatprep.subr.bf16.mxu0 %v1711_v16  ;;  %929 = vmatprep.mubr.bf16.mxu0 %v74_v33  ;;  %v1730_v47 = vld [vmem:[%s2323_s1 + $0x180] sm:$0xff]   ;;  %v1732_v49 = vld [vmem:[%s2323_s1 + $0x108] sm:$0xff]   ;;  %v1736_v53 = vld [vmem:[%s2323_s1 + $0x110] sm:$0xff]  }
  0x11   :  { %1520 = vmatpush3.bf16.msra.mxu1 %v1710_v15  ;;  %978 = vmatprep.mubr.bf16.mxu1 %v76_v41  ;;  %v1733_v50 = vld [vmem:[%s2323_s1 + $0x1c8] sm:$0xff]   ;;  %v1737_v54 = vld [vmem:[%s2323_s1 + $0x1d0] sm:$0xff]   ;;  %v1739_v56 = vld [vmem:[%s2323_s1 + $0x158] sm:$0xff]  }
  0x12   :  { %1521 = vmatprep.subr.bf16.mxu1 %v1713_v18  ;;  %v1734_v51 = vld [vmem:[%s2323_s1 + $0x188] sm:$0xff]   ;;  %v1738_v55 = vld [vmem:[%s2323_s1 + $0x190] sm:$0xff]   ;;  %v1740_v57 = vld [vmem:[%s2323_s1 + $0x118] sm:$0xff]  }
  0x13   :  { %1494 = vmatpush3.bf16.msra.mxu0 %v1712_v17  ;;  %v1741_v58 = vld [vmem:[%s2323_s1 + $0x1d8] sm:$0xff]   ;;  %v1743_v60 = vld [vmem:[%s2323_s1 + $0x160] sm:$0xff]   ;;  %v1747_v0 = vld [vmem:[%s2323_s1 + $0x168] sm:$0xff]  }
  0x14   :  { %1495 = vmatprep.subr.bf16.mxu0 %v1715_v20  ;;  %v1742_v59 = vld [vmem:[%s2323_s1 + $0x198] sm:$0xff]   ;;  %v1744_v61 = vld [vmem:[%s2323_s1 + $0x120] sm:$0xff]   ;;  %v1748_v4 = vld [vmem:[%s2323_s1 + $0x128] sm:$0xff]  }
  0x15   :  { %1522 = vmatpush3.bf16.msra.mxu1 %v1714_v19  ;;  %v1745_v62 = vld [vmem:[%s2323_s1 + $0x1e0] sm:$0xff]   ;;  %v48_v1 = vld [vmem:[%s2324_s0 + $0xd8] sm:$0xff]  ;;  %v47_v5 = vld [vmem:[%s2324_s0 + $0xd0] sm:$0xff] }
  0x16   :  { %1523 = vmatprep.subr.bf16.mxu1 %v1717_v22  ;;  %v1746_v63 = vld [vmem:[%s2323_s1 + $0x1a0] sm:$0xff]   ;;  %v60_v6 = vld [vmem:[%s2324_s0 + $0x138] sm:$0xff]  ;;  %v1749_v8 = vld [vmem:[%s2323_s1 + $0x1e8] sm:$0xff]  }
  0x17   :  { %1496 = vmatpush3.bf16.msra.mxu0 %v1716_v21  ;;  %v61_v2 = vld [vmem:[%s2324_s0 + $0x140] sm:$0xff]  ;;  %v86_v7 = vpack.c.bf16 %v60_v6, %v47_v5  ;;  %v50_v9 = vld [vmem:[%s2324_s0 + $0xe8] sm:$0xff]  ;;  %v63_v10 = vld [vmem:[%s2324_s0 + $0x150] sm:$0xff] }
  0x18   :  { %1497 = vmatprep.subr.bf16.mxu0 %v1719_v24  ;;  %v87_v3 = vpack.c.bf16 %v61_v2, %v48_v1  ;;  %v89_v11 = vpack.c.bf16 %v63_v10, %v50_v9  ;;  %v1750_v12 = vld [vmem:[%s2323_s1 + $0x1a8] sm:$0xff]   ;;  %v49_v13 = vld [vmem:[%s2324_s0 + $0xe0] sm:$0xff]  ;;  %v1751_v16 = vld [vmem:[%s2323_s1 + $0x170] sm:$0xff]  }
  0x19   :  { %1524 = vmatpush3.bf16.msra.mxu1 %v1718_v23  ;;  %v62_v14 = vld [vmem:[%s2324_s0 + $0x148] sm:$0xff]  ;;  %v1752_v17 = vld [vmem:[%s2323_s1 + $0x130] sm:$0xff]   ;;  %v1755_v20 = vld [vmem:[%s2323_s1 + $0x178] sm:$0xff]  }
  0x1a   :  { %1525 = vmatprep.subr.bf16.mxu1 %v1721_v26  ;;  %v88_v15 = vpack.c.bf16 %v62_v14, %v49_v13  ;;  %v1753_v18 = vld [vmem:[%s2323_s1 + $0x1f0] sm:$0xff]   ;;  %v1756_v21 = vld [vmem:[%s2323_s1 + $0x138] sm:$0xff]   ;;  %v26_v23 = vld [vmem:[%s2324_s0 + $0x28] sm:$0xff] }
  0x1b   :  { %1498 = vmatpush3.bf16.msra.mxu0 %v1720_v25  ;;  %v1754_v19 = vld [vmem:[%s2323_s1 + $0x1b0] sm:$0xff]   ;;  %v1757_v22 = vld [vmem:[%s2323_s1 + $0x1f8] sm:$0xff]   ;;  %v41_v32 = vld [vmem:[%s2324_s0 + $0xa0] sm:$0xff] }
  0x1c   :  { %1499 = vmatprep.subr.bf16.mxu0 %v1723_v28  ;;  %v39_v24 = vld [vmem:[%s2324_s0 + $0x90] sm:$0xff]  ;;  %v1758_v26 = vld [vmem:[%s2323_s1 + $0x1b8] sm:$0xff]   ;;  %v38_v28 = vld [vmem:[%s2324_s0 + $0x88] sm:$0xff] }
  0x1d   :  { %1526 = vmatpush3.bf16.msra.mxu1 %v1722_v27  ;;  %v78_v25 = vpack.c.bf16 %v39_v24, %v26_v23  ;;  %v25_v27 = vld [vmem:[%s2324_s0 + $0x20] sm:$0xff]  ;;  %v28_v31 = vld [vmem:[%s2324_s0 + $0x38] sm:$0xff]  ;;  %v27_v35 = vld [vmem:[%s2324_s0 + $0x30] sm:$0xff] }
  0x1e   :  { %1527 = vmatprep.subr.bf16.mxu1 %v1725_v30  ;;  %v1759_v30 = vld [vmem:[%s2323_s1 + $0x240] sm:$0xff]   ;;  %v80_v33 = vpack.c.bf16 %v41_v32, %v28_v31  ;;  %v40_v36 = vld [vmem:[%s2324_s0 + $0x98] sm:$0xff]  ;;  %v1763_v40 = vld [vmem:[%s2323_s1 + $0x248] sm:$0xff]  }
  0x1f   :  { %1500 = vmatpush3.bf16.msra.mxu0 %v1724_v29  ;;  %v77_v29 = vpack.c.bf16 %v38_v28, %v25_v27  ;;  %v1762_v39 = vld [vmem:[%s2323_s1 + $0x280] sm:$0xff]   ;;  %v1764_v41 = vld [vmem:[%s2323_s1 + $0x208] sm:$0xff]   ;;  %v52_v43 = vld [vmem:[%s2324_s0 + $0xf8] sm:$0xff] }
  0x20   :  { %1541 = vmatprep.subr.bf16.mxu0 %v1727_v38  ;;  %v1761_v38 = vld [vmem:[%s2323_s1 + $0x2c0] sm:$0xff]   ;;  %v1780_v5 = vld [vmem:[%s2323_s1 + $0x228] sm:$0xff]   ;;  %v1784_v9 = vld [vmem:[%s2323_s1 + $0x230] sm:$0xff]  }
  0x21   :  { %1528 = vmatpush3.bf16.msra.mxu1 %v1726_v34  ;;  %v1760_v34 = vld [vmem:[%s2323_s1 + $0x200] sm:$0xff]   ;;  %v1781_v6 = vld [vmem:[%s2323_s1 + $0x2e8] sm:$0xff]   ;;  %v1785_v10 = vld [vmem:[%s2323_s1 + $0x2f0] sm:$0xff]  }
  0x22   :  { %930 = vmatmul.mubr.bf16.vlgmr.msra.gmra.mrb[0].mxu0 %v73_v37  ;;  %1569 = vmatprep.subr.bf16.mxu1 %v1729_v46  ;;  %v79_v37 = vpack.c.bf16 %v40_v36, %v27_v35  ;;  %v65_v44 = vld [vmem:[%s2324_s0 + $0x160] sm:$0xff]  ;;  %v1766_v46 = vld [vmem:[%s2323_s1 + $0x288] sm:$0xff]   ;;  %v1788_v13 = vld [vmem:[%s2323_s1 + $0x238] sm:$0xff]  }
  0x23   :  { %1542 = vmatpush3.bf16.msra.mxu0 %v1728_v42  ;;  %937 = vmatprep.mubr.bf16.mxu0 %v87_v3  ;;  %v1765_v42 = vld [vmem:[%s2323_s1 + $0x2c8] sm:$0xff]   ;;  %v1776_v1 = vld [vmem:[%s2323_s1 + $0x220] sm:$0xff]   ;;  %v1789_v14 = vld [vmem:[%s2323_s1 + $0x2f8] sm:$0xff]  }
  0x24   :  { %979 = vmatmul.mubr.bf16.vlgmr.msra.gmra.mrb[0].mxu1 %v75_v45  ;;  %1543 = vmatprep.subr.bf16.mxu0 %v1731_v48  ;;  %v91_v45 = vpack.c.bf16 %v65_v44, %v52_v43  ;;  %v64_v48 = vld [vmem:[%s2324_s0 + $0x158] sm:$0xff]  ;;  %v1777_v2 = vld [vmem:[%s2323_s1 + $0x2e0] sm:$0xff]   ;;  %v55_v32 = vld [vmem:[%s2324_s0 + $0x110] sm:$0xff] }
  0x25   :  { %1570 = vmatpush3.bf16.msra.mxu1 %v1730_v47  ;;  %986 = vmatprep.mubr.bf16.mxu1 %v89_v11  ;;  %v51_v47 = vld [vmem:[%s2324_s0 + $0xf0] sm:$0xff]  ;;  %v1778_v3 = vld [vmem:[%s2323_s1 + $0x2a0] sm:$0xff]   ;;  %v32_v23 = vld [vmem:[%s2324_s0 + $0x58] sm:$0xff] }
  0x26   :  { %1571 = vmatprep.subr.bf16.mxu1 %v1733_v50  ;;  %v1767_v50 = vld [vmem:[%s2323_s1 + $0x250] sm:$0xff]   ;;  %v45_v24 = vld [vmem:[%s2324_s0 + $0xc0] sm:$0xff]  ;;  %v44_v27 = vld [vmem:[%s2324_s0 + $0xb8] sm:$0xff] }
  0x27   :  { %1544 = vmatpush3.bf16.msra.mxu0 %v1732_v49  ;;  %v90_v49 = vpack.c.bf16 %v64_v48, %v51_v47  ;;  %v1786_v11 = vld [vmem:[%s2323_s1 + $0x2b0] sm:$0xff]   ;;  %v56_v28 = vld [vmem:[%s2324_s0 + $0x118] sm:$0xff]  ;;  %v58_v35 = vld [vmem:[%s2324_s0 + $0x128] sm:$0xff] }
  0x28   :  { %1545 = vmatprep.subr.bf16.mxu0 %v1735_v52  ;;  %v67_v52 = vld [vmem:[%s2324_s0 + $0x170] sm:$0xff]  ;;  %v1793_v48 = vld [vmem:[%s2325_s3] sm:$0xff]  }
  0x29   :  { %1572 = vmatpush3.bf16.msra.mxu1 %v1734_v51  ;;  %v54_v51 = vld [vmem:[%s2324_s0 + $0x108] sm:$0xff]  ;;  %v71_v36 = vld [vmem:[%s2324_s0 + $0x190] sm:$0xff] }
  0x2a   :  { %1573 = vmatprep.subr.bf16.mxu1 %v1737_v54  ;;  %938 = vmatmul.mubr.bf16.gmra.mrb[4].mxu0 %v86_v7  ;;  %v1768_v54 = vld [vmem:[%s2323_s1 + $0x210] sm:$0xff]   ;;  %v1782_v7 = vld [vmem:[%s2323_s1 + $0x2a8] sm:$0xff]  }
  0x2b   :  { %1546 = vmatpush3.bf16.msra.mxu0 %v1736_v53  ;;  %1027 = vmatprep.mubr.bf16.mxu0 %v78_v25  ;;  %v93_v53 = vpack.c.bf16 %v67_v52, %v54_v51  ;;  %v31_v25 = vld [vmem:[%s2324_s0 + $0x50] sm:$0xff]  ;;  %v1796_v51 = vld [vmem:[%s2325_s3 + $0x18] sm:$0xff]   ;;  %v1797_v52 = vld [vmem:[%s2325_s3 + $0x20] sm:$0xff]  }
  0x2c   :  { %1547 = vmatprep.subr.bf16.mxu0 %v1739_v56  ;;  %987 = vmatmul.mubr.bf16.gmra.mrb[4].mxu1 %v88_v15  ;;  %v66_v56 = vld [vmem:[%s2324_s0 + $0x168] sm:$0xff] }
  0x2d   :  { %1574 = vmatpush3.bf16.msra.mxu1 %v1738_v55  ;;  %1076 = vmatprep.mubr.bf16.mxu1 %v80_v33  ;;  %v53_v55 = vld [vmem:[%s2324_s0 + $0x100] sm:$0xff]  ;;  %v30_v15 = vld [vmem:[%s2324_s0 + $0x48] sm:$0xff]  ;;  %v68_v33 = vld [vmem:[%s2324_s0 + $0x178] sm:$0xff] }
  0x2e   :  { %1575 = vmatprep.subr.bf16.mxu1 %v1741_v58  ;;  %v1769_v58 = vld [vmem:[%s2323_s1 + $0x2d0] sm:$0xff]  }
  0x2f   :  { %1548 = vmatpush3.bf16.msra.mxu0 %v1740_v57  ;;  %v92_v57 = vpack.c.bf16 %v66_v56, %v53_v55  ;;  %v1800_v55 = vld [vmem:[%s2325_s3 + $0x38] sm:$0xff]  }
  0x30   :  { %1549 = vmatprep.subr.bf16.mxu0 %v1743_v60  ;;  %v1771_v60 = vld [vmem:[%s2323_s1 + $0x258] sm:$0xff]  }
  0x31   :  { %1576 = vmatpush3.bf16.msra.mxu1 %v1742_v59  ;;  %v1770_v59 = vld [vmem:[%s2323_s1 + $0x290] sm:$0xff]  }
  0x32   :  { %1577 = vmatprep.subr.bf16.mxu1 %v1745_v62  ;;  %v1773_v62 = vld [vmem:[%s2323_s1 + $0x2d8] sm:$0xff]  }
  0x33   :  { %1550 = vmatpush3.bf16.msra.mxu0 %v1744_v61  ;;  %v1772_v61 = vld [vmem:[%s2323_s1 + $0x218] sm:$0xff]  }
  0x34   :  { %1551 = vmatprep.subr.bf16.mxu0 %v1747_v0  ;;  %v1775_v0 = vld [vmem:[%s2323_s1 + $0x260] sm:$0xff]  }
  0x35   :  { %1578 = vmatpush3.bf16.msra.mxu1 %v1746_v63  ;;  %v1774_v63 = vld [vmem:[%s2323_s1 + $0x298] sm:$0xff]  }
  0x36   :  { %1579 = vmatprep.subr.bf16.mxu1 %v1749_v8  ;;  %v1783_v8 = vld [vmem:[%s2323_s1 + $0x270] sm:$0xff]  }
  0x37   :  { %1552 = vmatpush3.bf16.msra.mxu0 %v1748_v4  ;;  %v1779_v4 = vld [vmem:[%s2323_s1 + $0x268] sm:$0xff]  }
  0x38   :  { %1553 = vmatprep.subr.bf16.mxu0 %v1751_v16  ;;  %v43_v16 = vld [vmem:[%s2324_s0 + $0xb0] sm:$0xff] }
  0x39   :  { %1580 = vmatpush3.bf16.msra.mxu1 %v1750_v12  ;;  %v1787_v12 = vld [vmem:[%s2323_s1 + $0x278] sm:$0xff]  }
  0x3a   :  { %1581 = vmatprep.subr.bf16.mxu1 %v1753_v18  ;;  %v1790_v18 = vld [vmem:[%s2323_s1 + $0x2b8] sm:$0xff]  }
  0x3b   :  { %1554 = vmatpush3.bf16.msra.mxu0 %v1752_v17  ;;  %v82_v17 = vpack.c.bf16 %v43_v16, %v30_v15 }
  0x3c   :  { %1555 = vmatprep.subr.bf16.mxu0 %v1755_v20  ;;  %v42_v20 = vld [vmem:[%s2324_s0 + $0xa8] sm:$0xff] }
  0x3d   :  { %1582 = vmatpush3.bf16.msra.mxu1 %v1754_v19  ;;  %v29_v19 = vld [vmem:[%s2324_s0 + $0x40] sm:$0xff] }
  0x3e   :  { %1583 = vmatprep.subr.bf16.mxu1 %v1757_v22  ;;  %v1791_v22 = vld [vmem:[%s2323_s1 + $0x300] sm:$0xff]  }
  0x3f   :  { %1556 = vmatpush3.bf16.msra.mxu0 %v1756_v21  ;;  %v81_v21 = vpack.c.bf16 %v42_v20, %v29_v19 }
  0x40   :  { %1597 = vmatprep.subr.bf16.mxu0 %v1759_v30  ;;  %v83_v30 = vpack.c.bf16 %v44_v27, %v31_v25 }
  0x41   :  { %1584 = vmatpush3.bf16.msra.mxu1 %v1758_v26  ;;  %v84_v26 = vpack.c.bf16 %v45_v24, %v32_v23 }
  0x42   :  { %1028 = vmatmul.mubr.bf16.vlgmr.msra.gmra.mrb[8].mxu0 %v77_v29  ;;  %1625 = vmatprep.subr.bf16.mxu1 %v1761_v38  ;;  %v69_v29 = vld [vmem:[%s2324_s0 + $0x180] sm:$0xff]  ;;  %v94_v38 = vpack.c.bf16 %v68_v33, %v55_v32 }
  0x43   :  { %1598 = vmatpush3.bf16.msra.mxu0 %v1760_v34  ;;  %1035 = vmatprep.mubr.bf16.mxu0 %v91_v45  ;;  %v95_v31 = vpack.c.bf16 %v69_v29, %v56_v28  ;;  %v1792_v34 = vld [vmem:[%s2323_s1 + $0x308] sm:$0xff]   ;;  %v59_v45 = vld [vmem:[%s2324_s0 + $0x130] sm:$0xff] }
  0x44   :  { %1077 = vmatmul.mubr.bf16.vlgmr.msra.gmra.mrb[8].mxu1 %v79_v37  ;;  %1599 = vmatprep.subr.bf16.mxu0 %v1763_v40  ;;  %v57_v37 = vld [vmem:[%s2324_s0 + $0x120] sm:$0xff]  ;;  %v70_v40 = vld [vmem:[%s2324_s0 + $0x188] sm:$0xff] }
  0x45   :  { %1626 = vmatpush3.bf16.msra.mxu1 %v1762_v39  ;;  %1084 = vmatprep.mubr.bf16.mxu1 %v93_v53  ;;  %v97_v39 = vpack.c.bf16 %v71_v36, %v58_v35  ;;  %v96_v44 = vpack.c.bf16 %v70_v40, %v57_v37  ;;  %v1798_v53 = vld [vmem:[%s2325_s3 + $0x28] sm:$0xff]  }
  0x46   :  { %1627 = vmatprep.subr.bf16.mxu1 %v1765_v42  ;;  %v46_v42 = vld [vmem:[%s2324_s0 + $0xc8] sm:$0xff] }
  0x47   :  { %1600 = vmatpush3.bf16.msra.mxu0 %v1764_v41  ;;  %v33_v41 = vld [vmem:[%s2324_s0 + $0x60] sm:$0xff] }
  0x48   :  { %1601 = vmatprep.subr.bf16.mxu0 %v1767_v50  ;;  %v85_v43 = vpack.c.bf16 %v46_v42, %v33_v41  ;;  %v1795_v50 = vld [vmem:[%s2325_s3 + $0x10] sm:$0xff]  }
  0x49   :  { %1628 = vmatpush3.bf16.msra.mxu1 %v1766_v46  ;;  %v72_v46 = vld [vmem:[%s2324_s0 + $0x198] sm:$0xff] }
  0x4a   :  { %1036 = vmatmul.mubr.bf16.gmra.mrb[12].mxu0 %v90_v49  ;;  %1629 = vmatprep.subr.bf16.mxu1 %v1769_v58  ;;  %v98_v47 = vpack.c.bf16 %v72_v46, %v59_v45  ;;  %v1794_v49 = vld [vmem:[%s2325_s3 + $0x8] sm:$0xff]  }
  0x4b   :  { %1602 = vmatpush3.bf16.msra.mxu0 %v1768_v54  ;;  %1125 = vmatprep.mubr.bf16.mxu0 %v82_v17  ;;  %v1799_v54 = vld [vmem:[%s2325_s3 + $0x30] sm:$0xff]  }
  0x4c   :  { %1085 = vmatmul.mubr.bf16.gmra.mrb[12].mxu1 %v92_v57  ;;  %1603 = vmatprep.subr.bf16.mxu0 %v1771_v60  ;;  %v1375_v57 = vld [vmem:[%s2326_s2] ss:$0 sm:$0xff] }
  0x4d   :  { %1630 = vmatpush3.bf16.msra.mxu1 %v1770_v59  ;;  %1174 = vmatprep.mubr.bf16.mxu1 %v84_v26 }
  0x4e   :  { %1631 = vmatprep.subr.bf16.mxu1 %v1773_v62 }
  0x4f   :  { %1604 = vmatpush3.bf16.msra.mxu0 %v1772_v61 }
  0x50   :  { %1605 = vmatprep.subr.bf16.mxu0 %v1775_v0 }
  0x51   :  { %1632 = vmatpush3.bf16.msra.mxu1 %v1774_v63 }
  0x52   :  { %1633 = vmatprep.subr.bf16.mxu1 %v1777_v2 }
  0x53   :  { %1606 = vmatpush3.bf16.msra.mxu0 %v1776_v1 }
  0x54   :  { %1607 = vmatprep.subr.bf16.mxu0 %v1779_v4 }
  0x55   :  { %1634 = vmatpush3.bf16.msra.mxu1 %v1778_v3 }
  0x56   :  { %1635 = vmatprep.subr.bf16.mxu1 %v1781_v6 }
  0x57   :  { %1608 = vmatpush3.bf16.msra.mxu0 %v1780_v5 }
  0x58   :  { %1609 = vmatprep.subr.bf16.mxu0 %v1783_v8 }
  0x59   :  { %1636 = vmatpush3.bf16.msra.mxu1 %v1782_v7 }
  0x5a   :  { %1637 = vmatprep.subr.bf16.mxu1 %v1785_v10 }
  0x5b   :  { %1610 = vmatpush3.bf16.msra.mxu0 %v1784_v9 }
  0x5c   :  { %1611 = vmatprep.subr.bf16.mxu0 %v1787_v12 }
  0x5d   :  { %1638 = vmatpush3.bf16.msra.mxu1 %v1786_v11 }
  0x5e   :  { %1639 = vmatprep.subr.bf16.mxu1 %v1789_v14 }
  0x5f   :  { %1612 = vmatpush3.bf16.msra.mxu0 %v1788_v13 }
  0x60   :  { %1667 = vmatprep.subr.bf16.mxu0 %v1791_v22 }
  0x61   :  { %1640 = vmatpush3.bf16.msra.mxu1 %v1790_v18 }
  0x62   :  { %1126 = vmatmul.mubr.bf16.vlgmr.msra.gmra.mrb[16].mxu0 %v81_v21  ;;  %1675 = vmatprep.subr.bf16.mxu1 %v1793_v48 }
  0x63   :  { %1668 = vmatpush3.bf16.msra.mxu0 %v1791_v22  ;;  %1133 = vmatprep.mubr.bf16.mxu0 %v95_v31 }
  0x64   :  { %1175 = vmatmul.mubr.bf16.vlgmr.msra.gmra.mrb[16].mxu1 %v83_v30  ;;  %1669 = vmatprep.subr.bf16.mxu0 %v1792_v34 }
  0x65   :  { %1182 = vmatprep.mubr.bf16.mxu1 %v97_v39  ;;  %1676 = vmatpush3.bf16.msra.mxu1 %v1793_v48 }
  0x66   :  { %1677 = vmatprep.subr.bf16.mxu1 %v1794_v49 }
  0x67   :  { %1670 = vmatpush3.bf16.msra.mxu0 %v1792_v34 }
  0x69   :  { %1678 = vmatpush3.bf16.msra.mxu1 %v1794_v49 }
  0x6a   :  { %1134 = vmatmul.mubr.bf16.gmra.mrb[20].mxu0 %v94_v38  ;;  %1679 = vmatprep.subr.bf16.mxu1 %v1795_v50 }
  0x6b   :  { %1671 = vmatprep.mubr.msk.bf16.mxu0 %vm890_vm0, %v85_v43 }
  0x6c   :  { %1183 = vmatmul.mubr.bf16.gmra.mrb[20].mxu1 %v96_v44 }
  0x6d   :  { %1680 = vmatpush3.bf16.msra.mxu1 %v1795_v50 }
  0x6e   :  { %1681 = vmatprep.subr.bf16.mxu1 %v1796_v51 }
  0x71   :  { %1682 = vmatpush3.bf16.msra.mxu1 %v1796_v51 }
  0x72   :  { %1672 = vmatmul.mubr.msk.bf16.vlgmr.msra.gmra.mrb[24].mxu0 %vm890_vm0, %v98_v47  ;;  %1683 = vmatprep.subr.bf16.mxu1 %v1797_v52 }
  0x75   :  { %1684 = vmatpush3.bf16.msra.mxu1 %v1797_v52 }
  0x76   :  { %1685 = vmatprep.subr.bf16.mxu1 %v1798_v53 }
  0x79   :  { %1686 = vmatpush3.bf16.msra.mxu1 %v1798_v53 }
  0x7a   :  { %1687 = vmatprep.subr.bf16.mxu1 %v1799_v54 }
  0x7d   :  { %1688 = vmatpush3.bf16.msra.mxu1 %v1799_v54 }
  0x7e   :  { %1689 = vmatprep.subr.bf16.mxu1 %v1800_v55 }
  0x81   :  { %1690 = vmatpush3.bf16.msra.mxu1 %v1800_v55 }
  0xf5   :  { %v1501_v56 = vpop.f32.mrb[0].mxu0 }
  0xf6   :  { %v1502_v58 = vpop.f32.mrb[1].mxu0 }
  0xf7   :  { %v1503_v59 = vadd.f32 %v1502_v58, %v1501_v56  ;;  %v1504_v60 = vpop.f32.mrb[2].mxu0  ;;  %v1529_v61 = vpop.f32.mrb[0].mxu1 }
  0xf8   :  { %v1505_v62 = vpop.f32.mrb[3].mxu0  ;;  %v1530_v1 = vpop.f32.mrb[1].mxu1 }
  0xf9   :  { %v932_v63 = vadd.f32 %v1503_v59, %v1375_v57  ;;  %v1506_v0 = vadd.f32 %v1505_v62, %v1504_v60  ;;  %v1531_v2 = vadd.f32 %v1530_v1, %v1529_v61  ;;  %v1532_v3 = vpop.f32.mrb[2].mxu1 }
  0xfa   :  { %v1533_v5 = vpop.f32.mrb[3].mxu1 }
  0xfb   :  { %v935_v4 = vadd.f32 %v1506_v0, %v1375_v57  ;;  %v981_v6 = vadd.f32 %v1531_v2, %v932_v63  ;;  %v1534_v7 = vadd.f32 %v1533_v5, %v1532_v3 }
  0xfd   :  { %v984_v8 = vadd.f32 %v1534_v7, %v935_v4  ;;  %v1507_v9 = vpop.f32.mrb[4].mxu0 }
  0xfe   :  { %v1508_v10 = vpop.f32.mrb[5].mxu0 }
  0xff   :  { %v1509_v11 = vadd.f32 %v1508_v10, %v1507_v9  ;;  %v1510_v12 = vpop.f32.mrb[6].mxu0  ;;  %v1535_v15 = vpop.f32.mrb[4].mxu1 }
 0x100   :  { %v1511_v13 = vpop.f32.mrb[7].mxu0  ;;  %v1536_v17 = vpop.f32.mrb[5].mxu1 }
 0x101   :  { %v940_v14 = vadd.f32 %v1509_v11, %v1375_v57  ;;  %v1512_v16 = vadd.f32 %v1511_v13, %v1510_v12  ;;  %v1537_v19 = vadd.f32 %v1536_v17, %v1535_v15  ;;  %v1538_v20 = vpop.f32.mrb[6].mxu1 }
 0x102   :  { %v1539_v21 = vpop.f32.mrb[7].mxu1 }
 0x103   :  { %v943_v18 = vadd.f32 %v1512_v16, %v1375_v57  ;;  %v989_v22 = vadd.f32 %v1537_v19, %v940_v14  ;;  %v1540_v23 = vadd.f32 %v1539_v21, %v1538_v20 }
 0x105   :  { %v992_v24 = vadd.f32 %v1540_v23, %v943_v18 }
 0x115   :  { %v1557_v25 = vpop.f32.mrb[8].mxu0 }
 0x116   :  { %v1558_v26 = vpop.f32.mrb[9].mxu0 }
 0x117   :  { %v1559_v27 = vadd.f32 %v1558_v26, %v1557_v25  ;;  %v1560_v28 = vpop.f32.mrb[10].mxu0  ;;  %v1585_v29 = vpop.f32.mrb[8].mxu1 }
 0x118   :  { %v1561_v30 = vpop.f32.mrb[11].mxu0  ;;  %v1586_v33 = vpop.f32.mrb[9].mxu1 }
 0x119   :  { %v1030_v31 = vadd.f32 %v1559_v27, %v981_v6  ;;  %v1562_v32 = vadd.f32 %v1561_v30, %v1560_v28  ;;  %v1587_v34 = vadd.f32 %v1586_v33, %v1585_v29  ;;  %v1588_v35 = vpop.f32.mrb[10].mxu1 }
 0x11a   :  { %v1589_v37 = vpop.f32.mrb[11].mxu1 }
 0x11b   :  { %v1033_v36 = vadd.f32 %v1562_v32, %v984_v8  ;;  %v1079_v38 = vadd.f32 %v1587_v34, %v1030_v31  ;;  %v1590_v39 = vadd.f32 %v1589_v37, %v1588_v35 }
 0x11d   :  { %v1082_v40 = vadd.f32 %v1590_v39, %v1033_v36  ;;  %v1563_v41 = vpop.f32.mrb[12].mxu0  ;;  %v1476_v39 = vld [vmem:[%s2327_s4] ss:$0 sm:$0xff] }
 0x11e   :  { %v1564_v42 = vpop.f32.mrb[13].mxu0 }
 0x11f   :  { %v1565_v43 = vadd.f32 %v1564_v42, %v1563_v41  ;;  %v1566_v44 = vpop.f32.mrb[14].mxu0  ;;  %v1591_v45 = vpop.f32.mrb[12].mxu1 }
 0x120   :  { %v1567_v46 = vpop.f32.mrb[15].mxu0  ;;  %v1592_v49 = vpop.f32.mrb[13].mxu1 }
 0x121   :  { %v1038_v47 = vadd.f32 %v1565_v43, %v989_v22  ;;  %v1568_v48 = vadd.f32 %v1567_v46, %v1566_v44  ;;  %v1593_v50 = vadd.f32 %v1592_v49, %v1591_v45  ;;  %v1594_v51 = vpop.f32.mrb[14].mxu1 }
 0x122   :  { %v1595_v53 = vpop.f32.mrb[15].mxu1 }
 0x123   :  { %v1041_v52 = vadd.f32 %v1568_v48, %v992_v24  ;;  %v1087_v54 = vadd.f32 %v1593_v50, %v1038_v47  ;;  %v1596_v55 = vadd.f32 %v1595_v53, %v1594_v51 }
 0x125   :  { %v1090_v56 = vadd.f32 %v1596_v55, %v1041_v52 }
 0x135   :  { %v1613_v57 = vpop.f32.mrb[16].mxu0 }
 0x136   :  { %v1614_v58 = vpop.f32.mrb[17].mxu0 }
 0x137   :  { %v1615_v59 = vadd.f32 %v1614_v58, %v1613_v57  ;;  %v1616_v60 = vpop.f32.mrb[18].mxu0  ;;  %v1641_v61 = vpop.f32.mrb[16].mxu1 }
 0x138   :  { %v1617_v62 = vpop.f32.mrb[19].mxu0  ;;  %v1642_v1 = vpop.f32.mrb[17].mxu1 }
 0x139   :  { %v1128_v63 = vadd.f32 %v1615_v59, %v1079_v38  ;;  %v1618_v0 = vadd.f32 %v1617_v62, %v1616_v60  ;;  %v1643_v2 = vadd.f32 %v1642_v1, %v1641_v61  ;;  %v1644_v3 = vpop.f32.mrb[18].mxu1 }
 0x13a   :  { %v1645_v5 = vpop.f32.mrb[19].mxu1 }
 0x13b   :  { %v1131_v4 = vadd.f32 %v1618_v0, %v1082_v40  ;;  %v1646_v6 = vadd.f32 %v1645_v5, %v1644_v3  ;;  %v1177_v7 = vadd.f32 %v1643_v2, %v1128_v63 }
 0x13d   :  { %v1619_v8 = vpop.f32.mrb[20].mxu0  ;;  %v1180_v10 = vadd.f32 %v1646_v6, %v1131_v4 }
 0x13e   :  { %v1620_v9 = vpop.f32.mrb[21].mxu0 }
 0x13f   :  { %v1621_v11 = vadd.f32 %v1620_v9, %v1619_v8  ;;  %v1622_v12 = vpop.f32.mrb[22].mxu0  ;;  %v1647_v13 = vpop.f32.mrb[20].mxu1 }
 0x140   :  { %v1623_v14 = vpop.f32.mrb[23].mxu0  ;;  %v1648_v17 = vpop.f32.mrb[21].mxu1 }
 0x141   :  { %v1136_v15 = vadd.f32 %v1621_v11, %v1087_v54  ;;  %v1624_v16 = vadd.f32 %v1623_v14, %v1622_v12  ;;  %v1649_v18 = vadd.f32 %v1648_v17, %v1647_v13  ;;  %v1650_v19 = vpop.f32.mrb[22].mxu1 }
 0x142   :  { %v1651_v21 = vpop.f32.mrb[23].mxu1 }
 0x143   :  { %v1139_v20 = vadd.f32 %v1624_v16, %v1090_v56  ;;  %v1652_v22 = vadd.f32 %v1651_v21, %v1650_v19  ;;  %v1185_v23 = vadd.f32 %v1649_v18, %v1136_v15 }
 0x145   :  { %v1673_v24 = vpop.f32.mrb[24].mxu0  ;;  %v1188_v27 = vadd.f32 %v1652_v22, %v1139_v20 }
 0x146   :  { %v1234_v25 = vadd.f32 %v1673_v24, %v1185_v23  ;;  %v1225_v26 = vpop.f32.mrb[25].mxu0 }
 0x147   :  { %v1226_v28 = vadd.f32 %v1225_v26, %v1177_v7  ;;  %v1674_v29 = vpop.f32.mrb[26].mxu0 }
 0x148   :  { %v1237_v30 = vadd.f32 %v1674_v29, %v1188_v27  ;;  %v1228_v31 = vpop.f32.mrb[27].mxu0  ;;  %v1242_v33 = vmax.f32 %v1234_v25, 0.0 }
 0x149   :  { %v1229_v32 = vadd.f32 %v1228_v31, %v1180_v10  ;;  %v1240_v35 = vmax.f32 %v1226_v28, 0.0 }
 0x14a   :  { %v1243_v34 = vmax.f32 %v1237_v30, 0.0 }
 0x14b   :  { %v1241_v36 = vmax.f32 %v1229_v32, 0.0 }
 0x14c   :  { %v1245_v37 = vpack.c.bf16 %v1243_v34, %v1242_v33 }
 0x14d   :  { %v1244_v38 = vpack.c.bf16 %v1241_v36, %v1240_v35 }
 0x14f   :  { %1691 = vmatprep.mubr.bf16.mxu1 %v1244_v38 }
 0x150   :  { %1692 = vmatmul.mubr.bf16.vlgmr.msra.gmra.mrb[24].mxu1 %v1245_v37 }
 0x223   :  { %v1693_v40 = vpop.f32.mrb[24].mxu1 }
 0x224   :  { %v1360_v41 = vadd.f32 %v1693_v40, %v1476_v39  ;;  %v1351_v42 = vpop.f32.mrb[25].mxu1 }
 0x225   :  { %v1352_v43 = vadd.f32 %v1476_v39, %v1351_v42  ;;  %v1694_v44 = vpop.f32.mrb[26].mxu1 }
 0x226   :  { %1369 = vst.msk [vmem:[%s2328_s5 + $0x10] sm:$0xff] %vm1366_vm1, %v1360_v41  ;;  %v1363_v45 = vadd.f32 %v1694_v44, %v1476_v39  ;;  %v1354_v46 = vpop.f32.mrb[27].mxu1 }
 0x227   :  { %1367 = vst.msk [vmem:[%s2328_s5] sm:$0xff] %vm1366_vm1, %v1352_v43  ;;  %v1355_v47 = vadd.f32 %v1476_v39, %v1354_v46 }
 0x228   :  { %1370 = vst.msk [vmem:[%s2328_s5 + $0x18] sm:$0xff] %vm1366_vm1, %v1363_v45 }
 0x229   :  { %1368 = vst.msk [vmem:[%s2328_s5 + $0x8] sm:$0xff] %vm1366_vm1, %v1355_v47 }

// kernel: cnn_forward.2
= control target key start
LH: loop header
LB: loop body
LE: loop exit
PB: predicated region body
PF: predicated region fallthrough
CT: control target
= control target key end

     0   :  { %s17720_s25 = smov 0   ;;  %s22833_s0 = inlined_call_operand.vmem [shape: f32[1024,30], index: 0, kind: input, shape index: {}]   ;;  %s22834_s1 = inlined_call_operand.vmem [shape: f32[3,30,448], index: 1, kind: input, shape index: {}]   ;;  %s22835_s2 = inlined_call_operand.vmem [shape: f32[1,448], index: 2, kind: input, shape index: {}]   ;;  %s22836_s3 = inlined_call_operand.vmem [shape: bf16[448,256], index: 3, kind: input, shape index: {}]   ;;  %s22837_s4 = inlined_call_operand.vmem [shape: bf16[448,256], index: 4, kind: input, shape index: {}]   ;;  %s22838_s5 = inlined_call_operand.vmem [shape: bf16[258,510], index: 5, kind: input, shape index: {}]   ;;  %s22839_s6 = inlined_call_operand.vmem [shape: bf16[258,510], index: 6, kind: input, shape index: {}]   ;;  %s22840_s7 = inlined_call_operand.vmem [shape: bf16[3,256,448], index: 7, kind: input, shape index: {}]   ;;  %s22841_s8 = inlined_call_operand.vmem [shape: f32[1,448], index: 8, kind: input, shape index: {}]   ;;  %s22842_s9 = inlined_call_operand.vmem [shape: bf16[112,256], index: 9, kind: input, shape index: {}]   ;;  %s22843_s10 = inlined_call_operand.vmem [shape: bf16[112,256], index: 10, kind: input, shape index: {}]   ;;  %s22844_s11 = inlined_call_operand.vmem [shape: bf16[448,224], index: 11, kind: input, shape index: {}]   ;;  %s22845_s12 = inlined_call_operand.vmem [shape: bf16[448,224], index: 12, kind: input, shape index: {}]   ;;  %s22846_s13 = inlined_call_operand.vmem [shape: f32[224,224], index: 13, kind: output, shape index: {}]  }
   0x1 LB: > { %s14162_s26 = sadd.s32 4294967295, %s17646_s25   ;;  %p14166_p0 = scmp.ge.s32.totalorder %s17646_s25, 1  ;;  %s17646_s25 = sphi %s17720_s25, %s23_s25  }
   0x2   : > { %p388_p1 = scmp.lt.s32.totalorder %s17646_s25, 3 }
   0x4   : > { %p389_p2 = pnand %p14166_p0, %p388_p1 }
   0x6   : > { %392 = sbr.rel (%p389_p2) target bundleno = 2969 (0xb99), region = 72 }
   0xd   : > { %v14172_v0 = vld [vmem:[%s22834_s1 + $0x88] sm:$0xff]  ;;  %v14174_v2 = vld [vmem:[%s22834_s1 + $0x98] sm:$0xff]  ;;  %vm865_vm0 = vcmask 1045504   ;;  %v14171_v5 = vld [vmem:[%s22834_s1 + $0x80] sm:$0xff]  ;;  %v17648_v7 = vmov 0.0   ;;  %s14167_s22 = sshll.u32 %s14162_s26, 6 }
   0xe   : > { %v14176_v1 = vld [vmem:[%s22834_s1 + $0xa8] sm:$0xff]  ;;  %v14178_v4 = vld [vmem:[%s22834_s1 + $0xb8] sm:$0xff]  ;;  %v14175_v6 = vld [vmem:[%s22834_s1 + $0xa0] sm:$0xff]  ;;  %942 = vmatprep.mubr.f32.mxu0 %v17648_v7  ;;  %1391 = vmatprep.mubr.f32.mxu1 %v17648_v7  ;;  %p434_p3 = scmp.lt.s32.totalorder %s14167_s22, 127  ;;  %vm17649_vm1 = vmmov 1   ;;  %vm608_vm3 = vcmask 1046528  }
   0xf   : > { %v15424_v3 = vpack.c.bf16 %v14176_v1, %v14172_v0  ;;  %v15434_v8 = vpack.c.bf16 %v14178_v4, %v14174_v2  ;;  %v15426_v9 = vpack.c.bf16 %v14175_v6, %v14171_v5  ;;  %v14173_v10 = vld [vmem:[%s22834_s1 + $0x90] sm:$0xff]  ;;  %v14180_v12 = vld [vmem:[%s22834_s1 + $0xc8] sm:$0xff]  ;;  %vm17763_vm2 = vmpackc.low %vm865_vm0, %vm17649_vm1  ;;  %vm736_vm4 = vcmask 244736   ;;  %s439_s20 = smul.u32 14, %s14162_s26 }
  0x10   : > { %v14177_v11 = vld [vmem:[%s22834_s1 + $0xb0] sm:$0xff]  ;;  %v14184_v14 = vld [vmem:[%s22834_s1 + $0xe8] sm:$0x3f]  ;;  %v14182_v16 = vld [vmem:[%s22834_s1 + $0xd8] sm:$0xff]  ;;  %s23040_s22 = smov (!%p434_p3, %s14167_s22), 127  ;;  %vm5250_vm5 = vcmask 523264  }
  0x11   : > { %15425 = vmatprep.subr.bf16.mxu0 %v15424_v3  ;;  %v15436_v13 = vpack.c.bf16 %v14177_v11, %v14173_v10  ;;  %15435 = vmatprep.subr.bf16.mxu1 %v15434_v8  ;;  %v15428_v17 = vpack.c.bf16 %v14184_v14, %v14180_v12  ;;  %v14186_v18 = vld [vmem:[%s22834_s1 + $0xf8] sm:$0x3f]  ;;  %v14179_v19 = vld [vmem:[%s22834_s1 + $0xc0] sm:$0xff]  ;;  %v14181_v23 = vld [vmem:[%s22834_s1 + $0xd0] sm:$0xff]  ;;  %s14168_s14 = sshll.u32 %s23040_s22, 3  ;;  %vm7670_vm6 = vcmask 1031168  }
  0x12   : > { %15427 = vmatpush1.bf16.msra.mxu0 %v15426_v9  ;;  %v14183_v20 = vld [vmem:[%s22834_s1 + $0xe0] sm:$0x3f]  ;;  %v15438_v21 = vpack.c.bf16 %v14186_v18, %v14182_v16  ;;  %v14185_v24 = vld [vmem:[%s22834_s1 + $0xf0] sm:$0x3f]  ;;  %s17792_s17 = scalar_lea.vmem %s22833_s0, %s14168_s14  ;;  %v512_v43 = vld [vmem:[%s22834_s1 + $0x8] sm:$0xff]  ;;  %p440_p4 = scmp.lt.s32.totalorder %s439_s20, 27 }
  0x13   : > { %15437 = vmatpush1.bf16.msra.mxu1 %v15436_v13  ;;  %v15431_v22 = vpack.c.bf16 %v14183_v20, %v14179_v19  ;;  %15430 = vmatprep.subr.msk.bf16.mxu0 %vm17763_vm2, %v15428_v17  ;;  %v15441_v25 = vpack.c.bf16 %v14185_v24, %v14181_v23  ;;  %v447_v26 = vld [vmem:[%s17792_s17] sm:$0xff]  ;;  %v448_v27 = vld [vmem:[%s17792_s17 + $0x8] sm:$0xff]  ;;  %v449_v28 = vld [vmem:[%s17792_s17 + $0x10] sm:$0xff]  ;;  %vm9195_vm7 = vsmask.f32 7424  ;;  %vm14076_vm8 = vcmask 785408  }
  0x14   : > { %15440 = vmatprep.subr.msk.bf16.mxu1 %vm17763_vm2, %v15438_v21  ;;  %v609_v29 = vrot.slane %v447_v26, 1  ;;  %v610_v30 = vrot.slane %v448_v27, 1  ;;  %v612_v31 = vrot.slane %v449_v28, 1  ;;  %v450_v32 = vld [vmem:[%s17792_s17 + $0x18] sm:$0xff]  ;;  %v451_v36 = vld [vmem:[%s17792_s17 + $0x20] sm:$0xff]  ;;  %v452_v39 = vld [vmem:[%s17792_s17 + $0x28] sm:$0xff] }
  0x15   : > { %v614_v35 = vrot.slane %v450_v32, 1  ;;  %v616_v38 = vrot.slane %v451_v36, 1  ;;  %v453_v40 = vld [vmem:[%s17792_s17 + $0x30] sm:$0xff]  ;;  %v618_v42 = vrot.slane %v452_v39, 1  ;;  %v516_v44 = vld [vmem:[%s22834_s1 + $0x28] sm:$0xff]  ;;  %v514_v45 = vld [vmem:[%s22834_s1 + $0x18] sm:$0xff] }
  0x16   : > { %15433 = vmatpush1.bf16.msk.msra.mxu0 %vm17763_vm2, %v15431_v22  ;;  %v611_v33 = vsel %vm608_vm3, %v609_v29, %v610_v30  ;;  %v613_v34 = vsel %vm608_vm3, %v610_v30, %v612_v31  ;;  %v518_v46 = vld [vmem:[%s22834_s1 + $0x38] sm:$0xff]  ;;  %v511_v47 = vld [vmem:[%s22834_s1] sm:$0xff]  ;;  %v513_v49 = vld [vmem:[%s22834_s1 + $0x10] sm:$0xff]  ;;  %v620_v53 = vrot.slane %v453_v40, 1  ;;  %v15444_v54 = vpack.c.bf16 %v516_v44, %v512_v43  ;;  %s23042_s20 = smov (!%p440_p4, %s439_s20), 27 }
  0x17   : > { %15443 = vmatpush1.bf16.msk.msra.mxu1 %vm17763_vm2, %v15441_v25  ;;  %v615_v37 = vsel %vm608_vm3, %v612_v31, %v614_v35  ;;  %v617_v41 = vsel %vm608_vm3, %v614_v35, %v616_v38  ;;  %v515_v48 = vld [vmem:[%s22834_s1 + $0x20] sm:$0xff]  ;;  %v454_v50 = vld [vmem:[%s17792_s17 + $0x38] sm:$0xff]  ;;  %v517_v51 = vld [vmem:[%s22834_s1 + $0x30] sm:$0xff]  ;;  %v619_v52 = vsel %vm608_vm3, %v616_v38, %v618_v42  ;;  %v15454_v55 = vpack.c.bf16 %v518_v46, %v514_v45  ;;  %s15423_s21 = sshll.u32 %s23042_s20, 4 }
  0x18   : > { %v15446_v56 = vpack.c.bf16 %v515_v48, %v511_v47  ;;  %v15456_v57 = vpack.c.bf16 %v517_v51, %v513_v49  ;;  %v455_v58 = vld [vmem:[%s17792_s17 + $0x40] sm:$0xff]  ;;  %v621_v59 = vsel %vm608_vm3, %v618_v42, %v620_v53  ;;  %v622_v60 = vrot.slane %v454_v50, 1  ;;  %15445 = vmatprep.subr.bf16.mxu0 %v15444_v54  ;;  %v456_v61 = vld [vmem:[%s17792_s17 + $0x48] sm:$0xff]  ;;  %v457_v0 = vld [vmem:[%s17792_s17 + $0x50] sm:$0xff]  ;;  %s22786_s27 = scalar_lea.vmem %s22846_s13, %s15423_s21 }
  0x19   : > { %14189 = vmatmul.mubr.msk.f32.vlgmr.msra.gmra.mrb[0].mxu0 %vm736_vm4, %v611_v33  ;;  %15455 = vmatprep.subr.bf16.mxu1 %v15454_v55  ;;  %v624_v63 = vrot.slane %v455_v58, 1  ;;  %v626_v2 = vrot.slane %v456_v61, 1  ;;  %v458_v3 = vld [vmem:[%s17792_s17 + $0x58] sm:$0xff]  ;;  %v628_v5 = vrot.slane %v457_v0, 1  ;;  %v459_v6 = vld [vmem:[%s17792_s17 + $0x60] sm:$0xff]  ;;  %v460_v10 = vld [vmem:[%s17792_s17 + $0x68] sm:$0xff] }
  0x1a   : > { %14255 = vmatmul.mubr.msk.f32.vlgmr.msra.gmra.mrb[0].mxu1 %vm736_vm4, %v611_v33  ;;  %948 = vmatprep.mubr.f32.mxu0 %v17648_v7  ;;  %v623_v62 = vsel %vm608_vm3, %v620_v53, %v622_v60  ;;  %v630_v9 = vrot.slane %v458_v3, 1  ;;  %v632_v12 = vrot.slane %v459_v6, 1  ;;  %v461_v13 = vld [vmem:[%s17792_s17 + $0x70] sm:$0xff]  ;;  %v634_v16 = vrot.slane %v460_v10, 1  ;;  %v462_v17 = vld [vmem:[%s17792_s17 + $0x78] sm:$0xff]  ;;  %v463_v20 = vld [vmem:[%s17792_s17 + $0x80] sm:$0xff] }
  0x1b   : > { %1397 = vmatprep.mubr.f32.mxu1 %v17648_v7  ;;  %15447 = vmatpush1.bf16.msra.mxu0 %v15446_v56  ;;  %v625_v1 = vsel %vm608_vm3, %v622_v60, %v624_v63  ;;  %v627_v4 = vsel %vm608_vm3, %v624_v63, %v626_v2  ;;  %v629_v8 = vsel %vm608_vm3, %v626_v2, %v628_v5  ;;  %v636_v19 = vrot.slane %v461_v13, 1  ;;  %v464_v23 = vld [vmem:[%s17792_s17 + $0x88] sm:$0xff]  ;;  %v465_v26 = vld [vmem:[%s17792_s17 + $0x90] sm:$0xff]  ;;  %v466_v29 = vld [vmem:[%s17792_s17 + $0x98] sm:$0xff] }
  0x1c   : > { %15457 = vmatpush1.bf16.msra.mxu1 %v15456_v57  ;;  %v631_v11 = vsel %vm608_vm3, %v628_v5, %v630_v9  ;;  %v633_v14 = vsel %vm608_vm3, %v630_v9, %v632_v12  ;;  %v635_v18 = vsel %vm608_vm3, %v632_v12, %v634_v16  ;;  %v638_v22 = vrot.slane %v462_v17, 1  ;;  %v467_v32 = vld [vmem:[%s17792_s17 + $0xa0] sm:$0xff]  ;;  %v468_v35 = vld [vmem:[%s17792_s17 + $0xa8] sm:$0xff]  ;;  %v469_v38 = vld [vmem:[%s17792_s17 + $0xb0] sm:$0xff] }
  0x1d   : > { %14190 = vmatmul.mubr.msk.f32.gmra.mrb[2].mxu0 %vm736_vm4, %v613_v34  ;;  %v637_v21 = vsel %vm608_vm3, %v634_v16, %v636_v19  ;;  %v640_v25 = vrot.slane %v463_v20, 1  ;;  %v642_v28 = vrot.slane %v464_v23, 1  ;;  %v644_v31 = vrot.slane %v465_v26, 1  ;;  %v471_v44 = vld [vmem:[%s17792_s17 + $0xc0] sm:$0xff]  ;;  %v472_v47 = vld [vmem:[%s17792_s17 + $0xc8] sm:$0xff]  ;;  %v473_v50 = vld [vmem:[%s17792_s17 + $0xd0] sm:$0xff] }
  0x1e   : > { %14256 = vmatmul.mubr.msk.f32.gmra.mrb[2].mxu1 %vm736_vm4, %v613_v34  ;;  %954 = vmatprep.mubr.f32.mxu0 %v17648_v7  ;;  %v639_v24 = vsel %vm608_vm3, %v636_v19, %v638_v22  ;;  %v646_v34 = vrot.slane %v466_v29, 1  ;;  %v650_v40 = vrot.slane %v468_v35, 1  ;;  %v652_v43 = vrot.slane %v469_v38, 1  ;;  %v474_v53 = vld [vmem:[%s17792_s17 + $0xd8] sm:$0xff]  ;;  %v475_v56 = vld [vmem:[%s17792_s17 + $0xe0] sm:$0xff]  ;;  %v18657_v15 = vld [vmem:[%s17792_s17 + $0x110] sm:$0xff] }
  0x1f   : > { %1403 = vmatprep.mubr.f32.mxu1 %v17648_v7  ;;  %v641_v27 = vsel %vm608_vm3, %v638_v22, %v640_v25  ;;  %v643_v30 = vsel %vm608_vm3, %v640_v25, %v642_v28  ;;  %v645_v33 = vsel %vm608_vm3, %v642_v28, %v644_v31  ;;  %v656_v49 = vrot.slane %v471_v44, 1  ;;  %v524_v16 = vld [vmem:[%s22834_s1 + $0x68] sm:$0x3f]  ;;  %v522_v17 = vld [vmem:[%s22834_s1 + $0x58] sm:$0xff]  ;;  %v519_v20 = vld [vmem:[%s22834_s1 + $0x40] sm:$0xff] }
  0x20   : > { %v647_v36 = vsel %vm608_vm3, %v644_v31, %v646_v34  ;;  %v653_v45 = vsel %vm608_vm3, %v650_v40, %v652_v43  ;;  %v660_v55 = vrot.slane %v473_v50, 1  ;;  %v662_v58 = vrot.slane %v474_v53, 1  ;;  %v526_v19 = vld [vmem:[%s22834_s1 + $0x78] sm:$0x3f]  ;;  %v525_v25 = vld [vmem:[%s22834_s1 + $0x70] sm:$0x3f] }
  0x21   : > { %14191 = vmatmul.mubr.msk.f32.gmra.mrb[4].mxu0 %vm736_vm4, %v615_v37  ;;  %v664_v61 = vrot.slane %v475_v56, 1  ;;  %v15458_v22 = vpack.c.bf16 %v526_v19, %v522_v17  ;;  %v482_v26 = vld [vmem:[%s17792_s17 + $0x118] sm:$0xff]  ;;  %v18179_v19 = vld [vmem:[%s17792_s17 + $0x1a8] sm:$0xff] }
  0x22   : > { %14257 = vmatmul.mubr.msk.f32.gmra.mrb[4].mxu1 %vm736_vm4, %v615_v37  ;;  %960 = vmatprep.mubr.f32.mxu0 %v17648_v7  ;;  %v648_v37 = vrot.slane %v467_v32, 1  ;;  %v663_v60 = vsel %vm608_vm3, %v660_v55, %v662_v58  ;;  %v678_v32 = vrot.slane %v482_v26, 1 }
  0x23   : > { %1409 = vmatprep.mubr.f32.mxu1 %v17648_v7  ;;  %v665_v63 = vsel %vm608_vm3, %v662_v58, %v664_v61  ;;  %15460 = vmatprep.subr.msk.bf16.mxu1 %vm17763_vm2, %v15458_v22  ;;  %v18188_v22 = vld [vmem:[%s17792_s17 + $0x1b0] sm:$0xff] }
  0x24   : > { %v649_v39 = vsel %vm608_vm3, %v646_v34, %v648_v37  ;;  %v651_v42 = vsel %vm608_vm3, %v648_v37, %v650_v40 }
  0x25   : > { %14192 = vmatmul.mubr.msk.f32.gmra.mrb[6].mxu0 %vm736_vm4, %v617_v41 }
  0x26   : > { %14258 = vmatmul.mubr.msk.f32.gmra.mrb[6].mxu1 %vm736_vm4, %v617_v41  ;;  %966 = vmatprep.mubr.f32.mxu0 %v17648_v7  ;;  %v470_v41 = vld [vmem:[%s17792_s17 + $0xb8] sm:$0xff] }
  0x27   : > { %1415 = vmatprep.mubr.f32.mxu1 %v17648_v7  ;;  %v654_v46 = vrot.slane %v470_v41, 1 }
  0x29   : > { %14193 = vmatmul.mubr.msk.f32.gmra.mrb[8].mxu0 %vm736_vm4, %v619_v52  ;;  %v655_v48 = vsel %vm608_vm3, %v652_v43, %v654_v46  ;;  %v657_v51 = vsel %vm608_vm3, %v654_v46, %v656_v49 }
  0x2a   : > { %14259 = vmatmul.mubr.msk.f32.gmra.mrb[8].mxu1 %vm736_vm4, %v619_v52  ;;  %972 = vmatprep.mubr.f32.mxu0 %v17648_v7  ;;  %v658_v52 = vrot.slane %v472_v47, 1 }
  0x2b   : > { %1421 = vmatprep.mubr.f32.mxu1 %v17648_v7 }
  0x2c   : > { %v659_v54 = vsel %vm608_vm3, %v656_v49, %v658_v52  ;;  %v661_v57 = vsel %vm608_vm3, %v658_v52, %v660_v55 }
  0x2d   : > { %14194 = vmatmul.mubr.msk.f32.gmra.mrb[10].mxu0 %vm736_vm4, %v621_v59 }
  0x2e   : > { %14260 = vmatmul.mubr.msk.f32.gmra.mrb[10].mxu1 %vm736_vm4, %v621_v59  ;;  %978 = vmatprep.mubr.f32.mxu0 %v17648_v7  ;;  %v476_v59 = vld [vmem:[%s17792_s17 + $0xe8] sm:$0xff] }
  0x2f   : > { %1427 = vmatprep.mubr.f32.mxu1 %v17648_v7  ;;  %v666_v0 = vrot.slane %v476_v59, 1 }
  0x31   : > { %14195 = vmatmul.mubr.msk.f32.gmra.mrb[12].mxu0 %vm736_vm4, %v623_v62  ;;  %v667_v2 = vsel %vm608_vm3, %v664_v61, %v666_v0 }
  0x32   : > { %14261 = vmatmul.mubr.msk.f32.gmra.mrb[12].mxu1 %vm736_vm4, %v623_v62  ;;  %984 = vmatprep.mubr.f32.mxu0 %v17648_v7  ;;  %v477_v62 = vld [vmem:[%s17792_s17 + $0xf0] sm:$0xff] }
  0x33   : > { %1433 = vmatprep.mubr.f32.mxu1 %v17648_v7  ;;  %v668_v3 = vrot.slane %v477_v62, 1 }
  0x35   : > { %14196 = vmatmul.mubr.msk.f32.gmra.mrb[14].mxu0 %vm736_vm4, %v625_v1  ;;  %v669_v5 = vsel %vm608_vm3, %v666_v0, %v668_v3 }
  0x36   : > { %14262 = vmatmul.mubr.msk.f32.gmra.mrb[14].mxu1 %vm736_vm4, %v625_v1  ;;  %990 = vmatprep.mubr.f32.mxu0 %v17648_v7  ;;  %v478_v1 = vld [vmem:[%s17792_s17 + $0xf8] sm:$0xff] }
  0x37   : > { %1439 = vmatprep.mubr.f32.mxu1 %v17648_v7  ;;  %v670_v6 = vrot.slane %v478_v1, 1 }
  0x39   : > { %14197 = vmatmul.mubr.msk.f32.gmra.mrb[16].mxu0 %vm736_vm4, %v627_v4  ;;  %v671_v9 = vsel %vm608_vm3, %v668_v3, %v670_v6 }
  0x3a   : > { %14263 = vmatmul.mubr.msk.f32.gmra.mrb[16].mxu1 %vm736_vm4, %v627_v4  ;;  %996 = vmatprep.mubr.f32.mxu0 %v17648_v7  ;;  %v479_v4 = vld [vmem:[%s17792_s17 + $0x100] sm:$0xff] }
  0x3b   : > { %1445 = vmatprep.mubr.f32.mxu1 %v17648_v7  ;;  %v672_v10 = vrot.slane %v479_v4, 1 }
  0x3d   : > { %14198 = vmatmul.mubr.msk.f32.gmra.mrb[18].mxu0 %vm736_vm4, %v629_v8  ;;  %v673_v12 = vsel %vm608_vm3, %v670_v6, %v672_v10 }
  0x3e   : > { %14264 = vmatmul.mubr.msk.f32.gmra.mrb[18].mxu1 %vm736_vm4, %v629_v8  ;;  %1002 = vmatprep.mubr.f32.mxu0 %v17648_v7  ;;  %v480_v8 = vld [vmem:[%s17792_s17 + $0x108] sm:$0xff] }
  0x3f   : > { %1451 = vmatprep.mubr.f32.mxu1 %v17648_v7  ;;  %v674_v13 = vrot.slane %v480_v8, 1 }
  0x41   : > { %14199 = vmatmul.mubr.msk.f32.gmra.mrb[20].mxu0 %vm736_vm4, %v631_v11  ;;  %v675_v28 = vsel %vm608_vm3, %v672_v10, %v674_v13 }
  0x42   : > { %14265 = vmatmul.mubr.msk.f32.gmra.mrb[20].mxu1 %vm736_vm4, %v631_v11  ;;  %1008 = vmatprep.mubr.f32.mxu0 %v17648_v7  ;;  %v481_v11 = vld [vmem:[%s17792_s17 + $0x110] sm:$0xff] }
  0x43   : > { %1457 = vmatprep.mubr.f32.mxu1 %v17648_v7  ;;  %v676_v29 = vrot.slane %v481_v11, 1 }
  0x45   : > { %14200 = vmatmul.mubr.msk.f32.gmra.mrb[22].mxu0 %vm736_vm4, %v633_v14  ;;  %v677_v31 = vsel %vm608_vm3, %v674_v13, %v676_v29  ;;  %v679_v34 = vsel %vm608_vm3, %v676_v29, %v678_v32 }
  0x46   : > { %14266 = vmatmul.mubr.msk.f32.gmra.mrb[22].mxu1 %vm736_vm4, %v633_v14  ;;  %1014 = vmatprep.mubr.f32.mxu0 %v17648_v7  ;;  %v520_v14 = vld [vmem:[%s22834_s1 + $0x48] sm:$0xff] }
  0x47   : > { %1463 = vmatprep.mubr.f32.mxu1 %v17648_v7 }
  0x49   : > { %14201 = vmatmul.mubr.msk.f32.gmra.mrb[24].mxu0 %vm736_vm4, %v635_v18 }
  0x4a   : > { %14267 = vmatmul.mubr.msk.f32.gmra.mrb[24].mxu1 %vm736_vm4, %v635_v18  ;;  %1020 = vmatprep.mubr.f32.mxu0 %v17648_v7  ;;  %v15448_v18 = vpack.c.bf16 %v524_v16, %v520_v14  ;;  %v18170_v16 = vld [vmem:[%s17792_s17 + $0x1a0] sm:$0xff] }
  0x4b   : > { %1469 = vmatprep.mubr.f32.mxu1 %v17648_v7 }
  0x4c   : > { %15450 = vmatprep.subr.msk.bf16.mxu0 %vm17763_vm2, %v15448_v18 }
  0x4d   : > { %14202 = vmatmul.mubr.msk.f32.gmra.mrb[26].mxu0 %vm736_vm4, %v637_v21 }
  0x4e   : > { %14268 = vmatmul.mubr.msk.f32.gmra.mrb[26].mxu1 %vm736_vm4, %v637_v21  ;;  %1026 = vmatprep.mubr.f32.mxu0 %v17648_v7  ;;  %v523_v21 = vld [vmem:[%s22834_s1 + $0x60] sm:$0x3f] }
  0x4f   : > { %1475 = vmatprep.mubr.f32.mxu1 %v17648_v7  ;;  %v15451_v23 = vpack.c.bf16 %v523_v21, %v519_v20  ;;  %v712_v21 = vrot.slane %v18170_v16, 1 }
  0x51   : > { %14203 = vmatmul.mubr.msk.f32.gmra.mrb[28].mxu0 %vm736_vm4, %v639_v24 }
  0x52   : > { %14269 = vmatmul.mubr.msk.f32.gmra.mrb[28].mxu1 %vm736_vm4, %v639_v24  ;;  %1032 = vmatprep.mubr.f32.mxu0 %v17648_v7  ;;  %v521_v24 = vld [vmem:[%s22834_s1 + $0x50] sm:$0xff] }
  0x53   : > { %1481 = vmatprep.mubr.f32.mxu1 %v17648_v7  ;;  %15453 = vmatpush1.bf16.msk.msra.mxu0 %vm17763_vm2, %v15451_v23 }
  0x55   : > { %14204 = vmatmul.mubr.msk.f32.gmra.mrb[30].mxu0 %vm736_vm4, %v641_v27 }
  0x56   : > { %14270 = vmatmul.mubr.msk.f32.gmra.mrb[30].mxu1 %vm736_vm4, %v641_v27  ;;  %1038 = vmatprep.mubr.f32.mxu0 %v17648_v7  ;;  %v15461_v27 = vpack.c.bf16 %v525_v25, %v521_v24  ;;  %v714_v24 = vrot.slane %v18179_v19, 1  ;;  %v18197_v25 = vld [vmem:[%s17792_s17 + $0x1b8] sm:$0xff] }
  0x57   : > { %1487 = vmatprep.mubr.f32.mxu1 %v17648_v7 }
  0x58   : > { %15463 = vmatpush1.bf16.msk.msra.mxu1 %vm17763_vm2, %v15461_v27  ;;  %v715_v26 = vsel %vm608_vm3, %v712_v21, %v714_v24  ;;  %v716_v27 = vrot.slane %v18188_v22, 1 }
  0x59   : > { %14205 = vmatmul.mubr.msk.f32.gmra.mrb[32].mxu0 %vm736_vm4, %v643_v30 }
  0x5a   : > { %14271 = vmatmul.mubr.msk.f32.gmra.mrb[32].mxu1 %vm736_vm4, %v643_v30  ;;  %1044 = vmatprep.mubr.f32.mxu0 %v17648_v7  ;;  %v483_v30 = vld [vmem:[%s17792_s17 + $0x120] sm:$0xff]  ;;  %v717_v29 = vsel %vm608_vm3, %v714_v24, %v716_v27  ;;  %v18400_v24 = vld [vmem:[%s17792_s17 + $0x48] sm:$0xff] }
  0x5b   : > { %1493 = vmatprep.mubr.f32.mxu1 %v17648_v7  ;;  %v680_v35 = vrot.slane %v483_v30, 1  ;;  %v718_v30 = vrot.slane %v18197_v25, 1 }
  0x5d   : > { %14206 = vmatmul.mubr.msk.f32.gmra.mrb[34].mxu0 %vm736_vm4, %v645_v33  ;;  %v681_v37 = vsel %vm608_vm3, %v678_v32, %v680_v35 }
  0x5e   : > { %14272 = vmatmul.mubr.msk.f32.gmra.mrb[34].mxu1 %vm736_vm4, %v645_v33  ;;  %1050 = vmatprep.mubr.f32.mxu0 %v17648_v7  ;;  %v484_v33 = vld [vmem:[%s17792_s17 + $0x128] sm:$0xff] }
  0x5f   : > { %1499 = vmatprep.mubr.f32.mxu1 %v17648_v7  ;;  %v682_v38 = vrot.slane %v484_v33, 1  ;;  %v18219_v33 = vld [vmem:[%s17792_s17 + $0x1c8] sm:$0xff] }
  0x61   : > { %14207 = vmatmul.mubr.msk.f32.gmra.mrb[36].mxu0 %vm736_vm4, %v647_v36  ;;  %v683_v40 = vsel %vm608_vm3, %v680_v35, %v682_v38  ;;  %v722_v35 = vrot.slane %v18219_v33, 1 }
  0x62   : > { %14273 = vmatmul.mubr.msk.f32.gmra.mrb[36].mxu1 %vm736_vm4, %v647_v36  ;;  %1056 = vmatprep.mubr.f32.mxu0 %v17648_v7  ;;  %v485_v36 = vld [vmem:[%s17792_s17 + $0x130] sm:$0xff] }
  0x63   : > { %1505 = vmatprep.mubr.f32.mxu1 %v17648_v7  ;;  %v684_v41 = vrot.slane %v485_v36, 1  ;;  %v18228_v36 = vld [vmem:[%s17792_s17 + $0x1d0] sm:$0xff] }
  0x65   : > { %14208 = vmatmul.mubr.msk.f32.gmra.mrb[38].mxu0 %vm736_vm4, %v649_v39  ;;  %v685_v43 = vsel %vm608_vm3, %v682_v38, %v684_v41  ;;  %v724_v38 = vrot.slane %v18228_v36, 1 }
  0x66   : > { %14274 = vmatmul.mubr.msk.f32.gmra.mrb[38].mxu1 %vm736_vm4, %v649_v39  ;;  %1062 = vmatprep.mubr.f32.mxu0 %v17648_v7  ;;  %v486_v39 = vld [vmem:[%s17792_s17 + $0x138] sm:$0xff] }
  0x67   : > { %1511 = vmatprep.mubr.f32.mxu1 %v17648_v7  ;;  %v686_v44 = vrot.slane %v486_v39, 1  ;;  %v18237_v39 = vld [vmem:[%s17792_s17 + $0x1d8] sm:$0xff] }
  0x69   : > { %14209 = vmatmul.mubr.msk.f32.gmra.mrb[40].mxu0 %vm736_vm4, %v651_v42  ;;  %v687_v46 = vsel %vm608_vm3, %v684_v41, %v686_v44  ;;  %v726_v41 = vrot.slane %v18237_v39, 1 }
  0x6a   : > { %14275 = vmatmul.mubr.msk.f32.gmra.mrb[40].mxu1 %vm736_vm4, %v651_v42  ;;  %1068 = vmatprep.mubr.f32.mxu0 %v17648_v7  ;;  %v487_v42 = vld [vmem:[%s17792_s17 + $0x140] sm:$0xff] }
  0x6b   : > { %1517 = vmatprep.mubr.f32.mxu1 %v17648_v7  ;;  %v688_v47 = vrot.slane %v487_v42, 1  ;;  %v18246_v42 = vld [vmem:[%s17792_s17 + $0x1e0] sm:$0xff] }
  0x6d   : > { %14210 = vmatmul.mubr.msk.f32.gmra.mrb[42].mxu0 %vm736_vm4, %v653_v45  ;;  %v689_v49 = vsel %vm608_vm3, %v686_v44, %v688_v47  ;;  %v728_v44 = vrot.slane %v18246_v42, 1 }
  0x6e   : > { %14276 = vmatmul.mubr.msk.f32.gmra.mrb[42].mxu1 %vm736_vm4, %v653_v45  ;;  %1074 = vmatprep.mubr.f32.mxu0 %v17648_v7  ;;  %v488_v45 = vld [vmem:[%s17792_s17 + $0x148] sm:$0xff] }
  0x6f   : > { %1523 = vmatprep.mubr.f32.mxu1 %v17648_v7  ;;  %v690_v50 = vrot.slane %v488_v45, 1  ;;  %v18255_v45 = vld [vmem:[%s17792_s17 + $0x1e8] sm:$0xff] }
  0x71   : > { %14211 = vmatmul.mubr.msk.f32.gmra.mrb[44].mxu0 %vm736_vm4, %v655_v48  ;;  %v691_v52 = vsel %vm608_vm3, %v688_v47, %v690_v50  ;;  %v730_v47 = vrot.slane %v18255_v45, 1 }
  0x72   : > { %14277 = vmatmul.mubr.msk.f32.gmra.mrb[44].mxu1 %vm736_vm4, %v655_v48  ;;  %1080 = vmatprep.mubr.f32.mxu0 %v17648_v7  ;;  %v489_v48 = vld [vmem:[%s17792_s17 + $0x150] sm:$0xff] }
  0x73   : > { %1529 = vmatprep.mubr.f32.mxu1 %v17648_v7  ;;  %v692_v53 = vrot.slane %v489_v48, 1  ;;  %v18264_v48 = vld [vmem:[%s17792_s17 + $0x1f0] sm:$0xff] }
  0x75   : > { %14212 = vmatmul.mubr.msk.f32.gmra.mrb[46].mxu0 %vm736_vm4, %v657_v51  ;;  %v693_v55 = vsel %vm608_vm3, %v690_v50, %v692_v53  ;;  %v732_v50 = vrot.slane %v18264_v48, 1 }
  0x76   : > { %14278 = vmatmul.mubr.msk.f32.gmra.mrb[46].mxu1 %vm736_vm4, %v657_v51  ;;  %1086 = vmatprep.mubr.f32.mxu0 %v17648_v7  ;;  %v490_v51 = vld [vmem:[%s17792_s17 + $0x158] sm:$0xff] }
  0x77   : > { %1535 = vmatprep.mubr.f32.mxu1 %v17648_v7  ;;  %v694_v56 = vrot.slane %v490_v51, 1  ;;  %v18273_v51 = vld [vmem:[%s17792_s17 + $0x1f8] sm:$0xff] }
  0x79   : > { %14213 = vmatmul.mubr.msk.f32.gmra.mrb[48].mxu0 %vm736_vm4, %v659_v54  ;;  %v695_v58 = vsel %vm608_vm3, %v692_v53, %v694_v56  ;;  %v734_v53 = vrot.slane %v18273_v51, 1 }
  0x7a   : > { %14279 = vmatmul.mubr.msk.f32.gmra.mrb[48].mxu1 %vm736_vm4, %v659_v54  ;;  %1092 = vmatprep.mubr.f32.mxu0 %v17648_v7  ;;  %v491_v54 = vld [vmem:[%s17792_s17 + $0x160] sm:$0xff] }
  0x7b   : > { %1541 = vmatprep.mubr.f32.mxu1 %v17648_v7  ;;  %v696_v59 = vrot.slane %v491_v54, 1  ;;  %v735_v54 = vsel %vm608_vm3, %v732_v50, %v734_v53 }
  0x7d   : > { %14214 = vmatmul.mubr.msk.f32.gmra.mrb[50].mxu0 %vm736_vm4, %v661_v57  ;;  %v697_v61 = vsel %vm608_vm3, %v694_v56, %v696_v59  ;;  %v18304_v56 = vld [vmem:[%s17792_s17 + $0x8] sm:$0xff] }
  0x7e   : > { %14280 = vmatmul.mubr.msk.f32.gmra.mrb[50].mxu1 %vm736_vm4, %v661_v57  ;;  %1098 = vmatprep.mubr.f32.mxu0 %v17648_v7  ;;  %v18108_v57 = vld [vmem:[%s17792_s17 + $0x168] sm:$0xff] }
  0x7f   : > { %1547 = vmatprep.mubr.f32.mxu1 %v17648_v7  ;;  %v698_v62 = vrot.slane %v18108_v57, 1 }
  0x81   : > { %14215 = vmatmul.mubr.msk.f32.gmra.mrb[52].mxu0 %vm736_vm4, %v663_v60  ;;  %v699_v0 = vsel %vm608_vm3, %v696_v59, %v698_v62  ;;  %v14456_v59 = vld [vmem:[%s22834_s1 + $0x128] sm:$0xff] }
  0x82   : > { %14281 = vmatmul.mubr.msk.f32.gmra.mrb[52].mxu1 %vm736_vm4, %v663_v60  ;;  %1104 = vmatprep.mubr.f32.mxu0 %v17648_v7  ;;  %v18116_v60 = vld [vmem:[%s17792_s17 + $0x170] sm:$0xff] }
  0x83   : > { %1553 = vmatprep.mubr.f32.mxu1 %v17648_v7  ;;  %v700_v1 = vrot.slane %v18116_v60, 1 }
  0x85   : > { %14216 = vmatmul.mubr.msk.f32.gmra.mrb[54].mxu0 %vm736_vm4, %v665_v63  ;;  %v701_v3 = vsel %vm608_vm3, %v698_v62, %v700_v1 }
  0x86   : > { %14282 = vmatmul.mubr.msk.f32.gmra.mrb[54].mxu1 %vm736_vm4, %v665_v63  ;;  %1110 = vmatprep.mubr.f32.mxu0 %v17648_v7  ;;  %v18125_v63 = vld [vmem:[%s17792_s17 + $0x178] sm:$0xff] }
  0x87   : > { %1559 = vmatprep.mubr.f32.mxu1 %v17648_v7  ;;  %v702_v4 = vrot.slane %v18125_v63, 1 }
  0x89   : > { %14217 = vmatmul.mubr.msk.f32.gmra.mrb[56].mxu0 %vm736_vm4, %v667_v2  ;;  %v703_v6 = vsel %vm608_vm3, %v700_v1, %v702_v4  ;;  %v14451_v1 = vld [vmem:[%s22834_s1 + $0x100] sm:$0xff] }
  0x8a   : > { %14283 = vmatmul.mubr.msk.f32.gmra.mrb[56].mxu1 %vm736_vm4, %v667_v2  ;;  %1116 = vmatprep.mubr.f32.mxu0 %v17648_v7  ;;  %v18134_v2 = vld [vmem:[%s17792_s17 + $0x180] sm:$0xff] }
  0x8b   : > { %1565 = vmatprep.mubr.f32.mxu1 %v17648_v7  ;;  %v704_v8 = vrot.slane %v18134_v2, 1 }
  0x8d   : > { %14218 = vmatmul.mubr.msk.f32.gmra.mrb[58].mxu0 %vm736_vm4, %v669_v5  ;;  %v705_v10 = vsel %vm608_vm3, %v702_v4, %v704_v8 }
  0x8e   : > { %14284 = vmatmul.mubr.msk.f32.gmra.mrb[58].mxu1 %vm736_vm4, %v669_v5  ;;  %1122 = vmatprep.mubr.f32.mxu0 %v17648_v7  ;;  %v18143_v5 = vld [vmem:[%s17792_s17 + $0x188] sm:$0xff] }
  0x8f   : > { %1571 = vmatprep.mubr.f32.mxu1 %v17648_v7  ;;  %v706_v11 = vrot.slane %v18143_v5, 1 }
  0x91   : > { %14219 = vmatmul.mubr.msk.f32.gmra.mrb[60].mxu0 %vm736_vm4, %v671_v9  ;;  %v707_v13 = vsel %vm608_vm3, %v704_v8, %v706_v11  ;;  %v14453_v8 = vld [vmem:[%s22834_s1 + $0x110] sm:$0xff] }
  0x92   : > { %14285 = vmatmul.mubr.msk.f32.gmra.mrb[60].mxu1 %vm736_vm4, %v671_v9  ;;  %1128 = vmatprep.mubr.f32.mxu0 %v17648_v7  ;;  %v18152_v9 = vld [vmem:[%s17792_s17 + $0x190] sm:$0xff] }
  0x93   : > { %1577 = vmatprep.mubr.f32.mxu1 %v17648_v7  ;;  %v708_v14 = vrot.slane %v18152_v9, 1 }
  0x95   : > { %14220 = vmatmul.mubr.msk.f32.gmra.mrb[62].mxu0 %vm736_vm4, %v673_v12  ;;  %v709_v17 = vsel %vm608_vm3, %v706_v11, %v708_v14 }
  0x96   : > { %14286 = vmatmul.mubr.msk.f32.gmra.mrb[62].mxu1 %vm736_vm4, %v673_v12  ;;  %1134 = vmatprep.mubr.f32.mxu0 %v17648_v7  ;;  %v18161_v12 = vld [vmem:[%s17792_s17 + $0x198] sm:$0xff] }
  0x97   : > { %1583 = vmatprep.mubr.f32.mxu1 %v17648_v7  ;;  %v710_v18 = vrot.slane %v18161_v12, 1 }
  0x99   : > { %14221 = vmatmul.mubr.msk.f32.gmra.mrb[64].mxu0 %vm736_vm4, %v675_v28  ;;  %v711_v20 = vsel %vm608_vm3, %v708_v14, %v710_v18  ;;  %v713_v23 = vsel %vm608_vm3, %v710_v18, %v712_v21  ;;  %v18346_v14 = vld [vmem:[%s17792_s17 + $0x18] sm:$0xff]  ;;  %v18364_v18 = vld [vmem:[%s17792_s17 + $0x28] sm:$0xff] }
  0x9a   : > { %14287 = vmatmul.mubr.msk.f32.gmra.mrb[64].mxu1 %vm736_vm4, %v675_v28  ;;  %1140 = vmatprep.mubr.f32.mxu0 %v17648_v7  ;;  %v18206_v28 = vld [vmem:[%s17792_s17 + $0x1c0] sm:$0xff]  ;;  %v18382_v21 = vld [vmem:[%s17792_s17 + $0x38] sm:$0xff] }
  0x9b   : > { %1589 = vmatprep.mubr.f32.mxu1 %v17648_v7  ;;  %v720_v32 = vrot.slane %v18206_v28, 1 }
  0x9d   : > { %14222 = vmatmul.mubr.msk.f32.gmra.mrb[66].mxu0 %vm736_vm4, %v677_v31 }
  0x9e   : > { %14288 = vmatmul.mubr.msk.f32.gmra.mrb[66].mxu1 %vm736_vm4, %v677_v31  ;;  %1146 = vmatprep.mubr.f32.mxu0 %v17648_v7  ;;  %v719_v31 = vsel %vm608_vm3, %v716_v27, %v718_v30  ;;  %v18418_v27 = vld [vmem:[%s17792_s17 + $0x58] sm:$0xff] }
  0x9f   : > { %1595 = vmatprep.mubr.f32.mxu1 %v17648_v7 }
  0xa1   : > { %14223 = vmatmul.mubr.msk.f32.gmra.mrb[68].mxu0 %vm736_vm4, %v679_v34 }
  0xa2   : > { %14289 = vmatmul.mubr.msk.f32.gmra.mrb[68].mxu1 %vm736_vm4, %v679_v34  ;;  %1152 = vmatprep.mubr.f32.mxu0 %v17648_v7  ;;  %v721_v34 = vsel %vm608_vm3, %v718_v30, %v720_v32  ;;  %v18436_v30 = vld [vmem:[%s17792_s17 + $0x68] sm:$0xff] }
  0xa3   : > { %1601 = vmatprep.mubr.f32.mxu1 %v17648_v7 }
  0xa5   : > { %14224 = vmatmul.mubr.msk.f32.gmra.mrb[70].mxu0 %vm736_vm4, %v681_v37 }
  0xa6   : > { %14290 = vmatmul.mubr.msk.f32.gmra.mrb[70].mxu1 %vm736_vm4, %v681_v37  ;;  %1158 = vmatprep.mubr.f32.mxu0 %v17648_v7  ;;  %v723_v37 = vsel %vm608_vm3, %v720_v32, %v722_v35  ;;  %v18454_v32 = vld [vmem:[%s17792_s17 + $0x78] sm:$0xff] }
  0xa7   : > { %1607 = vmatprep.mubr.f32.mxu1 %v17648_v7 }
  0xa9   : > { %14225 = vmatmul.mubr.msk.f32.gmra.mrb[72].mxu0 %vm736_vm4, %v683_v40 }
  0xaa   : > { %14291 = vmatmul.mubr.msk.f32.gmra.mrb[72].mxu1 %vm736_vm4, %v683_v40  ;;  %1164 = vmatprep.mubr.f32.mxu0 %v17648_v7  ;;  %v725_v40 = vsel %vm608_vm3, %v722_v35, %v724_v38  ;;  %v18472_v35 = vld [vmem:[%s17792_s17 + $0x88] sm:$0xff] }
  0xab   : > { %1613 = vmatprep.mubr.f32.mxu1 %v17648_v7 }
  0xad   : > { %14226 = vmatmul.mubr.msk.f32.gmra.mrb[74].mxu0 %vm736_vm4, %v685_v43 }
  0xae   : > { %14292 = vmatmul.mubr.msk.f32.gmra.mrb[74].mxu1 %vm736_vm4, %v685_v43  ;;  %1170 = vmatprep.mubr.f32.mxu0 %v17648_v7  ;;  %v727_v43 = vsel %vm608_vm3, %v724_v38, %v726_v41  ;;  %v18490_v38 = vld [vmem:[%s17792_s17 + $0x98] sm:$0xff] }
  0xaf   : > { %1619 = vmatprep.mubr.f32.mxu1 %v17648_v7 }
  0xb1   : > { %14227 = vmatmul.mubr.msk.f32.gmra.mrb[76].mxu0 %vm736_vm4, %v687_v46 }
  0xb2   : > { %14293 = vmatmul.mubr.msk.f32.gmra.mrb[76].mxu1 %vm736_vm4, %v687_v46  ;;  %1176 = vmatprep.mubr.f32.mxu0 %v17648_v7  ;;  %v729_v46 = vsel %vm608_vm3, %v726_v41, %v728_v44  ;;  %v18508_v41 = vld [vmem:[%s17792_s17 + $0xa8] sm:$0xff] }
  0xb3   : > { %1625 = vmatprep.mubr.f32.mxu1 %v17648_v7 }
  0xb5   : > { %14228 = vmatmul.mubr.msk.f32.gmra.mrb[78].mxu0 %vm736_vm4, %v689_v49 }
  0xb6   : > { %14294 = vmatmul.mubr.msk.f32.gmra.mrb[78].mxu1 %vm736_vm4, %v689_v49  ;;  %1182 = vmatprep.mubr.f32.mxu0 %v17648_v7  ;;  %v731_v49 = vsel %vm608_vm3, %v728_v44, %v730_v47  ;;  %v18526_v44 = vld [vmem:[%s17792_s17 + $0xb8] sm:$0xff] }
  0xb7   : > { %1631 = vmatprep.mubr.f32.mxu1 %v17648_v7 }
  0xb9   : > { %14229 = vmatmul.mubr.msk.f32.gmra.mrb[80].mxu0 %vm736_vm4, %v691_v52 }
  0xba   : > { %14295 = vmatmul.mubr.msk.f32.gmra.mrb[80].mxu1 %vm736_vm4, %v691_v52  ;;  %1188 = vmatprep.mubr.f32.mxu0 %v17648_v7  ;;  %v733_v52 = vsel %vm608_vm3, %v730_v47, %v732_v50  ;;  %v18544_v47 = vld [vmem:[%s17792_s17 + $0xc8] sm:$0xff]  ;;  %v18562_v50 = vld [vmem:[%s17792_s17 + $0xd8] sm:$0xff] }
  0xbb   : > { %1637 = vmatprep.mubr.f32.mxu1 %v17648_v7 }
  0xbd   : > { %14230 = vmatmul.mubr.msk.f32.gmra.mrb[82].mxu0 %vm736_vm4, %v693_v55 }
  0xbe   : > { %14296 = vmatmul.mubr.msk.f32.gmra.mrb[82].mxu1 %vm736_vm4, %v693_v55  ;;  %1194 = vmatprep.mubr.f32.mxu0 %v17648_v7  ;;  %v18295_v55 = vld [vmem:[%s17792_s17] sm:$0xff] }
  0xbf   : > { %1643 = vmatprep.mubr.f32.mxu1 %v17648_v7 }
  0xc1   : > { %14231 = vmatmul.mubr.msk.f32.gmra.mrb[84].mxu0 %vm736_vm4, %v695_v58 }
  0xc2   : > { %14297 = vmatmul.mubr.msk.f32.gmra.mrb[84].mxu1 %vm736_vm4, %v695_v58  ;;  %1200 = vmatprep.mubr.f32.mxu0 %v17648_v7  ;;  %v14452_v58 = vld [vmem:[%s22834_s1 + $0x108] sm:$0xff] }
  0xc3   : > { %1649 = vmatprep.mubr.f32.mxu1 %v17648_v7  ;;  %v15464_v62 = vpack.c.bf16 %v14456_v59, %v14452_v58  ;;  %v14460_v58 = vld [vmem:[%s22834_s1 + $0x148] sm:$0xff] }
  0xc4   : > { %v14464_v59 = vld [vmem:[%s22834_s1 + $0x168] sm:$0x3f] }
  0xc5   : > { %14232 = vmatmul.mubr.msk.f32.gmra.mrb[86].mxu0 %vm736_vm4, %v697_v61  ;;  %15465 = vmatprep.subr.bf16.mxu0 %v15464_v62  ;;  %v15468_v62 = vpack.c.bf16 %v14464_v59, %v14460_v58  ;;  %v18639_v59 = vld [vmem:[%s17792_s17 + $0x100] sm:$0xff] }
  0xc6   : > { %14298 = vmatmul.mubr.msk.f32.gmra.mrb[86].mxu1 %vm736_vm4, %v697_v61  ;;  %1206 = vmatprep.mubr.f32.mxu0 %v17648_v7  ;;  %v14454_v61 = vld [vmem:[%s22834_s1 + $0x118] sm:$0xff] }
  0xc7   : > { %1655 = vmatprep.mubr.f32.mxu1 %v17648_v7 }
  0xc9   : > { %14233 = vmatmul.mubr.msk.f32.gmra.mrb[88].mxu0 %vm736_vm4, %v699_v0 }
  0xca   : > { %14299 = vmatmul.mubr.msk.f32.gmra.mrb[88].mxu1 %vm736_vm4, %v699_v0  ;;  %1212 = vmatprep.mubr.f32.mxu0 %v17648_v7  ;;  %v14458_v0 = vld [vmem:[%s22834_s1 + $0x138] sm:$0xff] }
  0xcb   : > { %1661 = vmatprep.mubr.f32.mxu1 %v17648_v7  ;;  %v15474_v4 = vpack.c.bf16 %v14458_v0, %v14454_v61  ;;  %v14462_v61 = vld [vmem:[%s22834_s1 + $0x158] sm:$0xff] }
  0xcc   : > { %v14466_v0 = vld [vmem:[%s22834_s1 + $0x178] sm:$0x3f] }
  0xcd   : > { %14234 = vmatmul.mubr.msk.f32.gmra.mrb[90].mxu0 %vm736_vm4, %v701_v3  ;;  %15475 = vmatprep.subr.bf16.mxu1 %v15474_v4  ;;  %v15478_v4 = vpack.c.bf16 %v14466_v0, %v14462_v61  ;;  %v18648_v61 = vld [vmem:[%s17792_s17 + $0x108] sm:$0xff]  ;;  %v18675_v0 = vld [vmem:[%s17792_s17 + $0x120] sm:$0xff] }
  0xce   : > { %14300 = vmatmul.mubr.msk.f32.gmra.mrb[90].mxu1 %vm736_vm4, %v701_v3  ;;  %1218 = vmatprep.mubr.f32.mxu0 %v17648_v7  ;;  %v14455_v3 = vld [vmem:[%s22834_s1 + $0x120] sm:$0xff] }
  0xcf   : > { %1667 = vmatprep.mubr.f32.mxu1 %v17648_v7 }
  0xd1   : > { %14235 = vmatmul.mubr.msk.f32.gmra.mrb[92].mxu0 %vm736_vm4, %v703_v6 }
  0xd2   : > { %14301 = vmatmul.mubr.msk.f32.gmra.mrb[92].mxu1 %vm736_vm4, %v703_v6  ;;  %1224 = vmatprep.mubr.f32.mxu0 %v17648_v7  ;;  %v15466_v6 = vpack.c.bf16 %v14455_v3, %v14451_v1  ;;  %v14459_v1 = vld [vmem:[%s22834_s1 + $0x140] sm:$0xff] }
  0xd3   : > { %1673 = vmatprep.mubr.f32.mxu1 %v17648_v7  ;;  %v14463_v3 = vld [vmem:[%s22834_s1 + $0x160] sm:$0x3f] }
  0xd5   : > { %14236 = vmatmul.mubr.msk.f32.gmra.mrb[94].mxu0 %vm736_vm4, %v705_v10 }
  0xd6   : > { %14302 = vmatmul.mubr.msk.f32.gmra.mrb[94].mxu1 %vm736_vm4, %v705_v10  ;;  %1230 = vmatprep.mubr.f32.mxu0 %v17648_v7  ;;  %v14457_v10 = vld [vmem:[%s22834_s1 + $0x130] sm:$0xff] }
  0xd7   : > { %1679 = vmatprep.mubr.f32.mxu1 %v17648_v7  ;;  %v15476_v11 = vpack.c.bf16 %v14457_v10, %v14453_v8  ;;  %v14461_v8 = vld [vmem:[%s22834_s1 + $0x150] sm:$0xff] }
  0xd8   : > { %v14465_v10 = vld [vmem:[%s22834_s1 + $0x170] sm:$0x3f] }
  0xd9   : > { %14237 = vmatmul.mubr.msk.f32.gmra.mrb[96].mxu0 %vm736_vm4, %v707_v13  ;;  %v15481_v58 = vpack.c.bf16 %v14465_v10, %v14461_v8  ;;  %v18720_v8 = vld [vmem:[%s17792_s17 + $0x148] sm:$0xff]  ;;  %v18729_v10 = vld [vmem:[%s17792_s17 + $0x150] sm:$0xff] }
  0xda   : > { %14303 = vmatmul.mubr.msk.f32.gmra.mrb[96].mxu1 %vm736_vm4, %v707_v13  ;;  %1236 = vmatprep.mubr.f32.mxu0 %v17648_v7  ;;  %v18337_v13 = vld [vmem:[%s17792_s17 + $0x10] sm:$0xff]  ;;  %22909 = vst [vmem:[#allocation2_spill] sm:$0xff] %v18720_v8 }
  0xdb   : > { %1685 = vmatprep.mubr.f32.mxu1 %v17648_v7 }
  0xdd   : > { %14238 = vmatmul.mubr.msk.f32.gmra.mrb[98].mxu0 %vm736_vm4, %v709_v17 }
  0xde   : > { %14304 = vmatmul.mubr.msk.f32.gmra.mrb[98].mxu1 %vm736_vm4, %v709_v17  ;;  %1242 = vmatprep.mubr.f32.mxu0 %v17648_v7  ;;  %v18355_v17 = vld [vmem:[%s17792_s17 + $0x20] sm:$0xff] }
  0xdf   : > { %1691 = vmatprep.mubr.f32.mxu1 %v17648_v7 }
  0xe1   : > { %14239 = vmatmul.mubr.msk.f32.gmra.mrb[100].mxu0 %vm736_vm4, %v711_v20 }
  0xe2   : > { %14305 = vmatmul.mubr.msk.f32.gmra.mrb[100].mxu1 %vm736_vm4, %v711_v20  ;;  %1248 = vmatprep.mubr.f32.mxu0 %v17648_v7  ;;  %v18373_v20 = vld [vmem:[%s17792_s17 + $0x30] sm:$0xff] }
  0xe3   : > { %1697 = vmatprep.mubr.f32.mxu1 %v17648_v7 }
  0xe5   : > { %14240 = vmatmul.mubr.msk.f32.gmra.mrb[102].mxu0 %vm736_vm4, %v713_v23 }
  0xe6   : > { %14306 = vmatmul.mubr.msk.f32.gmra.mrb[102].mxu1 %vm736_vm4, %v713_v23  ;;  %1254 = vmatprep.mubr.f32.mxu0 %v17648_v7  ;;  %v18391_v23 = vld [vmem:[%s17792_s17 + $0x40] sm:$0xff] }
  0xe7   : > { %1703 = vmatprep.mubr.f32.mxu1 %v17648_v7 }
  0xe9   : > { %14241 = vmatmul.mubr.msk.f32.gmra.mrb[104].mxu0 %vm736_vm4, %v715_v26 }
  0xea   : > { %14307 = vmatmul.mubr.msk.f32.gmra.mrb[104].mxu1 %vm736_vm4, %v715_v26  ;;  %1260 = vmatprep.mubr.f32.mxu0 %v17648_v7  ;;  %v18409_v26 = vld [vmem:[%s17792_s17 + $0x50] sm:$0xff] }
  0xeb   : > { %1709 = vmatprep.mubr.f32.mxu1 %v17648_v7 }
  0xed   : > { %14242 = vmatmul.mubr.msk.f32.gmra.mrb[106].mxu0 %vm736_vm4, %v717_v29 }
  0xee   : > { %14308 = vmatmul.mubr.msk.f32.gmra.mrb[106].mxu1 %vm736_vm4, %v717_v29  ;;  %1266 = vmatprep.mubr.f32.mxu0 %v17648_v7  ;;  %v18427_v29 = vld [vmem:[%s17792_s17 + $0x60] sm:$0xff] }
  0xef   : > { %1715 = vmatprep.mubr.f32.mxu1 %v17648_v7 }
  0xf1   : > { %14243 = vmatmul.mubr.msk.f32.gmra.mrb[108].mxu0 %vm736_vm4, %v719_v31 }
  0xf2   : > { %14309 = vmatmul.mubr.msk.f32.gmra.mrb[108].mxu1 %vm736_vm4, %v719_v31  ;;  %1272 = vmatprep.mubr.f32.mxu0 %v17648_v7  ;;  %v18445_v31 = vld [vmem:[%s17792_s17 + $0x70] sm:$0xff] }
  0xf3   : > { %1721 = vmatprep.mubr.f32.mxu1 %v17648_v7 }
  0xf5   : > { %14244 = vmatmul.mubr.msk.f32.gmra.mrb[110].mxu0 %vm736_vm4, %v721_v34 }
  0xf6   : > { %14310 = vmatmul.mubr.msk.f32.gmra.mrb[110].mxu1 %vm736_vm4, %v721_v34  ;;  %1278 = vmatprep.mubr.f32.mxu0 %v17648_v7  ;;  %v18463_v34 = vld [vmem:[%s17792_s17 + $0x80] sm:$0xff] }
  0xf7   : > { %1727 = vmatprep.mubr.f32.mxu1 %v17648_v7 }
  0xf9   : > { %14245 = vmatmul.mubr.msk.f32.gmra.mrb[112].mxu0 %vm736_vm4, %v723_v37 }
  0xfa   : > { %14311 = vmatmul.mubr.msk.f32.gmra.mrb[112].mxu1 %vm736_vm4, %v723_v37  ;;  %1284 = vmatprep.mubr.f32.mxu0 %v17648_v7  ;;  %v18481_v37 = vld [vmem:[%s17792_s17 + $0x90] sm:$0xff] }
  0xfb   : > { %1733 = vmatprep.mubr.f32.mxu1 %v17648_v7 }
  0xfd   : > { %14246 = vmatmul.mubr.msk.f32.gmra.mrb[114].mxu0 %vm736_vm4, %v725_v40 }
  0xfe   : > { %14312 = vmatmul.mubr.msk.f32.gmra.mrb[114].mxu1 %vm736_vm4, %v725_v40  ;;  %1290 = vmatprep.mubr.f32.mxu0 %v17648_v7  ;;  %v18499_v40 = vld [vmem:[%s17792_s17 + $0xa0] sm:$0xff] }
  0xff   : > { %1739 = vmatprep.mubr.f32.mxu1 %v17648_v7 }
 0x101   : > { %14247 = vmatmul.mubr.msk.f32.gmra.mrb[116].mxu0 %vm736_vm4, %v727_v43 }
 0x102   : > { %14313 = vmatmul.mubr.msk.f32.gmra.mrb[116].mxu1 %vm736_vm4, %v727_v43  ;;  %1296 = vmatprep.mubr.f32.mxu0 %v17648_v7  ;;  %v18517_v43 = vld [vmem:[%s17792_s17 + $0xb0] sm:$0xff] }
 0x103   : > { %1745 = vmatprep.mubr.f32.mxu1 %v17648_v7 }
 0x105   : > { %14248 = vmatmul.mubr.msk.f32.gmra.mrb[118].mxu0 %vm736_vm4, %v729_v46 }
 0x106   : > { %14314 = vmatmul.mubr.msk.f32.gmra.mrb[118].mxu1 %vm736_vm4, %v729_v46  ;;  %1302 = vmatprep.mubr.f32.mxu0 %v17648_v7  ;;  %v18535_v46 = vld [vmem:[%s17792_s17 + $0xc0] sm:$0xff] }
 0x107   : > { %1751 = vmatprep.mubr.f32.mxu1 %v17648_v7 }
 0x109   : > { %14249 = vmatmul.mubr.msk.f32.gmra.mrb[120].mxu0 %vm736_vm4, %v731_v49 }
 0x10a   : > { %14315 = vmatmul.mubr.msk.f32.gmra.mrb[120].mxu1 %vm736_vm4, %v731_v49  ;;  %1308 = vmatprep.mubr.f32.mxu0 %v17648_v7  ;;  %v18553_v49 = vld [vmem:[%s17792_s17 + $0xd0] sm:$0xff] }
 0x10b   : > { %1757 = vmatprep.mubr.f32.mxu1 %v17648_v7 }
 0x10d   : > { %14250 = vmatmul.mubr.msk.f32.gmra.mrb[122].mxu0 %vm736_vm4, %v733_v52 }
 0x10e   : > { %14316 = vmatmul.mubr.msk.f32.gmra.mrb[122].mxu1 %vm736_vm4, %v733_v52  ;;  %1314 = vmatprep.mubr.f32.mxu0 %v17648_v7  ;;  %v18571_v52 = vld [vmem:[%s17792_s17 + $0xe0] sm:$0xff] }
 0x10f   : > { %1763 = vmatprep.mubr.f32.mxu1 %v17648_v7 }
 0x111   : > { %14251 = vmatmul.mubr.msk.f32.gmra.mrb[124].mxu0 %vm736_vm4, %v735_v54 }
 0x112   : > { %14317 = vmatmul.mubr.msk.f32.gmra.mrb[124].mxu1 %vm736_vm4, %v735_v54  ;;  %1320 = vmatprep.mubr.f32.mxu0 %v17648_v7  ;;  %v18589_v54 = vld [vmem:[%s17792_s17 + $0xf0] sm:$0xff] }
 0x113   : > { %1769 = vmatprep.mubr.f32.mxu1 %v17648_v7 }
 0x115   : > { %14252 = vmatmul.mubr.msk.f32.gmra.mrb[126].mxu0 %vm736_vm4, %v734_v53 }
 0x116   : > { %14318 = vmatmul.mubr.msk.f32.gmra.mrb[126].mxu1 %vm736_vm4, %v734_v53  ;;  %1980 = vmatprep.mubr.f32.mxu0 %v17648_v7  ;;  %v18580_v53 = vld [vmem:[%s17792_s17 + $0xe8] sm:$0xff] }
 0x117   : > { %2429 = vmatprep.mubr.f32.mxu1 %v17648_v7 }
 0x119   : > { %14321 = vmatmul.mubr.msk.f32.vlgmr.msra.gmra.mrb[0].mxu0 %vm736_vm4, %v18295_v55 }
 0x11a   : > { %14387 = vmatmul.mubr.msk.f32.vlgmr.msra.gmra.mrb[0].mxu1 %vm736_vm4, %v18295_v55  ;;  %1986 = vmatprep.mubr.f32.mxu0 %v17648_v7 }
 0x11b   : > { %2435 = vmatprep.mubr.f32.mxu1 %v17648_v7  ;;  %15467 = vmatpush1.bf16.msra.mxu0 %v15466_v6  ;;  %v15471_v6 = vpack.c.bf16 %v14463_v3, %v14459_v1  ;;  %v18684_v1 = vld [vmem:[%s17792_s17 + $0x128] sm:$0xff]  ;;  %v18693_v3 = vld [vmem:[%s17792_s17 + $0x130] sm:$0xff] }
 0x11c   : > { %15477 = vmatpush1.bf16.msra.mxu1 %v15476_v11  ;;  %v18622_v11 = vld [vmem:[%s17792_s17 + $0xf8] sm:$0xff]  ;;  %15470 = vmatprep.subr.msk.bf16.mxu0 %vm17763_vm2, %v15468_v62 }
 0x11d   : > { %14322 = vmatmul.mubr.msk.f32.gmra.mrb[2].mxu0 %vm736_vm4, %v18304_v56  ;;  %15480 = vmatprep.subr.msk.bf16.mxu1 %vm17763_vm2, %v15478_v4  ;;  %v18666_v62 = vld [vmem:[%s17792_s17 + $0x118] sm:$0xff] }
 0x11e   : > { %14388 = vmatmul.mubr.msk.f32.gmra.mrb[2].mxu1 %vm736_vm4, %v18304_v56  ;;  %1992 = vmatprep.mubr.f32.mxu0 %v17648_v7  ;;  %v18702_v4 = vld [vmem:[%s17792_s17 + $0x138] sm:$0xff] }
 0x11f   : > { %2441 = vmatprep.mubr.f32.mxu1 %v17648_v7  ;;  %15473 = vmatpush1.bf16.msk.msra.mxu0 %vm17763_vm2, %v15471_v6  ;;  %v18711_v6 = vld [vmem:[%s17792_s17 + $0x140] sm:$0xff] }
 0x120   : > { %15483 = vmatpush1.bf16.msk.msra.mxu1 %vm17763_vm2, %v15481_v58  ;;  %v18738_v58 = vld [vmem:[%s17792_s17 + $0x158] sm:$0xff] }
 0x121   : > { %14323 = vmatmul.mubr.msk.f32.gmra.mrb[4].mxu0 %vm736_vm4, %v18337_v13 }
 0x122   : > { %14389 = vmatmul.mubr.msk.f32.gmra.mrb[4].mxu1 %vm736_vm4, %v18337_v13  ;;  %1998 = vmatprep.mubr.f32.mxu0 %v17648_v7 }
 0x123   : > { %2447 = vmatprep.mubr.f32.mxu1 %v17648_v7 }
 0x125   : > { %14324 = vmatmul.mubr.msk.f32.gmra.mrb[6].mxu0 %vm736_vm4, %v18346_v14 }
 0x126   : > { %14390 = vmatmul.mubr.msk.f32.gmra.mrb[6].mxu1 %vm736_vm4, %v18346_v14  ;;  %2004 = vmatprep.mubr.f32.mxu0 %v17648_v7 }
 0x127   : > { %2453 = vmatprep.mubr.f32.mxu1 %v17648_v7 }
 0x129   : > { %14325 = vmatmul.mubr.msk.f32.gmra.mrb[8].mxu0 %vm736_vm4, %v18355_v17 }
 0x12a   : > { %14391 = vmatmul.mubr.msk.f32.gmra.mrb[8].mxu1 %vm736_vm4, %v18355_v17  ;;  %2010 = vmatprep.mubr.f32.mxu0 %v17648_v7 }
 0x12b   : > { %2459 = vmatprep.mubr.f32.mxu1 %v17648_v7 }
 0x12d   : > { %14326 = vmatmul.mubr.msk.f32.gmra.mrb[10].mxu0 %vm736_vm4, %v18364_v18 }
 0x12e   : > { %14392 = vmatmul.mubr.msk.f32.gmra.mrb[10].mxu1 %vm736_vm4, %v18364_v18  ;;  %2016 = vmatprep.mubr.f32.mxu0 %v17648_v7 }
 0x12f   : > { %2465 = vmatprep.mubr.f32.mxu1 %v17648_v7 }
 0x131   : > { %14327 = vmatmul.mubr.msk.f32.gmra.mrb[12].mxu0 %vm736_vm4, %v18373_v20 }
 0x132   : > { %14393 = vmatmul.mubr.msk.f32.gmra.mrb[12].mxu1 %vm736_vm4, %v18373_v20  ;;  %2022 = vmatprep.mubr.f32.mxu0 %v17648_v7 }
 0x133   : > { %2471 = vmatprep.mubr.f32.mxu1 %v17648_v7 }
 0x135   : > { %14328 = vmatmul.mubr.msk.f32.gmra.mrb[14].mxu0 %vm736_vm4, %v18382_v21 }
 0x136   : > { %14394 = vmatmul.mubr.msk.f32.gmra.mrb[14].mxu1 %vm736_vm4, %v18382_v21  ;;  %2028 = vmatprep.mubr.f32.mxu0 %v17648_v7 }
 0x137   : > { %2477 = vmatprep.mubr.f32.mxu1 %v17648_v7 }
 0x139   : > { %14329 = vmatmul.mubr.msk.f32.gmra.mrb[16].mxu0 %vm736_vm4, %v18391_v23 }
 0x13a   : > { %14395 = vmatmul.mubr.msk.f32.gmra.mrb[16].mxu1 %vm736_vm4, %v18391_v23  ;;  %2034 = vmatprep.mubr.f32.mxu0 %v17648_v7 }
 0x13b   : > { %2483 = vmatprep.mubr.f32.mxu1 %v17648_v7 }
 0x13d   : > { %14330 = vmatmul.mubr.msk.f32.gmra.mrb[18].mxu0 %vm736_vm4, %v18400_v24 }
 0x13e   : > { %14396 = vmatmul.mubr.msk.f32.gmra.mrb[18].mxu1 %vm736_vm4, %v18400_v24  ;;  %2040 = vmatprep.mubr.f32.mxu0 %v17648_v7 }
 0x13f   : > { %2489 = vmatprep.mubr.f32.mxu1 %v17648_v7 }
 0x141   : > { %14331 = vmatmul.mubr.msk.f32.gmra.mrb[20].mxu0 %vm736_vm4, %v18409_v26 }
 0x142   : > { %14397 = vmatmul.mubr.msk.f32.gmra.mrb[20].mxu1 %vm736_vm4, %v18409_v26  ;;  %2046 = vmatprep.mubr.f32.mxu0 %v17648_v7 }
 0x143   : > { %2495 = vmatprep.mubr.f32.mxu1 %v17648_v7 }
 0x145   : > { %14332 = vmatmul.mubr.msk.f32.gmra.mrb[22].mxu0 %vm736_vm4, %v18418_v27 }
 0x146   : > { %14398 = vmatmul.mubr.msk.f32.gmra.mrb[22].mxu1 %vm736_vm4, %v18418_v27  ;;  %2052 = vmatprep.mubr.f32.mxu0 %v17648_v7 }
 0x147   : > { %2501 = vmatprep.mubr.f32.mxu1 %v17648_v7 }
 0x149   : > { %14333 = vmatmul.mubr.msk.f32.gmra.mrb[24].mxu0 %vm736_vm4, %v18427_v29 }
 0x14a   : > { %14399 = vmatmul.mubr.msk.f32.gmra.mrb[24].mxu1 %vm736_vm4, %v18427_v29  ;;  %2058 = vmatprep.mubr.f32.mxu0 %v17648_v7 }
 0x14b   : > { %2507 = vmatprep.mubr.f32.mxu1 %v17648_v7 }
 0x14d   : > { %14334 = vmatmul.mubr.msk.f32.gmra.mrb[26].mxu0 %vm736_vm4, %v18436_v30 }
 0x14e   : > { %14400 = vmatmul.mubr.msk.f32.gmra.mrb[26].mxu1 %vm736_vm4, %v18436_v30  ;;  %2064 = vmatprep.mubr.f32.mxu0 %v17648_v7 }
 0x14f   : > { %2513 = vmatprep.mubr.f32.mxu1 %v17648_v7 }
 0x151   : > { %14335 = vmatmul.mubr.msk.f32.gmra.mrb[28].mxu0 %vm736_vm4, %v18445_v31 }
 0x152   : > { %14401 = vmatmul.mubr.msk.f32.gmra.mrb[28].mxu1 %vm736_vm4, %v18445_v31  ;;  %2070 = vmatprep.mubr.f32.mxu0 %v17648_v7 }
 0x153   : > { %2519 = vmatprep.mubr.f32.mxu1 %v17648_v7 }
 0x155   : > { %14336 = vmatmul.mubr.msk.f32.gmra.mrb[30].mxu0 %vm736_vm4, %v18454_v32 }
 0x156   : > { %14402 = vmatmul.mubr.msk.f32.gmra.mrb[30].mxu1 %vm736_vm4, %v18454_v32  ;;  %2076 = vmatprep.mubr.f32.mxu0 %v17648_v7 }
 0x157   : > { %2525 = vmatprep.mubr.f32.mxu1 %v17648_v7 }
 0x159   : > { %14337 = vmatmul.mubr.msk.f32.gmra.mrb[32].mxu0 %vm736_vm4, %v18463_v34 }
 0x15a   : > { %14403 = vmatmul.mubr.msk.f32.gmra.mrb[32].mxu1 %vm736_vm4, %v18463_v34  ;;  %2082 = vmatprep.mubr.f32.mxu0 %v17648_v7 }
 0x15b   : > { %2531 = vmatprep.mubr.f32.mxu1 %v17648_v7 }
 0x15d   : > { %14338 = vmatmul.mubr.msk.f32.gmra.mrb[34].mxu0 %vm736_vm4, %v18472_v35 }
 0x15e   : > { %14404 = vmatmul.mubr.msk.f32.gmra.mrb[34].mxu1 %vm736_vm4, %v18472_v35  ;;  %2088 = vmatprep.mubr.f32.mxu0 %v17648_v7 }
 0x15f   : > { %2537 = vmatprep.mubr.f32.mxu1 %v17648_v7 }
 0x161   : > { %14339 = vmatmul.mubr.msk.f32.gmra.mrb[36].mxu0 %vm736_vm4, %v18481_v37 }
 0x162   : > { %14405 = vmatmul.mubr.msk.f32.gmra.mrb[36].mxu1 %vm736_vm4, %v18481_v37  ;;  %2094 = vmatprep.mubr.f32.mxu0 %v17648_v7 }
 0x163   : > { %2543 = vmatprep.mubr.f32.mxu1 %v17648_v7 }
 0x165   : > { %14340 = vmatmul.mubr.msk.f32.gmra.mrb[38].mxu0 %vm736_vm4, %v18490_v38 }
 0x166   : > { %14406 = vmatmul.mubr.msk.f32.gmra.mrb[38].mxu1 %vm736_vm4, %v18490_v38  ;;  %2100 = vmatprep.mubr.f32.mxu0 %v17648_v7 }
 0x167   : > { %2549 = vmatprep.mubr.f32.mxu1 %v17648_v7 }
 0x169   : > { %14341 = vmatmul.mubr.msk.f32.gmra.mrb[40].mxu0 %vm736_vm4, %v18499_v40 }
 0x16a   : > { %14407 = vmatmul.mubr.msk.f32.gmra.mrb[40].mxu1 %vm736_vm4, %v18499_v40  ;;  %2106 = vmatprep.mubr.f32.mxu0 %v17648_v7 }
 0x16b   : > { %2555 = vmatprep.mubr.f32.mxu1 %v17648_v7 }
 0x16d   : > { %14342 = vmatmul.mubr.msk.f32.gmra.mrb[42].mxu0 %vm736_vm4, %v18508_v41 }
 0x16e   : > { %14408 = vmatmul.mubr.msk.f32.gmra.mrb[42].mxu1 %vm736_vm4, %v18508_v41  ;;  %2112 = vmatprep.mubr.f32.mxu0 %v17648_v7 }
 0x16f   : > { %2561 = vmatprep.mubr.f32.mxu1 %v17648_v7 }
 0x171   : > { %14343 = vmatmul.mubr.msk.f32.gmra.mrb[44].mxu0 %vm736_vm4, %v18517_v43 }
 0x172   : > { %14409 = vmatmul.mubr.msk.f32.gmra.mrb[44].mxu1 %vm736_vm4, %v18517_v43  ;;  %2118 = vmatprep.mubr.f32.mxu0 %v17648_v7 }
 0x173   : > { %2567 = vmatprep.mubr.f32.mxu1 %v17648_v7 }
 0x175   : > { %14344 = vmatmul.mubr.msk.f32.gmra.mrb[46].mxu0 %vm736_vm4, %v18526_v44 }
 0x176   : > { %14410 = vmatmul.mubr.msk.f32.gmra.mrb[46].mxu1 %vm736_vm4, %v18526_v44  ;;  %2124 = vmatprep.mubr.f32.mxu0 %v17648_v7 }
 0x177   : > { %2573 = vmatprep.mubr.f32.mxu1 %v17648_v7 }
 0x179   : > { %14345 = vmatmul.mubr.msk.f32.gmra.mrb[48].mxu0 %vm736_vm4, %v18535_v46 }
 0x17a   : > { %14411 = vmatmul.mubr.msk.f32.gmra.mrb[48].mxu1 %vm736_vm4, %v18535_v46  ;;  %2130 = vmatprep.mubr.f32.mxu0 %v17648_v7 }
 0x17b   : > { %2579 = vmatprep.mubr.f32.mxu1 %v17648_v7 }
 0x17d   : > { %14346 = vmatmul.mubr.msk.f32.gmra.mrb[50].mxu0 %vm736_vm4, %v18544_v47 }
 0x17e   : > { %14412 = vmatmul.mubr.msk.f32.gmra.mrb[50].mxu1 %vm736_vm4, %v18544_v47  ;;  %2136 = vmatprep.mubr.f32.mxu0 %v17648_v7 }
 0x17f   : > { %2585 = vmatprep.mubr.f32.mxu1 %v17648_v7 }
 0x181   : > { %14347 = vmatmul.mubr.msk.f32.gmra.mrb[52].mxu0 %vm736_vm4, %v18553_v49 }
 0x182   : > { %14413 = vmatmul.mubr.msk.f32.gmra.mrb[52].mxu1 %vm736_vm4, %v18553_v49  ;;  %2142 = vmatprep.mubr.f32.mxu0 %v17648_v7 }
 0x183   : > { %2591 = vmatprep.mubr.f32.mxu1 %v17648_v7 }
 0x185   : > { %14348 = vmatmul.mubr.msk.f32.gmra.mrb[54].mxu0 %vm736_vm4, %v18562_v50 }
 0x186   : > { %14414 = vmatmul.mubr.msk.f32.gmra.mrb[54].mxu1 %vm736_vm4, %v18562_v50  ;;  %2148 = vmatprep.mubr.f32.mxu0 %v17648_v7 }
 0x187   : > { %2597 = vmatprep.mubr.f32.mxu1 %v17648_v7 }
 0x189   : > { %14349 = vmatmul.mubr.msk.f32.gmra.mrb[56].mxu0 %vm736_vm4, %v18571_v52 }
 0x18a   : > { %14415 = vmatmul.mubr.msk.f32.gmra.mrb[56].mxu1 %vm736_vm4, %v18571_v52  ;;  %2154 = vmatprep.mubr.f32.mxu0 %v17648_v7 }
 0x18b   : > { %2603 = vmatprep.mubr.f32.mxu1 %v17648_v7 }
 0x18d   : > { %14350 = vmatmul.mubr.msk.f32.gmra.mrb[58].mxu0 %vm736_vm4, %v18580_v53 }
 0x18e   : > { %14416 = vmatmul.mubr.msk.f32.gmra.mrb[58].mxu1 %vm736_vm4, %v18580_v53  ;;  %2160 = vmatprep.mubr.f32.mxu0 %v17648_v7 }
 0x18f   : > { %2609 = vmatprep.mubr.f32.mxu1 %v17648_v7 }
 0x191   : > { %14351 = vmatmul.mubr.msk.f32.gmra.mrb[60].mxu0 %vm736_vm4, %v18589_v54 }
 0x192   : > { %14417 = vmatmul.mubr.msk.f32.gmra.mrb[60].mxu1 %vm736_vm4, %v18589_v54  ;;  %2166 = vmatprep.mubr.f32.mxu0 %v17648_v7 }
 0x193   : > { %2615 = vmatprep.mubr.f32.mxu1 %v17648_v7 }
 0x195   : > { %14352 = vmatmul.mubr.msk.f32.gmra.mrb[62].mxu0 %vm736_vm4, %v18622_v11 }
 0x196   : > { %14418 = vmatmul.mubr.msk.f32.gmra.mrb[62].mxu1 %vm736_vm4, %v18622_v11  ;;  %2172 = vmatprep.mubr.f32.mxu0 %v17648_v7 }
 0x197   : > { %2621 = vmatprep.mubr.f32.mxu1 %v17648_v7 }
 0x199   : > { %14353 = vmatmul.mubr.msk.f32.gmra.mrb[64].mxu0 %vm736_vm4, %v18639_v59 }
 0x19a   : > { %14419 = vmatmul.mubr.msk.f32.gmra.mrb[64].mxu1 %vm736_vm4, %v18639_v59  ;;  %2178 = vmatprep.mubr.f32.mxu0 %v17648_v7 }
 0x19b   : > { %2627 = vmatprep.mubr.f32.mxu1 %v17648_v7 }
 0x19d   : > { %14354 = vmatmul.mubr.msk.f32.gmra.mrb[66].mxu0 %vm736_vm4, %v18648_v61 }
 0x19e   : > { %14420 = vmatmul.mubr.msk.f32.gmra.mrb[66].mxu1 %vm736_vm4, %v18648_v61  ;;  %2184 = vmatprep.mubr.f32.mxu0 %v17648_v7 }
 0x19f   : > { %2633 = vmatprep.mubr.f32.mxu1 %v17648_v7 }
 0x1a1   : > { %14355 = vmatmul.mubr.msk.f32.gmra.mrb[68].mxu0 %vm736_vm4, %v18657_v15 }
 0x1a2   : > { %14421 = vmatmul.mubr.msk.f32.gmra.mrb[68].mxu1 %vm736_vm4, %v18657_v15  ;;  %2190 = vmatprep.mubr.f32.mxu0 %v17648_v7 }
 0x1a3   : > { %2639 = vmatprep.mubr.f32.mxu1 %v17648_v7 }
 0x1a5   : > { %14356 = vmatmul.mubr.msk.f32.gmra.mrb[70].mxu0 %vm736_vm4, %v18666_v62 }
 0x1a6   : > { %14422 = vmatmul.mubr.msk.f32.gmra.mrb[70].mxu1 %vm736_vm4, %v18666_v62  ;;  %2196 = vmatprep.mubr.f32.mxu0 %v17648_v7 }
 0x1a7   : > { %2645 = vmatprep.mubr.f32.mxu1 %v17648_v7 }
 0x1a9   : > { %14357 = vmatmul.mubr.msk.f32.gmra.mrb[72].mxu0 %vm736_vm4, %v18675_v0 }
 0x1aa   : > { %14423 = vmatmul.mubr.msk.f32.gmra.mrb[72].mxu1 %vm736_vm4, %v18675_v0  ;;  %2202 = vmatprep.mubr.f32.mxu0 %v17648_v7 }
 0x1ab   : > { %2651 = vmatprep.mubr.f32.mxu1 %v17648_v7 }
 0x1ad   : > { %14358 = vmatmul.mubr.msk.f32.gmra.mrb[74].mxu0 %vm736_vm4, %v18684_v1 }
 0x1ae   : > { %14424 = vmatmul.mubr.msk.f32.gmra.mrb[74].mxu1 %vm736_vm4, %v18684_v1  ;;  %2208 = vmatprep.mubr.f32.mxu0 %v17648_v7 }
 0x1af   : > { %2657 = vmatprep.mubr.f32.mxu1 %v17648_v7 }
 0x1b1   : > { %14359 = vmatmul.mubr.msk.f32.gmra.mrb[76].mxu0 %vm736_vm4, %v18693_v3 }
 0x1b2   : > { %14425 = vmatmul.mubr.msk.f32.gmra.mrb[76].mxu1 %vm736_vm4, %v18693_v3  ;;  %2214 = vmatprep.mubr.f32.mxu0 %v17648_v7 }
 0x1b3   : > { %2663 = vmatprep.mubr.f32.mxu1 %v17648_v7 }
 0x1b5   : > { %14360 = vmatmul.mubr.msk.f32.gmra.mrb[78].mxu0 %vm736_vm4, %v18702_v4 }
 0x1b6   : > { %14426 = vmatmul.mubr.msk.f32.gmra.mrb[78].mxu1 %vm736_vm4, %v18702_v4  ;;  %2220 = vmatprep.mubr.f32.mxu0 %v17648_v7 }
 0x1b7   : > { %2669 = vmatprep.mubr.f32.mxu1 %v17648_v7 }
 0x1b9   : > { %14361 = vmatmul.mubr.msk.f32.gmra.mrb[80].mxu0 %vm736_vm4, %v18711_v6 }
 0x1ba   : > { %14427 = vmatmul.mubr.msk.f32.gmra.mrb[80].mxu1 %vm736_vm4, %v18711_v6  ;;  %2226 = vmatprep.mubr.f32.mxu0 %v17648_v7 }
 0x1bb   : > { %2675 = vmatprep.mubr.f32.mxu1 %v17648_v7 }
 0x1bd   : > { %14362 = vmatmul.mubr.msk.f32.gmra.mrb[82].mxu0 %vm736_vm4, %v18720_v8 }
 0x1be   : > { %14428 = vmatmul.mubr.msk.f32.gmra.mrb[82].mxu1 %vm736_vm4, %v18720_v8  ;;  %2232 = vmatprep.mubr.f32.mxu0 %v17648_v7  ;;  %v18747_v8 = vld [vmem:[%s17792_s17 + $0x160] sm:$0xff] }
 0x1bf   : > { %2681 = vmatprep.mubr.f32.mxu1 %v17648_v7 }
 0x1c1   : > { %14363 = vmatmul.mubr.msk.f32.gmra.mrb[84].mxu0 %vm736_vm4, %v18729_v10 }
 0x1c2   : > { %14429 = vmatmul.mubr.msk.f32.gmra.mrb[84].mxu1 %vm736_vm4, %v18729_v10  ;;  %2238 = vmatprep.mubr.f32.mxu0 %v17648_v7 }
 0x1c3   : > { %2687 = vmatprep.mubr.f32.mxu1 %v17648_v7 }
 0x1c5   : > { %14364 = vmatmul.mubr.msk.f32.gmra.mrb[86].mxu0 %vm736_vm4, %v18738_v58 }
 0x1c6   : > { %14430 = vmatmul.mubr.msk.f32.gmra.mrb[86].mxu1 %vm736_vm4, %v18738_v58  ;;  %2244 = vmatprep.mubr.f32.mxu0 %v17648_v7 }
 0x1c7   : > { %2693 = vmatprep.mubr.f32.mxu1 %v17648_v7 }
 0x1c9   : > { %14365 = vmatmul.mubr.msk.f32.gmra.mrb[88].mxu0 %vm736_vm4, %v18747_v8 }
 0x1ca   : > { %14431 = vmatmul.mubr.msk.f32.gmra.mrb[88].mxu1 %vm736_vm4, %v18747_v8  ;;  %2250 = vmatprep.mubr.f32.mxu0 %v17648_v7 }
 0x1cb   : > { %2699 = vmatprep.mubr.f32.mxu1 %v17648_v7 }
 0x1cd   : > { %14366 = vmatmul.mubr.msk.f32.gmra.mrb[90].mxu0 %vm736_vm4, %v18108_v57 }
 0x1ce   : > { %14432 = vmatmul.mubr.msk.f32.gmra.mrb[90].mxu1 %vm736_vm4, %v18108_v57  ;;  %2256 = vmatprep.mubr.f32.mxu0 %v17648_v7  ;;  %v2831_v57 = vrot.slane %v18295_v55, 2  ;;  %v16718_v55 = vld [vmem:[%s22836_s3 + $0x14] ss:$8 sps:$4 sm:$0xff]  }
 0x1cf   : > { %2705 = vmatprep.mubr.f32.mxu1 %v17648_v7 }
 0x1d1   : > { %14367 = vmatmul.mubr.msk.f32.gmra.mrb[92].mxu0 %vm736_vm4, %v18116_v60 }
 0x1d2   : > { %14433 = vmatmul.mubr.msk.f32.gmra.mrb[92].mxu1 %vm736_vm4, %v18116_v60  ;;  %2262 = vmatprep.mubr.f32.mxu0 %v17648_v7  ;;  %v2832_v60 = vrot.slane %v18304_v56, 2 }
 0x1d3   : > { %2711 = vmatprep.mubr.f32.mxu1 %v17648_v7 }
 0x1d5   : > { %14368 = vmatmul.mubr.msk.f32.gmra.mrb[94].mxu0 %vm736_vm4, %v18125_v63 }
 0x1d6   : > { %14434 = vmatmul.mubr.msk.f32.gmra.mrb[94].mxu1 %vm736_vm4, %v18125_v63  ;;  %2268 = vmatprep.mubr.f32.mxu0 %v17648_v7  ;;  %v2833_v63 = vsel %vm865_vm0, %v2831_v57, %v2832_v60  ;;  %v2852_v57 = vrot.slane %v18418_v27, 2  ;;  %v2854_v27 = vrot.slane %v18427_v29, 2 }
 0x1d7   : > { %2717 = vmatprep.mubr.f32.mxu1 %v17648_v7 }
 0x1d8   : > { %v2855_v29 = vsel %vm865_vm0, %v2852_v57, %v2854_v27 }
 0x1d9   : > { %14369 = vmatmul.mubr.msk.f32.gmra.mrb[96].mxu0 %vm736_vm4, %v18134_v2 }
 0x1da   : > { %14435 = vmatmul.mubr.msk.f32.gmra.mrb[96].mxu1 %vm736_vm4, %v18134_v2  ;;  %2274 = vmatprep.mubr.f32.mxu0 %v17648_v7  ;;  %v2834_v2 = vrot.slane %v18337_v13, 2  ;;  %v2846_v13 = vrot.slane %v18391_v23, 2  ;;  %v2850_v23 = vrot.slane %v18409_v26, 2  ;;  %v16722_v26 = vld [vmem:[%s22836_s3 + $0x20] ss:$8 sps:$4 sm:$0xff]  }
 0x1db   : > { %2723 = vmatprep.mubr.f32.mxu1 %v17648_v7 }
 0x1dd   : > { %14370 = vmatmul.mubr.msk.f32.gmra.mrb[98].mxu0 %vm736_vm4, %v18143_v5 }
 0x1de   : > { %14436 = vmatmul.mubr.msk.f32.gmra.mrb[98].mxu1 %vm736_vm4, %v18143_v5  ;;  %2280 = vmatprep.mubr.f32.mxu0 %v17648_v7  ;;  %v2835_v5 = vsel %vm865_vm0, %v2832_v60, %v2834_v2  ;;  %v16724_v60 = vld [vmem:[%s22836_s3 + $0x24] ss:$8 sps:$4 sm:$0xff]  }
 0x1df   : > { %2729 = vmatprep.mubr.f32.mxu1 %v17648_v7 }
 0x1e1   : > { %14371 = vmatmul.mubr.msk.f32.gmra.mrb[100].mxu0 %vm736_vm4, %v18152_v9 }
 0x1e2   : > { %14437 = vmatmul.mubr.msk.f32.gmra.mrb[100].mxu1 %vm736_vm4, %v18152_v9  ;;  %2286 = vmatprep.mubr.f32.mxu0 %v17648_v7  ;;  %v2836_v9 = vrot.slane %v18346_v14, 2  ;;  %v16721_v14 = vld [vmem:[%s22837_s4 + $0x14] ss:$8 sps:$4 sm:$0xff]  }
 0x1e3   : > { %2735 = vmatprep.mubr.f32.mxu1 %v17648_v7 }
 0x1e5   : > { %14372 = vmatmul.mubr.msk.f32.gmra.mrb[102].mxu0 %vm736_vm4, %v18161_v12 }
 0x1e6   : > { %14438 = vmatmul.mubr.msk.f32.gmra.mrb[102].mxu1 %vm736_vm4, %v18161_v12  ;;  %2292 = vmatprep.mubr.f32.mxu0 %v17648_v7  ;;  %v16710_v12 = vld [vmem:[%s22836_s3] ss:$8 sps:$4 sm:$0xff]  }
 0x1e7   : > { %2741 = vmatprep.mubr.f32.mxu1 %v17648_v7 }
 0x1e9   : > { %14373 = vmatmul.mubr.msk.f32.gmra.mrb[104].mxu0 %vm736_vm4, %v18170_v16 }
 0x1ea   : > { %14439 = vmatmul.mubr.msk.f32.gmra.mrb[104].mxu1 %vm736_vm4, %v18170_v16  ;;  %2298 = vmatprep.mubr.f32.mxu0 %v17648_v7  ;;  %v16712_v16 = vld [vmem:[%s22836_s3 + $0x4] ss:$8 sps:$4 sm:$0xff]  }
 0x1eb   : > { %2747 = vmatprep.mubr.f32.mxu1 %v17648_v7  ;;  %5347 = vmatprep.subr.bf16.mxu0 %v16712_v16  ;;  %v2858_v16 = vrot.slane %v18445_v31, 2  ;;  %v16728_v31 = vld [vmem:[%s22836_s3 + $0x30] ss:$8 sps:$4 sm:$0xff]  }
 0x1ed   : > { %14374 = vmatmul.mubr.msk.f32.gmra.mrb[106].mxu0 %vm736_vm4, %v18179_v19 }
 0x1ee   : > { %14440 = vmatmul.mubr.msk.f32.gmra.mrb[106].mxu1 %vm736_vm4, %v18179_v19  ;;  %2304 = vmatprep.mubr.f32.mxu0 %v17648_v7  ;;  %v2837_v19 = vsel %vm865_vm0, %v2834_v2, %v2836_v9  ;;  %v16727_v2 = vld [vmem:[%s22837_s4 + $0x24] ss:$8 sps:$4 sm:$0xff]  }
 0x1ef   : > { %2753 = vmatprep.mubr.f32.mxu1 %v17648_v7 }
 0x1f1   : > { %14375 = vmatmul.mubr.msk.f32.gmra.mrb[108].mxu0 %vm736_vm4, %v18188_v22 }
 0x1f2   : > { %14441 = vmatmul.mubr.msk.f32.gmra.mrb[108].mxu1 %vm736_vm4, %v18188_v22  ;;  %2310 = vmatprep.mubr.f32.mxu0 %v17648_v7  ;;  %v2838_v22 = vrot.slane %v18355_v17, 2  ;;  %v16719_v17 = vld [vmem:[%s22837_s4 + $0x10] ss:$8 sps:$4 sm:$0xff]  }
 0x1f3   : > { %2759 = vmatprep.mubr.f32.mxu1 %v17648_v7 }
 0x1f5   : > { %14376 = vmatmul.mubr.msk.f32.gmra.mrb[110].mxu0 %vm736_vm4, %v18197_v25 }
 0x1f6   : > { %14442 = vmatmul.mubr.msk.f32.gmra.mrb[110].mxu1 %vm736_vm4, %v18197_v25  ;;  %2316 = vmatprep.mubr.f32.mxu0 %v17648_v7  ;;  %v16715_v25 = vld [vmem:[%s22837_s4 + $0x4] ss:$8 sps:$4 sm:$0xff]  }
 0x1f7   : > { %2765 = vmatprep.mubr.f32.mxu1 %v17648_v7  ;;  %6389 = vmatprep.subr.bf16.mxu1 %v16715_v25 }
 0x1f9   : > { %14377 = vmatmul.mubr.msk.f32.gmra.mrb[112].mxu0 %vm736_vm4, %v18206_v28 }
 0x1fa   : > { %14443 = vmatmul.mubr.msk.f32.gmra.mrb[112].mxu1 %vm736_vm4, %v18206_v28  ;;  %2322 = vmatprep.mubr.f32.mxu0 %v17648_v7  ;;  %v16713_v28 = vld [vmem:[%s22837_s4] ss:$8 sps:$4 sm:$0xff]  }
 0x1fb   : > { %2771 = vmatprep.mubr.f32.mxu1 %v17648_v7 }
 0x1fd   : > { %14378 = vmatmul.mubr.msk.f32.gmra.mrb[114].mxu0 %vm736_vm4, %v18219_v33 }
 0x1fe   : > { %14444 = vmatmul.mubr.msk.f32.gmra.mrb[114].mxu1 %vm736_vm4, %v18219_v33  ;;  %2328 = vmatprep.mubr.f32.mxu0 %v17648_v7  ;;  %v2839_v33 = vsel %vm865_vm0, %v2836_v9, %v2838_v22  ;;  %v2856_v9 = vrot.slane %v18436_v30, 2 }
 0x1ff   : > { %2777 = vmatprep.mubr.f32.mxu1 %v17648_v7 }
 0x200   : > { %v2859_v30 = vsel %vm865_vm0, %v2856_v9, %v2858_v16 }
 0x201   : > { %14379 = vmatmul.mubr.msk.f32.gmra.mrb[116].mxu0 %vm736_vm4, %v18228_v36 }
 0x202   : > { %14445 = vmatmul.mubr.msk.f32.gmra.mrb[116].mxu1 %vm736_vm4, %v18228_v36  ;;  %2334 = vmatprep.mubr.f32.mxu0 %v17648_v7  ;;  %v2840_v36 = vrot.slane %v18364_v18, 2 }
 0x203   : > { %2783 = vmatprep.mubr.f32.mxu1 %v17648_v7 }
 0x205   : > { %14380 = vmatmul.mubr.msk.f32.gmra.mrb[118].mxu0 %vm736_vm4, %v18237_v39 }
 0x206   : > { %14446 = vmatmul.mubr.msk.f32.gmra.mrb[118].mxu1 %vm736_vm4, %v18237_v39  ;;  %2340 = vmatprep.mubr.f32.mxu0 %v17648_v7  ;;  %v2841_v39 = vsel %vm865_vm0, %v2838_v22, %v2840_v36  ;;  %v16730_v22 = vld [vmem:[%s22836_s3 + $0x34] ss:$8 sps:$4 sm:$0xff]  }
 0x207   : > { %2789 = vmatprep.mubr.f32.mxu1 %v17648_v7 }
 0x209   : > { %14381 = vmatmul.mubr.msk.f32.gmra.mrb[120].mxu0 %vm736_vm4, %v18246_v42 }
 0x20a   : > { %14447 = vmatmul.mubr.msk.f32.gmra.mrb[120].mxu1 %vm736_vm4, %v18246_v42  ;;  %2346 = vmatprep.mubr.f32.mxu0 %v17648_v7  ;;  %v2842_v42 = vrot.slane %v18373_v20, 2  ;;  %v2848_v20 = vrot.slane %v18400_v24, 2 }
 0x20b   : > { %2795 = vmatprep.mubr.f32.mxu1 %v17648_v7 }
 0x20c   : > { %v2851_v24 = vsel %vm865_vm0, %v2848_v20, %v2850_v23 }
 0x20d   : > { %14382 = vmatmul.mubr.msk.f32.gmra.mrb[122].mxu0 %vm736_vm4, %v18255_v45 }
 0x20e   : > { %14448 = vmatmul.mubr.msk.f32.gmra.mrb[122].mxu1 %vm736_vm4, %v18255_v45  ;;  %2352 = vmatprep.mubr.f32.mxu0 %v17648_v7  ;;  %v2843_v45 = vsel %vm865_vm0, %v2840_v36, %v2842_v42  ;;  %v2864_v36 = vrot.slane %v18472_v35, 2 }
 0x20f   : > { %2801 = vmatprep.mubr.f32.mxu1 %v17648_v7 }
 0x211   : > { %14383 = vmatmul.mubr.msk.f32.gmra.mrb[124].mxu0 %vm736_vm4, %v18264_v48 }
 0x212   : > { %14449 = vmatmul.mubr.msk.f32.gmra.mrb[124].mxu1 %vm736_vm4, %v18264_v48  ;;  %2358 = vmatprep.mubr.f32.mxu0 %v17648_v7  ;;  %v2844_v48 = vrot.slane %v18382_v21, 2  ;;  %v2849_v21 = vsel %vm865_vm0, %v2846_v13, %v2848_v20  ;;  %v16742_v20 = vld [vmem:[%s22836_s3 + $0x54] ss:$8 sps:$4 sm:$0xff]  }
 0x213   : > { %2807 = vmatprep.mubr.f32.mxu1 %v17648_v7 }
 0x214   : > { %v2845_v56 = vsel %vm865_vm0, %v2842_v42, %v2844_v48  ;;  %v2847_v18 = vsel %vm865_vm0, %v2844_v48, %v2846_v13  ;;  %v2866_v42 = vrot.slane %v18481_v37, 2  ;;  %v16734_v37 = vld [vmem:[%s22836_s3 + $0x40] ss:$8 sps:$4 sm:$0xff]   ;;  %v16736_v48 = vld [vmem:[%s22836_s3 + $0x44] ss:$8 sps:$4 sm:$0xff]   ;;  %v2872_v13 = vrot.slane %v18508_v41, 2 }
 0x215   : > { %14384 = vmatmul.mubr.msk.f32.gmra.mrb[126].mxu0 %vm736_vm4, %v18273_v51 }
 0x216   : > { %14450 = vmatmul.mubr.msk.f32.gmra.mrb[126].mxu1 %vm736_vm4, %v18273_v51  ;;  %3162 = vmatprep.mubr.f32.mxu0 %v17648_v7  ;;  %v16716_v51 = vld [vmem:[%s22836_s3 + $0x10] ss:$8 sps:$4 sm:$0xff]   ;;  %v2867_v35 = vsel %vm865_vm0, %v2864_v36, %v2866_v42 }
 0x217   : > { %3611 = vmatprep.mubr.f32.mxu1 %v17648_v7 }
 0x219   : > { %14469 = vmatmul.mubr.msk.f32.vlgmr.msra.gmra.mrb[0].mxu0 %vm736_vm4, %v2833_v63 }
 0x21a   : > { %14535 = vmatmul.mubr.msk.f32.vlgmr.msra.gmra.mrb[0].mxu1 %vm736_vm4, %v2833_v63  ;;  %3168 = vmatprep.mubr.f32.mxu0 %v17648_v7  ;;  %v2853_v63 = vsel %vm865_vm0, %v2850_v23, %v2852_v57  ;;  %v16743_v23 = vld [vmem:[%s22837_s4 + $0x50] ss:$8 sps:$4 sm:$0xff]   ;;  %v16748_v57 = vld [vmem:[%s22836_s3 + $0x64] ss:$8 sps:$4 sm:$0xff]  }
 0x21b   : > { %3617 = vmatprep.mubr.f32.mxu1 %v17648_v7  ;;  %5348 = vmatpush1.bf16.msra.mxu0 %v16710_v12  ;;  %v2857_v12 = vsel %vm865_vm0, %v2854_v27, %v2856_v9  ;;  %v2880_v27 = vrot.slane %v18544_v47, 2  ;;  %v16752_v47 = vld [vmem:[%s22836_s3 + $0x70] ss:$8 sps:$4 sm:$0xff]  }
 0x21c   : > { %6390 = vmatpush1.bf16.msra.mxu1 %v16713_v28  ;;  %5349 = vmatprep.subr.bf16.mxu0 %v16718_v55  ;;  %v16733_v28 = vld [vmem:[%s22837_s4 + $0x34] ss:$8 sps:$4 sm:$0xff]   ;;  %v16739_v55 = vld [vmem:[%s22837_s4 + $0x44] ss:$8 sps:$4 sm:$0xff]  }
 0x21d   : > { %14470 = vmatmul.mubr.msk.f32.gmra.mrb[2].mxu0 %vm736_vm4, %v2835_v5  ;;  %6391 = vmatprep.subr.bf16.mxu1 %v16721_v14 }
 0x21e   : > { %14536 = vmatmul.mubr.msk.f32.gmra.mrb[2].mxu1 %vm736_vm4, %v2835_v5  ;;  %3174 = vmatprep.mubr.f32.mxu0 %v17648_v7  ;;  %v16725_v5 = vld [vmem:[%s22837_s4 + $0x20] ss:$8 sps:$4 sm:$0xff]  }
 0x21f   : > { %3623 = vmatprep.mubr.f32.mxu1 %v17648_v7  ;;  %5350 = vmatpush1.bf16.msra.mxu0 %v16716_v51 }
 0x220   : > { %6392 = vmatpush1.bf16.msra.mxu1 %v16719_v17  ;;  %5351 = vmatprep.subr.bf16.mxu0 %v16724_v60  ;;  %v2874_v17 = vrot.slane %v18517_v43, 2  ;;  %v16745_v43 = vld [vmem:[%s22837_s4 + $0x54] ss:$8 sps:$4 sm:$0xff]   ;;  %v16746_v60 = vld [vmem:[%s22836_s3 + $0x60] ss:$8 sps:$4 sm:$0xff]  }
 0x221   : > { %14471 = vmatmul.mubr.msk.f32.gmra.mrb[4].mxu0 %vm736_vm4, %v2837_v19  ;;  %6393 = vmatprep.subr.bf16.mxu1 %v16727_v2  ;;  %v16754_v2 = vld [vmem:[%s22836_s3 + $0x74] ss:$8 sps:$4 sm:$0xff]  }
 0x222   : > { %14537 = vmatmul.mubr.msk.f32.gmra.mrb[4].mxu1 %vm736_vm4, %v2837_v19  ;;  %3180 = vmatprep.mubr.f32.mxu0 %v17648_v7  ;;  %v2860_v19 = vrot.slane %v18454_v32, 2  ;;  %v2862_v32 = vrot.slane %v18463_v34, 2  ;;  %v2875_v41 = vsel %vm865_vm0, %v2872_v13, %v2874_v17 }
 0x223   : > { %3629 = vmatprep.mubr.f32.mxu1 %v17648_v7  ;;  %5352 = vmatpush1.bf16.msra.mxu0 %v16722_v26  ;;  %v16751_v26 = vld [vmem:[%s22837_s4 + $0x64] ss:$8 sps:$4 sm:$0xff]  }
 0x224   : > { %6394 = vmatpush1.bf16.msra.mxu1 %v16725_v5  ;;  %v2861_v25 = vsel %vm865_vm0, %v2858_v16, %v2860_v19  ;;  %5353 = vmatprep.subr.bf16.mxu0 %v16730_v22  ;;  %v2863_v34 = vsel %vm865_vm0, %v2860_v19, %v2862_v32  ;;  %v16757_v5 = vld [vmem:[%s22837_s4 + $0x74] ss:$8 sps:$4 sm:$0xff]   ;;  %v16760_v16 = vld [vmem:[%s22836_s3 + $0x84] ss:$8 sps:$4 sm:$0xff]   ;;  %v16761_v19 = vld [vmem:[%s22837_s4 + $0x80] ss:$8 sps:$4 sm:$0xff]  }
 0x225   : > { %14472 = vmatmul.mubr.msk.f32.gmra.mrb[6].mxu0 %vm736_vm4, %v2839_v33  ;;  %6395 = vmatprep.subr.bf16.mxu1 %v16733_v28  ;;  %v2884_v22 = vrot.slane %v18562_v50, 2  ;;  %v16764_v50 = vld [vmem:[%s22836_s3 + $0x90] ss:$8 sps:$4 sm:$0xff]  }
 0x226   : > { %14538 = vmatmul.mubr.msk.f32.gmra.mrb[6].mxu1 %vm736_vm4, %v2839_v33  ;;  %3186 = vmatprep.mubr.f32.mxu0 %v17648_v7  ;;  %v16731_v33 = vld [vmem:[%s22837_s4 + $0x30] ss:$8 sps:$4 sm:$0xff]  }
 0x227   : > { %3635 = vmatprep.mubr.f32.mxu1 %v17648_v7  ;;  %5354 = vmatpush1.bf16.msra.mxu0 %v16728_v31  ;;  %v16767_v28 = vld [vmem:[%s22837_s4 + $0x90] ss:$8 sps:$4 sm:$0xff]  }
 0x228   : > { %6396 = vmatpush1.bf16.msra.mxu1 %v16731_v33  ;;  %5355 = vmatprep.subr.bf16.mxu0 %v16736_v48  ;;  %v16781_v48 = vld [vmem:[%s22837_s4 + $0xb4] ss:$8 sps:$4 sm:$0xff]  }
 0x229   : > { %14473 = vmatmul.mubr.msk.f32.gmra.mrb[8].mxu0 %vm736_vm4, %v2841_v39  ;;  %6397 = vmatprep.subr.bf16.mxu1 %v16739_v55  ;;  %v2890_v55 = vrot.slane %v18589_v54, 2  ;;  %v16782_v54 = vld [vmem:[%s22836_s3 + $0xc0] ss:$8 sps:$4 sm:$0xff]  }
 0x22a   : > { %14539 = vmatmul.mubr.msk.f32.gmra.mrb[8].mxu1 %vm736_vm4, %v2841_v39  ;;  %3192 = vmatprep.mubr.f32.mxu0 %v17648_v7  ;;  %v2865_v39 = vsel %vm865_vm0, %v2862_v32, %v2864_v36  ;;  %v16769_v32 = vld [vmem:[%s22837_s4 + $0x94] ss:$8 sps:$4 sm:$0xff]   ;;  %v16772_v36 = vld [vmem:[%s22836_s3 + $0xa4] ss:$8 sps:$4 sm:$0xff]  }
 0x22b   : > { %3641 = vmatprep.mubr.f32.mxu1 %v17648_v7  ;;  %5356 = vmatpush1.bf16.msra.mxu0 %v16734_v37  ;;  %v16778_v37 = vld [vmem:[%s22836_s3 + $0xb4] ss:$8 sps:$4 sm:$0xff]  }
 0x22c   : > { %5357 = vmatprep.subr.bf16.mxu0 %v16742_v20  ;;  %v16791_v20 = vld [vmem:[%s22837_s4 + $0xd0] ss:$8 sps:$4 sm:$0xff]  }
 0x22d   : > { %14474 = vmatmul.mubr.msk.f32.gmra.mrb[10].mxu0 %vm736_vm4, %v2843_v45 }
 0x22e   : > { %14540 = vmatmul.mubr.msk.f32.gmra.mrb[10].mxu1 %vm736_vm4, %v2843_v45  ;;  %3198 = vmatprep.mubr.f32.mxu0 %v17648_v7  ;;  %v2868_v45 = vrot.slane %v18490_v38, 2  ;;  %v2870_v38 = vrot.slane %v18499_v40, 2 }
 0x22f   : > { %3647 = vmatprep.mubr.f32.mxu1 %v17648_v7 }
 0x230   : > { %v2869_v51 = vsel %vm865_vm0, %v2866_v42, %v2868_v45  ;;  %v2871_v40 = vsel %vm865_vm0, %v2868_v45, %v2870_v38  ;;  %v2873_v14 = vsel %vm865_vm0, %v2870_v38, %v2872_v13  ;;  %v16773_v42 = vld [vmem:[%s22837_s4 + $0xa0] ss:$8 sps:$4 sm:$0xff]   ;;  %v2888_v45 = vrot.slane %v18580_v53, 2  ;;  %v16776_v53 = vld [vmem:[%s22836_s3 + $0xb0] ss:$8 sps:$4 sm:$0xff]  }
 0x231   : > { %14475 = vmatmul.mubr.msk.f32.gmra.mrb[12].mxu0 %vm736_vm4, %v2845_v56  ;;  %v16785_v13 = vld [vmem:[%s22837_s4 + $0xc0] ss:$8 sps:$4 sm:$0xff]  }
 0x232   : > { %14541 = vmatmul.mubr.msk.f32.gmra.mrb[12].mxu1 %vm736_vm4, %v2845_v56  ;;  %3204 = vmatprep.mubr.f32.mxu0 %v17648_v7  ;;  %v16737_v56 = vld [vmem:[%s22837_s4 + $0x40] ss:$8 sps:$4 sm:$0xff]  }
 0x233   : > { %3653 = vmatprep.mubr.f32.mxu1 %v17648_v7  ;;  %6398 = vmatpush1.bf16.msra.mxu1 %v16737_v56  ;;  %v16784_v56 = vld [vmem:[%s22836_s3 + $0xc4] ss:$8 sps:$4 sm:$0xff]  }
 0x234   : > { %6399 = vmatprep.subr.bf16.mxu1 %v16745_v43 }
 0x235   : > { %14476 = vmatmul.mubr.msk.f32.gmra.mrb[14].mxu0 %vm736_vm4, %v2847_v18 }
 0x236   : > { %14542 = vmatmul.mubr.msk.f32.gmra.mrb[14].mxu1 %vm736_vm4, %v2847_v18  ;;  %3210 = vmatprep.mubr.f32.mxu0 %v17648_v7  ;;  %v2876_v18 = vrot.slane %v18526_v44, 2 }
 0x237   : > { %3659 = vmatprep.mubr.f32.mxu1 %v17648_v7  ;;  %6400 = vmatpush1.bf16.msra.mxu1 %v16743_v23  ;;  %v16796_v23 = vld [vmem:[%s22836_s3 + $0xe4] ss:$8 sps:$4 sm:$0xff]  }
 0x238   : > { %v2877_v44 = vsel %vm865_vm0, %v2874_v17, %v2876_v18  ;;  %6401 = vmatprep.subr.bf16.mxu1 %v16751_v26  ;;  %v2892_v17 = vrot.slane %v18622_v11, 2  ;;  %v16788_v11 = vld [vmem:[%s22836_s3 + $0xd0] ss:$8 sps:$4 sm:$0xff]   ;;  %v2896_v26 = vrot.slane %v18648_v61, 2 }
 0x239   : > { %14477 = vmatmul.mubr.msk.f32.gmra.mrb[16].mxu0 %vm736_vm4, %v2849_v21  ;;  %v16800_v61 = vld [vmem:[%s22836_s3 + $0xf0] ss:$8 sps:$4 sm:$0xff]  }
 0x23a   : > { %14543 = vmatmul.mubr.msk.f32.gmra.mrb[16].mxu1 %vm736_vm4, %v2849_v21  ;;  %3216 = vmatprep.mubr.f32.mxu0 %v17648_v7  ;;  %v16740_v21 = vld [vmem:[%s22836_s3 + $0x50] ss:$8 sps:$4 sm:$0xff]   ;;  %v2893_v43 = vsel %vm865_vm0, %v2890_v55, %v2892_v17 }
 0x23b   : > { %3665 = vmatprep.mubr.f32.mxu1 %v17648_v7  ;;  %5358 = vmatpush1.bf16.msra.mxu0 %v16740_v21  ;;  %v2894_v21 = vrot.slane %v18639_v59, 2  ;;  %v16794_v59 = vld [vmem:[%s22836_s3 + $0xe0] ss:$8 sps:$4 sm:$0xff]  }
 0x23c   : > { %5359 = vmatprep.subr.bf16.mxu0 %v16748_v57 }
 0x23d   : > { %14478 = vmatmul.mubr.msk.f32.gmra.mrb[18].mxu0 %vm736_vm4, %v2851_v24  ;;  %v2895_v57 = vsel %vm865_vm0, %v2892_v17, %v2894_v21 }
 0x23e   : > { %14544 = vmatmul.mubr.msk.f32.gmra.mrb[18].mxu1 %vm736_vm4, %v2851_v24  ;;  %3222 = vmatprep.mubr.f32.mxu0 %v17648_v7  ;;  %v2878_v24 = vrot.slane %v18535_v46, 2  ;;  %v16749_v46 = vld [vmem:[%s22837_s4 + $0x60] ss:$8 sps:$4 sm:$0xff]  }
 0x23f   : > { %3671 = vmatprep.mubr.f32.mxu1 %v17648_v7  ;;  %5360 = vmatpush1.bf16.msra.mxu0 %v16746_v60  ;;  %v16802_v60 = vld [vmem:[%s22836_s3 + $0xf4] ss:$8 sps:$4 sm:$0xff]  }
 0x240   : > { %6402 = vmatpush1.bf16.msra.mxu1 %v16749_v46  ;;  %v2881_v9 = vsel %vm865_vm0, %v2878_v24, %v2880_v27  ;;  %5361 = vmatprep.subr.bf16.mxu0 %v16754_v2  ;;  %v16805_v46 = vld [vmem:[%s22837_s4 + $0xf4] ss:$8 sps:$4 sm:$0xff]   ;;  %v2898_v2 = vrot.slane %v18657_v15, 2 }
 0x241   : > { %14479 = vmatmul.mubr.msk.f32.gmra.mrb[20].mxu0 %vm736_vm4, %v2853_v63  ;;  %6403 = vmatprep.subr.bf16.mxu1 %v16757_v5 }
 0x242   : > { %14545 = vmatmul.mubr.msk.f32.gmra.mrb[20].mxu1 %vm736_vm4, %v2853_v63  ;;  %3228 = vmatprep.mubr.f32.mxu0 %v17648_v7  ;;  %v2879_v63 = vsel %vm865_vm0, %v2876_v18, %v2878_v24  ;;  %v16793_v18 = vld [vmem:[%s22837_s4 + $0xd4] ss:$8 sps:$4 sm:$0xff]   ;;  %v16797_v24 = vld [vmem:[%s22837_s4 + $0xe0] ss:$8 sps:$4 sm:$0xff]   ;;  %v2899_v5 = vsel %vm865_vm0, %v2896_v26, %v2898_v2 }
 0x243   : > { %3677 = vmatprep.mubr.f32.mxu1 %v17648_v7  ;;  %5362 = vmatpush1.bf16.msra.mxu0 %v16752_v47  ;;  %v2900_v47 = vrot.slane %v18666_v62, 2 }
 0x244   : > { %5363 = vmatprep.subr.bf16.mxu0 %v16760_v16  ;;  %v2908_v16 = vrot.slane %v18702_v4, 2 }
 0x245   : > { %14480 = vmatmul.mubr.msk.f32.gmra.mrb[22].mxu0 %vm736_vm4, %v2855_v29  ;;  %v2901_v15 = vsel %vm865_vm0, %v2898_v2, %v2900_v47 }
 0x246   : > { %14546 = vmatmul.mubr.msk.f32.gmra.mrb[22].mxu1 %vm736_vm4, %v2855_v29  ;;  %3234 = vmatprep.mubr.f32.mxu0 %v17648_v7  ;;  %v16755_v29 = vld [vmem:[%s22837_s4 + $0x70] ss:$8 sps:$4 sm:$0xff]  }
 0x247   : > { %3683 = vmatprep.mubr.f32.mxu1 %v17648_v7  ;;  %6404 = vmatpush1.bf16.msra.mxu1 %v16755_v29  ;;  %v2902_v29 = vrot.slane %v18675_v0, 2 }
 0x249   : > { %14481 = vmatmul.mubr.msk.f32.gmra.mrb[24].mxu0 %vm736_vm4, %v2857_v12  ;;  %v2903_v62 = vsel %vm865_vm0, %v2900_v47, %v2902_v29 }
 0x24a   : > { %14547 = vmatmul.mubr.msk.f32.gmra.mrb[24].mxu1 %vm736_vm4, %v2857_v12  ;;  %3240 = vmatprep.mubr.f32.mxu0 %v17648_v7  ;;  %v2882_v12 = vrot.slane %v18553_v49, 2  ;;  %v16758_v49 = vld [vmem:[%s22836_s3 + $0x80] ss:$8 sps:$4 sm:$0xff]  }
 0x24b   : > { %3689 = vmatprep.mubr.f32.mxu1 %v17648_v7  ;;  %5364 = vmatpush1.bf16.msra.mxu0 %v16758_v49  ;;  %v22910_v49 = vld [vmem:[#allocation2_spill] sm:$0xff] }
 0x24c   : > { %v2883_v31 = vsel %vm865_vm0, %v2880_v27, %v2882_v12  ;;  %v2885_v33 = vsel %vm865_vm0, %v2882_v12, %v2884_v22  ;;  %v2897_v27 = vsel %vm865_vm0, %v2894_v21, %v2896_v26  ;;  %v2906_v12 = vrot.slane %v18693_v3, 2 }
 0x24d   : > { %14482 = vmatmul.mubr.msk.f32.gmra.mrb[26].mxu0 %vm736_vm4, %v2859_v30 }
 0x24e   : > { %14548 = vmatmul.mubr.msk.f32.gmra.mrb[26].mxu1 %vm736_vm4, %v2859_v30  ;;  %3246 = vmatprep.mubr.f32.mxu0 %v17648_v7  ;;  %v16763_v30 = vld [vmem:[%s22837_s4 + $0x84] ss:$8 sps:$4 sm:$0xff]   ;;  %v2909_v3 = vsel %vm865_vm0, %v2906_v12, %v2908_v16 }
 0x24f   : > { %3695 = vmatprep.mubr.f32.mxu1 %v17648_v7  ;;  %6405 = vmatprep.subr.bf16.mxu1 %v16763_v30  ;;  %v2910_v30 = vrot.slane %v18711_v6, 2 }
 0x250   : > { %6406 = vmatpush1.bf16.msra.mxu1 %v16761_v19  ;;  %v2912_v19 = vrot.slane %v22910_v49, 2 }
 0x251   : > { %14483 = vmatmul.mubr.msk.f32.gmra.mrb[28].mxu0 %vm736_vm4, %v2861_v25  ;;  %6407 = vmatprep.subr.bf16.mxu1 %v16769_v32  ;;  %v2911_v4 = vsel %vm865_vm0, %v2908_v16, %v2910_v30  ;;  %v2918_v32 = vrot.slane %v18747_v8, 2 }
 0x252   : > { %14549 = vmatmul.mubr.msk.f32.gmra.mrb[28].mxu1 %vm736_vm4, %v2861_v25  ;;  %3252 = vmatprep.mubr.f32.mxu0 %v17648_v7  ;;  %v16766_v25 = vld [vmem:[%s22836_s3 + $0x94] ss:$8 sps:$4 sm:$0xff]   ;;  %v2913_v6 = vsel %vm865_vm0, %v2910_v30, %v2912_v19 }
 0x253   : > { %3701 = vmatprep.mubr.f32.mxu1 %v17648_v7  ;;  %5365 = vmatprep.subr.bf16.mxu0 %v16766_v25  ;;  %v2916_v25 = vrot.slane %v18738_v58, 2 }
 0x254   : > { %5366 = vmatpush1.bf16.msra.mxu0 %v16764_v50  ;;  %6408 = vmatpush1.bf16.msra.mxu1 %v16767_v28  ;;  %v17621_v50 = vld [vmem:[%s17792_s17 + $0x168] sm:$0xff] }
 0x255   : > { %14484 = vmatmul.mubr.msk.f32.gmra.mrb[30].mxu0 %vm736_vm4, %v2863_v34  ;;  %5367 = vmatprep.subr.bf16.mxu0 %v16772_v36  ;;  %v2919_v58 = vsel %vm865_vm0, %v2916_v25, %v2918_v32  ;;  %v2920_v28 = vrot.slane %v17621_v50, 2  ;;  %v17633_v50 = vld [vmem:[%s17792_s17 + $0x1c8] sm:$0xff] }
 0x256   : > { %14550 = vmatmul.mubr.msk.f32.gmra.mrb[30].mxu1 %vm736_vm4, %v2863_v34  ;;  %3258 = vmatprep.mubr.f32.mxu0 %v17648_v7  ;;  %v2886_v34 = vrot.slane %v18571_v52, 2  ;;  %v16770_v52 = vld [vmem:[%s22836_s3 + $0xa0] ss:$8 sps:$4 sm:$0xff]  }
 0x257   : > { %3707 = vmatprep.mubr.f32.mxu1 %v17648_v7  ;;  %v2921_v8 = vsel %vm865_vm0, %v2918_v32, %v2920_v28 }
 0x258   : > { %5368 = vmatpush1.bf16.msra.mxu0 %v16770_v52  ;;  %v2889_v38 = vsel %vm865_vm0, %v2886_v34, %v2888_v45 }
 0x259   : > { %14485 = vmatmul.mubr.msk.f32.gmra.mrb[32].mxu0 %vm736_vm4, %v2865_v39  ;;  %5369 = vmatprep.subr.bf16.mxu0 %v16778_v37 }
 0x25a   : > { %14551 = vmatmul.mubr.msk.f32.gmra.mrb[32].mxu1 %vm736_vm4, %v2865_v39  ;;  %3264 = vmatprep.mubr.f32.mxu0 %v17648_v7  ;;  %v16775_v39 = vld [vmem:[%s22837_s4 + $0xa4] ss:$8 sps:$4 sm:$0xff]  }
 0x25b   : > { %3713 = vmatprep.mubr.f32.mxu1 %v17648_v7  ;;  %6409 = vmatprep.subr.bf16.mxu1 %v16775_v39  ;;  %v17623_v39 = vld [vmem:[%s17792_s17 + $0x178] sm:$0xff] }
 0x25c   : > { %6410 = vmatpush1.bf16.msra.mxu1 %v16773_v42  ;;  %5370 = vmatpush1.bf16.msra.mxu0 %v16776_v53  ;;  %v2924_v52 = vrot.slane %v17623_v39, 2 }
 0x25d   : > { %14486 = vmatmul.mubr.msk.f32.gmra.mrb[34].mxu0 %vm736_vm4, %v2867_v35  ;;  %6411 = vmatprep.subr.bf16.mxu1 %v16781_v48  ;;  %v17625_v48 = vld [vmem:[%s17792_s17 + $0x188] sm:$0xff] }
 0x25e   : > { %14552 = vmatmul.mubr.msk.f32.gmra.mrb[34].mxu1 %vm736_vm4, %v2867_v35  ;;  %3270 = vmatprep.mubr.f32.mxu0 %v17648_v7  ;;  %v2887_v35 = vsel %vm865_vm0, %v2884_v22, %v2886_v34  ;;  %v2928_v53 = vrot.slane %v17625_v48, 2 }
 0x25f   : > { %3719 = vmatprep.mubr.f32.mxu1 %v17648_v7  ;;  %5371 = vmatprep.subr.bf16.mxu0 %v16784_v56 }
 0x260   : > { %5372 = vmatpush1.bf16.msra.mxu0 %v16782_v54 }
 0x261   : > { %14487 = vmatmul.mubr.msk.f32.gmra.mrb[36].mxu0 %vm736_vm4, %v2869_v51 }
 0x262   : > { %14553 = vmatmul.mubr.msk.f32.gmra.mrb[36].mxu1 %vm736_vm4, %v2869_v51  ;;  %3276 = vmatprep.mubr.f32.mxu0 %v17648_v7  ;;  %v16779_v51 = vld [vmem:[%s22837_s4 + $0xb0] ss:$8 sps:$4 sm:$0xff]  }
 0x263   : > { %3725 = vmatprep.mubr.f32.mxu1 %v17648_v7  ;;  %6412 = vmatpush1.bf16.msra.mxu1 %v16779_v51 }
 0x265   : > { %14488 = vmatmul.mubr.msk.f32.gmra.mrb[38].mxu0 %vm736_vm4, %v2871_v40 }
 0x266   : > { %14554 = vmatmul.mubr.msk.f32.gmra.mrb[38].mxu1 %vm736_vm4, %v2871_v40  ;;  %3282 = vmatprep.mubr.f32.mxu0 %v17648_v7  ;;  %v16787_v40 = vld [vmem:[%s22837_s4 + $0xc4] ss:$8 sps:$4 sm:$0xff]  }
 0x267   : > { %3731 = vmatprep.mubr.f32.mxu1 %v17648_v7  ;;  %6413 = vmatprep.subr.bf16.mxu1 %v16787_v40  ;;  %v17627_v40 = vld [vmem:[%s17792_s17 + $0x198] sm:$0xff] }
 0x268   : > { %6414 = vmatpush1.bf16.msra.mxu1 %v16785_v13  ;;  %v2932_v54 = vrot.slane %v17627_v40, 2 }
 0x269   : > { %14489 = vmatmul.mubr.msk.f32.gmra.mrb[40].mxu0 %vm736_vm4, %v2873_v14  ;;  %6415 = vmatprep.subr.bf16.mxu1 %v16793_v18 }
 0x26a   : > { %14555 = vmatmul.mubr.msk.f32.gmra.mrb[40].mxu1 %vm736_vm4, %v2873_v14  ;;  %3288 = vmatprep.mubr.f32.mxu0 %v17648_v7  ;;  %v2891_v14 = vsel %vm865_vm0, %v2888_v45, %v2890_v55 }
 0x26b   : > { %3737 = vmatprep.mubr.f32.mxu1 %v17648_v7 }
 0x26c   : > { %6416 = vmatpush1.bf16.msra.mxu1 %v16791_v20 }
 0x26d   : > { %14490 = vmatmul.mubr.msk.f32.gmra.mrb[42].mxu0 %vm736_vm4, %v2875_v41 }
 0x26e   : > { %14556 = vmatmul.mubr.msk.f32.gmra.mrb[42].mxu1 %vm736_vm4, %v2875_v41  ;;  %3294 = vmatprep.mubr.f32.mxu0 %v17648_v7  ;;  %v16790_v41 = vld [vmem:[%s22836_s3 + $0xd4] ss:$8 sps:$4 sm:$0xff]  }
 0x26f   : > { %3743 = vmatprep.mubr.f32.mxu1 %v17648_v7  ;;  %5373 = vmatprep.subr.bf16.mxu0 %v16790_v41  ;;  %v4254_v41 = vlaneseq }
 0x270   : > { %5374 = vmatpush1.bf16.msra.mxu0 %v16788_v11  ;;  %v17629_v11 = vld [vmem:[%s17792_s17 + $0x1a8] sm:$0xff] }
 0x271   : > { %14491 = vmatmul.mubr.msk.f32.gmra.mrb[44].mxu0 %vm736_vm4, %v2877_v44  ;;  %5375 = vmatprep.subr.bf16.mxu0 %v16796_v23  ;;  %v2936_v20 = vrot.slane %v17629_v11, 2  ;;  %v17630_v23 = vld [vmem:[%s17792_s17 + $0x1b0] sm:$0xff] }
 0x272   : > { %14557 = vmatmul.mubr.msk.f32.gmra.mrb[44].mxu1 %vm736_vm4, %v2877_v44  ;;  %3300 = vmatprep.mubr.f32.mxu0 %v17648_v7  ;;  %v16799_v44 = vld [vmem:[%s22837_s4 + $0xe4] ss:$8 sps:$4 sm:$0xff]  }
 0x273   : > { %3749 = vmatprep.mubr.f32.mxu1 %v17648_v7  ;;  %6417 = vmatprep.subr.bf16.mxu1 %v16799_v44  ;;  %v2938_v44 = vrot.slane %v17630_v23, 2 }
 0x274   : > { %5376 = vmatpush1.bf16.msra.mxu0 %v16794_v59  ;;  %6418 = vmatpush1.bf16.msra.mxu1 %v16797_v24 }
 0x275   : > { %14492 = vmatmul.mubr.msk.f32.gmra.mrb[46].mxu0 %vm736_vm4, %v2879_v63  ;;  %5377 = vmatprep.subr.bf16.mxu0 %v16802_v60 }
 0x276   : > { %14558 = vmatmul.mubr.msk.f32.gmra.mrb[46].mxu1 %vm736_vm4, %v2879_v63  ;;  %3306 = vmatprep.mubr.f32.mxu0 %v17648_v7  ;;  %v16803_v63 = vld [vmem:[%s22837_s4 + $0xf0] ss:$8 sps:$4 sm:$0xff]  }
 0x277   : > { %3755 = vmatprep.mubr.f32.mxu1 %v17648_v7  ;;  %6419 = vmatprep.subr.bf16.mxu1 %v16805_v46  ;;  %v2939_v46 = vsel %vm865_vm0, %v2936_v20, %v2938_v44 }
 0x278   : > { %5378 = vmatpush1.bf16.msra.mxu0 %v16800_v61  ;;  %6420 = vmatpush1.bf16.msra.mxu1 %v16803_v63  ;;  %v17631_v61 = vld [vmem:[%s17792_s17 + $0x1b8] sm:$0xff] }
 0x279   : > { %14493 = vmatmul.mubr.msk.f32.gmra.mrb[48].mxu0 %vm736_vm4, %v2881_v9  ;;  %v2940_v63 = vrot.slane %v17631_v61, 2 }
 0x27a   : > { %14559 = vmatmul.mubr.msk.f32.gmra.mrb[48].mxu1 %vm736_vm4, %v2881_v9  ;;  %3312 = vmatprep.mubr.f32.mxu0 %v17648_v7  ;;  %v2904_v9 = vrot.slane %v18684_v1, 2 }
 0x27b   : > { %3761 = vmatprep.mubr.f32.mxu1 %v17648_v7 }
 0x27c   : > { %v2905_v0 = vsel %vm865_vm0, %v2902_v29, %v2904_v9  ;;  %v2907_v1 = vsel %vm865_vm0, %v2904_v9, %v2906_v12  ;;  %v17632_v12 = vld [vmem:[%s17792_s17 + $0x1c0] sm:$0xff] }
 0x27d   : > { %14494 = vmatmul.mubr.msk.f32.gmra.mrb[50].mxu0 %vm736_vm4, %v2883_v31 }
 0x27e   : > { %14560 = vmatmul.mubr.msk.f32.gmra.mrb[50].mxu1 %vm736_vm4, %v2883_v31  ;;  %3318 = vmatprep.mubr.f32.mxu0 %v17648_v7  ;;  %v2914_v31 = vrot.slane %v18729_v10, 2 }
 0x27f   : > { %3767 = vmatprep.mubr.f32.mxu1 %v17648_v7 }
 0x280   : > { %v2915_v22 = vsel %vm865_vm0, %v2912_v19, %v2914_v31  ;;  %v2917_v10 = vsel %vm865_vm0, %v2914_v31, %v2916_v25 }
 0x281   : > { %14495 = vmatmul.mubr.msk.f32.gmra.mrb[52].mxu0 %vm736_vm4, %v2885_v33 }
 0x282   : > { %14561 = vmatmul.mubr.msk.f32.gmra.mrb[52].mxu1 %vm736_vm4, %v2885_v33  ;;  %3324 = vmatprep.mubr.f32.mxu0 %v17648_v7  ;;  %v17622_v33 = vld [vmem:[%s17792_s17 + $0x170] sm:$0xff] }
 0x283   : > { %3773 = vmatprep.mubr.f32.mxu1 %v17648_v7  ;;  %v2922_v34 = vrot.slane %v17622_v33, 2 }
 0x285   : > { %14496 = vmatmul.mubr.msk.f32.gmra.mrb[54].mxu0 %vm736_vm4, %v2887_v35  ;;  %v2923_v36 = vsel %vm865_vm0, %v2920_v28, %v2922_v34  ;;  %v2925_v42 = vsel %vm865_vm0, %v2922_v34, %v2924_v52  ;;  %v2944_v28 = vrot.slane %v17633_v50, 2 }
 0x286   : > { %14562 = vmatmul.mubr.msk.f32.gmra.mrb[54].mxu1 %vm736_vm4, %v2887_v35  ;;  %3330 = vmatprep.mubr.f32.mxu0 %v17648_v7  ;;  %v17624_v35 = vld [vmem:[%s17792_s17 + $0x180] sm:$0xff] }
 0x287   : > { %3779 = vmatprep.mubr.f32.mxu1 %v17648_v7  ;;  %v2926_v45 = vrot.slane %v17624_v35, 2 }
 0x289   : > { %14497 = vmatmul.mubr.msk.f32.gmra.mrb[56].mxu0 %vm736_vm4, %v2889_v38  ;;  %v2927_v37 = vsel %vm865_vm0, %v2924_v52, %v2926_v45  ;;  %v2929_v51 = vsel %vm865_vm0, %v2926_v45, %v2928_v53 }
 0x28a   : > { %14563 = vmatmul.mubr.msk.f32.gmra.mrb[56].mxu1 %vm736_vm4, %v2889_v38  ;;  %3336 = vmatprep.mubr.f32.mxu0 %v17648_v7  ;;  %v17626_v38 = vld [vmem:[%s17792_s17 + $0x190] sm:$0xff] }
 0x28b   : > { %3785 = vmatprep.mubr.f32.mxu1 %v17648_v7  ;;  %v2930_v55 = vrot.slane %v17626_v38, 2 }
 0x28d   : > { %14498 = vmatmul.mubr.msk.f32.gmra.mrb[58].mxu0 %vm736_vm4, %v2891_v14  ;;  %v2931_v56 = vsel %vm865_vm0, %v2928_v53, %v2930_v55  ;;  %v2933_v13 = vsel %vm865_vm0, %v2930_v55, %v2932_v54 }
 0x28e   : > { %14564 = vmatmul.mubr.msk.f32.gmra.mrb[58].mxu1 %vm736_vm4, %v2891_v14  ;;  %3342 = vmatprep.mubr.f32.mxu0 %v17648_v7  ;;  %v17628_v14 = vld [vmem:[%s17792_s17 + $0x1a0] sm:$0xff] }
 0x28f   : > { %3791 = vmatprep.mubr.f32.mxu1 %v17648_v7  ;;  %v2934_v17 = vrot.slane %v17628_v14, 2 }
 0x291   : > { %14499 = vmatmul.mubr.msk.f32.gmra.mrb[60].mxu0 %vm736_vm4, %v2893_v43  ;;  %v2935_v18 = vsel %vm865_vm0, %v2932_v54, %v2934_v17  ;;  %v2937_v21 = vsel %vm865_vm0, %v2934_v17, %v2936_v20 }
 0x292   : > { %14565 = vmatmul.mubr.msk.f32.gmra.mrb[60].mxu1 %vm736_vm4, %v2893_v43  ;;  %3348 = vmatprep.mubr.f32.mxu0 %v17648_v7  ;;  %v19371_v43 = vshrl.u32 %v4254_v41, 7 }
 0x293   : > { %3797 = vmatprep.mubr.f32.mxu1 %v17648_v7 }
 0x294   : > { %22911 = vst [vmem:[#allocation2_spill] sm:$0xff] %v19371_v43  ;;  %v22851_v59 = vsub.s32 0, %v19371_v43  ;;  %v22850_v24 = vsub.s32 2, %v19371_v43  ;;  %v22849_v26 = vsub.s32 1, %v19371_v43  ;;  %v22848_v60 = vsub.s32 3, %v19371_v43 }
 0x295   : > { %14500 = vmatmul.mubr.msk.f32.gmra.mrb[62].mxu0 %vm736_vm4, %v2895_v57 }
 0x296   : > { %14566 = vmatmul.mubr.msk.f32.gmra.mrb[62].mxu1 %vm736_vm4, %v2895_v57  ;;  %3354 = vmatprep.mubr.f32.mxu0 %v17648_v7  ;;  %v4252_v57 = vld [vmem:[%s22835_s2] sm:$0xf] }
 0x297   : > { %3803 = vmatprep.mubr.f32.mxu1 %v17648_v7  ;;  %v19398_v2 = vrot.slane %v4252_v57, %v22850_v24  ;;  %v19407_v9 = vrot.slane %v4252_v57, %v22848_v60 }
 0x299   : > { %14501 = vmatmul.mubr.msk.f32.gmra.mrb[64].mxu0 %vm736_vm4, %v2897_v27 }
 0x29a   : > { %14567 = vmatmul.mubr.msk.f32.gmra.mrb[64].mxu1 %vm736_vm4, %v2897_v27  ;;  %3360 = vmatprep.mubr.f32.mxu0 %v17648_v7  ;;  %v19394_v27 = vrot.slane %v4252_v57, %v22851_v59 }
 0x29b   : > { %3809 = vmatprep.mubr.f32.mxu1 %v17648_v7 }
 0x29d   : > { %14502 = vmatmul.mubr.msk.f32.gmra.mrb[66].mxu0 %vm736_vm4, %v2899_v5 }
 0x29e   : > { %14568 = vmatmul.mubr.msk.f32.gmra.mrb[66].mxu1 %vm736_vm4, %v2899_v5  ;;  %3366 = vmatprep.mubr.f32.mxu0 %v17648_v7 }
 0x29f   : > { %3815 = vmatprep.mubr.f32.mxu1 %v17648_v7 }
 0x2a1   : > { %14503 = vmatmul.mubr.msk.f32.gmra.mrb[68].mxu0 %vm736_vm4, %v2901_v15 }
 0x2a2   : > { %14569 = vmatmul.mubr.msk.f32.gmra.mrb[68].mxu1 %vm736_vm4, %v2901_v15  ;;  %3372 = vmatprep.mubr.f32.mxu0 %v17648_v7  ;;  %v19402_v15 = vrot.slane %v4252_v57, %v22849_v26 }
 0x2a3   : > { %3821 = vmatprep.mubr.f32.mxu1 %v17648_v7 }
 0x2a5   : > { %14504 = vmatmul.mubr.msk.f32.gmra.mrb[70].mxu0 %vm736_vm4, %v2903_v62 }
 0x2a6   : > { %14570 = vmatmul.mubr.msk.f32.gmra.mrb[70].mxu1 %vm736_vm4, %v2903_v62  ;;  %3378 = vmatprep.mubr.f32.mxu0 %v17648_v7 }
 0x2a7   : > { %3827 = vmatprep.mubr.f32.mxu1 %v17648_v7 }
 0x2a9   : > { %14505 = vmatmul.mubr.msk.f32.gmra.mrb[72].mxu0 %vm736_vm4, %v2905_v0 }
 0x2aa   : > { %14571 = vmatmul.mubr.msk.f32.gmra.mrb[72].mxu1 %vm736_vm4, %v2905_v0  ;;  %3384 = vmatprep.mubr.f32.mxu0 %v17648_v7  ;;  %v2941_v0 = vsel %vm865_vm0, %v2938_v44, %v2940_v63 }
 0x2ab   : > { %3833 = vmatprep.mubr.f32.mxu1 %v17648_v7 }
 0x2ad   : > { %14506 = vmatmul.mubr.msk.f32.gmra.mrb[74].mxu0 %vm736_vm4, %v2907_v1 }
 0x2ae   : > { %14572 = vmatmul.mubr.msk.f32.gmra.mrb[74].mxu1 %vm736_vm4, %v2907_v1  ;;  %3390 = vmatprep.mubr.f32.mxu0 %v17648_v7  ;;  %v2942_v1 = vrot.slane %v17632_v12, 2 }
 0x2af   : > { %3839 = vmatprep.mubr.f32.mxu1 %v17648_v7 }
 0x2b0   : > { %v2945_v55 = vsel %vm865_vm0, %v2942_v1, %v2944_v28 }
 0x2b1   : > { %14507 = vmatmul.mubr.msk.f32.gmra.mrb[76].mxu0 %vm736_vm4, %v2909_v3 }
 0x2b2   : > { %14573 = vmatmul.mubr.msk.f32.gmra.mrb[76].mxu1 %vm736_vm4, %v2909_v3  ;;  %3396 = vmatprep.mubr.f32.mxu0 %v17648_v7 }
 0x2b3   : > { %3845 = vmatprep.mubr.f32.mxu1 %v17648_v7 }
 0x2b5   : > { %14508 = vmatmul.mubr.msk.f32.gmra.mrb[78].mxu0 %vm736_vm4, %v2911_v4 }
 0x2b6   : > { %14574 = vmatmul.mubr.msk.f32.gmra.mrb[78].mxu1 %vm736_vm4, %v2911_v4  ;;  %3402 = vmatprep.mubr.f32.mxu0 %v17648_v7 }
 0x2b7   : > { %3851 = vmatprep.mubr.f32.mxu1 %v17648_v7 }
 0x2b9   : > { %14509 = vmatmul.mubr.msk.f32.gmra.mrb[80].mxu0 %vm736_vm4, %v2913_v6 }
 0x2ba   : > { %14575 = vmatmul.mubr.msk.f32.gmra.mrb[80].mxu1 %vm736_vm4, %v2913_v6  ;;  %3408 = vmatprep.mubr.f32.mxu0 %v17648_v7 }
 0x2bb   : > { %3857 = vmatprep.mubr.f32.mxu1 %v17648_v7 }
 0x2bd   : > { %14510 = vmatmul.mubr.msk.f32.gmra.mrb[82].mxu0 %vm736_vm4, %v2915_v22 }
 0x2be   : > { %14576 = vmatmul.mubr.msk.f32.gmra.mrb[82].mxu1 %vm736_vm4, %v2915_v22  ;;  %3414 = vmatprep.mubr.f32.mxu0 %v17648_v7 }
 0x2bf   : > { %3863 = vmatprep.mubr.f32.mxu1 %v17648_v7 }
 0x2c1   : > { %14511 = vmatmul.mubr.msk.f32.gmra.mrb[84].mxu0 %vm736_vm4, %v2917_v10 }
 0x2c2   : > { %14577 = vmatmul.mubr.msk.f32.gmra.mrb[84].mxu1 %vm736_vm4, %v2917_v10  ;;  %3420 = vmatprep.mubr.f32.mxu0 %v17648_v7 }
 0x2c3   : > { %3869 = vmatprep.mubr.f32.mxu1 %v17648_v7 }
 0x2c5   : > { %14512 = vmatmul.mubr.msk.f32.gmra.mrb[86].mxu0 %vm736_vm4, %v2919_v58 }
 0x2c6   : > { %14578 = vmatmul.mubr.msk.f32.gmra.mrb[86].mxu1 %vm736_vm4, %v2919_v58  ;;  %3426 = vmatprep.mubr.f32.mxu0 %v17648_v7  ;;  %v2943_v58 = vsel %vm865_vm0, %v2940_v63, %v2942_v1 }
 0x2c7   : > { %3875 = vmatprep.mubr.f32.mxu1 %v17648_v7 }
 0x2c9   : > { %14513 = vmatmul.mubr.msk.f32.gmra.mrb[88].mxu0 %vm736_vm4, %v2921_v8 }
 0x2ca   : > { %14579 = vmatmul.mubr.msk.f32.gmra.mrb[88].mxu1 %vm736_vm4, %v2921_v8  ;;  %3432 = vmatprep.mubr.f32.mxu0 %v17648_v7 }
 0x2cb   : > { %3881 = vmatprep.mubr.f32.mxu1 %v17648_v7 }
 0x2cd   : > { %14514 = vmatmul.mubr.msk.f32.gmra.mrb[90].mxu0 %vm736_vm4, %v2923_v36 }
 0x2ce   : > { %14580 = vmatmul.mubr.msk.f32.gmra.mrb[90].mxu1 %vm736_vm4, %v2923_v36  ;;  %3438 = vmatprep.mubr.f32.mxu0 %v17648_v7 }
 0x2cf   : > { %3887 = vmatprep.mubr.f32.mxu1 %v17648_v7 }
 0x2d1   : > { %14515 = vmatmul.mubr.msk.f32.gmra.mrb[92].mxu0 %vm736_vm4, %v2925_v42 }
 0x2d2   : > { %14581 = vmatmul.mubr.msk.f32.gmra.mrb[92].mxu1 %vm736_vm4, %v2925_v42  ;;  %3444 = vmatprep.mubr.f32.mxu0 %v17648_v7 }
 0x2d3   : > { %3893 = vmatprep.mubr.f32.mxu1 %v17648_v7 }
 0x2d5   : > { %14516 = vmatmul.mubr.msk.f32.gmra.mrb[94].mxu0 %vm736_vm4, %v2927_v37 }
 0x2d6   : > { %14582 = vmatmul.mubr.msk.f32.gmra.mrb[94].mxu1 %vm736_vm4, %v2927_v37  ;;  %3450 = vmatprep.mubr.f32.mxu0 %v17648_v7 }
 0x2d7   : > { %3899 = vmatprep.mubr.f32.mxu1 %v17648_v7 }
 0x2d9   : > { %14517 = vmatmul.mubr.msk.f32.gmra.mrb[96].mxu0 %vm736_vm4, %v2929_v51 }
 0x2da   : > { %14583 = vmatmul.mubr.msk.f32.gmra.mrb[96].mxu1 %vm736_vm4, %v2929_v51  ;;  %3456 = vmatprep.mubr.f32.mxu0 %v17648_v7 }
 0x2db   : > { %3905 = vmatprep.mubr.f32.mxu1 %v17648_v7 }
 0x2dd   : > { %14518 = vmatmul.mubr.msk.f32.gmra.mrb[98].mxu0 %vm736_vm4, %v2931_v56 }
 0x2de   : > { %14584 = vmatmul.mubr.msk.f32.gmra.mrb[98].mxu1 %vm736_vm4, %v2931_v56  ;;  %3462 = vmatprep.mubr.f32.mxu0 %v17648_v7  ;;  %v17634_v56 = vld [vmem:[%s17792_s17 + $0x1d0] sm:$0xff] }
 0x2df   : > { %3911 = vmatprep.mubr.f32.mxu1 %v17648_v7  ;;  %v2946_v40 = vrot.slane %v17634_v56, 2 }
 0x2e1   : > { %14519 = vmatmul.mubr.msk.f32.gmra.mrb[100].mxu0 %vm736_vm4, %v2933_v13  ;;  %v2947_v63 = vsel %vm865_vm0, %v2944_v28, %v2946_v40 }
 0x2e2   : > { %14585 = vmatmul.mubr.msk.f32.gmra.mrb[100].mxu1 %vm736_vm4, %v2933_v13  ;;  %3468 = vmatprep.mubr.f32.mxu0 %v17648_v7 }
 0x2e3   : > { %3917 = vmatprep.mubr.f32.mxu1 %v17648_v7 }
 0x2e5   : > { %14520 = vmatmul.mubr.msk.f32.gmra.mrb[102].mxu0 %vm736_vm4, %v2935_v18 }
 0x2e6   : > { %14586 = vmatmul.mubr.msk.f32.gmra.mrb[102].mxu1 %vm736_vm4, %v2935_v18  ;;  %3474 = vmatprep.mubr.f32.mxu0 %v17648_v7 }
 0x2e7   : > { %3923 = vmatprep.mubr.f32.mxu1 %v17648_v7 }
 0x2e9   : > { %14521 = vmatmul.mubr.msk.f32.gmra.mrb[104].mxu0 %vm736_vm4, %v2937_v21 }
 0x2ea   : > { %14587 = vmatmul.mubr.msk.f32.gmra.mrb[104].mxu1 %vm736_vm4, %v2937_v21  ;;  %3480 = vmatprep.mubr.f32.mxu0 %v17648_v7 }
 0x2eb   : > { %3929 = vmatprep.mubr.f32.mxu1 %v17648_v7 }
 0x2ec   : > { %v3164_v5 = vpop.f32.mrb[0].mxu0 }
 0x2ed   : > { %v3613_v47 = vpop.f32.mrb[0].mxu1  ;;  %v3166_v29 = vpop.f32.mrb[1].mxu0  ;;  %14522 = vmatmul.mubr.msk.f32.gmra.mrb[106].mxu0 %vm736_vm4, %v2939_v46  ;;  %v4274_v16 = vadd.f32 %v19394_v27, %v3164_v5  ;;  %v17635_v5 = vld [vmem:[%s17792_s17 + $0x1d8] sm:$0xff] }
 0x2ee   : > { %v3615_v62 = vpop.f32.mrb[1].mxu1  ;;  %14588 = vmatmul.mubr.msk.f32.gmra.mrb[106].mxu1 %vm736_vm4, %v2939_v46  ;;  %3486 = vmatprep.mubr.f32.mxu0 %v17648_v7  ;;  %v4276_v3 = vadd.f32 %v19398_v2, %v3613_v47  ;;  %v4275_v30 = vadd.f32 %v19402_v15, %v3166_v29  ;;  %v2948_v47 = vrot.slane %v17635_v5, 2 }
 0x2ef   : > { %3935 = vmatprep.mubr.f32.mxu1 %v17648_v7  ;;  %v4277_v19 = vadd.f32 %v19407_v9, %v3615_v62  ;;  %v4530_v8 = vmax.f32 %v4274_v16, 0.0 }
 0x2f0   : > { %v3170_v4 = vpop.f32.mrb[2].mxu0  ;;  %v4532_v33 = vmax.f32 %v4276_v3, 0.0  ;;  %v4531_v35 = vmax.f32 %v4275_v30, 0.0 }
 0x2f1   : > { %v3619_v49 = vpop.f32.mrb[2].mxu1  ;;  %v4278_v6 = vadd.f32 %v19394_v27, %v3170_v4  ;;  %v3172_v22 = vpop.f32.mrb[3].mxu0  ;;  %14523 = vmatmul.mubr.msk.f32.gmra.mrb[108].mxu0 %vm736_vm4, %v2941_v0  ;;  %v4533_v37 = vmax.f32 %v4277_v19, 0.0 }
 0x2f2   : > { %v4280_v31 = vadd.f32 %v19398_v2, %v3619_v49  ;;  %v3621_v25 = vpop.f32.mrb[3].mxu1  ;;  %14589 = vmatmul.mubr.msk.f32.gmra.mrb[108].mxu1 %vm736_vm4, %v2941_v0  ;;  %v4279_v10 = vadd.f32 %v19402_v15, %v3172_v22  ;;  %3492 = vmatprep.mubr.f32.mxu0 %v17648_v7 }
 0x2f3   : > { %v4281_v32 = vadd.f32 %v19407_v9, %v3621_v25  ;;  %3941 = vmatprep.mubr.f32.mxu1 %v17648_v7  ;;  %v4534_v34 = vmax.f32 %v4278_v6, 0.0  ;;  %v2949_v25 = vsel %vm865_vm0, %v2946_v40, %v2948_v47 }
 0x2f4   : > { %v4536_v36 = vmax.f32 %v4280_v31, 0.0  ;;  %v3176_v52 = vpop.f32.mrb[4].mxu0  ;;  %v4535_v45 = vmax.f32 %v4279_v10, 0.0  ;;  %v17636_v10 = vld [vmem:[%s17792_s17 + $0x1e0] sm:$0xff] }
 0x2f5   : > { %v4537_v39 = vmax.f32 %v4281_v32, 0.0  ;;  %v3625_v42 = vpop.f32.mrb[4].mxu1  ;;  %v19428_v48 = vpack.c.bf16 %v4534_v34, %v4530_v8  ;;  %v3178_v51 = vpop.f32.mrb[5].mxu0  ;;  %14524 = vmatmul.mubr.msk.f32.gmra.mrb[110].mxu0 %vm736_vm4, %v2943_v58  ;;  %v4282_v13 = vadd.f32 %v19394_v27, %v3176_v52  ;;  %v2950_v32 = vrot.slane %v17636_v10, 2 }
 0x2f6   : > { %v19430_v53 = vpack.c.bf16 %v4536_v36, %v4532_v33  ;;  %v3627_v38 = vpop.f32.mrb[5].mxu1  ;;  %14590 = vmatmul.mubr.msk.f32.gmra.mrb[110].mxu1 %vm736_vm4, %v2943_v58  ;;  %3498 = vmatprep.mubr.f32.mxu0 %v17648_v7  ;;  %v19437_v54 = vpack.c.bf16 %v4535_v45, %v4531_v35  ;;  %v4284_v14 = vadd.f32 %v19398_v2, %v3625_v42 }
 0x2f7   : > { %3947 = vmatprep.mubr.f32.mxu1 %v17648_v7  ;;  %v19442_v17 = vpack.c.bf16 %v4537_v39, %v4533_v37  ;;  %v4283_v41 = vadd.f32 %v19402_v15, %v3178_v51  ;;  %v4285_v20 = vadd.f32 %v19407_v9, %v3627_v38  ;;  %v4538_v29 = vmax.f32 %v4282_v13, 0.0 }
 0x2f8   : > { %v3182_v18 = vpop.f32.mrb[6].mxu0  ;;  %v4540_v0 = vmax.f32 %v4284_v14, 0.0  ;;  %v2951_v38 = vsel %vm865_vm0, %v2948_v47, %v2950_v32  ;;  %v17638_v47 = vld [vmem:[%s17792_s17 + $0x1f0] sm:$0xff] }
 0x2f9   : > { %v3631_v11 = vpop.f32.mrb[6].mxu1  ;;  %v4286_v21 = vadd.f32 %v19394_v27, %v3182_v18  ;;  %v3184_v44 = vpop.f32.mrb[7].mxu0  ;;  %14525 = vmatmul.mubr.msk.f32.gmra.mrb[112].mxu0 %vm736_vm4, %v2945_v55  ;;  %v4539_v30 = vmax.f32 %v4283_v41, 0.0  ;;  %v4541_v49 = vmax.f32 %v4285_v20, 0.0 }
 0x2fa   : > { %v4288_v23 = vadd.f32 %v19398_v2, %v3631_v11  ;;  %v3633_v57 = vpop.f32.mrb[7].mxu1  ;;  %v4287_v46 = vadd.f32 %v19402_v15, %v3184_v44  ;;  %14591 = vmatmul.mubr.msk.f32.gmra.mrb[112].mxu1 %vm736_vm4, %v2945_v55  ;;  %3504 = vmatprep.mubr.f32.mxu0 %v17648_v7  ;;  %v17637_v55 = vld [vmem:[%s17792_s17 + $0x1e8] sm:$0xff] }
 0x2fb   : > { %v4289_v61 = vadd.f32 %v19407_v9, %v3633_v57  ;;  %3953 = vmatprep.mubr.f32.mxu1 %v17648_v7  ;;  %v4542_v62 = vmax.f32 %v4286_v21, 0.0  ;;  %v2952_v56 = vrot.slane %v17637_v55, 2 }
 0x2fc   : > { %v4544_v12 = vmax.f32 %v4288_v23, 0.0  ;;  %v3188_v16 = vpop.f32.mrb[8].mxu0  ;;  %v4543_v4 = vmax.f32 %v4287_v46, 0.0 }
 0x2fd   : > { %v4545_v1 = vmax.f32 %v4289_v61, 0.0  ;;  %v3637_v3 = vpop.f32.mrb[8].mxu1  ;;  %v3190_v19 = vpop.f32.mrb[9].mxu0  ;;  %14526 = vmatmul.mubr.msk.f32.gmra.mrb[114].mxu0 %vm736_vm4, %v2947_v63  ;;  %v19457_v31 = vpack.c.bf16 %v4542_v62, %v4538_v29  ;;  %v4290_v50 = vadd.f32 %v19394_v27, %v3188_v16  ;;  %v2953_v5 = vsel %vm865_vm0, %v2950_v32, %v2952_v56 }
 0x2fe   : > { %v3639_v6 = vpop.f32.mrb[9].mxu1  ;;  %v19459_v22 = vpack.c.bf16 %v4544_v12, %v4540_v0  ;;  %14592 = vmatmul.mubr.msk.f32.gmra.mrb[114].mxu1 %vm736_vm4, %v2947_v63  ;;  %3510 = vmatprep.mubr.f32.mxu0 %v17648_v7  ;;  %v19465_v58 = vpack.c.bf16 %v4543_v4, %v4539_v30  ;;  %v4292_v28 = vadd.f32 %v19398_v2, %v3637_v3  ;;  %v2954_v29 = vrot.slane %v17638_v47, 2 }
 0x2ff   : > { %3959 = vmatprep.mubr.f32.mxu1 %v17648_v7  ;;  %v19470_v8 = vpack.c.bf16 %v4545_v1, %v4541_v49  ;;  %v4291_v33 = vadd.f32 %v19402_v15, %v3190_v19  ;;  %v4293_v39 = vadd.f32 %v19407_v9, %v3639_v6  ;;  %v4546_v40 = vmax.f32 %v4290_v50, 0.0 }
 0x300   : > { %v3194_v34 = vpop.f32.mrb[10].mxu0  ;;  %v4548_v14 = vmax.f32 %v4292_v28, 0.0  ;;  %v2955_v50 = vsel %vm865_vm0, %v2952_v56, %v2954_v29  ;;  %v17639_v28 = vld [vmem:[%s17792_s17 + $0x1f8] sm:$0xff] }
 0x301   : > { %v3643_v36 = vpop.f32.mrb[10].mxu1  ;;  %v4294_v52 = vadd.f32 %v19394_v27, %v3194_v34  ;;  %v3196_v35 = vpop.f32.mrb[11].mxu0  ;;  %14527 = vmatmul.mubr.msk.f32.gmra.mrb[116].mxu0 %vm736_vm4, %v2949_v25  ;;  %v4547_v21 = vmax.f32 %v4291_v33, 0.0  ;;  %v4549_v44 = vmax.f32 %v4293_v39, 0.0  ;;  %v2956_v33 = vrot.slane %v17639_v28, 2 }
 0x302   : > { %v4296_v42 = vadd.f32 %v19398_v2, %v3643_v36  ;;  %v3645_v45 = vpop.f32.mrb[11].mxu1  ;;  %v4295_v37 = vadd.f32 %v19402_v15, %v3196_v35  ;;  %14593 = vmatmul.mubr.msk.f32.gmra.mrb[116].mxu1 %vm736_vm4, %v2949_v25  ;;  %3516 = vmatprep.mubr.f32.mxu0 %v17648_v7 }
 0x303   : > { %v4297_v51 = vadd.f32 %v19407_v9, %v3645_v45  ;;  %3965 = vmatprep.mubr.f32.mxu1 %v17648_v7  ;;  %v4550_v13 = vmax.f32 %v4294_v52, 0.0 }
 0x304   : > { %v4552_v41 = vmax.f32 %v4296_v42, 0.0  ;;  %v3200_v11 = vpop.f32.mrb[12].mxu0  ;;  %v4551_v23 = vmax.f32 %v4295_v37, 0.0 }
 0x305   : > { %v4553_v18 = vmax.f32 %v4297_v51, 0.0  ;;  %v3649_v20 = vpop.f32.mrb[12].mxu1  ;;  %v3202_v57 = vpop.f32.mrb[13].mxu0  ;;  %14528 = vmatmul.mubr.msk.f32.gmra.mrb[118].mxu0 %vm736_vm4, %v2951_v38  ;;  %v19485_v61 = vpack.c.bf16 %v4550_v13, %v4546_v40  ;;  %v4298_v0 = vadd.f32 %v19394_v27, %v3200_v11 }
 0x306   : > { %v3651_v46 = vpop.f32.mrb[13].mxu1  ;;  %v19487_v63 = vpack.c.bf16 %v4552_v41, %v4548_v14  ;;  %14594 = vmatmul.mubr.msk.f32.gmra.mrb[118].mxu1 %vm736_vm4, %v2951_v38  ;;  %3522 = vmatprep.mubr.f32.mxu0 %v17648_v7  ;;  %v19493_v62 = vpack.c.bf16 %v4551_v23, %v4547_v21  ;;  %v4300_v12 = vadd.f32 %v19398_v2, %v3649_v20 }
 0x307   : > { %3971 = vmatprep.mubr.f32.mxu1 %v17648_v7  ;;  %v19498_v1 = vpack.c.bf16 %v4553_v18, %v4549_v44  ;;  %v4299_v16 = vadd.f32 %v19402_v15, %v3202_v57  ;;  %v4301_v4 = vadd.f32 %v19407_v9, %v3651_v46  ;;  %v4554_v34 = vmax.f32 %v4298_v0, 0.0 }
 0x308   : > { %v3206_v3 = vpop.f32.mrb[14].mxu0  ;;  %v4556_v39 = vmax.f32 %v4300_v12, 0.0  ;;  %v2957_v14 = vsel %vm865_vm0, %v2954_v29, %v2956_v33 }
 0x309   : > { %v3655_v30 = vpop.f32.mrb[14].mxu1  ;;  %v4302_v49 = vadd.f32 %v19394_v27, %v3206_v3  ;;  %v3208_v6 = vpop.f32.mrb[15].mxu0  ;;  %14529 = vmatmul.mubr.msk.f32.gmra.mrb[120].mxu0 %vm736_vm4, %v2953_v5  ;;  %v4555_v37 = vmax.f32 %v4299_v16, 0.0  ;;  %v4557_v38 = vmax.f32 %v4301_v4, 0.0 }
 0x30a   : > { %v4304_v19 = vadd.f32 %v19398_v2, %v3655_v30  ;;  %v3657_v25 = vpop.f32.mrb[15].mxu1  ;;  %v4303_v10 = vadd.f32 %v19402_v15, %v3208_v6  ;;  %14595 = vmatmul.mubr.msk.f32.gmra.mrb[120].mxu1 %vm736_vm4, %v2953_v5  ;;  %3528 = vmatprep.mubr.f32.mxu0 %v17648_v7 }
 0x30b   : > { %v4305_v32 = vadd.f32 %v19407_v9, %v3657_v25  ;;  %3977 = vmatprep.mubr.f32.mxu1 %v17648_v7  ;;  %v4558_v36 = vmax.f32 %v4302_v49, 0.0 }
 0x30c   : > { %v4560_v52 = vmax.f32 %v4304_v19, 0.0  ;;  %v3212_v35 = vpop.f32.mrb[16].mxu0  ;;  %v4559_v51 = vmax.f32 %v4303_v10, 0.0 }
 0x30d   : > { %v4561_v42 = vmax.f32 %v4305_v32, 0.0  ;;  %v3661_v45 = vpop.f32.mrb[16].mxu1  ;;  %v3214_v55 = vpop.f32.mrb[17].mxu0  ;;  %14530 = vmatmul.mubr.msk.f32.gmra.mrb[122].mxu0 %vm736_vm4, %v2955_v50  ;;  %v19513_v13 = vpack.c.bf16 %v4558_v36, %v4554_v34  ;;  %v4306_v18 = vadd.f32 %v19394_v27, %v3212_v35 }
 0x30e   : > { %v3663_v40 = vpop.f32.mrb[17].mxu1  ;;  %v19515_v56 = vpack.c.bf16 %v4560_v52, %v4556_v39  ;;  %14596 = vmatmul.mubr.msk.f32.gmra.mrb[122].mxu1 %vm736_vm4, %v2955_v50  ;;  %3534 = vmatprep.mubr.f32.mxu0 %v17648_v7  ;;  %v19520_v41 = vpack.c.bf16 %v4559_v51, %v4555_v37  ;;  %v4308_v11 = vadd.f32 %v19398_v2, %v3661_v45 }
 0x30f   : > { %3983 = vmatprep.mubr.f32.mxu1 %v17648_v7  ;;  %v19525_v20 = vpack.c.bf16 %v4561_v42, %v4557_v38  ;;  %v4307_v21 = vadd.f32 %v19402_v15, %v3214_v55  ;;  %v4309_v57 = vadd.f32 %v19407_v9, %v3663_v40  ;;  %v4562_v16 = vmax.f32 %v4306_v18, 0.0 }
 0x310   : > { %v3218_v23 = vpop.f32.mrb[18].mxu0  ;;  %v4564_v30 = vmax.f32 %v4308_v11, 0.0 }
 0x311   : > { %v3667_v44 = vpop.f32.mrb[18].mxu1  ;;  %v4310_v46 = vadd.f32 %v19394_v27, %v3218_v23  ;;  %v3220_v47 = vpop.f32.mrb[19].mxu0  ;;  %14531 = vmatmul.mubr.msk.f32.gmra.mrb[124].mxu0 %vm736_vm4, %v2957_v14  ;;  %v4563_v25 = vmax.f32 %v4307_v21, 0.0  ;;  %v4565_v32 = vmax.f32 %v4309_v57, 0.0 }
 0x312   : > { %v4312_v5 = vadd.f32 %v19398_v2, %v3667_v44  ;;  %v3669_v29 = vpop.f32.mrb[19].mxu1  ;;  %v4311_v0 = vadd.f32 %v19402_v15, %v3220_v47  ;;  %14597 = vmatmul.mubr.msk.f32.gmra.mrb[124].mxu1 %vm736_vm4, %v2957_v14  ;;  %3540 = vmatprep.mubr.f32.mxu0 %v17648_v7 }
 0x313   : > { %v4313_v12 = vadd.f32 %v19407_v9, %v3669_v29  ;;  %3989 = vmatprep.mubr.f32.mxu1 %v17648_v7  ;;  %v4566_v3 = vmax.f32 %v4310_v46, 0.0 }
 0x314   : > { %v4568_v4 = vmax.f32 %v4312_v5, 0.0  ;;  %v3224_v19 = vpop.f32.mrb[20].mxu0  ;;  %v4567_v10 = vmax.f32 %v4311_v0, 0.0 }
 0x315   : > { %v4569_v49 = vmax.f32 %v4313_v12, 0.0  ;;  %v3673_v6 = vpop.f32.mrb[20].mxu1  ;;  %v3226_v50 = vpop.f32.mrb[21].mxu0  ;;  %14532 = vmatmul.mubr.msk.f32.gmra.mrb[126].mxu0 %vm736_vm4, %v2956_v33  ;;  %v19538_v34 = vpack.c.bf16 %v4566_v3, %v4562_v16  ;;  %v4314_v39 = vadd.f32 %v19394_v27, %v3224_v19 }
 0x316   : > { %v3675_v28 = vpop.f32.mrb[21].mxu1  ;;  %v19540_v36 = vpack.c.bf16 %v4568_v4, %v4564_v30  ;;  %14598 = vmatmul.mubr.msk.f32.gmra.mrb[126].mxu1 %vm736_vm4, %v2956_v33  ;;  %5379 = vmatprep.mubr.bf16.mxu0 %v19437_v54  ;;  %v19544_v7 = vpack.c.bf16 %v4567_v10, %v4563_v25  ;;  %v4316_v52 = vadd.f32 %v19398_v2, %v3673_v6  ;;  %v16806_v10 = vld [vmem:[%s22836_s3 + $0x100] ss:$8 sps:$4 sm:$0xff]  }
 0x317   : > { %6421 = vmatprep.mubr.bf16.mxu1 %v19437_v54  ;;  %v19549_v42 = vpack.c.bf16 %v4569_v49, %v4565_v32  ;;  %v4315_v35 = vadd.f32 %v19402_v15, %v3226_v50  ;;  %v4317_v45 = vadd.f32 %v19407_v9, %v3675_v28  ;;  %v4570_v18 = vmax.f32 %v4314_v39, 0.0 }
 0x318   : > { %v3230_v37 = vpop.f32.mrb[22].mxu0  ;;  %v4572_v21 = vmax.f32 %v4316_v52, 0.0  ;;  %v16808_v52 = vld [vmem:[%s22836_s3 + $0x104] ss:$8 sps:$4 sm:$0xff]  }
 0x319   : > { %v3679_v51 = vpop.f32.mrb[22].mxu1  ;;  %v4318_v33 = vadd.f32 %v19394_v27, %v3230_v37  ;;  %v3232_v55 = vpop.f32.mrb[23].mxu0  ;;  %5380 = vmatmul.mubr.bf16.vlgmr.msra.gmra.mrb[128].mxu0 %v19428_v48  ;;  %v4573_v44 = vmax.f32 %v4317_v45, 0.0  ;;  %v4571_v47 = vmax.f32 %v4315_v35, 0.0  ;;  %v16809_v35 = vld [vmem:[%s22837_s4 + $0x100] ss:$8 sps:$4 sm:$0xff]   ;;  %5700 = vmatprep.subr.bf16.mxu0 %v16808_v52 }
 0x31a   : > { %v4320_v38 = vadd.f32 %v19398_v2, %v3679_v51  ;;  %v3681_v40 = vpop.f32.mrb[23].mxu1  ;;  %v4319_v14 = vadd.f32 %v19402_v15, %v3232_v55  ;;  %6422 = vmatmul.mubr.bf16.vlgmr.msra.gmra.mrb[128].mxu1 %v19428_v48  ;;  %5389 = vmatprep.mubr.bf16.mxu0 %v19465_v58  ;;  %v16811_v51 = vld [vmem:[%s22837_s4 + $0x104] ss:$8 sps:$4 sm:$0xff]  }
 0x31b   : > { %v4321_v54 = vadd.f32 %v19407_v9, %v3681_v40  ;;  %6431 = vmatprep.mubr.bf16.mxu1 %v19465_v58  ;;  %v4574_v11 = vmax.f32 %v4318_v33, 0.0  ;;  %6742 = vmatprep.subr.bf16.mxu1 %v16811_v51 }
 0x31c   : > { %v4576_v23 = vmax.f32 %v4320_v38, 0.0  ;;  %v3236_v46 = vpop.f32.mrb[24].mxu0  ;;  %v4575_v29 = vmax.f32 %v4319_v14, 0.0  ;;  %5701 = vmatpush1.bf16.msra.mxu0 %v16806_v10  ;;  %6743 = vmatpush1.bf16.msra.mxu1 %v16809_v35 }
 0x31d   : > { %v4577_v57 = vmax.f32 %v4321_v54, 0.0  ;;  %v3685_v5 = vpop.f32.mrb[24].mxu1  ;;  %v3238_v0 = vpop.f32.mrb[25].mxu0  ;;  %v19561_v16 = vpack.c.bf16 %v4574_v11, %v4570_v18  ;;  %v4322_v58 = vadd.f32 %v19394_v27, %v3236_v46 }
 0x31e   : > { %v3687_v12 = vpop.f32.mrb[25].mxu1  ;;  %v19563_v3 = vpack.c.bf16 %v4576_v23, %v4572_v21  ;;  %v19565_v48 = vpack.c.bf16 %v4575_v29, %v4571_v47  ;;  %v4324_v4 = vadd.f32 %v19398_v2, %v3685_v5  ;;  %v4323_v49 = vadd.f32 %v19402_v15, %v3238_v0 }
 0x31f   : > { %v19567_v30 = vpack.c.bf16 %v4577_v57, %v4573_v44  ;;  %v4325_v19 = vadd.f32 %v19407_v9, %v3687_v12  ;;  %v4578_v33 = vmax.f32 %v4322_v58, 0.0 }
 0x320   : > { %v3242_v6 = vpop.f32.mrb[26].mxu0  ;;  %v4580_v55 = vmax.f32 %v4324_v4, 0.0  ;;  %v4579_v21 = vmax.f32 %v4323_v49, 0.0 }
 0x321   : > { %v3691_v25 = vpop.f32.mrb[26].mxu1  ;;  %v4326_v32 = vadd.f32 %v19394_v27, %v3242_v6  ;;  %v3244_v28 = vpop.f32.mrb[27].mxu0  ;;  %5390 = vmatmul.mubr.bf16.gmra.mrb[132].mxu0 %v19457_v31  ;;  %v4581_v14 = vmax.f32 %v4325_v19, 0.0 }
 0x322   : > { %v4328_v50 = vadd.f32 %v19398_v2, %v3691_v25  ;;  %v3693_v39 = vpop.f32.mrb[27].mxu1  ;;  %v4327_v45 = vadd.f32 %v19402_v15, %v3244_v28  ;;  %6432 = vmatmul.mubr.bf16.gmra.mrb[132].mxu1 %v19457_v31  ;;  %5399 = vmatprep.mubr.bf16.mxu0 %v19493_v62 }
 0x323   : > { %v4329_v37 = vadd.f32 %v19407_v9, %v3693_v39  ;;  %6441 = vmatprep.mubr.bf16.mxu1 %v19493_v62  ;;  %v4582_v38 = vmax.f32 %v4326_v32, 0.0 }
 0x324   : > { %v4584_v40 = vmax.f32 %v4328_v50, 0.0  ;;  %v3248_v18 = vpop.f32.mrb[28].mxu0  ;;  %v4583_v23 = vmax.f32 %v4327_v45, 0.0 }
 0x325   : > { %v4585_v54 = vmax.f32 %v4329_v37, 0.0  ;;  %v3697_v11 = vpop.f32.mrb[28].mxu1  ;;  %v3250_v31 = vpop.f32.mrb[29].mxu0  ;;  %v19593_v57 = vpack.c.bf16 %v4582_v38, %v4578_v33  ;;  %v4330_v47 = vadd.f32 %v19394_v27, %v3248_v18 }
 0x326   : > { %v3699_v44 = vpop.f32.mrb[29].mxu1  ;;  %v19595_v46 = vpack.c.bf16 %v4584_v40, %v4580_v55  ;;  %v19597_v62 = vpack.c.bf16 %v4583_v23, %v4579_v21  ;;  %v4332_v29 = vadd.f32 %v19398_v2, %v3697_v11  ;;  %v4331_v0 = vadd.f32 %v19402_v15, %v3250_v31 }
 0x327   : > { %v19599_v5 = vpack.c.bf16 %v4585_v54, %v4581_v14  ;;  %v4333_v12 = vadd.f32 %v19407_v9, %v3699_v44  ;;  %v4586_v50 = vmax.f32 %v4330_v47, 0.0 }
 0x328   : > { %v3254_v58 = vpop.f32.mrb[30].mxu0  ;;  %v4588_v39 = vmax.f32 %v4332_v29, 0.0  ;;  %v4587_v33 = vmax.f32 %v4331_v0, 0.0 }
 0x329   : > { %v3703_v4 = vpop.f32.mrb[30].mxu1  ;;  %v4334_v49 = vadd.f32 %v19394_v27, %v3254_v58  ;;  %v3256_v6 = vpop.f32.mrb[31].mxu0  ;;  %5400 = vmatmul.mubr.bf16.gmra.mrb[136].mxu0 %v19485_v61  ;;  %v4589_v35 = vmax.f32 %v4333_v12, 0.0 }
 0x32a   : > { %v4336_v19 = vadd.f32 %v19398_v2, %v3703_v4  ;;  %v3705_v25 = vpop.f32.mrb[31].mxu1  ;;  %v4335_v10 = vadd.f32 %v19402_v15, %v3256_v6  ;;  %6442 = vmatmul.mubr.bf16.gmra.mrb[136].mxu1 %v19485_v61  ;;  %5409 = vmatprep.mubr.bf16.mxu0 %v19520_v41 }
 0x32b   : > { %v4337_v32 = vadd.f32 %v19407_v9, %v3705_v25  ;;  %6451 = vmatprep.mubr.bf16.mxu1 %v19520_v41  ;;  %v4590_v28 = vmax.f32 %v4334_v49, 0.0 }
 0x32c   : > { %v4592_v52 = vmax.f32 %v4336_v19, 0.0  ;;  %v3260_v37 = vpop.f32.mrb[32].mxu0  ;;  %v4591_v38 = vmax.f32 %v4335_v10, 0.0 }
 0x32d   : > { %v4593_v45 = vmax.f32 %v4337_v32, 0.0  ;;  %v3709_v51 = vpop.f32.mrb[32].mxu1  ;;  %v3262_v55 = vpop.f32.mrb[33].mxu0  ;;  %v19613_v14 = vpack.c.bf16 %v4590_v28, %v4586_v50  ;;  %v4338_v61 = vadd.f32 %v19394_v27, %v3260_v37 }
 0x32e   : > { %v3711_v40 = vpop.f32.mrb[33].mxu1  ;;  %v19615_v54 = vpack.c.bf16 %v4592_v52, %v4588_v39  ;;  %v4340_v41 = vadd.f32 %v19398_v2, %v3709_v51  ;;  %v19619_v18 = vpack.c.bf16 %v4591_v38, %v4587_v33  ;;  %v4339_v21 = vadd.f32 %v19402_v15, %v3262_v55  ;;  %v16814_v51 = vld [vmem:[%s22836_s3 + $0x114] ss:$8 sps:$4 sm:$0xff]  }
 0x32f   : > { %v19621_v11 = vpack.c.bf16 %v4593_v45, %v4589_v35  ;;  %v4341_v23 = vadd.f32 %v19407_v9, %v3711_v40  ;;  %v4594_v49 = vmax.f32 %v4338_v61, 0.0  ;;  %v16812_v35 = vld [vmem:[%s22836_s3 + $0x110] ss:$8 sps:$4 sm:$0xff]   ;;  %v16817_v55 = vld [vmem:[%s22837_s4 + $0x114] ss:$8 sps:$4 sm:$0xff]   ;;  %5702 = vmatprep.subr.bf16.mxu0 %v16814_v51 }
 0x330   : > { %v3266_v31 = vpop.f32.mrb[34].mxu0  ;;  %v4596_v19 = vmax.f32 %v4340_v41, 0.0  ;;  %v4595_v25 = vmax.f32 %v4339_v21, 0.0  ;;  %6744 = vmatprep.subr.bf16.mxu1 %v16817_v55  ;;  %5703 = vmatpush1.bf16.msra.mxu0 %v16812_v35 }
 0x331   : > { %v3715_v44 = vpop.f32.mrb[34].mxu1  ;;  %v4342_v47 = vadd.f32 %v19394_v27, %v3266_v31  ;;  %v3268_v0 = vpop.f32.mrb[35].mxu0  ;;  %5410 = vmatmul.mubr.bf16.gmra.mrb[140].mxu0 %v19513_v13  ;;  %v4597_v6 = vmax.f32 %v4341_v23, 0.0 }
 0x332   : > { %v4344_v29 = vadd.f32 %v19398_v2, %v3715_v44  ;;  %v3717_v12 = vpop.f32.mrb[35].mxu1  ;;  %v4343_v58 = vadd.f32 %v19402_v15, %v3268_v0  ;;  %6452 = vmatmul.mubr.bf16.gmra.mrb[140].mxu1 %v19513_v13  ;;  %5419 = vmatprep.mubr.bf16.mxu0 %v19544_v7 }
 0x333   : > { %v4345_v4 = vadd.f32 %v19407_v9, %v3717_v12  ;;  %6461 = vmatprep.mubr.bf16.mxu1 %v19544_v7  ;;  %v4598_v10 = vmax.f32 %v4342_v47, 0.0  ;;  %v16815_v7 = vld [vmem:[%s22837_s4 + $0x110] ss:$8 sps:$4 sm:$0xff]  }
 0x334   : > { %v4600_v32 = vmax.f32 %v4344_v29, 0.0  ;;  %v3272_v28 = vpop.f32.mrb[36].mxu0  ;;  %v4599_v52 = vmax.f32 %v4343_v58, 0.0  ;;  %6745 = vmatpush1.bf16.msra.mxu1 %v16815_v7 }
 0x335   : > { %v4601_v50 = vmax.f32 %v4345_v4, 0.0  ;;  %v3721_v39 = vpop.f32.mrb[36].mxu1  ;;  %v3274_v45 = vpop.f32.mrb[37].mxu0  ;;  %v19636_v37 = vpack.c.bf16 %v4598_v10, %v4594_v49  ;;  %v4346_v61 = vadd.f32 %v19394_v27, %v3272_v28 }
 0x336   : > { %v3723_v13 = vpop.f32.mrb[37].mxu1  ;;  %v19644_v33 = vpack.c.bf16 %v4600_v32, %v4596_v19  ;;  %v19646_v38 = vpack.c.bf16 %v4599_v52, %v4595_v25  ;;  %v4348_v41 = vadd.f32 %v19398_v2, %v3721_v39  ;;  %v4347_v21 = vadd.f32 %v19402_v15, %v3274_v45 }
 0x337   : > { %v19651_v40 = vpack.c.bf16 %v4601_v50, %v4597_v6  ;;  %v4349_v23 = vadd.f32 %v19407_v9, %v3723_v13  ;;  %v4602_v49 = vmax.f32 %v4346_v61, 0.0 }
 0x338   : > { %v3278_v31 = vpop.f32.mrb[38].mxu0  ;;  %v4604_v6 = vmax.f32 %v4348_v41, 0.0  ;;  %v4603_v39 = vmax.f32 %v4347_v21, 0.0 }
 0x339   : > { %v3727_v44 = vpop.f32.mrb[38].mxu1  ;;  %v4350_v47 = vadd.f32 %v19394_v27, %v3278_v31  ;;  %v3280_v0 = vpop.f32.mrb[39].mxu0  ;;  %5420 = vmatmul.mubr.bf16.gmra.mrb[144].mxu0 %v19538_v34  ;;  %v4605_v10 = vmax.f32 %v4349_v23, 0.0 }
 0x33a   : > { %v4352_v29 = vadd.f32 %v19398_v2, %v3727_v44  ;;  %v3729_v12 = vpop.f32.mrb[39].mxu1  ;;  %v4351_v58 = vadd.f32 %v19402_v15, %v3280_v0  ;;  %6462 = vmatmul.mubr.bf16.gmra.mrb[144].mxu1 %v19538_v34  ;;  %5429 = vmatprep.mubr.bf16.mxu0 %v19565_v48 }
 0x33b   : > { %v4353_v4 = vadd.f32 %v19407_v9, %v3729_v12  ;;  %6471 = vmatprep.mubr.bf16.mxu1 %v19565_v48  ;;  %v4606_v19 = vmax.f32 %v4350_v47, 0.0 }
 0x33c   : > { %v4608_v25 = vmax.f32 %v4352_v29, 0.0  ;;  %v3284_v50 = vpop.f32.mrb[40].mxu0  ;;  %v4607_v52 = vmax.f32 %v4351_v58, 0.0 }
 0x33d   : > { %v4609_v32 = vmax.f32 %v4353_v4, 0.0  ;;  %v3733_v28 = vpop.f32.mrb[40].mxu1  ;;  %v3286_v35 = vpop.f32.mrb[41].mxu0  ;;  %v19665_v13 = vpack.c.bf16 %v4606_v19, %v4602_v49  ;;  %v4354_v48 = vadd.f32 %v19394_v27, %v3284_v50 }
 0x33e   : > { %v3735_v45 = vpop.f32.mrb[41].mxu1  ;;  %v19667_v51 = vpack.c.bf16 %v4608_v25, %v4604_v6  ;;  %v19669_v34 = vpack.c.bf16 %v4607_v52, %v4603_v39  ;;  %v4356_v55 = vadd.f32 %v19398_v2, %v3733_v28  ;;  %v4355_v61 = vadd.f32 %v19402_v15, %v3286_v35 }
 0x33f   : > { %v19671_v7 = vpack.c.bf16 %v4609_v32, %v4605_v10  ;;  %v4357_v41 = vadd.f32 %v19407_v9, %v3735_v45  ;;  %v4610_v58 = vmax.f32 %v4354_v48, 0.0 }
 0x340   : > { %v3290_v21 = vpop.f32.mrb[42].mxu0  ;;  %v4612_v49 = vmax.f32 %v4356_v55, 0.0  ;;  %v4611_v50 = vmax.f32 %v4355_v61, 0.0 }
 0x341   : > { %v3739_v23 = vpop.f32.mrb[42].mxu1  ;;  %v4358_v31 = vadd.f32 %v19394_v27, %v3290_v21  ;;  %v3292_v47 = vpop.f32.mrb[43].mxu0  ;;  %5430 = vmatmul.mubr.bf16.gmra.mrb[148].mxu0 %v19561_v16  ;;  %v4613_v6 = vmax.f32 %v4357_v41, 0.0 }
 0x342   : > { %v4360_v44 = vadd.f32 %v19398_v2, %v3739_v23  ;;  %v3741_v29 = vpop.f32.mrb[43].mxu1  ;;  %v4359_v0 = vadd.f32 %v19402_v15, %v3292_v47  ;;  %6472 = vmatmul.mubr.bf16.gmra.mrb[148].mxu1 %v19561_v16  ;;  %5439 = vmatprep.mubr.bf16.mxu0 %v19597_v62 }
 0x343   : > { %v4361_v12 = vadd.f32 %v19407_v9, %v3741_v29  ;;  %6481 = vmatprep.mubr.bf16.mxu1 %v19597_v62  ;;  %v4614_v4 = vmax.f32 %v4358_v31, 0.0 }
 0x344   : > { %v4616_v19 = vmax.f32 %v4360_v44, 0.0  ;;  %v3296_v10 = vpop.f32.mrb[44].mxu0  ;;  %v4615_v28 = vmax.f32 %v4359_v0, 0.0  ;;  %v16818_v0 = vld [vmem:[%s22836_s3 + $0x120] ss:$8 sps:$4 sm:$0xff]  }
 0x345   : > { %v4617_v25 = vmax.f32 %v4361_v12, 0.0  ;;  %v3745_v32 = vpop.f32.mrb[44].mxu1  ;;  %v3298_v39 = vpop.f32.mrb[45].mxu0  ;;  %v19685_v35 = vpack.c.bf16 %v4614_v4, %v4610_v58  ;;  %v4362_v62 = vadd.f32 %v19394_v27, %v3296_v10  ;;  %v16820_v12 = vld [vmem:[%s22836_s3 + $0x124] ss:$8 sps:$4 sm:$0xff]  }
 0x346   : > { %v3747_v52 = vpop.f32.mrb[45].mxu1  ;;  %v19687_v45 = vpack.c.bf16 %v4616_v19, %v4612_v49  ;;  %v19689_v16 = vpack.c.bf16 %v4615_v28, %v4611_v50  ;;  %v4364_v48 = vadd.f32 %v19398_v2, %v3745_v32  ;;  %v4363_v55 = vadd.f32 %v19402_v15, %v3298_v39  ;;  %v16821_v49 = vld [vmem:[%s22837_s4 + $0x120] ss:$8 sps:$4 sm:$0xff]   ;;  %v16823_v19 = vld [vmem:[%s22837_s4 + $0x124] ss:$8 sps:$4 sm:$0xff]   ;;  %5704 = vmatprep.subr.bf16.mxu0 %v16820_v12 }
 0x347   : > { %v19691_v21 = vpack.c.bf16 %v4617_v25, %v4613_v6  ;;  %v4365_v41 = vadd.f32 %v19407_v9, %v3747_v52  ;;  %v4618_v6 = vmax.f32 %v4362_v62, 0.0  ;;  %6746 = vmatprep.subr.bf16.mxu1 %v16823_v19  ;;  %5705 = vmatpush1.bf16.msra.mxu0 %v16818_v0 }
 0x348   : > { %v3302_v61 = vpop.f32.mrb[46].mxu0  ;;  %v4620_v10 = vmax.f32 %v4364_v48, 0.0  ;;  %v4619_v52 = vmax.f32 %v4363_v55, 0.0  ;;  %6747 = vmatpush1.bf16.msra.mxu1 %v16821_v49 }
 0x349   : > { %v3751_v23 = vpop.f32.mrb[46].mxu1  ;;  %v4366_v31 = vadd.f32 %v19394_v27, %v3302_v61  ;;  %v3304_v47 = vpop.f32.mrb[47].mxu0  ;;  %5440 = vmatmul.mubr.bf16.gmra.mrb[152].mxu0 %v19593_v57  ;;  %v4621_v50 = vmax.f32 %v4365_v41, 0.0 }
 0x34a   : > { %v4368_v44 = vadd.f32 %v19398_v2, %v3751_v23  ;;  %v3753_v29 = vpop.f32.mrb[47].mxu1  ;;  %v4367_v58 = vadd.f32 %v19402_v15, %v3304_v47  ;;  %6482 = vmatmul.mubr.bf16.gmra.mrb[152].mxu1 %v19593_v57  ;;  %5449 = vmatprep.mubr.bf16.mxu0 %v19619_v18 }
 0x34b   : > { %v4369_v4 = vadd.f32 %v19407_v9, %v3753_v29  ;;  %6491 = vmatprep.mubr.bf16.mxu1 %v19619_v18  ;;  %v4622_v25 = vmax.f32 %v4366_v31, 0.0 }
 0x34c   : > { %v4624_v32 = vmax.f32 %v4368_v44, 0.0  ;;  %v3308_v57 = vpop.f32.mrb[48].mxu0  ;;  %v4623_v61 = vmax.f32 %v4367_v58, 0.0 }
 0x34d   : > { %v4625_v28 = vmax.f32 %v4369_v4, 0.0  ;;  %v3757_v39 = vpop.f32.mrb[48].mxu1  ;;  %v3310_v23 = vpop.f32.mrb[49].mxu0  ;;  %v19717_v29 = vpack.c.bf16 %v4622_v25, %v4618_v6  ;;  %v4370_v48 = vadd.f32 %v19394_v27, %v3308_v57 }
 0x34e   : > { %v3759_v47 = vpop.f32.mrb[49].mxu1  ;;  %v19719_v60 = vpack.c.bf16 %v4624_v32, %v4620_v10  ;;  %v19721_v18 = vpack.c.bf16 %v4623_v61, %v4619_v52  ;;  %v4372_v41 = vadd.f32 %v19398_v2, %v3757_v39  ;;  %v4371_v55 = vadd.f32 %v19402_v15, %v3310_v23 }
 0x34f   : > { %v19723_v62 = vpack.c.bf16 %v4625_v28, %v4621_v50  ;;  %v4373_v31 = vadd.f32 %v19407_v9, %v3759_v47  ;;  %v4626_v25 = vmax.f32 %v4370_v48, 0.0 }
 0x350   : > { %v3314_v44 = vpop.f32.mrb[50].mxu0  ;;  %v4628_v32 = vmax.f32 %v4372_v41, 0.0  ;;  %v4627_v61 = vmax.f32 %v4371_v55, 0.0 }
 0x351   : > { %v3763_v0 = vpop.f32.mrb[50].mxu1  ;;  %v4374_v12 = vadd.f32 %v19394_v27, %v3314_v44  ;;  %v3316_v4 = vpop.f32.mrb[51].mxu0  ;;  %5450 = vmatmul.mubr.bf16.gmra.mrb[156].mxu0 %v19613_v14  ;;  %v4629_v28 = vmax.f32 %v4373_v31, 0.0 }
 0x352   : > { %v4376_v58 = vadd.f32 %v19398_v2, %v3763_v0  ;;  %v3765_v49 = vpop.f32.mrb[51].mxu1  ;;  %v4375_v19 = vadd.f32 %v19402_v15, %v3316_v4  ;;  %6492 = vmatmul.mubr.bf16.gmra.mrb[156].mxu1 %v19613_v14  ;;  %5459 = vmatprep.mubr.bf16.mxu0 %v19646_v38 }
 0x353   : > { %v4377_v6 = vadd.f32 %v19407_v9, %v3765_v49  ;;  %6501 = vmatprep.mubr.bf16.mxu1 %v19646_v38  ;;  %v4630_v10 = vmax.f32 %v4374_v12, 0.0 }
 0x354   : > { %v4632_v50 = vmax.f32 %v4376_v58, 0.0  ;;  %v3320_v39 = vpop.f32.mrb[52].mxu0  ;;  %v4631_v23 = vmax.f32 %v4375_v19, 0.0 }
 0x355   : > { %v4633_v57 = vmax.f32 %v4377_v6, 0.0  ;;  %v3769_v52 = vpop.f32.mrb[52].mxu1  ;;  %v3322_v47 = vpop.f32.mrb[53].mxu0  ;;  %v19737_v0 = vpack.c.bf16 %v4630_v10, %v4626_v25  ;;  %v4378_v38 = vadd.f32 %v19394_v27, %v3320_v39 }
 0x356   : > { %v3771_v44 = vpop.f32.mrb[53].mxu1  ;;  %v19739_v4 = vpack.c.bf16 %v4632_v50, %v4628_v32  ;;  %v19741_v14 = vpack.c.bf16 %v4631_v23, %v4627_v61  ;;  %v4380_v48 = vadd.f32 %v19398_v2, %v3769_v52  ;;  %v4379_v41 = vadd.f32 %v19402_v15, %v3322_v47 }
 0x357   : > { %v19743_v49 = vpack.c.bf16 %v4633_v57, %v4629_v28  ;;  %v4381_v31 = vadd.f32 %v19407_v9, %v3771_v44  ;;  %v4634_v50 = vmax.f32 %v4378_v38, 0.0 }
 0x358   : > { %v3326_v55 = vpop.f32.mrb[54].mxu0  ;;  %v4636_v57 = vmax.f32 %v4380_v48, 0.0  ;;  %v4635_v44 = vmax.f32 %v4379_v41, 0.0 }
 0x359   : > { %v3775_v12 = vpop.f32.mrb[54].mxu1  ;;  %v4382_v58 = vadd.f32 %v19394_v27, %v3326_v55  ;;  %v3328_v6 = vpop.f32.mrb[55].mxu0  ;;  %5460 = vmatmul.mubr.bf16.gmra.mrb[160].mxu0 %v19636_v37  ;;  %v4637_v52 = vmax.f32 %v4381_v31, 0.0 }
 0x35a   : > { %v4384_v19 = vadd.f32 %v19398_v2, %v3775_v12  ;;  %v3777_v25 = vpop.f32.mrb[55].mxu1  ;;  %v4383_v10 = vadd.f32 %v19402_v15, %v3328_v6  ;;  %6502 = vmatmul.mubr.bf16.gmra.mrb[160].mxu1 %v19636_v37  ;;  %5469 = vmatprep.mubr.bf16.mxu0 %v19669_v34 }
 0x35b   : > { %v4385_v32 = vadd.f32 %v19407_v9, %v3777_v25  ;;  %6511 = vmatprep.mubr.bf16.mxu1 %v19669_v34  ;;  %v4638_v28 = vmax.f32 %v4382_v58, 0.0 }
 0x35c   : > { %v4640_v39 = vmax.f32 %v4384_v19, 0.0  ;;  %v3332_v23 = vpop.f32.mrb[56].mxu0  ;;  %v4639_v55 = vmax.f32 %v4383_v10, 0.0 }
 0x35d   : > { %v4641_v61 = vmax.f32 %v4385_v32, 0.0  ;;  %v3781_v47 = vpop.f32.mrb[56].mxu1  ;;  %v3334_v12 = vpop.f32.mrb[57].mxu0  ;;  %v19757_v26 = vpack.c.bf16 %v4638_v28, %v4634_v50  ;;  %v4386_v34 = vadd.f32 %v19394_v27, %v3332_v23  ;;  %v16824_v28 = vld [vmem:[%s22836_s3 + $0x130] ss:$8 sps:$4 sm:$0xff]  }
 0x35e   : > { %v3783_v6 = vpop.f32.mrb[57].mxu1  ;;  %v19759_v25 = vpack.c.bf16 %v4640_v39, %v4636_v57  ;;  %v19761_v37 = vpack.c.bf16 %v4639_v55, %v4635_v44  ;;  %v4388_v38 = vadd.f32 %v19398_v2, %v3781_v47  ;;  %v4387_v48 = vadd.f32 %v19402_v15, %v3334_v12  ;;  %v16826_v57 = vld [vmem:[%s22836_s3 + $0x134] ss:$8 sps:$4 sm:$0xff]  }
 0x35f   : > { %v19763_v24 = vpack.c.bf16 %v4641_v61, %v4637_v52  ;;  %v4389_v31 = vadd.f32 %v19407_v9, %v3783_v6  ;;  %v16827_v61 = vld [vmem:[%s22837_s4 + $0x130] ss:$8 sps:$4 sm:$0xff]   ;;  %v16829_v23 = vld [vmem:[%s22837_s4 + $0x134] ss:$8 sps:$4 sm:$0xff]   ;;  %v4642_v47 = vmax.f32 %v4386_v34, 0.0  ;;  %5706 = vmatprep.subr.bf16.mxu0 %v16826_v57 }
 0x360   : > { %22912 = vst [vmem:[#allocation3_spill] sm:$0xff] %v19759_v25  ;;  %v3338_v41 = vpop.f32.mrb[58].mxu0  ;;  %v4644_v55 = vmax.f32 %v4388_v38, 0.0  ;;  %6748 = vmatprep.subr.bf16.mxu1 %v16829_v23  ;;  %5707 = vmatpush1.bf16.msra.mxu0 %v16824_v28 }
 0x361   : > { %22913 = vst [vmem:[#allocation4_spill] sm:$0xff] %v19763_v24  ;;  %v3787_v58 = vpop.f32.mrb[58].mxu1  ;;  %v4390_v19 = vadd.f32 %v19394_v27, %v3338_v41  ;;  %v3340_v32 = vpop.f32.mrb[59].mxu0  ;;  %5470 = vmatmul.mubr.bf16.gmra.mrb[164].mxu0 %v19665_v13  ;;  %v4645_v6 = vmax.f32 %v4389_v31, 0.0  ;;  %6749 = vmatpush1.bf16.msra.mxu1 %v16827_v61 }
 0x362   : > { %v4392_v10 = vadd.f32 %v19398_v2, %v3787_v58  ;;  %v3789_v50 = vpop.f32.mrb[59].mxu1  ;;  %v4391_v39 = vadd.f32 %v19402_v15, %v3340_v32  ;;  %6512 = vmatmul.mubr.bf16.gmra.mrb[164].mxu1 %v19665_v13  ;;  %5479 = vmatprep.mubr.bf16.mxu0 %v19689_v16  ;;  %v4643_v32 = vmax.f32 %v4387_v48, 0.0 }
 0x363   : > { %v4393_v52 = vadd.f32 %v19407_v9, %v3789_v50  ;;  %6521 = vmatprep.mubr.bf16.mxu1 %v19689_v16  ;;  %v4646_v44 = vmax.f32 %v4390_v19, 0.0 }
 0x364   : > { %v4648_v12 = vmax.f32 %v4392_v10, 0.0  ;;  %v3344_v13 = vpop.f32.mrb[60].mxu0  ;;  %v4647_v50 = vmax.f32 %v4391_v39, 0.0 }
 0x365   : > { %v4649_v41 = vmax.f32 %v4393_v52, 0.0  ;;  %v3793_v58 = vpop.f32.mrb[60].mxu1  ;;  %v3346_v59 = vpop.f32.mrb[61].mxu0  ;;  %v19789_v25 = vpack.c.bf16 %v4646_v44, %v4642_v47  ;;  %v4394_v38 = vadd.f32 %v19394_v27, %v3344_v13 }
 0x366   : > { %v3795_v43 = vpop.f32.mrb[61].mxu1  ;;  %v19791_v24 = vpack.c.bf16 %v4648_v12, %v4644_v55  ;;  %v19793_v16 = vpack.c.bf16 %v4647_v50, %v4643_v32  ;;  %v4396_v31 = vadd.f32 %v19398_v2, %v3793_v58  ;;  %v4395_v48 = vadd.f32 %v19402_v15, %v3346_v59 }
 0x367   : > { %v19795_v34 = vpack.c.bf16 %v4649_v41, %v4645_v6  ;;  %v4397_v19 = vadd.f32 %v19407_v9, %v3795_v43  ;;  %v4650_v43 = vmax.f32 %v4394_v38, 0.0 }
 0x368   : > { %22914 = vst [vmem:[#allocation5_spill] sm:$0xff] %v19791_v24  ;;  %v3350_v10 = vpop.f32.mrb[62].mxu0  ;;  %v4652_v44 = vmax.f32 %v4396_v31, 0.0  ;;  %v4651_v58 = vmax.f32 %v4395_v48, 0.0 }
 0x369   : > { %v3799_v28 = vpop.f32.mrb[62].mxu1  ;;  %v4398_v57 = vadd.f32 %v19394_v27, %v3350_v10  ;;  %v3352_v52 = vpop.f32.mrb[63].mxu0  ;;  %5480 = vmatmul.mubr.bf16.gmra.mrb[168].mxu0 %v19685_v35  ;;  %v4653_v12 = vmax.f32 %v4397_v19, 0.0 }
 0x36a   : > { %v4400_v39 = vadd.f32 %v19398_v2, %v3799_v28  ;;  %v3801_v61 = vpop.f32.mrb[63].mxu1  ;;  %v4399_v23 = vadd.f32 %v19402_v15, %v3352_v52  ;;  %6522 = vmatmul.mubr.bf16.gmra.mrb[168].mxu1 %v19685_v35  ;;  %5489 = vmatprep.mubr.bf16.mxu0 %v19721_v18 }
 0x36b   : > { %v4401_v47 = vadd.f32 %v19407_v9, %v3801_v61  ;;  %6531 = vmatprep.mubr.bf16.mxu1 %v19721_v18  ;;  %v4654_v59 = vmax.f32 %v4398_v57, 0.0 }
 0x36c   : > { %v4656_v55 = vmax.f32 %v4400_v39, 0.0  ;;  %v3356_v41 = vpop.f32.mrb[64].mxu0  ;;  %v4655_v32 = vmax.f32 %v4399_v23, 0.0 }
 0x36d   : > { %v4657_v6 = vmax.f32 %v4401_v47, 0.0  ;;  %v3805_v13 = vpop.f32.mrb[64].mxu1  ;;  %v4402_v50 = vadd.f32 %v19394_v27, %v3356_v41  ;;  %v3358_v28 = vpop.f32.mrb[65].mxu0  ;;  %v19811_v52 = vpack.c.bf16 %v4654_v59, %v4650_v43 }
 0x36e   : > { %v4404_v10 = vadd.f32 %v19398_v2, %v3805_v13  ;;  %v3807_v35 = vpop.f32.mrb[65].mxu1  ;;  %v19813_v61 = vpack.c.bf16 %v4656_v55, %v4652_v44  ;;  %v4403_v18 = vadd.f32 %v19402_v15, %v3358_v28  ;;  %v19817_v31 = vpack.c.bf16 %v4655_v32, %v4651_v58  ;;  %v16830_v58 = vld [vmem:[%s22836_s3 + $0x140] ss:$8 sps:$4 sm:$0xff]   ;;  %v16832_v32 = vld [vmem:[%s22836_s3 + $0x144] ss:$8 sps:$4 sm:$0xff]  }
 0x36f   : > { %v4405_v38 = vadd.f32 %v19407_v9, %v3807_v35  ;;  %v19819_v19 = vpack.c.bf16 %v4657_v6, %v4653_v12  ;;  %v4658_v43 = vmax.f32 %v4402_v50, 0.0  ;;  %5708 = vmatprep.subr.bf16.mxu0 %v16832_v32 }
 0x370   : > { %22915 = vst [vmem:[#allocation6_spill] sm:$0xff] %v19813_v61  ;;  %v3362_v48 = vpop.f32.mrb[66].mxu0  ;;  %v4660_v59 = vmax.f32 %v4404_v10, 0.0  ;;  %v4659_v12 = vmax.f32 %v4403_v18, 0.0  ;;  %5709 = vmatpush1.bf16.msra.mxu0 %v16830_v58 }
 0x371   : > { %22916 = vst [vmem:[#allocation7_spill] sm:$0xff] %v19819_v19  ;;  %v3811_v57 = vpop.f32.mrb[66].mxu1  ;;  %v4406_v39 = vadd.f32 %v19394_v27, %v3362_v48  ;;  %v3364_v47 = vpop.f32.mrb[67].mxu0  ;;  %5490 = vmatmul.mubr.bf16.gmra.mrb[172].mxu0 %v19717_v29  ;;  %v4661_v44 = vmax.f32 %v4405_v38, 0.0 }
 0x372   : > { %v4408_v23 = vadd.f32 %v19398_v2, %v3811_v57  ;;  %v3813_v41 = vpop.f32.mrb[67].mxu1  ;;  %v4407_v55 = vadd.f32 %v19402_v15, %v3364_v47  ;;  %6532 = vmatmul.mubr.bf16.gmra.mrb[172].mxu1 %v19717_v29  ;;  %5499 = vmatprep.mubr.bf16.mxu0 %v19741_v14  ;;  %v16833_v29 = vld [vmem:[%s22837_s4 + $0x140] ss:$8 sps:$4 sm:$0xff]  }
 0x373   : > { %v4409_v13 = vadd.f32 %v19407_v9, %v3813_v41  ;;  %6541 = vmatprep.mubr.bf16.mxu1 %v19741_v14  ;;  %v4662_v6 = vmax.f32 %v4406_v39, 0.0  ;;  %v16835_v39 = vld [vmem:[%s22837_s4 + $0x144] ss:$8 sps:$4 sm:$0xff]  }
 0x374   : > { %v4664_v50 = vmax.f32 %v4408_v23, 0.0  ;;  %v3368_v28 = vpop.f32.mrb[68].mxu0  ;;  %v4663_v38 = vmax.f32 %v4407_v55, 0.0  ;;  %6750 = vmatprep.subr.bf16.mxu1 %v16835_v39 }
 0x375   : > { %v4665_v10 = vmax.f32 %v4409_v13, 0.0  ;;  %v3817_v35 = vpop.f32.mrb[68].mxu1  ;;  %v3370_v18 = vpop.f32.mrb[69].mxu0  ;;  %v19838_v48 = vpack.c.bf16 %v4662_v6, %v4658_v43  ;;  %v4410_v57 = vadd.f32 %v19394_v27, %v3368_v28  ;;  %6751 = vmatpush1.bf16.msra.mxu1 %v16833_v29  ;;  %v16836_v29 = vld [vmem:[%s22836_s3 + $0x150] ss:$8 sps:$4 sm:$0xff]  }
 0x376   : > { %v3819_v14 = vpop.f32.mrb[69].mxu1  ;;  %v19844_v23 = vpack.c.bf16 %v4664_v50, %v4660_v59  ;;  %v4412_v47 = vadd.f32 %v19398_v2, %v3817_v35  ;;  %v19848_v55 = vpack.c.bf16 %v4663_v38, %v4659_v12  ;;  %v4411_v13 = vadd.f32 %v19402_v15, %v3370_v18 }
 0x377   : > { %v4413_v41 = vadd.f32 %v19407_v9, %v3819_v14  ;;  %v19851_v43 = vpack.c.bf16 %v4665_v10, %v4661_v44  ;;  %v4666_v50 = vmax.f32 %v4410_v57, 0.0  ;;  %v16838_v14 = vld [vmem:[%s22836_s3 + $0x154] ss:$8 sps:$4 sm:$0xff]  }
 0x378   : > { %22917 = vst [vmem:[#allocation8_spill] sm:$0xff] %v19844_v23  ;;  %v3374_v6 = vpop.f32.mrb[70].mxu0  ;;  %v4668_v12 = vmax.f32 %v4412_v47, 0.0  ;;  %v4667_v58 = vmax.f32 %v4411_v13, 0.0  ;;  %5710 = vmatprep.subr.bf16.mxu0 %v16838_v14 }
 0x379   : > { %22918 = vst [vmem:[#allocation9_spill] sm:$0xff] %v19851_v43  ;;  %v3823_v32 = vpop.f32.mrb[70].mxu1  ;;  %v3376_v28 = vpop.f32.mrb[71].mxu0  ;;  %5500 = vmatmul.mubr.bf16.gmra.mrb[176].mxu0 %v19737_v0  ;;  %v4414_v59 = vadd.f32 %v19394_v27, %v3374_v6  ;;  %v4669_v38 = vmax.f32 %v4413_v41, 0.0  ;;  %v16839_v41 = vld [vmem:[%s22837_s4 + $0x150] ss:$8 sps:$4 sm:$0xff]  }
 0x37a   : > { %v3825_v61 = vpop.f32.mrb[71].mxu1  ;;  %v4416_v35 = vadd.f32 %v19398_v2, %v3823_v32  ;;  %6542 = vmatmul.mubr.bf16.gmra.mrb[176].mxu1 %v19737_v0  ;;  %5509 = vmatprep.mubr.bf16.mxu0 %v19761_v37  ;;  %v4415_v44 = vadd.f32 %v19402_v15, %v3376_v28  ;;  %v16841_v32 = vld [vmem:[%s22837_s4 + $0x154] ss:$8 sps:$4 sm:$0xff]  }
 0x37b   : > { %v4417_v18 = vadd.f32 %v19407_v9, %v3825_v61  ;;  %6551 = vmatprep.mubr.bf16.mxu1 %v19761_v37  ;;  %v4670_v10 = vmax.f32 %v4414_v59, 0.0  ;;  %5711 = vmatpush1.bf16.msra.mxu0 %v16836_v29  ;;  %v16842_v29 = vld [vmem:[%s22836_s3 + $0x160] ss:$8 sps:$4 sm:$0xff]  }
 0x37c   : > { %v4672_v57 = vmax.f32 %v4416_v35, 0.0  ;;  %v3380_v39 = vpop.f32.mrb[72].mxu0  ;;  %v4671_v47 = vmax.f32 %v4415_v44, 0.0  ;;  %6752 = vmatprep.subr.bf16.mxu1 %v16841_v32 }
 0x37d   : > { %v4673_v61 = vmax.f32 %v4417_v18, 0.0  ;;  %v3829_v0 = vpop.f32.mrb[72].mxu1  ;;  %v3382_v13 = vpop.f32.mrb[73].mxu0  ;;  %v19870_v6 = vpack.c.bf16 %v4670_v10, %v4666_v50  ;;  %v4418_v35 = vadd.f32 %v19394_v27, %v3380_v39  ;;  %6753 = vmatpush1.bf16.msra.mxu1 %v16839_v41 }
 0x37e   : > { %v3831_v37 = vpop.f32.mrb[73].mxu1  ;;  %v19875_v28 = vpack.c.bf16 %v4672_v57, %v4668_v12  ;;  %v19877_v59 = vpack.c.bf16 %v4671_v47, %v4667_v58  ;;  %v4420_v44 = vadd.f32 %v19398_v2, %v3829_v0  ;;  %v4419_v50 = vadd.f32 %v19402_v15, %v3382_v13  ;;  %v16844_v12 = vld [vmem:[%s22836_s3 + $0x164] ss:$8 sps:$4 sm:$0xff]  }
 0x37f   : > { %v19880_v18 = vpack.c.bf16 %v4673_v61, %v4669_v38  ;;  %v4421_v23 = vadd.f32 %v19407_v9, %v3831_v37  ;;  %v16845_v61 = vld [vmem:[%s22837_s4 + $0x160] ss:$8 sps:$4 sm:$0xff]   ;;  %v4674_v41 = vmax.f32 %v4418_v35, 0.0  ;;  %v16847_v13 = vld [vmem:[%s22837_s4 + $0x164] ss:$8 sps:$4 sm:$0xff]   ;;  %5712 = vmatprep.subr.bf16.mxu0 %v16844_v12 }
 0x380   : > { %22919 = vst [vmem:[#allocation10_spill] sm:$0xff] %v19875_v28  ;;  %v3386_v10 = vpop.f32.mrb[74].mxu0  ;;  %v4676_v37 = vmax.f32 %v4420_v44, 0.0  ;;  %6754 = vmatprep.subr.bf16.mxu1 %v16847_v13  ;;  %5713 = vmatpush1.bf16.msra.mxu0 %v16842_v29  ;;  %v16851_v12 = vld [vmem:[%s22837_s4 + $0x170] ss:$8 sps:$4 sm:$0xff]  }
 0x381   : > { %22920 = vst [vmem:[#allocation11_spill] sm:$0xff] %v19880_v18  ;;  %v3835_v14 = vpop.f32.mrb[74].mxu1  ;;  %v3388_v58 = vpop.f32.mrb[75].mxu0  ;;  %5510 = vmatmul.mubr.bf16.gmra.mrb[180].mxu0 %v19757_v26  ;;  %v4422_v38 = vadd.f32 %v19394_v27, %v3386_v10  ;;  %v4677_v32 = vmax.f32 %v4421_v23, 0.0  ;;  %v4675_v10 = vmax.f32 %v4419_v50, 0.0  ;;  %6755 = vmatpush1.bf16.msra.mxu1 %v16845_v61 }
 0x382   : > { %v3837_v57 = vpop.f32.mrb[75].mxu1  ;;  %v4424_v39 = vadd.f32 %v19398_v2, %v3835_v14  ;;  %6552 = vmatmul.mubr.bf16.gmra.mrb[180].mxu1 %v19757_v26  ;;  %5519 = vmatprep.mubr.bf16.mxu0 %v19793_v16  ;;  %v4423_v47 = vadd.f32 %v19402_v15, %v3388_v58  ;;  %v16850_v26 = vld [vmem:[%s22836_s3 + $0x174] ss:$8 sps:$4 sm:$0xff]   ;;  %v16848_v23 = vld [vmem:[%s22836_s3 + $0x170] ss:$8 sps:$4 sm:$0xff]  }
 0x383   : > { %v4425_v0 = vadd.f32 %v19407_v9, %v3837_v57  ;;  %6561 = vmatprep.mubr.bf16.mxu1 %v19793_v16  ;;  %v4678_v28 = vmax.f32 %v4422_v38, 0.0  ;;  %5714 = vmatprep.subr.bf16.mxu0 %v16850_v26  ;;  %v16853_v38 = vld [vmem:[%s22837_s4 + $0x174] ss:$8 sps:$4 sm:$0xff]  }
 0x384   : > { %v4680_v14 = vmax.f32 %v4424_v39, 0.0  ;;  %v3392_v18 = vpop.f32.mrb[76].mxu0  ;;  %v4679_v35 = vmax.f32 %v4423_v47, 0.0  ;;  %6756 = vmatprep.subr.bf16.mxu1 %v16853_v38  ;;  %5715 = vmatpush1.bf16.msra.mxu0 %v16848_v23 }
 0x385   : > { %v4681_v57 = vmax.f32 %v4425_v0, 0.0  ;;  %v3841_v58 = vpop.f32.mrb[76].mxu1  ;;  %v3394_v44 = vpop.f32.mrb[77].mxu0  ;;  %v19911_v50 = vpack.c.bf16 %v4678_v28, %v4674_v41  ;;  %v4426_v47 = vadd.f32 %v19394_v27, %v3392_v18  ;;  %6757 = vmatpush1.bf16.msra.mxu1 %v16851_v12  ;;  %v16859_v12 = vld [vmem:[%s22837_s4 + $0x184] ss:$8 sps:$4 sm:$0xff]  }
 0x386   : > { %v3843_v16 = vpop.f32.mrb[77].mxu1  ;;  %v19919_v39 = vpack.c.bf16 %v4680_v14, %v4676_v37  ;;  %v19922_v0 = vpack.c.bf16 %v4679_v35, %v4675_v10  ;;  %v4427_v61 = vadd.f32 %v19402_v15, %v3394_v44  ;;  %v4428_v41 = vadd.f32 %v19398_v2, %v3841_v58  ;;  %v16856_v37 = vld [vmem:[%s22836_s3 + $0x184] ss:$8 sps:$4 sm:$0xff]   ;;  %v16857_v10 = vld [vmem:[%s22837_s4 + $0x180] ss:$8 sps:$4 sm:$0xff]   ;;  %6758 = vmatprep.subr.bf16.mxu1 %v16859_v12 }
 0x387   : > { %v4429_v29 = vadd.f32 %v19407_v9, %v3843_v16  ;;  %v19925_v28 = vpack.c.bf16 %v4681_v57, %v4677_v32  ;;  %v16854_v32 = vld [vmem:[%s22836_s3 + $0x180] ss:$8 sps:$4 sm:$0xff]   ;;  %v4682_v44 = vmax.f32 %v4426_v47, 0.0  ;;  %5716 = vmatprep.subr.bf16.mxu0 %v16856_v37  ;;  %v16860_v47 = vld [vmem:[%s22836_s3 + $0x190] ss:$8 sps:$4 sm:$0xff]  }
 0x388   : > { %22921 = vst [vmem:[#allocation12_spill] sm:$0xff] %v19919_v39  ;;  %v3398_v13 = vpop.f32.mrb[78].mxu0  ;;  %v4683_v38 = vmax.f32 %v4427_v61, 0.0  ;;  %5717 = vmatpush1.bf16.msra.mxu0 %v16854_v32  ;;  %v16865_v37 = vld [vmem:[%s22837_s4 + $0x194] ss:$8 sps:$4 sm:$0xff]  }
 0x389   : > { %22922 = vst [vmem:[#allocation13_spill] sm:$0xff] %v19925_v28  ;;  %v3847_v26 = vpop.f32.mrb[78].mxu1  ;;  %v3400_v14 = vpop.f32.mrb[79].mxu0  ;;  %5520 = vmatmul.mubr.bf16.gmra.mrb[184].mxu0 %v19789_v25  ;;  %v4430_v18 = vadd.f32 %v19394_v27, %v3398_v13  ;;  %v4685_v58 = vmax.f32 %v4429_v29, 0.0  ;;  %v16862_v29 = vld [vmem:[%s22836_s3 + $0x194] ss:$8 sps:$4 sm:$0xff]   ;;  %6759 = vmatpush1.bf16.msra.mxu1 %v16857_v10 }
 0x38a   : > { %v3849_v16 = vpop.f32.mrb[79].mxu1  ;;  %v4432_v57 = vadd.f32 %v19398_v2, %v3847_v26  ;;  %6562 = vmatmul.mubr.bf16.gmra.mrb[184].mxu1 %v19789_v25  ;;  %5529 = vmatprep.mubr.bf16.mxu0 %v19817_v31  ;;  %v4431_v23 = vadd.f32 %v19402_v15, %v3400_v14  ;;  %v4684_v26 = vmax.f32 %v4428_v41, 0.0  ;;  %v16863_v41 = vld [vmem:[%s22837_s4 + $0x190] ss:$8 sps:$4 sm:$0xff]  }
 0x38b   : > { %v4433_v35 = vadd.f32 %v19407_v9, %v3849_v16  ;;  %6571 = vmatprep.mubr.bf16.mxu1 %v19817_v31  ;;  %v4686_v13 = vmax.f32 %v4430_v18, 0.0  ;;  %5718 = vmatprep.subr.bf16.mxu0 %v16862_v29 }
 0x38c   : > { %v4688_v25 = vmax.f32 %v4432_v57, 0.0  ;;  %v3404_v39 = vpop.f32.mrb[80].mxu0  ;;  %v4687_v14 = vmax.f32 %v4431_v23, 0.0  ;;  %6760 = vmatprep.subr.bf16.mxu1 %v16865_v37  ;;  %5719 = vmatpush1.bf16.msra.mxu0 %v16860_v47 }
 0x38d   : > { %v4689_v16 = vmax.f32 %v4433_v35, 0.0  ;;  %v3853_v28 = vpop.f32.mrb[80].mxu1  ;;  %v3406_v31 = vpop.f32.mrb[81].mxu0  ;;  %v19955_v18 = vpack.c.bf16 %v4686_v13, %v4682_v44  ;;  %v4434_v23 = vadd.f32 %v19394_v27, %v3404_v39  ;;  %6761 = vmatpush1.bf16.msra.mxu1 %v16863_v41  ;;  %v16871_v41 = vld [vmem:[%s22837_s4 + $0x1a4] ss:$8 sps:$4 sm:$0xff]  }
 0x38e   : > { %v3855_v61 = vpop.f32.mrb[81].mxu1  ;;  %v19963_v57 = vpack.c.bf16 %v4688_v25, %v4684_v26  ;;  %v19966_v35 = vpack.c.bf16 %v4687_v14, %v4683_v38  ;;  %v4435_v10 = vadd.f32 %v19402_v15, %v3406_v31  ;;  %v4436_v12 = vadd.f32 %v19398_v2, %v3853_v28  ;;  %v16868_v26 = vld [vmem:[%s22836_s3 + $0x1a4] ss:$8 sps:$4 sm:$0xff]   ;;  %v16869_v28 = vld [vmem:[%s22837_s4 + $0x1a0] ss:$8 sps:$4 sm:$0xff]   ;;  %6762 = vmatprep.subr.bf16.mxu1 %v16871_v41 }
 0x38f   : > { %v4437_v32 = vadd.f32 %v19407_v9, %v3855_v61  ;;  %v19969_v44 = vpack.c.bf16 %v4689_v16, %v4685_v58  ;;  %v16866_v58 = vld [vmem:[%s22836_s3 + $0x1a0] ss:$8 sps:$4 sm:$0xff]   ;;  %v4690_v31 = vmax.f32 %v4434_v23, 0.0  ;;  %5720 = vmatprep.subr.bf16.mxu0 %v16868_v26  ;;  %v16872_v23 = vld [vmem:[%s22836_s3 + $0x1b0] ss:$8 sps:$4 sm:$0xff]  }
 0x390   : > { %22923 = vst [vmem:[#allocation14_spill] sm:$0xff] %v19963_v57  ;;  %v3410_v13 = vpop.f32.mrb[82].mxu0  ;;  %v4691_v37 = vmax.f32 %v4435_v10, 0.0  ;;  %5721 = vmatpush1.bf16.msra.mxu0 %v16866_v58  ;;  %v16877_v26 = vld [vmem:[%s22837_s4 + $0x1b4] ss:$8 sps:$4 sm:$0xff]  }
 0x391   : > { %22924 = vst [vmem:[#allocation15_spill] sm:$0xff] %v19969_v44  ;;  %v3859_v29 = vpop.f32.mrb[82].mxu1  ;;  %v3412_v25 = vpop.f32.mrb[83].mxu0  ;;  %5530 = vmatmul.mubr.bf16.gmra.mrb[188].mxu0 %v19811_v52  ;;  %v4438_v39 = vadd.f32 %v19394_v27, %v3410_v13  ;;  %v4693_v16 = vmax.f32 %v4437_v32, 0.0  ;;  %v16874_v32 = vld [vmem:[%s22836_s3 + $0x1b4] ss:$8 sps:$4 sm:$0xff]   ;;  %6763 = vmatpush1.bf16.msra.mxu1 %v16869_v28 }
 0x392   : > { %v3861_v61 = vpop.f32.mrb[83].mxu1  ;;  %v4440_v38 = vadd.f32 %v19398_v2, %v3859_v29  ;;  %6572 = vmatmul.mubr.bf16.gmra.mrb[188].mxu1 %v19811_v52  ;;  %5539 = vmatprep.mubr.bf16.mxu0 %v19848_v55  ;;  %v4439_v47 = vadd.f32 %v19402_v15, %v3412_v25  ;;  %v4692_v29 = vmax.f32 %v4436_v12, 0.0  ;;  %v16875_v12 = vld [vmem:[%s22837_s4 + $0x1b0] ss:$8 sps:$4 sm:$0xff]  }
 0x393   : > { %v4441_v14 = vadd.f32 %v19407_v9, %v3861_v61  ;;  %6581 = vmatprep.mubr.bf16.mxu1 %v19848_v55  ;;  %v4694_v13 = vmax.f32 %v4438_v39, 0.0  ;;  %5722 = vmatprep.subr.bf16.mxu0 %v16874_v32 }
 0x394   : > { %v4696_v52 = vmax.f32 %v4440_v38, 0.0  ;;  %v3416_v57 = vpop.f32.mrb[84].mxu0  ;;  %v4695_v25 = vmax.f32 %v4439_v47, 0.0  ;;  %6764 = vmatprep.subr.bf16.mxu1 %v16877_v26  ;;  %5723 = vmatpush1.bf16.msra.mxu0 %v16872_v23 }
 0x395   : > { %v4697_v61 = vmax.f32 %v4441_v14, 0.0  ;;  %v3865_v44 = vpop.f32.mrb[84].mxu1  ;;  %v3418_v55 = vpop.f32.mrb[85].mxu0  ;;  %v19999_v39 = vpack.c.bf16 %v4694_v13, %v4690_v31  ;;  %v4442_v47 = vadd.f32 %v19394_v27, %v3416_v57  ;;  %6765 = vmatpush1.bf16.msra.mxu1 %v16875_v12 }
 0x396   : > { %v3867_v10 = vpop.f32.mrb[85].mxu1  ;;  %v20007_v38 = vpack.c.bf16 %v4696_v52, %v4692_v29  ;;  %v20009_v58 = vpack.c.bf16 %v4695_v25, %v4691_v37  ;;  %v4444_v28 = vadd.f32 %v19398_v2, %v3865_v44  ;;  %v4443_v32 = vadd.f32 %v19402_v15, %v3418_v55 }
 0x397   : > { %v20011_v14 = vpack.c.bf16 %v4697_v61, %v4693_v16  ;;  %v4445_v31 = vadd.f32 %v19407_v9, %v3867_v10  ;;  %v4698_v29 = vmax.f32 %v4442_v47, 0.0 }
 0x398   : > { %22925 = vst [vmem:[#allocation16_spill] sm:$0xff] %v20007_v38  ;;  %v3422_v41 = vpop.f32.mrb[86].mxu0  ;;  %v4700_v61 = vmax.f32 %v4444_v28, 0.0  ;;  %v4699_v26 = vmax.f32 %v4443_v32, 0.0 }
 0x399   : > { %22926 = vst [vmem:[#allocation17_spill] sm:$0xff] %v20011_v14  ;;  %v3871_v13 = vpop.f32.mrb[86].mxu1  ;;  %v3424_v43 = vpop.f32.mrb[87].mxu0  ;;  %5540 = vmatmul.mubr.bf16.gmra.mrb[192].mxu0 %v19838_v48  ;;  %v4446_v37 = vadd.f32 %v19394_v27, %v3422_v41  ;;  %v4701_v23 = vmax.f32 %v4445_v31, 0.0 }
 0x39a   : > { %v3873_v19 = vpop.f32.mrb[87].mxu1  ;;  %v4448_v16 = vadd.f32 %v19398_v2, %v3871_v13  ;;  %6582 = vmatmul.mubr.bf16.gmra.mrb[192].mxu1 %v19838_v48  ;;  %5549 = vmatprep.mubr.bf16.mxu0 %v19877_v59  ;;  %v4447_v44 = vadd.f32 %v19402_v15, %v3424_v43 }
 0x39b   : > { %v4449_v57 = vadd.f32 %v19407_v9, %v3873_v19  ;;  %6591 = vmatprep.mubr.bf16.mxu1 %v19877_v59  ;;  %v4702_v52 = vmax.f32 %v4446_v37, 0.0 }
 0x39c   : > { %v4704_v25 = vmax.f32 %v4448_v16, 0.0  ;;  %v3428_v10 = vpop.f32.mrb[88].mxu0  ;;  %v4703_v41 = vmax.f32 %v4447_v44, 0.0 }
 0x39d   : > { %v4705_v55 = vmax.f32 %v4449_v57, 0.0  ;;  %v3877_v12 = vpop.f32.mrb[88].mxu1  ;;  %v3430_v13 = vpop.f32.mrb[89].mxu0  ;;  %v20025_v38 = vpack.c.bf16 %v4702_v52, %v4698_v29  ;;  %v4450_v59 = vadd.f32 %v19394_v27, %v3428_v10 }
 0x39e   : > { %v3879_v19 = vpop.f32.mrb[89].mxu1  ;;  %v20027_v48 = vpack.c.bf16 %v4704_v25, %v4700_v61  ;;  %v20029_v14 = vpack.c.bf16 %v4703_v41, %v4699_v26  ;;  %v4452_v47 = vadd.f32 %v19398_v2, %v3877_v12  ;;  %v4451_v32 = vadd.f32 %v19402_v15, %v3430_v13 }
 0x39f   : > { %v20031_v43 = vpack.c.bf16 %v4705_v55, %v4701_v23  ;;  %v4453_v28 = vadd.f32 %v19407_v9, %v3879_v19  ;;  %v4706_v25 = vmax.f32 %v4450_v59, 0.0 }
 0x3a0   : > { %22927 = vst [vmem:[#allocation18_spill] sm:$0xff] %v20027_v48  ;;  %v3434_v31 = vpop.f32.mrb[90].mxu0  ;;  %v4708_v55 = vmax.f32 %v4452_v47, 0.0  ;;  %v4707_v19 = vmax.f32 %v4451_v32, 0.0 }
 0x3a1   : > { %22928 = vst [vmem:[#allocation19_spill] sm:$0xff] %v20031_v43  ;;  %v3883_v37 = vpop.f32.mrb[90].mxu1  ;;  %v3436_v16 = vpop.f32.mrb[91].mxu0  ;;  %5550 = vmatmul.mubr.bf16.gmra.mrb[196].mxu0 %v19870_v6  ;;  %v4454_v44 = vadd.f32 %v19394_v27, %v3434_v31  ;;  %v4709_v12 = vmax.f32 %v4453_v28, 0.0 }
 0x3a2   : > { %v3885_v57 = vpop.f32.mrb[91].mxu1  ;;  %v4456_v29 = vadd.f32 %v19398_v2, %v3883_v37  ;;  %6592 = vmatmul.mubr.bf16.gmra.mrb[196].mxu1 %v19870_v6  ;;  %5559 = vmatprep.mubr.bf16.mxu0 %v19922_v0  ;;  %v4455_v61 = vadd.f32 %v19402_v15, %v3436_v16 }
 0x3a3   : > { %v4457_v52 = vadd.f32 %v19407_v9, %v3885_v57  ;;  %6601 = vmatprep.mubr.bf16.mxu1 %v19922_v0  ;;  %v4710_v23 = vmax.f32 %v4454_v44, 0.0 }
 0x3a4   : > { %v4712_v10 = vmax.f32 %v4456_v29, 0.0  ;;  %v3440_v41 = vpop.f32.mrb[92].mxu0  ;;  %v4711_v31 = vmax.f32 %v4455_v61, 0.0 }
 0x3a5   : > { %v4713_v26 = vmax.f32 %v4457_v52, 0.0  ;;  %v3889_v13 = vpop.f32.mrb[92].mxu1  ;;  %v3442_v37 = vpop.f32.mrb[93].mxu0  ;;  %v20045_v48 = vpack.c.bf16 %v4710_v23, %v4706_v25  ;;  %v4458_v0 = vadd.f32 %v19394_v27, %v3440_v41 }
 0x3a6   : > { %v3891_v57 = vpop.f32.mrb[93].mxu1  ;;  %v20047_v6 = vpack.c.bf16 %v4712_v10, %v4708_v55  ;;  %v20049_v43 = vpack.c.bf16 %v4711_v31, %v4707_v19  ;;  %v4460_v59 = vadd.f32 %v19398_v2, %v3889_v13  ;;  %v4459_v32 = vadd.f32 %v19402_v15, %v3442_v37 }
 0x3a7   : > { %v20051_v16 = vpack.c.bf16 %v4713_v26, %v4709_v12  ;;  %v4461_v47 = vadd.f32 %v19407_v9, %v3891_v57  ;;  %v4714_v10 = vmax.f32 %v4458_v0, 0.0 }
 0x3a8   : > { %22929 = vst [vmem:[#allocation20_spill] sm:$0xff] %v20047_v6  ;;  %v3446_v28 = vpop.f32.mrb[94].mxu0  ;;  %v4716_v26 = vmax.f32 %v4460_v59, 0.0  ;;  %v4715_v57 = vmax.f32 %v4459_v32, 0.0 }
 0x3a9   : > { %22930 = vst [vmem:[#allocation21_spill] sm:$0xff] %v20051_v16  ;;  %v3895_v44 = vpop.f32.mrb[94].mxu1  ;;  %v3448_v29 = vpop.f32.mrb[95].mxu0  ;;  %5560 = vmatmul.mubr.bf16.gmra.mrb[200].mxu0 %v19911_v50  ;;  %v4462_v61 = vadd.f32 %v19394_v27, %v3446_v28  ;;  %v4717_v13 = vmax.f32 %v4461_v47, 0.0 }
 0x3aa   : > { %v3897_v52 = vpop.f32.mrb[95].mxu1  ;;  %v4464_v25 = vadd.f32 %v19398_v2, %v3895_v44  ;;  %6602 = vmatmul.mubr.bf16.gmra.mrb[200].mxu1 %v19911_v50  ;;  %5569 = vmatprep.mubr.bf16.mxu0 %v19966_v35  ;;  %v4463_v55 = vadd.f32 %v19402_v15, %v3448_v29 }
 0x3ab   : > { %v4465_v23 = vadd.f32 %v19407_v9, %v3897_v52  ;;  %6611 = vmatprep.mubr.bf16.mxu1 %v19966_v35  ;;  %v4718_v12 = vmax.f32 %v4462_v61, 0.0 }
 0x3ac   : > { %v4720_v41 = vmax.f32 %v4464_v25, 0.0  ;;  %v3452_v31 = vpop.f32.mrb[96].mxu0  ;;  %v4719_v28 = vmax.f32 %v4463_v55, 0.0 }
 0x3ad   : > { %v4721_v19 = vmax.f32 %v4465_v23, 0.0  ;;  %v3901_v37 = vpop.f32.mrb[96].mxu1  ;;  %v3454_v44 = vpop.f32.mrb[97].mxu0  ;;  %v20065_v6 = vpack.c.bf16 %v4718_v12, %v4714_v10  ;;  %v4466_v35 = vadd.f32 %v19394_v27, %v3452_v31 }
 0x3ae   : > { %v3903_v52 = vpop.f32.mrb[97].mxu1  ;;  %v20067_v50 = vpack.c.bf16 %v4720_v41, %v4716_v26  ;;  %v20069_v16 = vpack.c.bf16 %v4719_v28, %v4715_v57  ;;  %v4468_v0 = vadd.f32 %v19398_v2, %v3901_v37  ;;  %v4467_v32 = vadd.f32 %v19402_v15, %v3454_v44 }
 0x3af   : > { %v20071_v29 = vpack.c.bf16 %v4721_v19, %v4717_v13  ;;  %v4469_v59 = vadd.f32 %v19407_v9, %v3903_v52  ;;  %v4722_v41 = vmax.f32 %v4466_v35, 0.0 }
 0x3b0   : > { %22931 = vst [vmem:[#allocation22_spill] sm:$0xff] %v20067_v50  ;;  %v3458_v47 = vpop.f32.mrb[98].mxu0  ;;  %v4724_v19 = vmax.f32 %v4468_v0, 0.0  ;;  %v4723_v52 = vmax.f32 %v4467_v32, 0.0 }
 0x3b1   : > { %22932 = vst [vmem:[#allocation23_spill] sm:$0xff] %v20071_v29  ;;  %v3907_v61 = vpop.f32.mrb[98].mxu1  ;;  %v3460_v25 = vpop.f32.mrb[99].mxu0  ;;  %5570 = vmatmul.mubr.bf16.gmra.mrb[204].mxu0 %v19955_v18  ;;  %v4470_v55 = vadd.f32 %v19394_v27, %v3458_v47  ;;  %v4725_v37 = vmax.f32 %v4469_v59, 0.0 }
 0x3b2   : > { %v3909_v23 = vpop.f32.mrb[99].mxu1  ;;  %v4472_v10 = vadd.f32 %v19398_v2, %v3907_v61  ;;  %6612 = vmatmul.mubr.bf16.gmra.mrb[204].mxu1 %v19955_v18  ;;  %5579 = vmatprep.mubr.bf16.mxu0 %v20009_v58  ;;  %v4471_v26 = vadd.f32 %v19402_v15, %v3460_v25 }
 0x3b3   : > { %v4473_v12 = vadd.f32 %v19407_v9, %v3909_v23  ;;  %6621 = vmatprep.mubr.bf16.mxu1 %v20009_v58  ;;  %v4726_v13 = vmax.f32 %v4470_v55, 0.0 }
 0x3b4   : > { %v4728_v31 = vmax.f32 %v4472_v10, 0.0  ;;  %v3464_v28 = vpop.f32.mrb[100].mxu0  ;;  %v4727_v47 = vmax.f32 %v4471_v26, 0.0 }
 0x3b5   : > { %v4729_v57 = vmax.f32 %v4473_v12, 0.0  ;;  %v3913_v44 = vpop.f32.mrb[100].mxu1  ;;  %v3466_v61 = vpop.f32.mrb[101].mxu0  ;;  %v20085_v50 = vpack.c.bf16 %v4726_v13, %v4722_v41  ;;  %v4474_v58 = vadd.f32 %v19394_v27, %v3464_v28 }
 0x3b6   : > { %v3915_v23 = vpop.f32.mrb[101].mxu1  ;;  %v20087_v18 = vpack.c.bf16 %v4728_v31, %v4724_v19  ;;  %v20089_v29 = vpack.c.bf16 %v4727_v47, %v4723_v52  ;;  %v4476_v35 = vadd.f32 %v19398_v2, %v3913_v44  ;;  %v4475_v32 = vadd.f32 %v19402_v15, %v3466_v61 }
 0x3b7   : > { %v20091_v25 = vpack.c.bf16 %v4729_v57, %v4725_v37  ;;  %v4477_v0 = vadd.f32 %v19407_v9, %v3915_v23  ;;  %v4730_v31 = vmax.f32 %v4474_v58, 0.0 }
 0x3b8   : > { %22933 = vst [vmem:[#allocation24_spill] sm:$0xff] %v20087_v18  ;;  %v3470_v59 = vpop.f32.mrb[102].mxu0  ;;  %v4732_v57 = vmax.f32 %v4476_v35, 0.0  ;;  %v4731_v23 = vmax.f32 %v4475_v32, 0.0 }
 0x3b9   : > { %22934 = vst [vmem:[#allocation25_spill] sm:$0xff] %v20091_v25  ;;  %v3919_v55 = vpop.f32.mrb[102].mxu1  ;;  %v3472_v10 = vpop.f32.mrb[103].mxu0  ;;  %5580 = vmatmul.mubr.bf16.gmra.mrb[208].mxu0 %v19999_v39  ;;  %v4478_v26 = vadd.f32 %v19394_v27, %v3470_v59  ;;  %v4733_v44 = vmax.f32 %v4477_v0, 0.0 }
 0x3ba   : > { %v3921_v12 = vpop.f32.mrb[103].mxu1  ;;  %v4480_v41 = vadd.f32 %v19398_v2, %v3919_v55  ;;  %6622 = vmatmul.mubr.bf16.gmra.mrb[208].mxu1 %v19999_v39  ;;  %5589 = vmatprep.mubr.bf16.mxu0 %v20029_v14  ;;  %v4479_v19 = vadd.f32 %v19402_v15, %v3472_v10 }
 0x3bb   : > { %v4481_v13 = vadd.f32 %v19407_v9, %v3921_v12  ;;  %6631 = vmatprep.mubr.bf16.mxu1 %v20029_v14  ;;  %v4734_v37 = vmax.f32 %v4478_v26, 0.0 }
 0x3bc   : > { %v4736_v28 = vmax.f32 %v4480_v41, 0.0  ;;  %v3476_v47 = vpop.f32.mrb[104].mxu0  ;;  %v4735_v59 = vmax.f32 %v4479_v19, 0.0 }
 0x3bd   : > { %v4737_v52 = vmax.f32 %v4481_v13, 0.0  ;;  %v3925_v61 = vpop.f32.mrb[104].mxu1  ;;  %v3478_v55 = vpop.f32.mrb[105].mxu0  ;;  %v20105_v18 = vpack.c.bf16 %v4734_v37, %v4730_v31  ;;  %v4482_v14 = vadd.f32 %v19394_v27, %v3476_v47 }
 0x3be   : > { %v3927_v12 = vpop.f32.mrb[105].mxu1  ;;  %v20107_v39 = vpack.c.bf16 %v4736_v28, %v4732_v57  ;;  %v20109_v25 = vpack.c.bf16 %v4735_v59, %v4731_v23  ;;  %v4484_v58 = vadd.f32 %v19398_v2, %v3925_v61  ;;  %v4483_v32 = vadd.f32 %v19402_v15, %v3478_v55 }
 0x3bf   : > { %v20111_v10 = vpack.c.bf16 %v4737_v52, %v4733_v44  ;;  %v4485_v35 = vadd.f32 %v19407_v9, %v3927_v12  ;;  %v4738_v28 = vmax.f32 %v4482_v14, 0.0 }
 0x3c0   : > { %22935 = vst [vmem:[#allocation26_spill] sm:$0xff] %v20107_v39  ;;  %v3482_v0 = vpop.f32.mrb[106].mxu0  ;;  %v4740_v52 = vmax.f32 %v4484_v58, 0.0  ;;  %v4739_v12 = vmax.f32 %v4483_v32, 0.0 }
 0x3c1   : > { %22936 = vst [vmem:[#allocation27_spill] sm:$0xff] %v20111_v10  ;;  %v3931_v26 = vpop.f32.mrb[106].mxu1  ;;  %v3484_v41 = vpop.f32.mrb[107].mxu0  ;;  %5590 = vmatmul.mubr.bf16.gmra.mrb[212].mxu0 %v20025_v38  ;;  %v4486_v19 = vadd.f32 %v19394_v27, %v3482_v0  ;;  %v4741_v61 = vmax.f32 %v4485_v35, 0.0 }
 0x3c2   : > { %v3933_v13 = vpop.f32.mrb[107].mxu1  ;;  %v4488_v31 = vadd.f32 %v19398_v2, %v3931_v26  ;;  %6632 = vmatmul.mubr.bf16.gmra.mrb[212].mxu1 %v20025_v38  ;;  %5599 = vmatprep.mubr.bf16.mxu0 %v20049_v43  ;;  %v4487_v57 = vadd.f32 %v19402_v15, %v3484_v41 }
 0x3c3   : > { %v4489_v37 = vadd.f32 %v19407_v9, %v3933_v13  ;;  %6641 = vmatprep.mubr.bf16.mxu1 %v20049_v43  ;;  %v4742_v44 = vmax.f32 %v4486_v19, 0.0 }
 0x3c4   : > { %v4744_v47 = vmax.f32 %v4488_v31, 0.0  ;;  %v3488_v59 = vpop.f32.mrb[108].mxu0  ;;  %v4743_v0 = vmax.f32 %v4487_v57, 0.0 }
 0x3c5   : > { %v4745_v23 = vmax.f32 %v4489_v37, 0.0  ;;  %v3937_v55 = vpop.f32.mrb[108].mxu1  ;;  %v3490_v26 = vpop.f32.mrb[109].mxu0  ;;  %v20125_v39 = vpack.c.bf16 %v4742_v44, %v4738_v28  ;;  %v4490_v43 = vadd.f32 %v19394_v27, %v3488_v59 }
 0x3c6   : > { %v3939_v13 = vpop.f32.mrb[109].mxu1  ;;  %v20127_v38 = vpack.c.bf16 %v4744_v47, %v4740_v52  ;;  %v20129_v10 = vpack.c.bf16 %v4743_v0, %v4739_v12  ;;  %v4491_v58 = vadd.f32 %v19402_v15, %v3490_v26  ;;  %v4492_v35 = vadd.f32 %v19398_v2, %v3937_v55 }
 0x3c7   : > { %v20131_v41 = vpack.c.bf16 %v4745_v23, %v4741_v61  ;;  %v4493_v32 = vadd.f32 %v19407_v9, %v3939_v13  ;;  %v4746_v47 = vmax.f32 %v4490_v43, 0.0 }
 0x3c8   : > { %22937 = vst [vmem:[#allocation28_spill] sm:$0xff] %v20127_v38  ;;  %v3494_v14 = vpop.f32.mrb[110].mxu0  ;;  %v4747_v59 = vmax.f32 %v4491_v58, 0.0  ;;  %v4748_v12 = vmax.f32 %v4492_v35, 0.0 }
 0x3c9   : > { %22938 = vst [vmem:[#allocation29_spill] sm:$0xff] %v20131_v41  ;;  %v3943_v19 = vpop.f32.mrb[110].mxu1  ;;  %v3496_v31 = vpop.f32.mrb[111].mxu0  ;;  %5600 = vmatmul.mubr.bf16.gmra.mrb[216].mxu0 %v20045_v48  ;;  %v4494_v37 = vadd.f32 %v19394_v27, %v3494_v14  ;;  %v4749_v26 = vmax.f32 %v4493_v32, 0.0 }
 0x3ca   : > { %v3945_v57 = vpop.f32.mrb[111].mxu1  ;;  %6642 = vmatmul.mubr.bf16.gmra.mrb[216].mxu1 %v20045_v48  ;;  %5609 = vmatprep.mubr.bf16.mxu0 %v20069_v16  ;;  %v4495_v28 = vadd.f32 %v19402_v15, %v3496_v31  ;;  %v4496_v44 = vadd.f32 %v19398_v2, %v3943_v19 }
 0x3cb   : > { %v4497_v52 = vadd.f32 %v19407_v9, %v3945_v57  ;;  %6651 = vmatprep.mubr.bf16.mxu1 %v20069_v16  ;;  %v4750_v61 = vmax.f32 %v4494_v37, 0.0 }
 0x3cc   : > { %v3500_v23 = vpop.f32.mrb[112].mxu0  ;;  %v4751_v55 = vmax.f32 %v4495_v28, 0.0  ;;  %v4752_v0 = vmax.f32 %v4496_v44, 0.0 }
 0x3cd   : > { %v4753_v13 = vmax.f32 %v4497_v52, 0.0  ;;  %v3949_v48 = vpop.f32.mrb[112].mxu1  ;;  %v3502_v14 = vpop.f32.mrb[113].mxu0  ;;  %v20145_v38 = vpack.c.bf16 %v4750_v61, %v4746_v47  ;;  %v4498_v16 = vadd.f32 %v19394_v27, %v3500_v23 }
 0x3ce   : > { %v3951_v31 = vpop.f32.mrb[113].mxu1  ;;  %v20147_v41 = vpack.c.bf16 %v4751_v55, %v4747_v59  ;;  %v20149_v19 = vpack.c.bf16 %v4752_v0, %v4748_v12  ;;  %v4499_v58 = vadd.f32 %v19402_v15, %v3502_v14  ;;  %v4500_v35 = vadd.f32 %v19398_v2, %v3949_v48 }
 0x3cf   : > { %v20152_v43 = vpack.c.bf16 %v4753_v13, %v4749_v26  ;;  %v4501_v32 = vadd.f32 %v19407_v9, %v3951_v31  ;;  %v4754_v59 = vmax.f32 %v4498_v16, 0.0 }
 0x3d0   : > { %22939 = vst [vmem:[#allocation30_spill] sm:$0xff] %v20149_v19  ;;  %v3506_v37 = vpop.f32.mrb[114].mxu0  ;;  %v4755_v0 = vmax.f32 %v4499_v58, 0.0  ;;  %v4756_v13 = vmax.f32 %v4500_v35, 0.0 }
 0x3d1   : > { %22940 = vst [vmem:[#allocation31_spill] sm:$0xff] %v20152_v43  ;;  %v3955_v57 = vpop.f32.mrb[114].mxu1  ;;  %v3508_v28 = vpop.f32.mrb[115].mxu0  ;;  %5610 = vmatmul.mubr.bf16.gmra.mrb[220].mxu0 %v20065_v6  ;;  %v4502_v44 = vadd.f32 %v19394_v27, %v3506_v37  ;;  %v4757_v14 = vmax.f32 %v4501_v32, 0.0 }
 0x3d2   : > { %v3957_v52 = vpop.f32.mrb[115].mxu1  ;;  %6652 = vmatmul.mubr.bf16.gmra.mrb[220].mxu1 %v20065_v6  ;;  %5619 = vmatprep.mubr.bf16.mxu0 %v20089_v29  ;;  %v4503_v47 = vadd.f32 %v19402_v15, %v3508_v28  ;;  %v4504_v61 = vadd.f32 %v19398_v2, %v3955_v57 }
 0x3d3   : > { %v4505_v23 = vadd.f32 %v19407_v9, %v3957_v52  ;;  %6661 = vmatprep.mubr.bf16.mxu1 %v20089_v29  ;;  %v4758_v55 = vmax.f32 %v4502_v44, 0.0 }
 0x3d4   : > { %v3512_v12 = vpop.f32.mrb[116].mxu0  ;;  %v4759_v26 = vmax.f32 %v4503_v47, 0.0  ;;  %v4760_v48 = vmax.f32 %v4504_v61, 0.0 }
 0x3d5   : > { %v4761_v31 = vmax.f32 %v4505_v23, 0.0  ;;  %v3961_v6 = vpop.f32.mrb[116].mxu1  ;;  %v3514_v37 = vpop.f32.mrb[117].mxu0  ;;  %v20165_v19 = vpack.c.bf16 %v4758_v55, %v4754_v59  ;;  %v4506_v29 = vadd.f32 %v19394_v27, %v3512_v12 }
 0x3d6   : > { %v3963_v28 = vpop.f32.mrb[117].mxu1  ;;  %v20167_v43 = vpack.c.bf16 %v4759_v26, %v4755_v0  ;;  %v20169_v57 = vpack.c.bf16 %v4760_v48, %v4756_v13  ;;  %v4507_v58 = vadd.f32 %v19402_v15, %v3514_v37  ;;  %v4508_v35 = vadd.f32 %v19398_v2, %v3961_v6 }
 0x3d7   : > { %v20172_v16 = vpack.c.bf16 %v4761_v31, %v4757_v14  ;;  %v4509_v32 = vadd.f32 %v19407_v9, %v3963_v28  ;;  %v4762_v0 = vmax.f32 %v4506_v29, 0.0 }
 0x3d8   : > { %22941 = vst [vmem:[#allocation32_spill] sm:$0xff] %v20169_v57  ;;  %v3518_v44 = vpop.f32.mrb[118].mxu0  ;;  %v4763_v48 = vmax.f32 %v4507_v58, 0.0  ;;  %v4764_v31 = vmax.f32 %v4508_v35, 0.0 }
 0x3d9   : > { %22942 = vst [vmem:[#allocation33_spill] sm:$0xff] %v20172_v16  ;;  %v3967_v52 = vpop.f32.mrb[118].mxu1  ;;  %v3520_v47 = vpop.f32.mrb[119].mxu0  ;;  %5620 = vmatmul.mubr.bf16.gmra.mrb[224].mxu0 %v20085_v50  ;;  %v4510_v61 = vadd.f32 %v19394_v27, %v3518_v44  ;;  %v4765_v37 = vmax.f32 %v4509_v32, 0.0 }
 0x3da   : > { %v3969_v23 = vpop.f32.mrb[119].mxu1  ;;  %6662 = vmatmul.mubr.bf16.gmra.mrb[224].mxu1 %v20085_v50  ;;  %5629 = vmatprep.mubr.bf16.mxu0 %v20109_v25  ;;  %v4511_v59 = vadd.f32 %v19402_v15, %v3520_v47  ;;  %v4512_v55 = vadd.f32 %v19398_v2, %v3967_v52 }
 0x3db   : > { %v4513_v12 = vadd.f32 %v19407_v9, %v3969_v23  ;;  %6671 = vmatprep.mubr.bf16.mxu1 %v20109_v25  ;;  %v4766_v26 = vmax.f32 %v4510_v61, 0.0 }
 0x3dc   : > { %v3524_v13 = vpop.f32.mrb[120].mxu0  ;;  %v4767_v14 = vmax.f32 %v4511_v59, 0.0  ;;  %v4768_v6 = vmax.f32 %v4512_v55, 0.0 }
 0x3dd   : > { %v4769_v28 = vmax.f32 %v4513_v12, 0.0  ;;  %v3973_v50 = vpop.f32.mrb[120].mxu1  ;;  %v3526_v44 = vpop.f32.mrb[121].mxu0  ;;  %v20185_v57 = vpack.c.bf16 %v4766_v26, %v4762_v0  ;;  %v4514_v25 = vadd.f32 %v19394_v27, %v3524_v13 }
 0x3de   : > { %v3975_v47 = vpop.f32.mrb[121].mxu1  ;;  %v20187_v16 = vpack.c.bf16 %v4767_v14, %v4763_v48  ;;  %v20189_v52 = vpack.c.bf16 %v4768_v6, %v4764_v31  ;;  %v4515_v58 = vadd.f32 %v19402_v15, %v3526_v44  ;;  %v4516_v35 = vadd.f32 %v19398_v2, %v3973_v50 }
 0x3df   : > { %v20192_v29 = vpack.c.bf16 %v4769_v28, %v4765_v37  ;;  %v4517_v32 = vadd.f32 %v19407_v9, %v3975_v47  ;;  %v4770_v48 = vmax.f32 %v4514_v25, 0.0 }
 0x3e0   : > { %22943 = vst [vmem:[#allocation34_spill] sm:$0xff] %v20189_v52  ;;  %v3530_v61 = vpop.f32.mrb[122].mxu0  ;;  %v4771_v6 = vmax.f32 %v4515_v58, 0.0  ;;  %v4772_v28 = vmax.f32 %v4516_v35, 0.0 }
 0x3e1   : > { %22944 = vst [vmem:[#allocation35_spill] sm:$0xff] %v20192_v29  ;;  %v3979_v23 = vpop.f32.mrb[122].mxu1  ;;  %v3532_v59 = vpop.f32.mrb[123].mxu0  ;;  %5630 = vmatmul.mubr.bf16.gmra.mrb[228].mxu0 %v20105_v18  ;;  %v4518_v55 = vadd.f32 %v19394_v27, %v3530_v61  ;;  %v4773_v44 = vmax.f32 %v4517_v32, 0.0 }
 0x3e2   : > { %v3981_v12 = vpop.f32.mrb[123].mxu1  ;;  %6672 = vmatmul.mubr.bf16.gmra.mrb[228].mxu1 %v20105_v18  ;;  %5639 = vmatprep.mubr.bf16.mxu0 %v20129_v10  ;;  %v4519_v0 = vadd.f32 %v19402_v15, %v3532_v59  ;;  %v4520_v26 = vadd.f32 %v19398_v2, %v3979_v23 }
 0x3e3   : > { %v4521_v13 = vadd.f32 %v19407_v9, %v3981_v12  ;;  %6681 = vmatprep.mubr.bf16.mxu1 %v20129_v10  ;;  %v4774_v14 = vmax.f32 %v4518_v55, 0.0 }
 0x3e4   : > { %v3536_v31 = vpop.f32.mrb[124].mxu0  ;;  %v4775_v37 = vmax.f32 %v4519_v0, 0.0  ;;  %v4776_v50 = vmax.f32 %v4520_v26, 0.0 }
 0x3e5   : > { %v4777_v47 = vmax.f32 %v4521_v13, 0.0  ;;  %v3985_v18 = vpop.f32.mrb[124].mxu1  ;;  %v3538_v61 = vpop.f32.mrb[125].mxu0  ;;  %v4906_v52 = vpack.c.bf16 %v4774_v14, %v4770_v48  ;;  %v4522_v23 = vadd.f32 %v19394_v27, %v3536_v31 }
 0x3e6   : > { %v3987_v29 = vpop.f32.mrb[125].mxu1  ;;  %v4907_v59 = vpack.c.bf16 %v4775_v37, %v4771_v6  ;;  %v20205_v24 = vpack.c.bf16 %v4776_v50, %v4772_v28  ;;  %v4523_v25 = vadd.f32 %v19402_v15, %v3538_v61  ;;  %v4524_v58 = vadd.f32 %v19398_v2, %v3985_v18 }
 0x3e7   : > { %v20208_v12 = vpack.c.bf16 %v4777_v47, %v4773_v44  ;;  %v4525_v35 = vadd.f32 %v19407_v9, %v3987_v29  ;;  %v4778_v29 = vmax.f32 %v4522_v23, 0.0 }
 0x3e8   : > { %v3542_v10 = vpop.f32.mrb[126].mxu0  ;;  %v4779_v6 = vmax.f32 %v4523_v25, 0.0  ;;  %v4780_v28 = vmax.f32 %v4524_v58, 0.0  ;;  %v22974_v58 = vld [vmem:[#allocation33_spill] sm:$0xff] }
 0x3e9   : > { %v3991_v32 = vpop.f32.mrb[126].mxu1  ;;  %v3544_v55 = vpop.f32.mrb[127].mxu0  ;;  %5640 = vmatmul.mubr.bf16.gmra.mrb[232].mxu0 %v20125_v39  ;;  %v4526_v0 = vadd.f32 %v19394_v27, %v3542_v10  ;;  %v4781_v27 = vmax.f32 %v4525_v35, 0.0  ;;  %v22973_v10 = vld [vmem:[#allocation30_spill] sm:$0xff] }
 0x3ea   : > { %v3993_v26 = vpop.f32.mrb[127].mxu1  ;;  %6682 = vmatmul.mubr.bf16.gmra.mrb[232].mxu1 %v20125_v39  ;;  %5649 = vmatprep.mubr.bf16.mxu0 %v20147_v41  ;;  %v4527_v13 = vadd.f32 %v19402_v15, %v3544_v55  ;;  %v4528_v48 = vadd.f32 %v19398_v2, %v3991_v32  ;;  %v22945_v2 = vld [vmem:[#allocation4_spill] sm:$0xff]  ;;  %v22946_v15 = vld [vmem:[#allocation3_spill] sm:$0xff] }
 0x3eb   : > { %v4529_v14 = vadd.f32 %v19407_v9, %v3993_v26  ;;  %6691 = vmatprep.mubr.bf16.mxu1 %v20147_v41  ;;  %v4782_v31 = vmax.f32 %v4526_v0, 0.0  ;;  %v22948_v9 = vld [vmem:[#allocation7_spill] sm:$0xff] }
 0x3ec   : > { %v4783_v37 = vmax.f32 %v4527_v13, 0.0  ;;  %v4784_v50 = vmax.f32 %v4528_v48, 0.0 }
 0x3ed   : > { %v4785_v44 = vmax.f32 %v4529_v14, 0.0  ;;  %v4910_v47 = vpack.c.bf16 %v4782_v31, %v4778_v29 }
 0x3ee   : > { %v4911_v39 = vpack.c.bf16 %v4783_v37, %v4779_v6  ;;  %v20221_v18 = vpack.c.bf16 %v4784_v50, %v4780_v28 }
 0x3ef   : > { %v20223_v61 = vpack.c.bf16 %v4785_v44, %v4781_v27  ;;  %v22975_v27 = vld [vmem:[#allocation32_spill] sm:$0xff] }
 0x3f1   : > { %5650 = vmatmul.mubr.bf16.gmra.mrb[236].mxu0 %v20145_v38 }
 0x3f2   : > { %6692 = vmatmul.mubr.bf16.gmra.mrb[236].mxu1 %v20145_v38  ;;  %5659 = vmatprep.mubr.bf16.mxu0 %v20167_v43 }
 0x3f3   : > { %6701 = vmatprep.mubr.bf16.mxu1 %v20167_v43 }
 0x3f9   : > { %5660 = vmatmul.mubr.bf16.gmra.mrb[240].mxu0 %v20165_v19 }
 0x3fa   : > { %6702 = vmatmul.mubr.bf16.gmra.mrb[240].mxu1 %v20165_v19  ;;  %5669 = vmatprep.mubr.bf16.mxu0 %v20187_v16 }
 0x3fb   : > { %6711 = vmatprep.mubr.bf16.mxu1 %v20187_v16 }
 0x401   : > { %5670 = vmatmul.mubr.bf16.gmra.mrb[244].mxu0 %v20185_v57 }
 0x402   : > { %6712 = vmatmul.mubr.bf16.gmra.mrb[244].mxu1 %v20185_v57  ;;  %5679 = vmatprep.mubr.bf16.mxu0 %v4907_v59 }
 0x403   : > { %6721 = vmatprep.mubr.bf16.mxu1 %v4907_v59 }
 0x409   : > { %5680 = vmatmul.mubr.bf16.gmra.mrb[248].mxu0 %v4906_v52 }
 0x40a   : > { %6722 = vmatmul.mubr.bf16.gmra.mrb[248].mxu1 %v4906_v52  ;;  %5689 = vmatprep.mubr.bf16.mxu0 %v4911_v39 }
 0x40b   : > { %6731 = vmatprep.mubr.bf16.mxu1 %v4911_v39 }
 0x411   : > { %5690 = vmatmul.mubr.bf16.gmra.mrb[252].mxu0 %v4910_v47 }
 0x412   : > { %6732 = vmatmul.mubr.bf16.gmra.mrb[252].mxu1 %v4910_v47  ;;  %14655 = vmatprep.mubr.msk.bf16.mxu0 %vm5250_vm5, %v19442_v17  ;;  %v22976_v47 = vld [vmem:[#allocation35_spill] sm:$0xff] }
 0x413   : > { %14743 = vmatprep.mubr.msk.bf16.mxu1 %vm5250_vm5, %v19442_v17  ;;  %v22950_v17 = vld [vmem:[#allocation9_spill] sm:$0xff] }
 0x419   : > { %5733 = vmatmul.mubr.bf16.vlgmr.msra.gmra.mrb[128].mxu0 %v19430_v53 }
 0x41a   : > { %6775 = vmatmul.mubr.bf16.vlgmr.msra.gmra.mrb[128].mxu1 %v19430_v53  ;;  %14656 = vmatprep.mubr.msk.bf16.mxu0 %vm5250_vm5, %v19470_v8  ;;  %v22949_v53 = vld [vmem:[#allocation6_spill] sm:$0xff] }
 0x41b   : > { %14744 = vmatprep.mubr.msk.bf16.mxu1 %vm5250_vm5, %v19470_v8  ;;  %v22952_v8 = vld [vmem:[#allocation11_spill] sm:$0xff] }
 0x421   : > { %5743 = vmatmul.mubr.bf16.gmra.mrb[132].mxu0 %v19459_v22 }
 0x422   : > { %6785 = vmatmul.mubr.bf16.gmra.mrb[132].mxu1 %v19459_v22  ;;  %14657 = vmatprep.mubr.msk.bf16.mxu0 %vm5250_vm5, %v19498_v1  ;;  %v22951_v22 = vld [vmem:[#allocation8_spill] sm:$0xff] }
 0x423   : > { %14745 = vmatprep.mubr.msk.bf16.mxu1 %vm5250_vm5, %v19498_v1  ;;  %v22954_v1 = vld [vmem:[#allocation13_spill] sm:$0xff] }
 0x429   : > { %5753 = vmatmul.mubr.bf16.gmra.mrb[136].mxu0 %v19487_v63 }
 0x42a   : > { %6795 = vmatmul.mubr.bf16.gmra.mrb[136].mxu1 %v19487_v63  ;;  %14658 = vmatprep.mubr.msk.bf16.mxu0 %vm5250_vm5, %v19525_v20  ;;  %v22953_v63 = vld [vmem:[#allocation10_spill] sm:$0xff] }
 0x42b   : > { %14746 = vmatprep.mubr.msk.bf16.mxu1 %vm5250_vm5, %v19525_v20  ;;  %v22956_v20 = vld [vmem:[#allocation15_spill] sm:$0xff] }
 0x431   : > { %5763 = vmatmul.mubr.bf16.gmra.mrb[140].mxu0 %v19515_v56 }
 0x432   : > { %6805 = vmatmul.mubr.bf16.gmra.mrb[140].mxu1 %v19515_v56  ;;  %14659 = vmatprep.mubr.msk.bf16.mxu0 %vm5250_vm5, %v19549_v42  ;;  %v22955_v56 = vld [vmem:[#allocation12_spill] sm:$0xff] }
 0x433   : > { %14747 = vmatprep.mubr.msk.bf16.mxu1 %vm5250_vm5, %v19549_v42  ;;  %v22958_v42 = vld [vmem:[#allocation17_spill] sm:$0xff] }
 0x439   : > { %5773 = vmatmul.mubr.bf16.gmra.mrb[144].mxu0 %v19540_v36 }
 0x43a   : > { %6815 = vmatmul.mubr.bf16.gmra.mrb[144].mxu1 %v19540_v36  ;;  %14660 = vmatprep.mubr.msk.bf16.mxu0 %vm5250_vm5, %v19567_v30  ;;  %v22957_v36 = vld [vmem:[#allocation14_spill] sm:$0xff] }
 0x43b   : > { %14748 = vmatprep.mubr.msk.bf16.mxu1 %vm5250_vm5, %v19567_v30  ;;  %v22960_v30 = vld [vmem:[#allocation19_spill] sm:$0xff] }
 0x441   : > { %5783 = vmatmul.mubr.bf16.gmra.mrb[148].mxu0 %v19563_v3 }
 0x442   : > { %6825 = vmatmul.mubr.bf16.gmra.mrb[148].mxu1 %v19563_v3  ;;  %14661 = vmatprep.mubr.msk.bf16.mxu0 %vm5250_vm5, %v19599_v5  ;;  %v22959_v3 = vld [vmem:[#allocation16_spill] sm:$0xff] }
 0x443   : > { %14749 = vmatprep.mubr.msk.bf16.mxu1 %vm5250_vm5, %v19599_v5  ;;  %v22962_v5 = vld [vmem:[#allocation21_spill] sm:$0xff] }
 0x449   : > { %5793 = vmatmul.mubr.bf16.gmra.mrb[152].mxu0 %v19595_v46 }
 0x44a   : > { %6835 = vmatmul.mubr.bf16.gmra.mrb[152].mxu1 %v19595_v46  ;;  %14662 = vmatprep.mubr.msk.bf16.mxu0 %vm5250_vm5, %v19621_v11  ;;  %v22961_v46 = vld [vmem:[#allocation18_spill] sm:$0xff] }
 0x44b   : > { %14750 = vmatprep.mubr.msk.bf16.mxu1 %vm5250_vm5, %v19621_v11  ;;  %v22964_v11 = vld [vmem:[#allocation23_spill] sm:$0xff] }
 0x451   : > { %5803 = vmatmul.mubr.bf16.gmra.mrb[156].mxu0 %v19615_v54 }
 0x452   : > { %6845 = vmatmul.mubr.bf16.gmra.mrb[156].mxu1 %v19615_v54  ;;  %14663 = vmatprep.mubr.msk.bf16.mxu0 %vm5250_vm5, %v19651_v40  ;;  %v22963_v54 = vld [vmem:[#allocation20_spill] sm:$0xff] }
 0x453   : > { %14751 = vmatprep.mubr.msk.bf16.mxu1 %vm5250_vm5, %v19651_v40  ;;  %v22966_v40 = vld [vmem:[#allocation25_spill] sm:$0xff] }
 0x459   : > { %5813 = vmatmul.mubr.bf16.gmra.mrb[160].mxu0 %v19644_v33 }
 0x45a   : > { %6855 = vmatmul.mubr.bf16.gmra.mrb[160].mxu1 %v19644_v33  ;;  %14664 = vmatprep.mubr.msk.bf16.mxu0 %vm5250_vm5, %v19671_v7  ;;  %v22965_v33 = vld [vmem:[#allocation22_spill] sm:$0xff] }
 0x45b   : > { %14752 = vmatprep.mubr.msk.bf16.mxu1 %vm5250_vm5, %v19671_v7  ;;  %v22968_v7 = vld [vmem:[#allocation27_spill] sm:$0xff] }
 0x461   : > { %5823 = vmatmul.mubr.bf16.gmra.mrb[164].mxu0 %v19667_v51 }
 0x462   : > { %6865 = vmatmul.mubr.bf16.gmra.mrb[164].mxu1 %v19667_v51  ;;  %14665 = vmatprep.mubr.msk.bf16.mxu0 %vm5250_vm5, %v19691_v21  ;;  %v22967_v51 = vld [vmem:[#allocation24_spill] sm:$0xff] }
 0x463   : > { %14753 = vmatprep.mubr.msk.bf16.mxu1 %vm5250_vm5, %v19691_v21  ;;  %v22970_v21 = vld [vmem:[#allocation29_spill] sm:$0xff] }
 0x469   : > { %5833 = vmatmul.mubr.bf16.gmra.mrb[168].mxu0 %v19687_v45 }
 0x46a   : > { %6875 = vmatmul.mubr.bf16.gmra.mrb[168].mxu1 %v19687_v45  ;;  %14666 = vmatprep.mubr.msk.bf16.mxu0 %vm5250_vm5, %v19723_v62  ;;  %v22969_v45 = vld [vmem:[#allocation26_spill] sm:$0xff] }
 0x46b   : > { %14754 = vmatprep.mubr.msk.bf16.mxu1 %vm5250_vm5, %v19723_v62  ;;  %v22971_v62 = vld [vmem:[#allocation28_spill] sm:$0xff] }
 0x471   : > { %5843 = vmatmul.mubr.bf16.gmra.mrb[172].mxu0 %v19719_v60 }
 0x472   : > { %6885 = vmatmul.mubr.bf16.gmra.mrb[172].mxu1 %v19719_v60  ;;  %14667 = vmatprep.mubr.msk.bf16.mxu0 %vm5250_vm5, %v19743_v49  ;;  %v22947_v60 = vld [vmem:[#allocation5_spill] sm:$0xff] }
 0x473   : > { %14755 = vmatprep.mubr.msk.bf16.mxu1 %vm5250_vm5, %v19743_v49 }
 0x479   : > { %5853 = vmatmul.mubr.bf16.gmra.mrb[176].mxu0 %v19739_v4 }
 0x47a   : > { %6895 = vmatmul.mubr.bf16.gmra.mrb[176].mxu1 %v19739_v4  ;;  %14668 = vmatprep.mubr.msk.bf16.mxu0 %vm5250_vm5, %v22945_v2  ;;  %v22972_v4 = vld [vmem:[#allocation31_spill] sm:$0xff] }
 0x47b   : > { %14756 = vmatprep.mubr.msk.bf16.mxu1 %vm5250_vm5, %v22945_v2 }
 0x481   : > { %5863 = vmatmul.mubr.bf16.gmra.mrb[180].mxu0 %v22946_v15 }
 0x482   : > { %6905 = vmatmul.mubr.bf16.gmra.mrb[180].mxu1 %v22946_v15  ;;  %14669 = vmatprep.mubr.msk.bf16.mxu0 %vm5250_vm5, %v19795_v34 }
 0x483   : > { %14757 = vmatprep.mubr.msk.bf16.mxu1 %vm5250_vm5, %v19795_v34 }
 0x489   : > { %5873 = vmatmul.mubr.bf16.gmra.mrb[184].mxu0 %v22947_v60 }
 0x48a   : > { %6915 = vmatmul.mubr.bf16.gmra.mrb[184].mxu1 %v22947_v60  ;;  %14670 = vmatprep.mubr.msk.bf16.mxu0 %vm5250_vm5, %v22948_v9 }
 0x48b   : > { %14758 = vmatprep.mubr.msk.bf16.mxu1 %vm5250_vm5, %v22948_v9 }
 0x491   : > { %5883 = vmatmul.mubr.bf16.gmra.mrb[188].mxu0 %v22949_v53 }
 0x492   : > { %6925 = vmatmul.mubr.bf16.gmra.mrb[188].mxu1 %v22949_v53  ;;  %14671 = vmatprep.mubr.msk.bf16.mxu0 %vm5250_vm5, %v22950_v17 }
 0x493   : > { %14759 = vmatprep.mubr.msk.bf16.mxu1 %vm5250_vm5, %v22950_v17 }
 0x499   : > { %5893 = vmatmul.mubr.bf16.gmra.mrb[192].mxu0 %v22951_v22 }
 0x49a   : > { %6935 = vmatmul.mubr.bf16.gmra.mrb[192].mxu1 %v22951_v22  ;;  %14672 = vmatprep.mubr.msk.bf16.mxu0 %vm5250_vm5, %v22952_v8 }
 0x49b   : > { %14760 = vmatprep.mubr.msk.bf16.mxu1 %vm5250_vm5, %v22952_v8 }
 0x4a1   : > { %5903 = vmatmul.mubr.bf16.gmra.mrb[196].mxu0 %v22953_v63 }
 0x4a2   : > { %6945 = vmatmul.mubr.bf16.gmra.mrb[196].mxu1 %v22953_v63  ;;  %14673 = vmatprep.mubr.msk.bf16.mxu0 %vm5250_vm5, %v22954_v1 }
 0x4a3   : > { %14761 = vmatprep.mubr.msk.bf16.mxu1 %vm5250_vm5, %v22954_v1 }
 0x4a9   : > { %5913 = vmatmul.mubr.bf16.gmra.mrb[200].mxu0 %v22955_v56 }
 0x4aa   : > { %6955 = vmatmul.mubr.bf16.gmra.mrb[200].mxu1 %v22955_v56  ;;  %14674 = vmatprep.mubr.msk.bf16.mxu0 %vm5250_vm5, %v22956_v20 }
 0x4ab   : > { %14762 = vmatprep.mubr.msk.bf16.mxu1 %vm5250_vm5, %v22956_v20 }
 0x4b1   : > { %5923 = vmatmul.mubr.bf16.gmra.mrb[204].mxu0 %v22957_v36 }
 0x4b2   : > { %6965 = vmatmul.mubr.bf16.gmra.mrb[204].mxu1 %v22957_v36  ;;  %14675 = vmatprep.mubr.msk.bf16.mxu0 %vm5250_vm5, %v22958_v42  ;;  %v22977_v36 = vld [vmem:[#allocation34_spill] sm:$0xff] }
 0x4b3   : > { %14763 = vmatprep.mubr.msk.bf16.mxu1 %vm5250_vm5, %v22958_v42 }
 0x4b9   : > { %5933 = vmatmul.mubr.bf16.gmra.mrb[208].mxu0 %v22959_v3 }
 0x4ba   : > { %6975 = vmatmul.mubr.bf16.gmra.mrb[208].mxu1 %v22959_v3  ;;  %14676 = vmatprep.mubr.msk.bf16.mxu0 %vm5250_vm5, %v22960_v30 }
 0x4bb   : > { %14764 = vmatprep.mubr.msk.bf16.mxu1 %vm5250_vm5, %v22960_v30 }
 0x4c1   : > { %5943 = vmatmul.mubr.bf16.gmra.mrb[212].mxu0 %v22961_v46 }
 0x4c2   : > { %6985 = vmatmul.mubr.bf16.gmra.mrb[212].mxu1 %v22961_v46  ;;  %14677 = vmatprep.mubr.msk.bf16.mxu0 %vm5250_vm5, %v22962_v5 }
 0x4c3   : > { %14765 = vmatprep.mubr.msk.bf16.mxu1 %vm5250_vm5, %v22962_v5 }
 0x4c9   : > { %5953 = vmatmul.mubr.bf16.gmra.mrb[216].mxu0 %v22963_v54 }
 0x4ca   : > { %6995 = vmatmul.mubr.bf16.gmra.mrb[216].mxu1 %v22963_v54  ;;  %14678 = vmatprep.mubr.msk.bf16.mxu0 %vm5250_vm5, %v22964_v11 }
 0x4cb   : > { %14766 = vmatprep.mubr.msk.bf16.mxu1 %vm5250_vm5, %v22964_v11 }
 0x4d1   : > { %5963 = vmatmul.mubr.bf16.gmra.mrb[220].mxu0 %v22965_v33 }
 0x4d2   : > { %7005 = vmatmul.mubr.bf16.gmra.mrb[220].mxu1 %v22965_v33  ;;  %14679 = vmatprep.mubr.msk.bf16.mxu0 %vm5250_vm5, %v22966_v40 }
 0x4d3   : > { %14767 = vmatprep.mubr.msk.bf16.mxu1 %vm5250_vm5, %v22966_v40 }
 0x4d9   : > { %5973 = vmatmul.mubr.bf16.gmra.mrb[224].mxu0 %v22967_v51 }
 0x4da   : > { %7015 = vmatmul.mubr.bf16.gmra.mrb[224].mxu1 %v22967_v51  ;;  %14680 = vmatprep.mubr.msk.bf16.mxu0 %vm5250_vm5, %v22968_v7 }
 0x4db   : > { %14768 = vmatprep.mubr.msk.bf16.mxu1 %vm5250_vm5, %v22968_v7 }
 0x4e1   : > { %5983 = vmatmul.mubr.bf16.gmra.mrb[228].mxu0 %v22969_v45 }
 0x4e2   : > { %7025 = vmatmul.mubr.bf16.gmra.mrb[228].mxu1 %v22969_v45  ;;  %14681 = vmatprep.mubr.msk.bf16.mxu0 %vm5250_vm5, %v22970_v21 }
 0x4e3   : > { %14769 = vmatprep.mubr.msk.bf16.mxu1 %vm5250_vm5, %v22970_v21 }
 0x4e9   : > { %5993 = vmatmul.mubr.bf16.gmra.mrb[232].mxu0 %v22971_v62 }
 0x4ea   : > { %7035 = vmatmul.mubr.bf16.gmra.mrb[232].mxu1 %v22971_v62  ;;  %14682 = vmatprep.mubr.msk.bf16.mxu0 %vm5250_vm5, %v22972_v4 }
 0x4eb   : > { %14770 = vmatprep.mubr.msk.bf16.mxu1 %vm5250_vm5, %v22972_v4 }
 0x4ec   : > { %v5734_v49 = vpop.f32.mrb[128].mxu0 }
 0x4ed   : > { %v6776_v34 = vpop.f32.mrb[128].mxu1  ;;  %v5736_v38 = vpop.f32.mrb[129].mxu0 }
 0x4ee   : > { %v7095_v41 = vmax.f32 %v5734_v49, %v6776_v34  ;;  %v6778_v19 = vpop.f32.mrb[129].mxu1  ;;  %v5738_v43 = vpop.f32.mrb[130].mxu0 }
 0x4ef   : > { %v6780_v57 = vpop.f32.mrb[130].mxu1  ;;  %v5740_v16 = vpop.f32.mrb[131].mxu0  ;;  %v7096_v52 = vmax.f32 %v5736_v38, %v6778_v19 }
 0x4f0   : > { %v7097_v59 = vmax.f32 %v5738_v43, %v6780_v57  ;;  %v6782_v23 = vpop.f32.mrb[131].mxu1 }
 0x4f1   : > { %6003 = vmatmul.mubr.bf16.gmra.mrb[236].mxu0 %v22973_v10  ;;  %v7098_v25 = vmax.f32 %v5740_v16, %v6782_v23 }
 0x4f2   : > { %7045 = vmatmul.mubr.bf16.gmra.mrb[236].mxu1 %v22973_v10  ;;  %14683 = vmatprep.mubr.msk.bf16.mxu0 %vm5250_vm5, %v22974_v58  ;;  %v7223_v35 = vpack.c.bf16 %v7097_v59, %v7095_v41 }
 0x4f3   : > { %14771 = vmatprep.mubr.msk.bf16.mxu1 %vm5250_vm5, %v22974_v58  ;;  %v7224_v32 = vpack.c.bf16 %v7098_v25, %v7096_v52 }
 0x4f4   : > { %v5744_v55 = vpop.f32.mrb[132].mxu0 }
 0x4f5   : > { %v6786_v0 = vpop.f32.mrb[132].mxu1  ;;  %7728 = vmatprep.subr.bf16.mxu0 %v7224_v32  ;;  %8564 = vmatprep.subr.bf16.mxu1 %v7224_v32  ;;  %v5746_v26 = vpop.f32.mrb[133].mxu0 }
 0x4f6   : > { %v7099_v13 = vmax.f32 %v5744_v55, %v6786_v0  ;;  %v6788_v48 = vpop.f32.mrb[133].mxu1  ;;  %7729 = vmatpush1.bf16.msra.mxu0 %v7223_v35  ;;  %8565 = vmatpush1.bf16.msra.mxu1 %v7223_v35  ;;  %v5748_v14 = vpop.f32.mrb[134].mxu0 }
 0x4f7   : > { %v7100_v29 = vmax.f32 %v5746_v26, %v6788_v48  ;;  %v6790_v31 = vpop.f32.mrb[134].mxu1  ;;  %v5750_v6 = vpop.f32.mrb[135].mxu0 }
 0x4f8   : > { %v7101_v37 = vmax.f32 %v5748_v14, %v6790_v31  ;;  %v6792_v28 = vpop.f32.mrb[135].mxu1 }
 0x4f9   : > { %v7102_v50 = vmax.f32 %v5750_v6, %v6792_v28  ;;  %6013 = vmatmul.mubr.bf16.gmra.mrb[240].mxu0 %v22975_v27 }
 0x4fa   : > { %v7225_v44 = vpack.c.bf16 %v7101_v37, %v7099_v13  ;;  %7055 = vmatmul.mubr.bf16.gmra.mrb[240].mxu1 %v22975_v27  ;;  %14684 = vmatprep.mubr.msk.bf16.mxu0 %vm5250_vm5, %v22976_v47 }
 0x4fb   : > { %14772 = vmatprep.mubr.msk.bf16.mxu1 %vm5250_vm5, %v22976_v47  ;;  %v7226_v39 = vpack.c.bf16 %v7102_v50, %v7100_v29 }
 0x4fc   : > { %v5754_v2 = vpop.f32.mrb[136].mxu0 }
 0x4fd   : > { %v6796_v15 = vpop.f32.mrb[136].mxu1  ;;  %7730 = vmatprep.subr.bf16.mxu0 %v7226_v39  ;;  %8566 = vmatprep.subr.bf16.mxu1 %v7226_v39  ;;  %v5756_v60 = vpop.f32.mrb[137].mxu0 }
 0x4fe   : > { %v7103_v9 = vmax.f32 %v5754_v2, %v6796_v15  ;;  %v6798_v53 = vpop.f32.mrb[137].mxu1  ;;  %7731 = vmatpush1.bf16.msra.mxu0 %v7225_v44  ;;  %8567 = vmatpush1.bf16.msra.mxu1 %v7225_v44  ;;  %v5758_v17 = vpop.f32.mrb[138].mxu0 }
 0x4ff   : > { %v7104_v22 = vmax.f32 %v5756_v60, %v6798_v53  ;;  %v6800_v8 = vpop.f32.mrb[138].mxu1  ;;  %v5760_v63 = vpop.f32.mrb[139].mxu0 }
 0x500   : > { %v7105_v1 = vmax.f32 %v5758_v17, %v6800_v8  ;;  %v6802_v56 = vpop.f32.mrb[139].mxu1 }
 0x501   : > { %v7106_v20 = vmax.f32 %v5760_v63, %v6802_v56  ;;  %6023 = vmatmul.mubr.bf16.gmra.mrb[244].mxu0 %v22977_v36 }
 0x502   : > { %v7227_v42 = vpack.c.bf16 %v7105_v1, %v7103_v9  ;;  %7065 = vmatmul.mubr.bf16.gmra.mrb[244].mxu1 %v22977_v36  ;;  %14685 = vmatprep.mubr.msk.bf16.mxu0 %vm5250_vm5, %v20208_v12 }
 0x503   : > { %14773 = vmatprep.mubr.msk.bf16.mxu1 %vm5250_vm5, %v20208_v12  ;;  %v7228_v3 = vpack.c.bf16 %v7106_v20, %v7104_v22 }
 0x504   : > { %v5764_v30 = vpop.f32.mrb[140].mxu0 }
 0x505   : > { %v6806_v46 = vpop.f32.mrb[140].mxu1  ;;  %7732 = vmatprep.subr.bf16.mxu0 %v7228_v3  ;;  %8568 = vmatprep.subr.bf16.mxu1 %v7228_v3  ;;  %v5766_v5 = vpop.f32.mrb[141].mxu0 }
 0x506   : > { %v7107_v54 = vmax.f32 %v5764_v30, %v6806_v46  ;;  %v6808_v11 = vpop.f32.mrb[141].mxu1  ;;  %7733 = vmatpush1.bf16.msra.mxu0 %v7227_v42  ;;  %8569 = vmatpush1.bf16.msra.mxu1 %v7227_v42  ;;  %v5768_v33 = vpop.f32.mrb[142].mxu0 }
 0x507   : > { %v7108_v40 = vmax.f32 %v5766_v5, %v6808_v11  ;;  %v6810_v51 = vpop.f32.mrb[142].mxu1  ;;  %v5770_v7 = vpop.f32.mrb[143].mxu0 }
 0x508   : > { %v7109_v45 = vmax.f32 %v5768_v33, %v6810_v51  ;;  %v6812_v21 = vpop.f32.mrb[143].mxu1 }
 0x509   : > { %v7110_v62 = vmax.f32 %v5770_v7, %v6812_v21  ;;  %6033 = vmatmul.mubr.bf16.gmra.mrb[248].mxu0 %v20205_v24 }
 0x50a   : > { %v7229_v12 = vpack.c.bf16 %v7109_v45, %v7107_v54  ;;  %7075 = vmatmul.mubr.bf16.gmra.mrb[248].mxu1 %v20205_v24  ;;  %14686 = vmatprep.mubr.msk.bf16.mxu0 %vm5250_vm5, %v20223_v61  ;;  %v16880_v24 = vld [vmem:[%s22838_s5 + $0x4] ss:$16 sps:$4 sm:$0xff]  }
 0x50b   : > { %14774 = vmatprep.mubr.msk.bf16.mxu1 %vm5250_vm5, %v20223_v61  ;;  %v7230_v4 = vpack.c.bf16 %v7110_v62, %v7108_v40  ;;  %v16883_v61 = vld [vmem:[%s22839_s6 + $0x4] ss:$16 sps:$4 sm:$0xff]  }
 0x50c   : > { %v5774_v49 = vpop.f32.mrb[144].mxu0 }
 0x50d   : > { %v6816_v34 = vpop.f32.mrb[144].mxu1  ;;  %7734 = vmatprep.subr.bf16.mxu0 %v7230_v4  ;;  %8570 = vmatprep.subr.bf16.mxu1 %v7230_v4  ;;  %v5776_v38 = vpop.f32.mrb[145].mxu0 }
 0x50e   : > { %v7111_v41 = vmax.f32 %v5774_v49, %v6816_v34  ;;  %v6818_v19 = vpop.f32.mrb[145].mxu1  ;;  %7735 = vmatpush1.bf16.msra.mxu0 %v7229_v12  ;;  %8571 = vmatpush1.bf16.msra.mxu1 %v7229_v12  ;;  %v5778_v43 = vpop.f32.mrb[146].mxu0 }
 0x50f   : > { %v7112_v57 = vmax.f32 %v5776_v38, %v6818_v19  ;;  %v6820_v16 = vpop.f32.mrb[146].mxu1  ;;  %v5780_v52 = vpop.f32.mrb[147].mxu0 }
 0x510   : > { %v7113_v59 = vmax.f32 %v5778_v43, %v6820_v16  ;;  %v6822_v23 = vpop.f32.mrb[147].mxu1 }
 0x511   : > { %v7114_v10 = vmax.f32 %v5780_v52, %v6822_v23  ;;  %6043 = vmatmul.mubr.bf16.gmra.mrb[252].mxu0 %v20221_v18 }
 0x512   : > { %v7231_v25 = vpack.c.bf16 %v7113_v59, %v7111_v41  ;;  %7085 = vmatmul.mubr.bf16.gmra.mrb[252].mxu1 %v20221_v18  ;;  %7760 = vmatprep.mubr.bf16.mxu0 %v16880_v24 }
 0x513   : > { %v7232_v58 = vpack.c.bf16 %v7114_v10, %v7112_v57  ;;  %8596 = vmatprep.mubr.bf16.mxu1 %v16883_v61 }
 0x514   : > { %v5784_v35 = vpop.f32.mrb[148].mxu0 }
 0x515   : > { %v6826_v32 = vpop.f32.mrb[148].mxu1  ;;  %7736 = vmatprep.subr.bf16.mxu0 %v7232_v58  ;;  %8572 = vmatprep.subr.bf16.mxu1 %v7232_v58  ;;  %v5786_v55 = vpop.f32.mrb[149].mxu0 }
 0x516   : > { %v7115_v0 = vmax.f32 %v5784_v35, %v6826_v32  ;;  %v6828_v26 = vpop.f32.mrb[149].mxu1  ;;  %7737 = vmatpush1.bf16.msra.mxu0 %v7231_v25  ;;  %8573 = vmatpush1.bf16.msra.mxu1 %v7231_v25  ;;  %v5788_v13 = vpop.f32.mrb[150].mxu0 }
 0x517   : > { %v7116_v48 = vmax.f32 %v5786_v55, %v6828_v26  ;;  %v6830_v14 = vpop.f32.mrb[150].mxu1  ;;  %v5790_v29 = vpop.f32.mrb[151].mxu0 }
 0x518   : > { %v7117_v31 = vmax.f32 %v5788_v13, %v6830_v14  ;;  %v6832_v6 = vpop.f32.mrb[151].mxu1 }
 0x519   : > { %v7118_v37 = vmax.f32 %v5790_v29, %v6832_v6 }
 0x51a   : > { %v7233_v18 = vpack.c.bf16 %v7117_v31, %v7115_v0 }
 0x51b   : > { %v7234_v28 = vpack.c.bf16 %v7118_v37, %v7116_v48 }
 0x51c   : > { %v5794_v50 = vpop.f32.mrb[152].mxu0 }
 0x51d   : > { %v6836_v27 = vpop.f32.mrb[152].mxu1  ;;  %7738 = vmatprep.subr.bf16.mxu0 %v7234_v28  ;;  %8574 = vmatprep.subr.bf16.mxu1 %v7234_v28  ;;  %v5796_v44 = vpop.f32.mrb[153].mxu0 }
 0x51e   : > { %v7119_v47 = vmax.f32 %v5794_v50, %v6836_v27  ;;  %v6838_v39 = vpop.f32.mrb[153].mxu1  ;;  %7739 = vmatpush1.bf16.msra.mxu0 %v7233_v18  ;;  %8575 = vmatpush1.bf16.msra.mxu1 %v7233_v18  ;;  %v5798_v2 = vpop.f32.mrb[154].mxu0 }
 0x51f   : > { %v7120_v15 = vmax.f32 %v5796_v44, %v6838_v39  ;;  %v6840_v60 = vpop.f32.mrb[154].mxu1  ;;  %v5800_v9 = vpop.f32.mrb[155].mxu0 }
 0x520   : > { %v7121_v53 = vmax.f32 %v5798_v2, %v6840_v60  ;;  %v6842_v17 = vpop.f32.mrb[155].mxu1 }
 0x521   : > { %v7122_v22 = vmax.f32 %v5800_v9, %v6842_v17 }
 0x522   : > { %v7235_v8 = vpack.c.bf16 %v7121_v53, %v7119_v47 }
 0x523   : > { %v7236_v63 = vpack.c.bf16 %v7122_v22, %v7120_v15 }
 0x524   : > { %v5804_v1 = vpop.f32.mrb[156].mxu0 }
 0x525   : > { %v6846_v56 = vpop.f32.mrb[156].mxu1  ;;  %7740 = vmatprep.subr.bf16.mxu0 %v7236_v63  ;;  %8576 = vmatprep.subr.bf16.mxu1 %v7236_v63  ;;  %v5806_v20 = vpop.f32.mrb[157].mxu0 }
 0x526   : > { %v7123_v36 = vmax.f32 %v5804_v1, %v6846_v56  ;;  %v6848_v42 = vpop.f32.mrb[157].mxu1  ;;  %7741 = vmatpush1.bf16.msra.mxu0 %v7235_v8  ;;  %8577 = vmatpush1.bf16.msra.mxu1 %v7235_v8  ;;  %v5808_v3 = vpop.f32.mrb[158].mxu0 }
 0x527   : > { %v7124_v30 = vmax.f32 %v5806_v20, %v6848_v42  ;;  %v6850_v46 = vpop.f32.mrb[158].mxu1  ;;  %v5810_v5 = vpop.f32.mrb[159].mxu0 }
 0x528   : > { %v7125_v54 = vmax.f32 %v5808_v3, %v6850_v46  ;;  %v6852_v11 = vpop.f32.mrb[159].mxu1 }
 0x529   : > { %v7126_v33 = vmax.f32 %v5810_v5, %v6852_v11 }
 0x52a   : > { %v7237_v40 = vpack.c.bf16 %v7125_v54, %v7123_v36 }
 0x52b   : > { %v7238_v51 = vpack.c.bf16 %v7126_v33, %v7124_v30 }
 0x52c   : > { %v5814_v7 = vpop.f32.mrb[160].mxu0 }
 0x52d   : > { %v6856_v45 = vpop.f32.mrb[160].mxu1  ;;  %7742 = vmatprep.subr.bf16.mxu0 %v7238_v51  ;;  %8578 = vmatprep.subr.bf16.mxu1 %v7238_v51  ;;  %v5816_v21 = vpop.f32.mrb[161].mxu0 }
 0x52e   : > { %v7127_v62 = vmax.f32 %v5814_v7, %v6856_v45  ;;  %v6858_v12 = vpop.f32.mrb[161].mxu1  ;;  %7743 = vmatpush1.bf16.msra.mxu0 %v7237_v40  ;;  %8579 = vmatpush1.bf16.msra.mxu1 %v7237_v40  ;;  %v5818_v4 = vpop.f32.mrb[162].mxu0 }
 0x52f   : > { %v7128_v49 = vmax.f32 %v5816_v21, %v6858_v12  ;;  %v6860_v34 = vpop.f32.mrb[162].mxu1  ;;  %v5820_v38 = vpop.f32.mrb[163].mxu0 }
 0x530   : > { %v7129_v41 = vmax.f32 %v5818_v4, %v6860_v34  ;;  %v6862_v19 = vpop.f32.mrb[163].mxu1 }
 0x531   : > { %v7130_v43 = vmax.f32 %v5820_v38, %v6862_v19 }
 0x532   : > { %v7239_v24 = vpack.c.bf16 %v7129_v41, %v7127_v62 }
 0x533   : > { %v7240_v57 = vpack.c.bf16 %v7130_v43, %v7128_v49 }
 0x534   : > { %v5824_v16 = vpop.f32.mrb[164].mxu0 }
 0x535   : > { %v6866_v52 = vpop.f32.mrb[164].mxu1  ;;  %7744 = vmatprep.subr.bf16.mxu0 %v7240_v57  ;;  %8580 = vmatprep.subr.bf16.mxu1 %v7240_v57  ;;  %v5826_v61 = vpop.f32.mrb[165].mxu0 }
 0x536   : > { %v7131_v59 = vmax.f32 %v5824_v16, %v6866_v52  ;;  %v6868_v23 = vpop.f32.mrb[165].mxu1  ;;  %7745 = vmatpush1.bf16.msra.mxu0 %v7239_v24  ;;  %8581 = vmatpush1.bf16.msra.mxu1 %v7239_v24  ;;  %v5828_v10 = vpop.f32.mrb[166].mxu0 }
 0x537   : > { %v7132_v25 = vmax.f32 %v5826_v61, %v6868_v23  ;;  %v6870_v58 = vpop.f32.mrb[166].mxu1  ;;  %v5830_v35 = vpop.f32.mrb[167].mxu0 }
 0x538   : > { %v7133_v32 = vmax.f32 %v5828_v10, %v6870_v58  ;;  %v6872_v55 = vpop.f32.mrb[167].mxu1 }
 0x539   : > { %v7134_v0 = vmax.f32 %v5830_v35, %v6872_v55 }
 0x53a   : > { %v7241_v26 = vpack.c.bf16 %v7133_v32, %v7131_v59 }
 0x53b   : > { %v7242_v13 = vpack.c.bf16 %v7134_v0, %v7132_v25 }
 0x53c   : > { %v5834_v48 = vpop.f32.mrb[168].mxu0 }
 0x53d   : > { %v6876_v14 = vpop.f32.mrb[168].mxu1  ;;  %7746 = vmatprep.subr.bf16.mxu0 %v7242_v13  ;;  %8582 = vmatprep.subr.bf16.mxu1 %v7242_v13  ;;  %v5836_v29 = vpop.f32.mrb[169].mxu0 }
 0x53e   : > { %v7135_v31 = vmax.f32 %v5834_v48, %v6876_v14  ;;  %v6878_v6 = vpop.f32.mrb[169].mxu1  ;;  %7747 = vmatpush1.bf16.msra.mxu0 %v7241_v26  ;;  %8583 = vmatpush1.bf16.msra.mxu1 %v7241_v26  ;;  %v5838_v37 = vpop.f32.mrb[170].mxu0 }
 0x53f   : > { %v7136_v18 = vmax.f32 %v5836_v29, %v6878_v6  ;;  %v6880_v28 = vpop.f32.mrb[170].mxu1  ;;  %v5840_v50 = vpop.f32.mrb[171].mxu0 }
 0x540   : > { %v7137_v27 = vmax.f32 %v5838_v37, %v6880_v28  ;;  %v6882_v44 = vpop.f32.mrb[171].mxu1 }
 0x541   : > { %v7138_v47 = vmax.f32 %v5840_v50, %v6882_v44 }
 0x542   : > { %v7243_v39 = vpack.c.bf16 %v7137_v27, %v7135_v31 }
 0x543   : > { %v7244_v2 = vpack.c.bf16 %v7138_v47, %v7136_v18 }
 0x544   : > { %v5844_v15 = vpop.f32.mrb[172].mxu0 }
 0x545   : > { %v6886_v60 = vpop.f32.mrb[172].mxu1  ;;  %7748 = vmatprep.subr.bf16.mxu0 %v7244_v2  ;;  %8584 = vmatprep.subr.bf16.mxu1 %v7244_v2  ;;  %v5846_v9 = vpop.f32.mrb[173].mxu0 }
 0x546   : > { %v7139_v53 = vmax.f32 %v5844_v15, %v6886_v60  ;;  %v6888_v17 = vpop.f32.mrb[173].mxu1  ;;  %7749 = vmatpush1.bf16.msra.mxu0 %v7243_v39  ;;  %8585 = vmatpush1.bf16.msra.mxu1 %v7243_v39  ;;  %v5848_v22 = vpop.f32.mrb[174].mxu0 }
 0x547   : > { %v7140_v8 = vmax.f32 %v5846_v9, %v6888_v17  ;;  %v6890_v63 = vpop.f32.mrb[174].mxu1  ;;  %v5850_v1 = vpop.f32.mrb[175].mxu0 }
 0x548   : > { %v7141_v56 = vmax.f32 %v5848_v22, %v6890_v63  ;;  %v6892_v20 = vpop.f32.mrb[175].mxu1 }
 0x549   : > { %v7142_v36 = vmax.f32 %v5850_v1, %v6892_v20  ;;  %v16881_v20 = vld [vmem:[%s22839_s6] ss:$16 sps:$4 sm:$0xff]  }
 0x54a   : > { %v7245_v42 = vpack.c.bf16 %v7141_v56, %v7139_v53  ;;  %v16878_v56 = vld [vmem:[%s22838_s5] ss:$16 sps:$4 sm:$0xff]  }
 0x54b   : > { %v7246_v3 = vpack.c.bf16 %v7142_v36, %v7140_v8 }
 0x54c   : > { %v5854_v30 = vpop.f32.mrb[176].mxu0 }
 0x54d   : > { %v6896_v46 = vpop.f32.mrb[176].mxu1  ;;  %7750 = vmatprep.subr.bf16.mxu0 %v7246_v3  ;;  %8586 = vmatprep.subr.bf16.mxu1 %v7246_v3  ;;  %v5856_v5 = vpop.f32.mrb[177].mxu0 }
 0x54e   : > { %v7143_v54 = vmax.f32 %v5854_v30, %v6896_v46  ;;  %v6898_v11 = vpop.f32.mrb[177].mxu1  ;;  %7751 = vmatpush1.bf16.msra.mxu0 %v7245_v42  ;;  %8587 = vmatpush1.bf16.msra.mxu1 %v7245_v42  ;;  %v5858_v33 = vpop.f32.mrb[178].mxu0  ;;  %v16886_v30 = vld [vmem:[%s22838_s5 + $0x24] ss:$16 sps:$4 sm:$0xff]  }
 0x54f   : > { %v7144_v40 = vmax.f32 %v5856_v5, %v6898_v11  ;;  %v6900_v51 = vpop.f32.mrb[178].mxu1  ;;  %v5860_v7 = vpop.f32.mrb[179].mxu0  ;;  %v16889_v46 = vld [vmem:[%s22839_s6 + $0x24] ss:$16 sps:$4 sm:$0xff]  }
 0x550   : > { %v7145_v45 = vmax.f32 %v5858_v33, %v6900_v51  ;;  %v6902_v21 = vpop.f32.mrb[179].mxu1 }
 0x551   : > { %v7146_v62 = vmax.f32 %v5860_v7, %v6902_v21 }
 0x552   : > { %v7247_v12 = vpack.c.bf16 %v7145_v45, %v7143_v54 }
 0x553   : > { %v7248_v4 = vpack.c.bf16 %v7146_v62, %v7144_v40 }
 0x554   : > { %v5864_v49 = vpop.f32.mrb[180].mxu0 }
 0x555   : > { %v6906_v34 = vpop.f32.mrb[180].mxu1  ;;  %7752 = vmatprep.subr.bf16.mxu0 %v7248_v4  ;;  %8588 = vmatprep.subr.bf16.mxu1 %v7248_v4  ;;  %v5866_v38 = vpop.f32.mrb[181].mxu0  ;;  %v16884_v4 = vld [vmem:[%s22838_s5 + $0x20] ss:$16 sps:$4 sm:$0xff]  }
 0x556   : > { %v7147_v41 = vmax.f32 %v5864_v49, %v6906_v34  ;;  %v6908_v19 = vpop.f32.mrb[181].mxu1  ;;  %7753 = vmatpush1.bf16.msra.mxu0 %v7247_v12  ;;  %8589 = vmatpush1.bf16.msra.mxu1 %v7247_v12  ;;  %v5868_v43 = vpop.f32.mrb[182].mxu0  ;;  %v16887_v49 = vld [vmem:[%s22839_s6 + $0x20] ss:$16 sps:$4 sm:$0xff]  }
 0x557   : > { %v7148_v24 = vmax.f32 %v5866_v38, %v6908_v19  ;;  %v6910_v57 = vpop.f32.mrb[182].mxu1  ;;  %v5870_v16 = vpop.f32.mrb[183].mxu0  ;;  %v16892_v19 = vld [vmem:[%s22838_s5 + $0x44] ss:$16 sps:$4 sm:$0xff]  }
 0x558   : > { %v7149_v52 = vmax.f32 %v5868_v43, %v6910_v57  ;;  %v6912_v61 = vpop.f32.mrb[183].mxu1  ;;  %v16895_v43 = vld [vmem:[%s22839_s6 + $0x44] ss:$16 sps:$4 sm:$0xff]  }
 0x559   : > { %v7150_v59 = vmax.f32 %v5870_v16, %v6912_v61 }
 0x55a   : > { %v7249_v23 = vpack.c.bf16 %v7149_v52, %v7147_v41 }
 0x55b   : > { %v7250_v10 = vpack.c.bf16 %v7150_v59, %v7148_v24 }
 0x55c   : > { %v5874_v25 = vpop.f32.mrb[184].mxu0 }
 0x55d   : > { %v6916_v58 = vpop.f32.mrb[184].mxu1  ;;  %7754 = vmatprep.subr.bf16.mxu0 %v7250_v10  ;;  %8590 = vmatprep.subr.bf16.mxu1 %v7250_v10  ;;  %v5876_v35 = vpop.f32.mrb[185].mxu0 }
 0x55e   : > { %v7151_v32 = vmax.f32 %v5874_v25, %v6916_v58  ;;  %v6918_v55 = vpop.f32.mrb[185].mxu1  ;;  %7755 = vmatpush1.bf16.msra.mxu0 %v7249_v23  ;;  %8591 = vmatpush1.bf16.msra.mxu1 %v7249_v23  ;;  %v5878_v0 = vpop.f32.mrb[186].mxu0 }
 0x55f   : > { %v7152_v26 = vmax.f32 %v5876_v35, %v6918_v55  ;;  %v6920_v13 = vpop.f32.mrb[186].mxu1  ;;  %v5880_v48 = vpop.f32.mrb[187].mxu0  ;;  %v16893_v55 = vld [vmem:[%s22839_s6 + $0x40] ss:$16 sps:$4 sm:$0xff]  }
 0x560   : > { %v7153_v14 = vmax.f32 %v5878_v0, %v6920_v13  ;;  %v6922_v29 = vpop.f32.mrb[187].mxu1 }
 0x561   : > { %v7154_v31 = vmax.f32 %v5880_v48, %v6922_v29  ;;  %v16898_v48 = vld [vmem:[%s22838_s5 + $0x64] ss:$16 sps:$4 sm:$0xff]  }
 0x562   : > { %v7251_v6 = vpack.c.bf16 %v7153_v14, %v7151_v32  ;;  %v16890_v32 = vld [vmem:[%s22838_s5 + $0x40] ss:$16 sps:$4 sm:$0xff]   ;;  %v16901_v14 = vld [vmem:[%s22839_s6 + $0x64] ss:$16 sps:$4 sm:$0xff]  }
 0x563   : > { %v7252_v37 = vpack.c.bf16 %v7154_v31, %v7152_v26 }
 0x564   : > { %v5884_v18 = vpop.f32.mrb[188].mxu0 }
 0x565   : > { %v6926_v28 = vpop.f32.mrb[188].mxu1  ;;  %7756 = vmatprep.subr.bf16.mxu0 %v7252_v37  ;;  %8592 = vmatprep.subr.bf16.mxu1 %v7252_v37  ;;  %v5886_v50 = vpop.f32.mrb[189].mxu0 }
 0x566   : > { %v7155_v27 = vmax.f32 %v5884_v18, %v6926_v28  ;;  %v6928_v44 = vpop.f32.mrb[189].mxu1  ;;  %7757 = vmatpush1.bf16.msra.mxu0 %v7251_v6  ;;  %8593 = vmatpush1.bf16.msra.mxu1 %v7251_v6  ;;  %v5888_v47 = vpop.f32.mrb[190].mxu0 }
 0x567   : > { %v7156_v39 = vmax.f32 %v5886_v50, %v6928_v44  ;;  %v6930_v2 = vpop.f32.mrb[190].mxu1  ;;  %v5890_v15 = vpop.f32.mrb[191].mxu0 }
 0x568   : > { %v7157_v60 = vmax.f32 %v5888_v47, %v6930_v2  ;;  %v6932_v9 = vpop.f32.mrb[191].mxu1  ;;  %v16896_v2 = vld [vmem:[%s22838_s5 + $0x60] ss:$16 sps:$4 sm:$0xff]  }
 0x569   : > { %v7158_v53 = vmax.f32 %v5890_v15, %v6932_v9  ;;  %v16899_v15 = vld [vmem:[%s22839_s6 + $0x60] ss:$16 sps:$4 sm:$0xff]  }
 0x56a   : > { %v7253_v17 = vpack.c.bf16 %v7157_v60, %v7155_v27 }
 0x56b   : > { %v7254_v22 = vpack.c.bf16 %v7158_v53, %v7156_v39 }
 0x56c   : > { %v5894_v8 = vpop.f32.mrb[192].mxu0 }
 0x56d   : > { %v6936_v63 = vpop.f32.mrb[192].mxu1  ;;  %7758 = vmatprep.subr.bf16.mxu0 %v7254_v22  ;;  %8594 = vmatprep.subr.bf16.mxu1 %v7254_v22  ;;  %v5896_v1 = vpop.f32.mrb[193].mxu0  ;;  %v16907_v22 = vld [vmem:[%s22839_s6 + $0x84] ss:$16 sps:$4 sm:$0xff]  }
 0x56e   : > { %v7159_v36 = vmax.f32 %v5894_v8, %v6936_v63  ;;  %v6938_v42 = vpop.f32.mrb[193].mxu1  ;;  %7759 = vmatpush1.bf16.msra.mxu0 %v7253_v17  ;;  %8595 = vmatpush1.bf16.msra.mxu1 %v7253_v17  ;;  %v5898_v3 = vpop.f32.mrb[194].mxu0  ;;  %v16904_v17 = vld [vmem:[%s22838_s5 + $0x84] ss:$16 sps:$4 sm:$0xff]  }
 0x56f   : > { %v7160_v5 = vmax.f32 %v5896_v1, %v6938_v42  ;;  %v6940_v54 = vpop.f32.mrb[194].mxu1  ;;  %v5900_v11 = vpop.f32.mrb[195].mxu0 }
 0x570   : > { %v7161_v33 = vmax.f32 %v5898_v3, %v6940_v54  ;;  %v6942_v40 = vpop.f32.mrb[195].mxu1  ;;  %v16902_v54 = vld [vmem:[%s22838_s5 + $0x80] ss:$16 sps:$4 sm:$0xff]  }
 0x571   : > { %v7162_v51 = vmax.f32 %v5900_v11, %v6942_v40  ;;  %7761 = vmatmul.mubr.bf16.vlgmr.msra.gmra.mrb[0].mxu0 %v16878_v56  ;;  %8597 = vmatmul.mubr.bf16.vlgmr.msra.gmra.mrb[0].mxu1 %v16881_v20  ;;  %v16905_v11 = vld [vmem:[%s22839_s6 + $0x80] ss:$16 sps:$4 sm:$0xff]  }
 0x572   : > { %v7255_v7 = vpack.c.bf16 %v7161_v33, %v7159_v36  ;;  %7770 = vmatprep.mubr.bf16.mxu0 %v16886_v30  ;;  %8606 = vmatprep.mubr.bf16.mxu1 %v16889_v46 }
 0x573   : > { %v7256_v45 = vpack.c.bf16 %v7162_v51, %v7160_v5 }
 0x574   : > { %v5904_v21 = vpop.f32.mrb[196].mxu0 }
 0x575   : > { %v6946_v62 = vpop.f32.mrb[196].mxu1  ;;  %7929 = vmatprep.subr.bf16.mxu0 %v7256_v45  ;;  %8765 = vmatprep.subr.bf16.mxu1 %v7256_v45  ;;  %v5906_v12 = vpop.f32.mrb[197].mxu0  ;;  %v16913_v45 = vld [vmem:[%s22839_s6 + $0xa4] ss:$16 sps:$4 sm:$0xff]  }
 0x576   : > { %v7163_v34 = vmax.f32 %v5904_v21, %v6946_v62  ;;  %v6948_v38 = vpop.f32.mrb[197].mxu1  ;;  %7930 = vmatpush1.bf16.msra.mxu0 %v7255_v7  ;;  %8766 = vmatpush1.bf16.msra.mxu1 %v7255_v7  ;;  %v5908_v41 = vpop.f32.mrb[198].mxu0  ;;  %v16910_v7 = vld [vmem:[%s22838_s5 + $0xa4] ss:$16 sps:$4 sm:$0xff]  }
 0x577   : > { %v7164_v24 = vmax.f32 %v5906_v12, %v6948_v38  ;;  %v6950_v57 = vpop.f32.mrb[198].mxu1  ;;  %v5910_v16 = vpop.f32.mrb[199].mxu0 }
 0x578   : > { %v7165_v52 = vmax.f32 %v5908_v41, %v6950_v57  ;;  %v6952_v61 = vpop.f32.mrb[199].mxu1  ;;  %v16908_v57 = vld [vmem:[%s22838_s5 + $0xa0] ss:$16 sps:$4 sm:$0xff]  }
 0x579   : > { %v7166_v59 = vmax.f32 %v5910_v16, %v6952_v61  ;;  %7771 = vmatmul.mubr.bf16.gmra.mrb[4].mxu0 %v16884_v4  ;;  %8607 = vmatmul.mubr.bf16.gmra.mrb[4].mxu1 %v16887_v49  ;;  %v16911_v16 = vld [vmem:[%s22839_s6 + $0xa0] ss:$16 sps:$4 sm:$0xff]  }
 0x57a   : > { %v7257_v23 = vpack.c.bf16 %v7165_v52, %v7163_v34  ;;  %7780 = vmatprep.mubr.bf16.mxu0 %v16892_v19  ;;  %8616 = vmatprep.mubr.bf16.mxu1 %v16895_v43 }
 0x57b   : > { %v7258_v10 = vpack.c.bf16 %v7166_v59, %v7164_v24 }
 0x57c   : > { %v5914_v25 = vpop.f32.mrb[200].mxu0 }
 0x57d   : > { %v6956_v58 = vpop.f32.mrb[200].mxu1  ;;  %7931 = vmatprep.subr.bf16.mxu0 %v7258_v10  ;;  %8767 = vmatprep.subr.bf16.mxu1 %v7258_v10  ;;  %v5916_v35 = vpop.f32.mrb[201].mxu0  ;;  %v16919_v10 = vld [vmem:[%s22839_s6 + $0xc4] ss:$16 sps:$4 sm:$0xff]  }
 0x57e   : > { %v7167_v0 = vmax.f32 %v5914_v25, %v6956_v58  ;;  %v6958_v26 = vpop.f32.mrb[201].mxu1  ;;  %7932 = vmatpush1.bf16.msra.mxu0 %v7257_v23  ;;  %8768 = vmatpush1.bf16.msra.mxu1 %v7257_v23  ;;  %v5918_v13 = vpop.f32.mrb[202].mxu0  ;;  %v16916_v23 = vld [vmem:[%s22838_s5 + $0xc4] ss:$16 sps:$4 sm:$0xff]  }
 0x57f   : > { %v7168_v29 = vmax.f32 %v5916_v35, %v6958_v26  ;;  %v6960_v31 = vpop.f32.mrb[202].mxu1  ;;  %v5920_v6 = vpop.f32.mrb[203].mxu0 }
 0x580   : > { %v7169_v37 = vmax.f32 %v5918_v13, %v6960_v31  ;;  %v6962_v18 = vpop.f32.mrb[203].mxu1  ;;  %v16914_v31 = vld [vmem:[%s22838_s5 + $0xc0] ss:$16 sps:$4 sm:$0xff]  }
 0x581   : > { %v7170_v28 = vmax.f32 %v5920_v6, %v6962_v18  ;;  %7781 = vmatmul.mubr.bf16.gmra.mrb[8].mxu0 %v16890_v32  ;;  %8617 = vmatmul.mubr.bf16.gmra.mrb[8].mxu1 %v16893_v55  ;;  %v16917_v6 = vld [vmem:[%s22839_s6 + $0xc0] ss:$16 sps:$4 sm:$0xff]  }
 0x582   : > { %v7259_v50 = vpack.c.bf16 %v7169_v37, %v7167_v0  ;;  %7790 = vmatprep.mubr.bf16.mxu0 %v16898_v48  ;;  %8626 = vmatprep.mubr.bf16.mxu1 %v16901_v14 }
 0x583   : > { %v7260_v27 = vpack.c.bf16 %v7170_v28, %v7168_v29 }
 0x584   : > { %v5924_v44 = vpop.f32.mrb[204].mxu0 }
 0x585   : > { %v6966_v47 = vpop.f32.mrb[204].mxu1  ;;  %7933 = vmatprep.subr.bf16.mxu0 %v7260_v27  ;;  %8769 = vmatprep.subr.bf16.mxu1 %v7260_v27  ;;  %v5926_v39 = vpop.f32.mrb[205].mxu0  ;;  %v16925_v27 = vld [vmem:[%s22839_s6 + $0xe4] ss:$16 sps:$4 sm:$0xff]  }
 0x586   : > { %v7171_v60 = vmax.f32 %v5924_v44, %v6966_v47  ;;  %v6968_v9 = vpop.f32.mrb[205].mxu1  ;;  %7934 = vmatpush1.bf16.msra.mxu0 %v7259_v50  ;;  %8770 = vmatpush1.bf16.msra.mxu1 %v7259_v50  ;;  %v5928_v53 = vpop.f32.mrb[206].mxu0  ;;  %v16922_v50 = vld [vmem:[%s22838_s5 + $0xe4] ss:$16 sps:$4 sm:$0xff]  }
 0x587   : > { %v7172_v8 = vmax.f32 %v5926_v39, %v6968_v9  ;;  %v6970_v63 = vpop.f32.mrb[206].mxu1  ;;  %v5930_v1 = vpop.f32.mrb[207].mxu0 }
 0x588   : > { %v7173_v56 = vmax.f32 %v5928_v53, %v6970_v63  ;;  %v6972_v20 = vpop.f32.mrb[207].mxu1  ;;  %v16920_v63 = vld [vmem:[%s22838_s5 + $0xe0] ss:$16 sps:$4 sm:$0xff]  }
 0x589   : > { %v7174_v36 = vmax.f32 %v5930_v1, %v6972_v20  ;;  %7791 = vmatmul.mubr.bf16.gmra.mrb[12].mxu0 %v16896_v2  ;;  %8627 = vmatmul.mubr.bf16.gmra.mrb[12].mxu1 %v16899_v15  ;;  %v16923_v1 = vld [vmem:[%s22839_s6 + $0xe0] ss:$16 sps:$4 sm:$0xff]  }
 0x58a   : > { %v7261_v42 = vpack.c.bf16 %v7173_v56, %v7171_v60  ;;  %7800 = vmatprep.mubr.bf16.mxu0 %v16904_v17  ;;  %8636 = vmatprep.mubr.bf16.mxu1 %v16907_v22 }
 0x58b   : > { %v7262_v3 = vpack.c.bf16 %v7174_v36, %v7172_v8 }
 0x58c   : > { %v5934_v30 = vpop.f32.mrb[208].mxu0 }
 0x58d   : > { %v6976_v46 = vpop.f32.mrb[208].mxu1  ;;  %7935 = vmatprep.subr.bf16.mxu0 %v7262_v3  ;;  %8771 = vmatprep.subr.bf16.mxu1 %v7262_v3  ;;  %v5936_v5 = vpop.f32.mrb[209].mxu0  ;;  %v16931_v3 = vld [vmem:[%s22839_s6 + $0x104] ss:$16 sps:$4 sm:$0xff]  }
 0x58e   : > { %v7175_v33 = vmax.f32 %v5934_v30, %v6976_v46  ;;  %v6978_v40 = vpop.f32.mrb[209].mxu1  ;;  %7936 = vmatpush1.bf16.msra.mxu0 %v7261_v42  ;;  %8772 = vmatpush1.bf16.msra.mxu1 %v7261_v42  ;;  %v5938_v51 = vpop.f32.mrb[210].mxu0  ;;  %v16928_v42 = vld [vmem:[%s22838_s5 + $0x104] ss:$16 sps:$4 sm:$0xff]  }
 0x58f   : > { %v7176_v21 = vmax.f32 %v5936_v5, %v6978_v40  ;;  %v6980_v62 = vpop.f32.mrb[210].mxu1  ;;  %v5940_v12 = vpop.f32.mrb[211].mxu0 }
 0x590   : > { %v7177_v4 = vmax.f32 %v5938_v51, %v6980_v62  ;;  %v6982_v49 = vpop.f32.mrb[211].mxu1  ;;  %v16926_v62 = vld [vmem:[%s22838_s5 + $0x100] ss:$16 sps:$4 sm:$0xff]  }
 0x591   : > { %v7178_v34 = vmax.f32 %v5940_v12, %v6982_v49  ;;  %7801 = vmatmul.mubr.bf16.gmra.mrb[16].mxu0 %v16902_v54  ;;  %8637 = vmatmul.mubr.bf16.gmra.mrb[16].mxu1 %v16905_v11  ;;  %v16929_v12 = vld [vmem:[%s22839_s6 + $0x100] ss:$16 sps:$4 sm:$0xff]  }
 0x592   : > { %v7263_v38 = vpack.c.bf16 %v7177_v4, %v7175_v33  ;;  %7810 = vmatprep.mubr.bf16.mxu0 %v16910_v7  ;;  %8646 = vmatprep.mubr.bf16.mxu1 %v16913_v45 }
 0x593   : > { %v7264_v41 = vpack.c.bf16 %v7178_v34, %v7176_v21 }
 0x594   : > { %v5944_v19 = vpop.f32.mrb[212].mxu0 }
 0x595   : > { %v6986_v43 = vpop.f32.mrb[212].mxu1  ;;  %7937 = vmatprep.subr.bf16.mxu0 %v7264_v41  ;;  %8773 = vmatprep.subr.bf16.mxu1 %v7264_v41  ;;  %v5946_v24 = vpop.f32.mrb[213].mxu0  ;;  %v16937_v41 = vld [vmem:[%s22839_s6 + $0x124] ss:$16 sps:$4 sm:$0xff]  }
 0x596   : > { %v7179_v52 = vmax.f32 %v5944_v19, %v6986_v43  ;;  %v6988_v61 = vpop.f32.mrb[213].mxu1  ;;  %7938 = vmatpush1.bf16.msra.mxu0 %v7263_v38  ;;  %8774 = vmatpush1.bf16.msra.mxu1 %v7263_v38  ;;  %v5948_v59 = vpop.f32.mrb[214].mxu0  ;;  %v16934_v38 = vld [vmem:[%s22838_s5 + $0x124] ss:$16 sps:$4 sm:$0xff]  }
 0x597   : > { %v7180_v25 = vmax.f32 %v5946_v24, %v6988_v61  ;;  %v6990_v58 = vpop.f32.mrb[214].mxu1  ;;  %v5950_v35 = vpop.f32.mrb[215].mxu0 }
 0x598   : > { %v7181_v32 = vmax.f32 %v5948_v59, %v6990_v58  ;;  %v6992_v55 = vpop.f32.mrb[215].mxu1  ;;  %v16932_v58 = vld [vmem:[%s22838_s5 + $0x120] ss:$16 sps:$4 sm:$0xff]  }
 0x599   : > { %v7182_v0 = vmax.f32 %v5950_v35, %v6992_v55  ;;  %7811 = vmatmul.mubr.bf16.gmra.mrb[20].mxu0 %v16908_v57  ;;  %8647 = vmatmul.mubr.bf16.gmra.mrb[20].mxu1 %v16911_v16  ;;  %v16935_v35 = vld [vmem:[%s22839_s6 + $0x120] ss:$16 sps:$4 sm:$0xff]  }
 0x59a   : > { %v7265_v26 = vpack.c.bf16 %v7181_v32, %v7179_v52  ;;  %7820 = vmatprep.mubr.bf16.mxu0 %v16916_v23  ;;  %8656 = vmatprep.mubr.bf16.mxu1 %v16919_v10 }
 0x59b   : > { %v7266_v13 = vpack.c.bf16 %v7182_v0, %v7180_v25 }
 0x59c   : > { %v5954_v48 = vpop.f32.mrb[216].mxu0 }
 0x59d   : > { %v6996_v14 = vpop.f32.mrb[216].mxu1  ;;  %7939 = vmatprep.subr.bf16.mxu0 %v7266_v13  ;;  %8775 = vmatprep.subr.bf16.mxu1 %v7266_v13  ;;  %v5956_v29 = vpop.f32.mrb[217].mxu0  ;;  %v16943_v13 = vld [vmem:[%s22839_s6 + $0x144] ss:$16 sps:$4 sm:$0xff]  }
 0x59e   : > { %v7183_v37 = vmax.f32 %v5954_v48, %v6996_v14  ;;  %v6998_v18 = vpop.f32.mrb[217].mxu1  ;;  %7940 = vmatpush1.bf16.msra.mxu0 %v7265_v26  ;;  %8776 = vmatpush1.bf16.msra.mxu1 %v7265_v26  ;;  %v5958_v28 = vpop.f32.mrb[218].mxu0  ;;  %v16940_v26 = vld [vmem:[%s22838_s5 + $0x144] ss:$16 sps:$4 sm:$0xff]  }
 0x59f   : > { %v7184_v44 = vmax.f32 %v5956_v29, %v6998_v18  ;;  %v7000_v47 = vpop.f32.mrb[218].mxu1  ;;  %v5960_v39 = vpop.f32.mrb[219].mxu0 }
 0x5a0   : > { %v7185_v2 = vmax.f32 %v5958_v28, %v7000_v47  ;;  %v7002_v15 = vpop.f32.mrb[219].mxu1  ;;  %v16938_v47 = vld [vmem:[%s22838_s5 + $0x140] ss:$16 sps:$4 sm:$0xff]  }
 0x5a1   : > { %v7186_v60 = vmax.f32 %v5960_v39, %v7002_v15  ;;  %7821 = vmatmul.mubr.bf16.gmra.mrb[24].mxu0 %v16914_v31  ;;  %8657 = vmatmul.mubr.bf16.gmra.mrb[24].mxu1 %v16917_v6  ;;  %v16941_v39 = vld [vmem:[%s22839_s6 + $0x140] ss:$16 sps:$4 sm:$0xff]  }
 0x5a2   : > { %v7267_v9 = vpack.c.bf16 %v7185_v2, %v7183_v37  ;;  %7830 = vmatprep.mubr.bf16.mxu0 %v16922_v50  ;;  %8666 = vmatprep.mubr.bf16.mxu1 %v16925_v27 }
 0x5a3   : > { %v7268_v53 = vpack.c.bf16 %v7186_v60, %v7184_v44 }
 0x5a4   : > { %v5964_v17 = vpop.f32.mrb[220].mxu0 }
 0x5a5   : > { %v7006_v22 = vpop.f32.mrb[220].mxu1  ;;  %7941 = vmatprep.subr.bf16.mxu0 %v7268_v53  ;;  %8777 = vmatprep.subr.bf16.mxu1 %v7268_v53  ;;  %v5966_v8 = vpop.f32.mrb[221].mxu0  ;;  %v16949_v53 = vld [vmem:[%s22839_s6 + $0x164] ss:$16 sps:$4 sm:$0xff]  }
 0x5a6   : > { %v7187_v56 = vmax.f32 %v5964_v17, %v7006_v22  ;;  %v7008_v20 = vpop.f32.mrb[221].mxu1  ;;  %7942 = vmatpush1.bf16.msra.mxu0 %v7267_v9  ;;  %8778 = vmatpush1.bf16.msra.mxu1 %v7267_v9  ;;  %v5968_v36 = vpop.f32.mrb[222].mxu0  ;;  %v16946_v9 = vld [vmem:[%s22838_s5 + $0x164] ss:$16 sps:$4 sm:$0xff]  }
 0x5a7   : > { %v7188_v30 = vmax.f32 %v5966_v8, %v7008_v20  ;;  %v7010_v46 = vpop.f32.mrb[222].mxu1  ;;  %v5970_v5 = vpop.f32.mrb[223].mxu0 }
 0x5a8   : > { %v7189_v54 = vmax.f32 %v5968_v36, %v7010_v46  ;;  %v7012_v11 = vpop.f32.mrb[223].mxu1  ;;  %v16944_v46 = vld [vmem:[%s22838_s5 + $0x160] ss:$16 sps:$4 sm:$0xff]  }
 0x5a9   : > { %v7190_v33 = vmax.f32 %v5970_v5, %v7012_v11  ;;  %7831 = vmatmul.mubr.bf16.gmra.mrb[28].mxu0 %v16920_v63  ;;  %8667 = vmatmul.mubr.bf16.gmra.mrb[28].mxu1 %v16923_v1  ;;  %v16947_v5 = vld [vmem:[%s22839_s6 + $0x160] ss:$16 sps:$4 sm:$0xff]  }
 0x5aa   : > { %v7269_v40 = vpack.c.bf16 %v7189_v54, %v7187_v56  ;;  %7840 = vmatprep.mubr.bf16.mxu0 %v16928_v42  ;;  %8676 = vmatprep.mubr.bf16.mxu1 %v16931_v3 }
 0x5ab   : > { %v7270_v51 = vpack.c.bf16 %v7190_v33, %v7188_v30 }
 0x5ac   : > { %v5974_v7 = vpop.f32.mrb[224].mxu0 }
 0x5ad   : > { %v7016_v45 = vpop.f32.mrb[224].mxu1  ;;  %7943 = vmatprep.subr.bf16.mxu0 %v7270_v51  ;;  %8779 = vmatprep.subr.bf16.mxu1 %v7270_v51  ;;  %v5976_v21 = vpop.f32.mrb[225].mxu0  ;;  %v16955_v51 = vld [vmem:[%s22839_s6 + $0x184] ss:$16 sps:$4 sm:$0xff]  }
 0x5ae   : > { %v7191_v4 = vmax.f32 %v5974_v7, %v7016_v45  ;;  %v7018_v49 = vpop.f32.mrb[225].mxu1  ;;  %7944 = vmatpush1.bf16.msra.mxu0 %v7269_v40  ;;  %8780 = vmatpush1.bf16.msra.mxu1 %v7269_v40  ;;  %v5978_v34 = vpop.f32.mrb[226].mxu0  ;;  %v16952_v40 = vld [vmem:[%s22838_s5 + $0x184] ss:$16 sps:$4 sm:$0xff]  }
 0x5af   : > { %v7192_v19 = vmax.f32 %v5976_v21, %v7018_v49  ;;  %v7020_v43 = vpop.f32.mrb[226].mxu1  ;;  %v5980_v24 = vpop.f32.mrb[227].mxu0 }
 0x5b0   : > { %v7193_v57 = vmax.f32 %v5978_v34, %v7020_v43  ;;  %v7022_v16 = vpop.f32.mrb[227].mxu1  ;;  %v16950_v43 = vld [vmem:[%s22838_s5 + $0x180] ss:$16 sps:$4 sm:$0xff]  }
 0x5b1   : > { %v7194_v52 = vmax.f32 %v5980_v24, %v7022_v16  ;;  %7841 = vmatmul.mubr.bf16.gmra.mrb[32].mxu0 %v16926_v62  ;;  %8677 = vmatmul.mubr.bf16.gmra.mrb[32].mxu1 %v16929_v12  ;;  %v16953_v24 = vld [vmem:[%s22839_s6 + $0x180] ss:$16 sps:$4 sm:$0xff]  }
 0x5b2   : > { %v7271_v61 = vpack.c.bf16 %v7193_v57, %v7191_v4  ;;  %7850 = vmatprep.mubr.bf16.mxu0 %v16934_v38  ;;  %8686 = vmatprep.mubr.bf16.mxu1 %v16937_v41 }
 0x5b3   : > { %v7272_v59 = vpack.c.bf16 %v7194_v52, %v7192_v19 }
 0x5b4   : > { %v5984_v23 = vpop.f32.mrb[228].mxu0 }
 0x5b5   : > { %v7026_v10 = vpop.f32.mrb[228].mxu1  ;;  %7945 = vmatprep.subr.bf16.mxu0 %v7272_v59  ;;  %8781 = vmatprep.subr.bf16.mxu1 %v7272_v59  ;;  %v5986_v25 = vpop.f32.mrb[229].mxu0  ;;  %v16961_v59 = vld [vmem:[%s22839_s6 + $0x1a4] ss:$16 sps:$4 sm:$0xff]  }
 0x5b6   : > { %v7195_v32 = vmax.f32 %v5984_v23, %v7026_v10  ;;  %v7028_v55 = vpop.f32.mrb[229].mxu1  ;;  %7946 = vmatpush1.bf16.msra.mxu0 %v7271_v61  ;;  %8782 = vmatpush1.bf16.msra.mxu1 %v7271_v61  ;;  %v5988_v0 = vpop.f32.mrb[230].mxu0  ;;  %v16958_v61 = vld [vmem:[%s22838_s5 + $0x1a4] ss:$16 sps:$4 sm:$0xff]  }
 0x5b7   : > { %v7196_v48 = vmax.f32 %v5986_v25, %v7028_v55  ;;  %v7030_v14 = vpop.f32.mrb[230].mxu1  ;;  %v5990_v29 = vpop.f32.mrb[231].mxu0 }
 0x5b8   : > { %v7197_v31 = vmax.f32 %v5988_v0, %v7030_v14  ;;  %v7032_v6 = vpop.f32.mrb[231].mxu1  ;;  %v16956_v14 = vld [vmem:[%s22838_s5 + $0x1a0] ss:$16 sps:$4 sm:$0xff]  }
 0x5b9   : > { %v7198_v37 = vmax.f32 %v5990_v29, %v7032_v6  ;;  %7851 = vmatmul.mubr.bf16.gmra.mrb[36].mxu0 %v16932_v58  ;;  %8687 = vmatmul.mubr.bf16.gmra.mrb[36].mxu1 %v16935_v35  ;;  %v16959_v29 = vld [vmem:[%s22839_s6 + $0x1a0] ss:$16 sps:$4 sm:$0xff]  }
 0x5ba   : > { %v7273_v18 = vpack.c.bf16 %v7197_v31, %v7195_v32  ;;  %7860 = vmatprep.mubr.bf16.mxu0 %v16940_v26  ;;  %8696 = vmatprep.mubr.bf16.mxu1 %v16943_v13 }
 0x5bb   : > { %v7274_v28 = vpack.c.bf16 %v7198_v37, %v7196_v48 }
 0x5bc   : > { %v5994_v50 = vpop.f32.mrb[232].mxu0 }
 0x5bd   : > { %v7036_v27 = vpop.f32.mrb[232].mxu1  ;;  %7947 = vmatprep.subr.bf16.mxu0 %v7274_v28  ;;  %8783 = vmatprep.subr.bf16.mxu1 %v7274_v28  ;;  %v5996_v44 = vpop.f32.mrb[233].mxu0  ;;  %v16967_v28 = vld [vmem:[%s22839_s6 + $0x1c4] ss:$16 sps:$4 sm:$0xff]  }
 0x5be   : > { %v7199_v2 = vmax.f32 %v5994_v50, %v7036_v27  ;;  %v7038_v15 = vpop.f32.mrb[233].mxu1  ;;  %7948 = vmatpush1.bf16.msra.mxu0 %v7273_v18  ;;  %8784 = vmatpush1.bf16.msra.mxu1 %v7273_v18  ;;  %v5998_v60 = vpop.f32.mrb[234].mxu0  ;;  %v16964_v18 = vld [vmem:[%s22838_s5 + $0x1c4] ss:$16 sps:$4 sm:$0xff]  }
 0x5bf   : > { %v7200_v17 = vmax.f32 %v5996_v44, %v7038_v15  ;;  %v7040_v22 = vpop.f32.mrb[234].mxu1  ;;  %v6000_v8 = vpop.f32.mrb[235].mxu0 }
 0x5c0   : > { %v7201_v63 = vmax.f32 %v5998_v60, %v7040_v22  ;;  %v7042_v1 = vpop.f32.mrb[235].mxu1  ;;  %v16962_v22 = vld [vmem:[%s22838_s5 + $0x1c0] ss:$16 sps:$4 sm:$0xff]  }
 0x5c1   : > { %v7202_v56 = vmax.f32 %v6000_v8, %v7042_v1  ;;  %7861 = vmatmul.mubr.bf16.gmra.mrb[40].mxu0 %v16938_v47  ;;  %8697 = vmatmul.mubr.bf16.gmra.mrb[40].mxu1 %v16941_v39  ;;  %v16965_v8 = vld [vmem:[%s22839_s6 + $0x1c0] ss:$16 sps:$4 sm:$0xff]  }
 0x5c2   : > { %v7275_v20 = vpack.c.bf16 %v7201_v63, %v7199_v2  ;;  %7870 = vmatprep.mubr.bf16.mxu0 %v16946_v9  ;;  %8706 = vmatprep.mubr.bf16.mxu1 %v16949_v53 }
 0x5c3   : > { %v7276_v36 = vpack.c.bf16 %v7202_v56, %v7200_v17 }
 0x5c4   : > { %v6004_v42 = vpop.f32.mrb[236].mxu0 }
 0x5c5   : > { %v7046_v3 = vpop.f32.mrb[236].mxu1  ;;  %7949 = vmatprep.subr.bf16.mxu0 %v7276_v36  ;;  %8785 = vmatprep.subr.bf16.mxu1 %v7276_v36  ;;  %v6006_v30 = vpop.f32.mrb[237].mxu0  ;;  %v16973_v36 = vld [vmem:[%s22839_s6 + $0x1e4] ss:$16 sps:$4 sm:$0xff]  }
 0x5c6   : > { %v7203_v54 = vmax.f32 %v6004_v42, %v7046_v3  ;;  %v7048_v11 = vpop.f32.mrb[237].mxu1  ;;  %7950 = vmatpush1.bf16.msra.mxu0 %v7275_v20  ;;  %8786 = vmatpush1.bf16.msra.mxu1 %v7275_v20  ;;  %v6008_v33 = vpop.f32.mrb[238].mxu0  ;;  %v16970_v20 = vld [vmem:[%s22838_s5 + $0x1e4] ss:$16 sps:$4 sm:$0xff]  }
 0x5c7   : > { %v7204_v7 = vmax.f32 %v6006_v30, %v7048_v11  ;;  %v7050_v45 = vpop.f32.mrb[238].mxu1  ;;  %v6010_v21 = vpop.f32.mrb[239].mxu0 }
 0x5c8   : > { %v7205_v62 = vmax.f32 %v6008_v33, %v7050_v45  ;;  %v7052_v12 = vpop.f32.mrb[239].mxu1 }
 0x5c9   : > { %v7206_v4 = vmax.f32 %v6010_v21, %v7052_v12  ;;  %7871 = vmatmul.mubr.bf16.gmra.mrb[44].mxu0 %v16944_v46  ;;  %8707 = vmatmul.mubr.bf16.gmra.mrb[44].mxu1 %v16947_v5  ;;  %v16971_v12 = vld [vmem:[%s22839_s6 + $0x1e0] ss:$16 sps:$4 sm:$0xff]  }
 0x5ca   : > { %v7277_v49 = vpack.c.bf16 %v7205_v62, %v7203_v54  ;;  %7880 = vmatprep.mubr.bf16.mxu0 %v16952_v40  ;;  %8716 = vmatprep.mubr.bf16.mxu1 %v16955_v51  ;;  %v7351_v40 = vld [vmem:[%s22838_s5 + $0x200] sm:$0x11] }
 0x5cb   : > { %v7278_v34 = vpack.c.bf16 %v7206_v4, %v7204_v7  ;;  %v8194_v51 = vld [vmem:[%s22839_s6 + $0x200] sm:$0x11] }
 0x5cc   : > { %v6014_v38 = vpop.f32.mrb[240].mxu0  ;;  %v16968_v62 = vld [vmem:[%s22838_s5 + $0x1e0] ss:$16 sps:$4 sm:$0xff]  }
 0x5cd   : > { %v7056_v41 = vpop.f32.mrb[240].mxu1  ;;  %7951 = vmatprep.subr.bf16.mxu0 %v7278_v34  ;;  %8787 = vmatprep.subr.bf16.mxu1 %v7278_v34  ;;  %v6016_v19 = vpop.f32.mrb[241].mxu0 }
 0x5ce   : > { %v7207_v57 = vmax.f32 %v6014_v38, %v7056_v41  ;;  %v7058_v16 = vpop.f32.mrb[241].mxu1  ;;  %7952 = vmatpush1.bf16.msra.mxu0 %v7277_v49  ;;  %8788 = vmatpush1.bf16.msra.mxu1 %v7277_v49  ;;  %v6018_v52 = vpop.f32.mrb[242].mxu0  ;;  %v14840_v38 = vcombine.high %v7351_v40, %v7351_v40  ;;  %v14926_v41 = vcombine.high %v8194_v51, %v8194_v51 }
 0x5cf   : > { %v7208_v23 = vmax.f32 %v6016_v19, %v7058_v16  ;;  %v7060_v10 = vpop.f32.mrb[242].mxu1  ;;  %v6020_v25 = vpop.f32.mrb[243].mxu0 }
 0x5d0   : > { %v7209_v58 = vmax.f32 %v6018_v52, %v7060_v10  ;;  %v7062_v35 = vpop.f32.mrb[243].mxu1  ;;  %v14839_v10 = vcombine.low %v7351_v40, %v7351_v40  ;;  %v17111_v40 = vld [vmem:[%s22840_s7 + $0x2a8] ss:$16 sps:$4 sm:$0xff]  }
 0x5d1   : > { %v7210_v32 = vmax.f32 %v6020_v25, %v7062_v35  ;;  %7881 = vmatmul.mubr.bf16.gmra.mrb[48].mxu0 %v16950_v43  ;;  %8717 = vmatmul.mubr.bf16.gmra.mrb[48].mxu1 %v16953_v24  ;;  %v14925_v25 = vcombine.low %v8194_v51, %v8194_v51  ;;  %v16983_v35 = vld [vmem:[%s22839_s6 + $0xc] ss:$16 sps:$4 sm:$0xff]   ;;  %v17116_v51 = vld [vmem:[%s22840_s7 + $0x2c4] ss:$16 sps:$4 sm:$0xff]  }
 0x5d2   : > { %v7279_v55 = vpack.c.bf16 %v7209_v58, %v7207_v57  ;;  %7890 = vmatprep.mubr.bf16.mxu0 %v16958_v61  ;;  %8726 = vmatprep.mubr.bf16.mxu1 %v16961_v59  ;;  %v16980_v58 = vld [vmem:[%s22838_s5 + $0xc] ss:$16 sps:$4 sm:$0xff]  }
 0x5d3   : > { %v7280_v0 = vpack.c.bf16 %v7210_v32, %v7208_v23  ;;  %v16978_v32 = vld [vmem:[%s22838_s5 + $0x8] ss:$16 sps:$4 sm:$0xff]  }
 0x5d4   : > { %v6024_v26 = vpop.f32.mrb[244].mxu0 }
 0x5d5   : > { %v7066_v13 = vpop.f32.mrb[244].mxu1  ;;  %7953 = vmatprep.subr.bf16.mxu0 %v7280_v0  ;;  %8789 = vmatprep.subr.bf16.mxu1 %v7280_v0  ;;  %v6026_v48 = vpop.f32.mrb[245].mxu0  ;;  %v16986_v0 = vld [vmem:[%s22838_s5 + $0x2c] ss:$16 sps:$4 sm:$0xff]  }
 0x5d6   : > { %v7211_v31 = vmax.f32 %v6024_v26, %v7066_v13  ;;  %v7068_v6 = vpop.f32.mrb[245].mxu1  ;;  %7954 = vmatpush1.bf16.msra.mxu0 %v7279_v55  ;;  %8790 = vmatpush1.bf16.msra.mxu1 %v7279_v55  ;;  %v6028_v37 = vpop.f32.mrb[246].mxu0  ;;  %v16981_v55 = vld [vmem:[%s22839_s6 + $0x8] ss:$16 sps:$4 sm:$0xff]   ;;  %v16989_v26 = vld [vmem:[%s22839_s6 + $0x2c] ss:$16 sps:$4 sm:$0xff]  }
 0x5d7   : > { %v7212_v50 = vmax.f32 %v6026_v48, %v7068_v6  ;;  %v7070_v27 = vpop.f32.mrb[246].mxu1  ;;  %v6030_v44 = vpop.f32.mrb[247].mxu0  ;;  %v17078_v13 = vld [vmem:[%s22840_s7 + $0x200] ss:$16 sps:$4 sm:$0xff]   ;;  %v17080_v48 = vld [vmem:[%s22840_s7 + $0x204] ss:$16 sps:$4 sm:$0xff]  }
 0x5d8   : > { %v7213_v47 = vmax.f32 %v6028_v37, %v7070_v27  ;;  %v7072_v39 = vpop.f32.mrb[247].mxu1  ;;  %v17089_v6 = vld [vmem:[%s22840_s7 + $0x22c] ss:$16 sps:$4 sm:$0xff]   ;;  %v17084_v37 = vld [vmem:[%s22840_s7 + $0x220] ss:$16 sps:$4 sm:$0xff]  }
 0x5d9   : > { %v7214_v2 = vmax.f32 %v6030_v44, %v7072_v39  ;;  %7891 = vmatmul.mubr.bf16.gmra.mrb[52].mxu0 %v16956_v14  ;;  %8727 = vmatmul.mubr.bf16.gmra.mrb[52].mxu1 %v16959_v29  ;;  %v17081_v14 = vld [vmem:[%s22840_s7 + $0x208] ss:$16 sps:$4 sm:$0xff]   ;;  %v17083_v29 = vld [vmem:[%s22840_s7 + $0x20c] ss:$16 sps:$4 sm:$0xff]   ;;  %v17090_v39 = vld [vmem:[%s22840_s7 + $0x240] ss:$16 sps:$4 sm:$0xff]  }
 0x5da   : > { %v7281_v15 = vpack.c.bf16 %v7213_v47, %v7211_v31  ;;  %7900 = vmatprep.mubr.bf16.mxu0 %v16964_v18  ;;  %8736 = vmatprep.mubr.bf16.mxu1 %v16967_v28  ;;  %v17086_v31 = vld [vmem:[%s22840_s7 + $0x224] ss:$16 sps:$4 sm:$0xff]   ;;  %v16984_v18 = vld [vmem:[%s22838_s5 + $0x28] ss:$16 sps:$4 sm:$0xff]   ;;  %v16995_v27 = vld [vmem:[%s22839_s6 + $0x4c] ss:$16 sps:$4 sm:$0xff]  }
 0x5db   : > { %v7282_v60 = vpack.c.bf16 %v7214_v2, %v7212_v50  ;;  %v16987_v28 = vld [vmem:[%s22839_s6 + $0x28] ss:$16 sps:$4 sm:$0xff]   ;;  %v16992_v50 = vld [vmem:[%s22838_s5 + $0x4c] ss:$16 sps:$4 sm:$0xff]   ;;  %v17092_v47 = vld [vmem:[%s22840_s7 + $0x244] ss:$16 sps:$4 sm:$0xff]  }
 0x5dc   : > { %v6034_v9 = vpop.f32.mrb[248].mxu0  ;;  %v17087_v44 = vld [vmem:[%s22840_s7 + $0x228] ss:$16 sps:$4 sm:$0xff]   ;;  %v17095_v2 = vld [vmem:[%s22840_s7 + $0x24c] ss:$16 sps:$4 sm:$0xff]  }
 0x5dd   : > { %v7076_v53 = vpop.f32.mrb[248].mxu1  ;;  %7955 = vmatprep.subr.bf16.mxu0 %v7282_v60  ;;  %8791 = vmatprep.subr.bf16.mxu1 %v7282_v60  ;;  %v6036_v17 = vpop.f32.mrb[249].mxu0  ;;  %v17093_v60 = vld [vmem:[%s22840_s7 + $0x248] ss:$16 sps:$4 sm:$0xff]  }
 0x5de   : > { %v7215_v63 = vmax.f32 %v6034_v9, %v7076_v53  ;;  %v7078_v1 = vpop.f32.mrb[249].mxu1  ;;  %7956 = vmatpush1.bf16.msra.mxu0 %v7281_v15  ;;  %8792 = vmatpush1.bf16.msra.mxu1 %v7281_v15  ;;  %v6038_v56 = vpop.f32.mrb[250].mxu0  ;;  %v17098_v15 = vld [vmem:[%s22840_s7 + $0x264] ss:$16 sps:$4 sm:$0xff]   ;;  %v17096_v9 = vld [vmem:[%s22840_s7 + $0x260] ss:$16 sps:$4 sm:$0xff]  }
 0x5df   : > { %v7216_v42 = vmax.f32 %v6036_v17, %v7078_v1  ;;  %v7080_v3 = vpop.f32.mrb[250].mxu1  ;;  %v6040_v30 = vpop.f32.mrb[251].mxu0  ;;  %v17101_v53 = vld [vmem:[%s22840_s7 + $0x26c] ss:$16 sps:$4 sm:$0xff]   ;;  %v16990_v17 = vld [vmem:[%s22838_s5 + $0x48] ss:$16 sps:$4 sm:$0xff]  }
 0x5e0   : > { %v7217_v46 = vmax.f32 %v6038_v56, %v7080_v3  ;;  %v7082_v5 = vpop.f32.mrb[251].mxu1  ;;  %v17099_v1 = vld [vmem:[%s22840_s7 + $0x268] ss:$16 sps:$4 sm:$0xff]   ;;  %v17104_v56 = vld [vmem:[%s22840_s7 + $0x284] ss:$16 sps:$4 sm:$0xff]  }
 0x5e1   : > { %v7218_v54 = vmax.f32 %v6040_v30, %v7082_v5  ;;  %7901 = vmatmul.mubr.bf16.gmra.mrb[56].mxu0 %v16962_v22  ;;  %8737 = vmatmul.mubr.bf16.gmra.mrb[56].mxu1 %v16965_v8  ;;  %v16993_v22 = vld [vmem:[%s22839_s6 + $0x48] ss:$16 sps:$4 sm:$0xff]   ;;  %v16998_v8 = vld [vmem:[%s22838_s5 + $0x6c] ss:$16 sps:$4 sm:$0xff]   ;;  %v17108_v30 = vld [vmem:[%s22840_s7 + $0x2a0] ss:$16 sps:$4 sm:$0xff]  }
 0x5e2   : > { %v7283_v11 = vpack.c.bf16 %v7217_v46, %v7215_v63  ;;  %7910 = vmatprep.mubr.bf16.mxu0 %v16970_v20  ;;  %8746 = vmatprep.mubr.bf16.mxu1 %v16973_v36  ;;  %v17001_v63 = vld [vmem:[%s22839_s6 + $0x6c] ss:$16 sps:$4 sm:$0xff]   ;;  %v17102_v20 = vld [vmem:[%s22840_s7 + $0x280] ss:$16 sps:$4 sm:$0xff]   ;;  %v17105_v3 = vld [vmem:[%s22840_s7 + $0x288] ss:$16 sps:$4 sm:$0xff]  }
 0x5e3   : > { %v7284_v33 = vpack.c.bf16 %v7218_v54, %v7216_v42  ;;  %v17107_v36 = vld [vmem:[%s22840_s7 + $0x28c] ss:$16 sps:$4 sm:$0xff]   ;;  %v17110_v42 = vld [vmem:[%s22840_s7 + $0x2a4] ss:$16 sps:$4 sm:$0xff]   ;;  %v16996_v5 = vld [vmem:[%s22838_s5 + $0x68] ss:$16 sps:$4 sm:$0xff]  }
 0x5e4   : > { %v6044_v7 = vpop.f32.mrb[252].mxu0  ;;  %v17113_v46 = vld [vmem:[%s22840_s7 + $0x2ac] ss:$16 sps:$4 sm:$0xff]   ;;  %v16999_v54 = vld [vmem:[%s22839_s6 + $0x68] ss:$16 sps:$4 sm:$0xff]  }
 0x5e5   : > { %v7086_v45 = vpop.f32.mrb[252].mxu1  ;;  %7957 = vmatprep.subr.bf16.mxu0 %v7284_v33  ;;  %8793 = vmatprep.subr.bf16.mxu1 %v7284_v33  ;;  %v6046_v21 = vpop.f32.mrb[253].mxu0  ;;  %v17007_v33 = vld [vmem:[%s22839_s6 + $0x8c] ss:$16 sps:$4 sm:$0xff]  }
 0x5e6   : > { %v7219_v4 = vmax.f32 %v6044_v7, %v7086_v45  ;;  %v7088_v49 = vpop.f32.mrb[253].mxu1  ;;  %7958 = vmatpush1.bf16.msra.mxu0 %v7283_v11  ;;  %8794 = vmatpush1.bf16.msra.mxu1 %v7283_v11  ;;  %v6048_v34 = vpop.f32.mrb[254].mxu0  ;;  %v17004_v11 = vld [vmem:[%s22838_s5 + $0x8c] ss:$16 sps:$4 sm:$0xff]   ;;  %v17114_v7 = vld [vmem:[%s22840_s7 + $0x2c0] ss:$16 sps:$4 sm:$0xff]  }
 0x5e7   : > { %v7220_v19 = vmax.f32 %v6046_v21, %v7088_v49  ;;  %v7090_v43 = vpop.f32.mrb[254].mxu1  ;;  %v6050_v24 = vpop.f32.mrb[255].mxu0  ;;  %v17119_v45 = vld [vmem:[%s22840_s7 + $0x2cc] ss:$16 sps:$4 sm:$0xff]   ;;  %v17122_v21 = vld [vmem:[%s22840_s7 + $0x2e4] ss:$16 sps:$4 sm:$0xff]  }
 0x5e8   : > { %v7221_v57 = vmax.f32 %v6048_v34, %v7090_v43  ;;  %v7092_v16 = vpop.f32.mrb[255].mxu1  ;;  %v17002_v49 = vld [vmem:[%s22838_s5 + $0x88] ss:$16 sps:$4 sm:$0xff]   ;;  %v17128_v43 = vld [vmem:[%s22840_s7 + $0x304] ss:$16 sps:$4 sm:$0xff]  }
 0x5e9   : > { %v7222_v52 = vmax.f32 %v6050_v24, %v7092_v16  ;;  %7911 = vmatmul.mubr.bf16.gmra.mrb[60].mxu0 %v16968_v62  ;;  %8747 = vmatmul.mubr.bf16.gmra.mrb[60].mxu1 %v16971_v12  ;;  %v17117_v62 = vld [vmem:[%s22840_s7 + $0x2c8] ss:$16 sps:$4 sm:$0xff]   ;;  %v17120_v12 = vld [vmem:[%s22840_s7 + $0x2e0] ss:$16 sps:$4 sm:$0xff]   ;;  %v17134_v16 = vld [vmem:[%s22840_s7 + $0x324] ss:$16 sps:$4 sm:$0xff]  }
 0x5ea   : > { %v7285_v61 = vpack.c.bf16 %v7221_v57, %v7219_v4  ;;  %7920 = vmatprep.mubr.bf16.mxu0 %v14840_v38  ;;  %8756 = vmatprep.mubr.bf16.mxu1 %v14926_v41  ;;  %v17125_v4 = vld [vmem:[%s22840_s7 + $0x2ec] ss:$16 sps:$4 sm:$0xff]   ;;  %v17005_v34 = vld [vmem:[%s22839_s6 + $0x88] ss:$16 sps:$4 sm:$0xff]   ;;  %v17126_v24 = vld [vmem:[%s22840_s7 + $0x300] ss:$16 sps:$4 sm:$0xff]  }
 0x5eb   : > { %v7286_v59 = vpack.c.bf16 %v7222_v52, %v7220_v19  ;;  %v17010_v38 = vld [vmem:[%s22838_s5 + $0xac] ss:$16 sps:$4 sm:$0xff]   ;;  %v17123_v19 = vld [vmem:[%s22840_s7 + $0x2e8] ss:$16 sps:$4 sm:$0xff]  }
 0x5ec   : > { %v7723_v23 = vsel %vm608_vm3, %v7285_v61, 0  ;;  %v17013_v41 = vld [vmem:[%s22839_s6 + $0xac] ss:$16 sps:$4 sm:$0xff]   ;;  %v17129_v52 = vld [vmem:[%s22840_s7 + $0x308] ss:$16 sps:$4 sm:$0xff]  }
 0x5ed   : > { %14843 = vmatprep.subr.msk.bf16.mxu0 %vm608_vm3, %v7286_v59  ;;  %14929 = vmatprep.subr.msk.bf16.mxu1 %vm608_vm3, %v7286_v59  ;;  %v17131_v57 = vld [vmem:[%s22840_s7 + $0x30c] ss:$16 sps:$4 sm:$0xff]   ;;  %v17132_v61 = vld [vmem:[%s22840_s7 + $0x320] ss:$16 sps:$4 sm:$0xff]  }
 0x5ee   : > { %7960 = vmatpush1.bf16.msra.mxu0 %v7723_v23  ;;  %8796 = vmatpush1.bf16.msra.mxu1 %v7723_v23  ;;  %v17137_v59 = vld [vmem:[%s22840_s7 + $0x32c] ss:$16 sps:$4 sm:$0xff]   ;;  %v17008_v23 = vld [vmem:[%s22838_s5 + $0xa8] ss:$16 sps:$4 sm:$0xff]  }
 0x5ef   : > { %9812 = vmatprep.subr.bf16.mxu0 %v17080_v48  ;;  %10005 = vmatprep.subr.bf16.mxu1 %v17083_v29  ;;  %v17017_v48 = vld [vmem:[%s22839_s6 + $0xc8] ss:$16 sps:$4 sm:$0xff]   ;;  %v17025_v29 = vld [vmem:[%s22839_s6 + $0xec] ss:$16 sps:$4 sm:$0xff]  }
 0x5f1   : > { %7921 = vmatmul.mubr.bf16.gmra.mrb[64].mxu0 %v14839_v10  ;;  %8757 = vmatmul.mubr.bf16.gmra.mrb[64].mxu1 %v14925_v25  ;;  %v17011_v10 = vld [vmem:[%s22839_s6 + $0xa8] ss:$16 sps:$4 sm:$0xff]   ;;  %v17016_v25 = vld [vmem:[%s22838_s5 + $0xcc] ss:$16 sps:$4 sm:$0xff]  }
 0x5f2   : > { %14844 = vmatprep.mubr.msk.bf16.mxu0 %vm7670_vm6, %v16980_v58  ;;  %14930 = vmatprep.mubr.msk.bf16.mxu1 %vm7670_vm6, %v16983_v35  ;;  %v17019_v58 = vld [vmem:[%s22839_s6 + $0xcc] ss:$16 sps:$4 sm:$0xff]   ;;  %v17135_v35 = vld [vmem:[%s22840_s7 + $0x328] ss:$16 sps:$4 sm:$0xff]  }
 0x5f9   : > { %7962 = vmatmul.mubr.bf16.vlgmr.msra.gmra.mrb[0].mxu0 %v16978_v32  ;;  %8798 = vmatmul.mubr.bf16.vlgmr.msra.gmra.mrb[0].mxu1 %v16981_v55  ;;  %v17140_v32 = vld [vmem:[%s22840_s7 + $0x344] ss:$16 sps:$4 sm:$0xff]   ;;  %v17138_v55 = vld [vmem:[%s22840_s7 + $0x340] ss:$16 sps:$4 sm:$0xff]  }
 0x5fa   : > { %14845 = vmatprep.mubr.msk.bf16.mxu0 %vm7670_vm6, %v16986_v0  ;;  %14931 = vmatprep.mubr.msk.bf16.mxu1 %vm7670_vm6, %v16989_v26  ;;  %v17143_v0 = vld [vmem:[%s22840_s7 + $0x34c] ss:$16 sps:$4 sm:$0xff]   ;;  %v17141_v26 = vld [vmem:[%s22840_s7 + $0x348] ss:$16 sps:$4 sm:$0xff]  }
 0x5fb   : > { %9813 = vmatpush1.bf16.msra.mxu0 %v17078_v13  ;;  %10006 = vmatpush1.bf16.msra.mxu1 %v17081_v14  ;;  %v17014_v13 = vld [vmem:[%s22838_s5 + $0xc8] ss:$16 sps:$4 sm:$0xff]   ;;  %v17022_v14 = vld [vmem:[%s22838_s5 + $0xec] ss:$16 sps:$4 sm:$0xff]  }
 0x5fc   : > { %9814 = vmatprep.subr.bf16.mxu0 %v17086_v31  ;;  %10007 = vmatprep.subr.bf16.mxu1 %v17089_v6  ;;  %v17020_v31 = vld [vmem:[%s22838_s5 + $0xe8] ss:$16 sps:$4 sm:$0xff]  }
 0x5fd   : > { %v17023_v6 = vld [vmem:[%s22839_s6 + $0xe8] ss:$16 sps:$4 sm:$0xff]  }
 0x5ff   : > { %9815 = vmatpush1.bf16.msra.mxu0 %v17084_v37  ;;  %10008 = vmatpush1.bf16.msra.mxu1 %v17087_v44  ;;  %v17028_v37 = vld [vmem:[%s22838_s5 + $0x10c] ss:$16 sps:$4 sm:$0xff]  }
 0x600   : > { %9816 = vmatprep.subr.bf16.mxu0 %v17092_v47  ;;  %10009 = vmatprep.subr.bf16.mxu1 %v17095_v2  ;;  %v17037_v44 = vld [vmem:[%s22839_s6 + $0x12c] ss:$16 sps:$4 sm:$0xff]   ;;  %v17032_v47 = vld [vmem:[%s22838_s5 + $0x128] ss:$16 sps:$4 sm:$0xff]  }
 0x601   : > { %7972 = vmatmul.mubr.bf16.gmra.mrb[4].mxu0 %v16984_v18  ;;  %8808 = vmatmul.mubr.bf16.gmra.mrb[4].mxu1 %v16987_v28  ;;  %v17031_v18 = vld [vmem:[%s22839_s6 + $0x10c] ss:$16 sps:$4 sm:$0xff]   ;;  %v17026_v28 = vld [vmem:[%s22838_s5 + $0x108] ss:$16 sps:$4 sm:$0xff]  }
 0x602   : > { %14846 = vmatprep.mubr.msk.bf16.mxu0 %vm7670_vm6, %v16992_v50  ;;  %14932 = vmatprep.mubr.msk.bf16.mxu1 %vm7670_vm6, %v16995_v27  ;;  %v17029_v50 = vld [vmem:[%s22839_s6 + $0x108] ss:$16 sps:$4 sm:$0xff]   ;;  %v17034_v27 = vld [vmem:[%s22838_s5 + $0x12c] ss:$16 sps:$4 sm:$0xff]  }
 0x603   : > { %9817 = vmatpush1.bf16.msra.mxu0 %v17090_v39  ;;  %10010 = vmatpush1.bf16.msra.mxu1 %v17093_v60  ;;  %v17035_v39 = vld [vmem:[%s22839_s6 + $0x128] ss:$16 sps:$4 sm:$0xff]   ;;  %v17040_v2 = vld [vmem:[%s22838_s5 + $0x14c] ss:$16 sps:$4 sm:$0xff]  }
 0x604   : > { %9818 = vmatprep.subr.bf16.mxu0 %v17098_v15  ;;  %10011 = vmatprep.subr.bf16.mxu1 %v17101_v53  ;;  %v17043_v15 = vld [vmem:[%s22839_s6 + $0x14c] ss:$16 sps:$4 sm:$0xff]   ;;  %v17038_v60 = vld [vmem:[%s22838_s5 + $0x148] ss:$16 sps:$4 sm:$0xff]  }
 0x605   : > { %v17046_v53 = vld [vmem:[%s22838_s5 + $0x16c] ss:$16 sps:$4 sm:$0xff]  }
 0x607   : > { %9819 = vmatpush1.bf16.msra.mxu0 %v17096_v9  ;;  %10012 = vmatpush1.bf16.msra.mxu1 %v17099_v1  ;;  %v17041_v9 = vld [vmem:[%s22839_s6 + $0x148] ss:$16 sps:$4 sm:$0xff]   ;;  %v17055_v1 = vld [vmem:[%s22839_s6 + $0x18c] ss:$16 sps:$4 sm:$0xff]  }
 0x608   : > { %9820 = vmatprep.subr.bf16.mxu0 %v17104_v56  ;;  %10013 = vmatprep.subr.bf16.mxu1 %v17107_v36  ;;  %v17146_v56 = vld [vmem:[%s22840_s7 + $0x364] ss:$16 sps:$4 sm:$0xff]   ;;  %v17144_v36 = vld [vmem:[%s22840_s7 + $0x360] ss:$16 sps:$4 sm:$0xff]  }
 0x609   : > { %7982 = vmatmul.mubr.bf16.gmra.mrb[8].mxu0 %v16990_v17  ;;  %8818 = vmatmul.mubr.bf16.gmra.mrb[8].mxu1 %v16993_v22  ;;  %v17049_v17 = vld [vmem:[%s22839_s6 + $0x16c] ss:$16 sps:$4 sm:$0xff]   ;;  %v17044_v22 = vld [vmem:[%s22838_s5 + $0x168] ss:$16 sps:$4 sm:$0xff]  }
 0x60a   : > { %14847 = vmatprep.mubr.msk.bf16.mxu0 %vm7670_vm6, %v16998_v8  ;;  %14933 = vmatprep.mubr.msk.bf16.mxu1 %vm7670_vm6, %v17001_v63  ;;  %v17047_v8 = vld [vmem:[%s22839_s6 + $0x168] ss:$16 sps:$4 sm:$0xff]   ;;  %v17052_v63 = vld [vmem:[%s22838_s5 + $0x18c] ss:$16 sps:$4 sm:$0xff]  }
 0x60b   : > { %9821 = vmatpush1.bf16.msra.mxu0 %v17102_v20  ;;  %10014 = vmatpush1.bf16.msra.mxu1 %v17105_v3  ;;  %v17149_v20 = vld [vmem:[%s22840_s7 + $0x36c] ss:$16 sps:$4 sm:$0xff]   ;;  %v17152_v3 = vld [vmem:[%s22840_s7 + $0x384] ss:$16 sps:$4 sm:$0xff]  }
 0x60c   : > { %9822 = vmatprep.subr.bf16.mxu0 %v17110_v42  ;;  %10015 = vmatprep.subr.bf16.mxu1 %v17113_v46  ;;  %v17147_v42 = vld [vmem:[%s22840_s7 + $0x368] ss:$16 sps:$4 sm:$0xff]   ;;  %v17150_v46 = vld [vmem:[%s22840_s7 + $0x380] ss:$16 sps:$4 sm:$0xff]  }
 0x60f   : > { %9823 = vmatpush1.bf16.msra.mxu0 %v17108_v30  ;;  %10016 = vmatpush1.bf16.msra.mxu1 %v17111_v40  ;;  %v17155_v30 = vld [vmem:[%s22840_s7 + $0x38c] ss:$16 sps:$4 sm:$0xff]  }
 0x610   : > { %9824 = vmatprep.subr.bf16.mxu0 %v17116_v51  ;;  %10017 = vmatprep.subr.bf16.mxu1 %v17119_v45  ;;  %v17061_v40 = vld [vmem:[%s22839_s6 + $0x1ac] ss:$16 sps:$4 sm:$0xff]   ;;  %v17158_v51 = vld [vmem:[%s22840_s7 + $0x3a4] ss:$16 sps:$4 sm:$0xff]   ;;  %v17156_v45 = vld [vmem:[%s22840_s7 + $0x3a0] ss:$16 sps:$4 sm:$0xff]  }
 0x611   : > { %7992 = vmatmul.mubr.bf16.gmra.mrb[12].mxu0 %v16996_v5  ;;  %8828 = vmatmul.mubr.bf16.gmra.mrb[12].mxu1 %v16999_v54  ;;  %v17153_v5 = vld [vmem:[%s22840_s7 + $0x388] ss:$16 sps:$4 sm:$0xff]  }
 0x612   : > { %14848 = vmatprep.mubr.msk.bf16.mxu0 %vm7670_vm6, %v17004_v11  ;;  %14934 = vmatprep.mubr.msk.bf16.mxu1 %vm7670_vm6, %v17007_v33  ;;  %v17050_v54 = vld [vmem:[%s22838_s5 + $0x188] ss:$16 sps:$4 sm:$0xff]   ;;  %v17058_v33 = vld [vmem:[%s22838_s5 + $0x1ac] ss:$16 sps:$4 sm:$0xff]  }
 0x613   : > { %9825 = vmatpush1.bf16.msra.mxu0 %v17114_v7  ;;  %10018 = vmatpush1.bf16.msra.mxu1 %v17117_v62  ;;  %v17053_v11 = vld [vmem:[%s22839_s6 + $0x188] ss:$16 sps:$4 sm:$0xff]   ;;  %v17161_v7 = vld [vmem:[%s22840_s7 + $0x3ac] ss:$16 sps:$4 sm:$0xff]   ;;  %v17164_v62 = vld [vmem:[%s22840_s7 + $0x3c4] ss:$16 sps:$4 sm:$0xff]  }
 0x614   : > { %9826 = vmatprep.subr.bf16.mxu0 %v17122_v21  ;;  %10019 = vmatprep.subr.bf16.mxu1 %v17125_v4  ;;  %v17159_v21 = vld [vmem:[%s22840_s7 + $0x3a8] ss:$16 sps:$4 sm:$0xff]   ;;  %v17162_v4 = vld [vmem:[%s22840_s7 + $0x3c0] ss:$16 sps:$4 sm:$0xff]  }
 0x617   : > { %9827 = vmatpush1.bf16.msra.mxu0 %v17120_v12  ;;  %10020 = vmatpush1.bf16.msra.mxu1 %v17123_v19  ;;  %v17167_v12 = vld [vmem:[%s22840_s7 + $0x3cc] ss:$16 sps:$4 sm:$0xff]  }
 0x618   : > { %9828 = vmatprep.subr.bf16.mxu0 %v17128_v43  ;;  %10021 = vmatprep.subr.bf16.mxu1 %v17131_v57  ;;  %v17067_v19 = vld [vmem:[%s22839_s6 + $0x1cc] ss:$16 sps:$4 sm:$0xff]   ;;  %v17170_v43 = vld [vmem:[%s22840_s7 + $0x3e4] ss:$16 sps:$4 sm:$0xff]   ;;  %v17168_v57 = vld [vmem:[%s22840_s7 + $0x3e0] ss:$16 sps:$4 sm:$0xff]  }
 0x619   : > { %8002 = vmatmul.mubr.bf16.gmra.mrb[16].mxu0 %v17002_v49  ;;  %8838 = vmatmul.mubr.bf16.gmra.mrb[16].mxu1 %v17005_v34  ;;  %v17165_v49 = vld [vmem:[%s22840_s7 + $0x3c8] ss:$16 sps:$4 sm:$0xff]  }
 0x61a   : > { %14849 = vmatprep.mubr.msk.bf16.mxu0 %vm7670_vm6, %v17010_v38  ;;  %14935 = vmatprep.mubr.msk.bf16.mxu1 %vm7670_vm6, %v17013_v41  ;;  %v17056_v34 = vld [vmem:[%s22838_s5 + $0x1a8] ss:$16 sps:$4 sm:$0xff]   ;;  %v17064_v41 = vld [vmem:[%s22838_s5 + $0x1cc] ss:$16 sps:$4 sm:$0xff]  }
 0x61b   : > { %9829 = vmatpush1.bf16.msra.mxu0 %v17126_v24  ;;  %10022 = vmatpush1.bf16.msra.mxu1 %v17129_v52  ;;  %v17059_v38 = vld [vmem:[%s22839_s6 + $0x1a8] ss:$16 sps:$4 sm:$0xff]   ;;  %v17173_v24 = vld [vmem:[%s22840_s7 + $0x3ec] ss:$16 sps:$4 sm:$0xff]  }
 0x61c   : > { %9830 = vmatprep.subr.bf16.mxu0 %v17134_v16  ;;  %10023 = vmatprep.subr.bf16.mxu1 %v17137_v59  ;;  %v17171_v16 = vld [vmem:[%s22840_s7 + $0x3e8] ss:$16 sps:$4 sm:$0xff]   ;;  %v17070_v59 = vld [vmem:[%s22838_s5 + $0x1ec] ss:$16 sps:$4 sm:$0xff]  }
 0x61d   : > { %v17062_v52 = vld [vmem:[%s22838_s5 + $0x1c8] ss:$16 sps:$4 sm:$0xff]  }
 0x61f   : > { %9831 = vmatpush1.bf16.msra.mxu0 %v17132_v61  ;;  %10024 = vmatpush1.bf16.msra.mxu1 %v17135_v35  ;;  %v17065_v61 = vld [vmem:[%s22839_s6 + $0x1c8] ss:$16 sps:$4 sm:$0xff]  }
 0x620   : > { %9832 = vmatprep.subr.bf16.mxu0 %v17140_v32  ;;  %10025 = vmatprep.subr.bf16.mxu1 %v17143_v0  ;;  %v17071_v35 = vld [vmem:[%s22839_s6 + $0x1e8] ss:$16 sps:$4 sm:$0xff]  }
 0x621   : > { %8012 = vmatmul.mubr.bf16.gmra.mrb[20].mxu0 %v17008_v23  ;;  %8848 = vmatmul.mubr.bf16.gmra.mrb[20].mxu1 %v17011_v10  ;;  %v17073_v23 = vld [vmem:[%s22839_s6 + $0x1ec] ss:$16 sps:$4 sm:$0xff]  }
 0x622   : > { %14850 = vmatprep.mubr.msk.bf16.mxu0 %vm7670_vm6, %v17016_v25  ;;  %14936 = vmatprep.mubr.msk.bf16.mxu1 %vm7670_vm6, %v17019_v58  ;;  %v7352_v10 = vld [vmem:[%s22838_s5 + $0x208] sm:$0x11] }
 0x623   : > { %9833 = vmatpush1.bf16.msra.mxu0 %v17138_v55  ;;  %10026 = vmatpush1.bf16.msra.mxu1 %v17141_v26  ;;  %v8195_v25 = vld [vmem:[%s22839_s6 + $0x208] sm:$0x11]  ;;  %v14842_v32 = vcombine.high %v7352_v10, %v7352_v10  ;;  %v14841_v0 = vcombine.low %v7352_v10, %v7352_v10 }
 0x624   : > { %9834 = vmatprep.subr.bf16.mxu0 %v17146_v56  ;;  %10027 = vmatprep.subr.bf16.mxu1 %v17149_v20  ;;  %v17068_v58 = vld [vmem:[%s22838_s5 + $0x1e8] ss:$16 sps:$4 sm:$0xff]   ;;  %v14928_v55 = vcombine.high %v8195_v25, %v8195_v25  ;;  %v14927_v26 = vcombine.low %v8195_v25, %v8195_v25  ;;  %v17182_v25 = vld [vmem:[%s22840_s7 + $0x24] ss:$16 sps:$4 sm:$0xff]  }
 0x627   : > { %9835 = vmatpush1.bf16.msra.mxu0 %v17144_v36  ;;  %10028 = vmatpush1.bf16.msra.mxu1 %v17147_v42 }
 0x628   : > { %9836 = vmatprep.subr.bf16.mxu0 %v17152_v3  ;;  %10029 = vmatprep.subr.bf16.mxu1 %v17155_v30 }
 0x629   : > { %8022 = vmatmul.mubr.bf16.gmra.mrb[24].mxu0 %v17014_v13  ;;  %8858 = vmatmul.mubr.bf16.gmra.mrb[24].mxu1 %v17017_v48  ;;  %v17176_v13 = vld [vmem:[%s22840_s7 + $0x4] ss:$16 sps:$4 sm:$0xff]   ;;  %v17179_v48 = vld [vmem:[%s22840_s7 + $0xc] ss:$16 sps:$4 sm:$0xff]  }
 0x62a   : > { %14851 = vmatprep.mubr.msk.bf16.mxu0 %vm7670_vm6, %v17022_v14  ;;  %14937 = vmatprep.mubr.msk.bf16.mxu1 %vm7670_vm6, %v17025_v29 }
 0x62b   : > { %9837 = vmatpush1.bf16.msra.mxu0 %v17150_v46  ;;  %10030 = vmatpush1.bf16.msra.mxu1 %v17153_v5 }
 0x62c   : > { %9838 = vmatprep.subr.bf16.mxu0 %v17158_v51  ;;  %10031 = vmatprep.subr.bf16.mxu1 %v17161_v7 }
 0x62f   : > { %9839 = vmatpush1.bf16.msra.mxu0 %v17156_v45  ;;  %10032 = vmatpush1.bf16.msra.mxu1 %v17159_v21 }
 0x630   : > { %9840 = vmatprep.subr.bf16.mxu0 %v17164_v62  ;;  %10033 = vmatprep.subr.bf16.mxu1 %v17167_v12 }
 0x631   : > { %8032 = vmatmul.mubr.bf16.gmra.mrb[28].mxu0 %v17020_v31  ;;  %8868 = vmatmul.mubr.bf16.gmra.mrb[28].mxu1 %v17023_v6 }
 0x632   : > { %14852 = vmatprep.mubr.msk.bf16.mxu0 %vm7670_vm6, %v17028_v37  ;;  %14938 = vmatprep.mubr.msk.bf16.mxu1 %vm7670_vm6, %v17031_v18 }
 0x633   : > { %9841 = vmatpush1.bf16.msra.mxu0 %v17162_v4  ;;  %10034 = vmatpush1.bf16.msra.mxu1 %v17165_v49 }
 0x634   : > { %9842 = vmatprep.subr.bf16.mxu0 %v17170_v43  ;;  %10035 = vmatprep.subr.bf16.mxu1 %v17173_v24 }
 0x637   : > { %9843 = vmatpush1.bf16.msra.mxu0 %v17168_v57  ;;  %10036 = vmatpush1.bf16.msra.mxu1 %v17171_v16 }
 0x638   : > { %10518 = vmatprep.subr.bf16.mxu0 %v17176_v13  ;;  %10711 = vmatprep.subr.bf16.mxu1 %v17179_v48  ;;  %v17183_v13 = vld [vmem:[%s22840_s7 + $0x28] ss:$16 sps:$4 sm:$0xff]   ;;  %v17188_v48 = vld [vmem:[%s22840_s7 + $0x44] ss:$16 sps:$4 sm:$0xff]  }
 0x639   : > { %8042 = vmatmul.mubr.bf16.gmra.mrb[32].mxu0 %v17026_v28  ;;  %8878 = vmatmul.mubr.bf16.gmra.mrb[32].mxu1 %v17029_v50 }
 0x63a   : > { %14853 = vmatprep.mubr.msk.bf16.mxu0 %vm7670_vm6, %v17034_v27  ;;  %14939 = vmatprep.mubr.msk.bf16.mxu1 %vm7670_vm6, %v17037_v44 }
 0x641   : > { %8052 = vmatmul.mubr.bf16.gmra.mrb[36].mxu0 %v17032_v47  ;;  %8888 = vmatmul.mubr.bf16.gmra.mrb[36].mxu1 %v17035_v39 }
 0x642   : > { %14854 = vmatprep.mubr.msk.bf16.mxu0 %vm7670_vm6, %v17040_v2  ;;  %14940 = vmatprep.mubr.msk.bf16.mxu1 %vm7670_vm6, %v17043_v15 }
 0x649   : > { %8062 = vmatmul.mubr.bf16.gmra.mrb[40].mxu0 %v17038_v60  ;;  %8898 = vmatmul.mubr.bf16.gmra.mrb[40].mxu1 %v17041_v9 }
 0x64a   : > { %14855 = vmatprep.mubr.msk.bf16.mxu0 %vm7670_vm6, %v17046_v53  ;;  %14941 = vmatprep.mubr.msk.bf16.mxu1 %vm7670_vm6, %v17049_v17 }
 0x651   : > { %8072 = vmatmul.mubr.bf16.gmra.mrb[44].mxu0 %v17044_v22  ;;  %8908 = vmatmul.mubr.bf16.gmra.mrb[44].mxu1 %v17047_v8 }
 0x652   : > { %14856 = vmatprep.mubr.msk.bf16.mxu0 %vm7670_vm6, %v17052_v63  ;;  %14942 = vmatprep.mubr.msk.bf16.mxu1 %vm7670_vm6, %v17055_v1 }
 0x659   : > { %8082 = vmatmul.mubr.bf16.gmra.mrb[48].mxu0 %v17050_v54  ;;  %8918 = vmatmul.mubr.bf16.gmra.mrb[48].mxu1 %v17053_v11 }
 0x65a   : > { %14857 = vmatprep.mubr.msk.bf16.mxu0 %vm7670_vm6, %v17058_v33  ;;  %14943 = vmatprep.mubr.msk.bf16.mxu1 %vm7670_vm6, %v17061_v40 }
 0x661   : > { %8092 = vmatmul.mubr.bf16.gmra.mrb[52].mxu0 %v17056_v34  ;;  %8928 = vmatmul.mubr.bf16.gmra.mrb[52].mxu1 %v17059_v38 }
 0x662   : > { %14858 = vmatprep.mubr.msk.bf16.mxu0 %vm7670_vm6, %v17064_v41  ;;  %14944 = vmatprep.mubr.msk.bf16.mxu1 %vm7670_vm6, %v17067_v19 }
 0x669   : > { %8102 = vmatmul.mubr.bf16.gmra.mrb[56].mxu0 %v17062_v52  ;;  %8938 = vmatmul.mubr.bf16.gmra.mrb[56].mxu1 %v17065_v61  ;;  %v17174_v61 = vld [vmem:[%s22840_s7] ss:$16 sps:$4 sm:$0xff]  }
 0x66a   : > { %14859 = vmatprep.mubr.msk.bf16.mxu0 %vm7670_vm6, %v17070_v59  ;;  %14945 = vmatprep.mubr.msk.bf16.mxu1 %vm7670_vm6, %v17073_v23  ;;  %v17177_v59 = vld [vmem:[%s22840_s7 + $0x8] ss:$16 sps:$4 sm:$0xff]  }
 0x671   : > { %8112 = vmatmul.mubr.bf16.gmra.mrb[60].mxu0 %v17068_v58  ;;  %8948 = vmatmul.mubr.bf16.gmra.mrb[60].mxu1 %v17071_v35  ;;  %v17185_v58 = vld [vmem:[%s22840_s7 + $0x2c] ss:$16 sps:$4 sm:$0xff]  }
 0x672   : > { %14860 = vmatprep.mubr.msk.bf16.mxu0 %vm7670_vm6, %v14842_v32  ;;  %14946 = vmatprep.mubr.msk.bf16.mxu1 %vm7670_vm6, %v14928_v55 }
 0x679   : > { %8122 = vmatmul.mubr.bf16.gmra.mrb[64].mxu0 %v14841_v0  ;;  %8958 = vmatmul.mubr.bf16.gmra.mrb[64].mxu1 %v14927_v26  ;;  %v17180_v0 = vld [vmem:[%s22840_s7 + $0x20] ss:$16 sps:$4 sm:$0xff]  }
 0x6cc   : > { %v7963_v14 = vpop.f32.mrb[0].mxu0  ;;  %v8799_v29 = vpop.f32.mrb[0].mxu1 }
 0x6cd   : > { %v8966_v31 = vmax.f32 %v7963_v14, %v8799_v29  ;;  %v7965_v6 = vpop.f32.mrb[1].mxu0  ;;  %v8801_v37 = vpop.f32.mrb[1].mxu1 }
 0x6ce   : > { %v8967_v18 = vmax.f32 %v7965_v6, %v8801_v37  ;;  %v7967_v28 = vpop.f32.mrb[2].mxu0  ;;  %v8803_v50 = vpop.f32.mrb[2].mxu1  ;;  %v17191_v37 = vld [vmem:[%s22840_s7 + $0x4c] ss:$16 sps:$4 sm:$0xff]  }
 0x6cf   : > { %v8968_v27 = vmax.f32 %v7967_v28, %v8803_v50  ;;  %v7969_v44 = vpop.f32.mrb[3].mxu0  ;;  %v8805_v47 = vpop.f32.mrb[3].mxu1 }
 0x6d0   : > { %v8969_v39 = vmax.f32 %v7969_v44, %v8805_v47 }
 0x6d1   : > { %v21058_v2 = vpack.c.bf16 %v8968_v27, %v8966_v31 }
 0x6d2   : > { %v21060_v15 = vpack.c.bf16 %v8969_v39, %v8967_v18 }
 0x6d3   : > { %v9199_v20 = vshll.u32 %v21058_v2, 16  ;;  %v9197_v21 = vshrl.u32 %v21058_v2, 16 }
 0x6d4   : > { %v7973_v60 = vpop.f32.mrb[4].mxu0  ;;  %v8809_v9 = vpop.f32.mrb[4].mxu1  ;;  %v9211_v56 = vshll.u32 %v21060_v15, 16  ;;  %v9209_v7 = vshrl.u32 %v21060_v15, 16 }
 0x6d5   : > { %v8970_v53 = vmax.f32 %v7973_v60, %v8809_v9  ;;  %v7975_v17 = vpop.f32.mrb[5].mxu0  ;;  %v8811_v22 = vpop.f32.mrb[5].mxu1  ;;  %v9201_v11 = vrot.slane %v9199_v20, 1 }
 0x6d6   : > { %v8971_v8 = vmax.f32 %v7975_v17, %v8811_v22  ;;  %v7977_v63 = vpop.f32.mrb[6].mxu0  ;;  %v8813_v1 = vpop.f32.mrb[6].mxu1  ;;  %v9213_v54 = vrot.slane %v9211_v56, 1  ;;  %v17189_v56 = vld [vmem:[%s22840_s7 + $0x48] ss:$16 sps:$4 sm:$0xff]  }
 0x6d7   : > { %v8972_v36 = vmax.f32 %v7977_v63, %v8813_v1  ;;  %v7979_v42 = vpop.f32.mrb[7].mxu0  ;;  %v8815_v3 = vpop.f32.mrb[7].mxu1  ;;  %v9202_v24 = vor.u32 %v9201_v11, %v9197_v21  ;;  %v17186_v1 = vld [vmem:[%s22840_s7 + $0x40] ss:$16 sps:$4 sm:$0xff]  }
 0x6d8   : > { %v8973_v30 = vmax.f32 %v7979_v42, %v8815_v3  ;;  %v9214_v19 = vor.u32 %v9213_v54, %v9209_v7  ;;  %v17194_v42 = vld [vmem:[%s22840_s7 + $0x64] ss:$16 sps:$4 sm:$0xff]   ;;  %v17197_v3 = vld [vmem:[%s22840_s7 + $0x6c] ss:$16 sps:$4 sm:$0xff]  }
 0x6d9   : > { %v21064_v46 = vpack.c.bf16 %v8972_v36, %v8970_v53  ;;  %v17200_v7 = vld [vmem:[%s22840_s7 + $0x84] ss:$16 sps:$4 sm:$0xff]  }
 0x6da   : > { %v21066_v5 = vpack.c.bf16 %v8973_v30, %v8971_v8 }
 0x6db   : > { %v9204_v33 = vshll.u32 %v21064_v46, 16  ;;  %v9220_v18 = vshrl.u32 %v21064_v46, 16 }
 0x6dc   : > { %v7983_v40 = vpop.f32.mrb[8].mxu0  ;;  %v8819_v51 = vpop.f32.mrb[8].mxu1  ;;  %v9216_v45 = vshll.u32 %v21066_v5, 16  ;;  %v9228_v31 = vshrl.u32 %v21066_v5, 16 }
 0x6dd   : > { %v9206_v62 = vrot.slane %v9204_v33, 1  ;;  %v8974_v12 = vmax.f32 %v7983_v40, %v8819_v51  ;;  %v7985_v4 = vpop.f32.mrb[9].mxu0  ;;  %v8821_v49 = vpop.f32.mrb[9].mxu1  ;;  %v17192_v33 = vld [vmem:[%s22840_s7 + $0x60] ss:$16 sps:$4 sm:$0xff]  }
 0x6de   : > { %v8975_v34 = vmax.f32 %v7985_v4, %v8821_v49  ;;  %v7987_v38 = vpop.f32.mrb[10].mxu0  ;;  %v8823_v41 = vpop.f32.mrb[10].mxu1  ;;  %v9218_v43 = vrot.slane %v9216_v45, 1  ;;  %v17195_v51 = vld [vmem:[%s22840_s7 + $0x68] ss:$16 sps:$4 sm:$0xff]  }
 0x6df   : > { %v8976_v57 = vmax.f32 %v7987_v38, %v8823_v41  ;;  %v7989_v16 = vpop.f32.mrb[11].mxu0  ;;  %v8825_v52 = vpop.f32.mrb[11].mxu1  ;;  %v9207_v32 = vsel %vm9195_vm7, %v9202_v24, %v9206_v62  ;;  %v9222_v63 = vor.u32 %v9220_v18, %v9206_v62  ;;  %v17203_v4 = vld [vmem:[%s22840_s7 + $0x8c] ss:$16 sps:$4 sm:$0xff]   ;;  %v17212_v18 = vld [vmem:[%s22840_s7 + $0xc4] ss:$16 sps:$4 sm:$0xff]  }
 0x6e0   : > { %v8977_v23 = vmax.f32 %v7989_v16, %v8825_v52  ;;  %v9219_v10 = vsel %vm9195_vm7, %v9214_v19, %v9218_v43  ;;  %v9230_v9 = vor.u32 %v9228_v31, %v9218_v43  ;;  %v17204_v31 = vld [vmem:[%s22840_s7 + $0xa0] ss:$16 sps:$4 sm:$0xff]  }
 0x6e1   : > { %v21085_v35 = vpack.c.bf16 %v8976_v57, %v8974_v12  ;;  %9844 = vmatprep.mubr.bf16.mxu0 %v9219_v10  ;;  %10037 = vmatprep.mubr.bf16.mxu1 %v9219_v10 }
 0x6e2   : > { %v21088_v55 = vpack.c.bf16 %v8977_v23, %v8975_v34  ;;  %9845 = vmatmul.mubr.bf16.vlgmr.msra.gmra.mrb[68].mxu0 %v9207_v32  ;;  %10038 = vmatmul.mubr.bf16.vlgmr.msra.gmra.mrb[68].mxu1 %v9207_v32 }
 0x6e3   : > { %v9224_v26 = vshll.u32 %v21085_v35, 16  ;;  %10519 = vmatpush1.bf16.msra.mxu0 %v17174_v61  ;;  %10712 = vmatpush1.bf16.msra.mxu1 %v17177_v59  ;;  %v9236_v49 = vshrl.u32 %v21085_v35, 16 }
 0x6e4   : > { %v7993_v14 = vpop.f32.mrb[12].mxu0  ;;  %v8829_v29 = vpop.f32.mrb[12].mxu1  ;;  %v9232_v6 = vshll.u32 %v21088_v55, 16  ;;  %10520 = vmatprep.subr.bf16.mxu0 %v17182_v25  ;;  %10713 = vmatprep.subr.bf16.mxu1 %v17185_v58  ;;  %v9244_v62 = vshrl.u32 %v21088_v55, 16  ;;  %v17198_v25 = vld [vmem:[%s22840_s7 + $0x80] ss:$16 sps:$4 sm:$0xff]  }
 0x6e5   : > { %v9226_v28 = vrot.slane %v9224_v26, 1  ;;  %v8978_v50 = vmax.f32 %v7993_v14, %v8829_v29  ;;  %v7995_v27 = vpop.f32.mrb[13].mxu0  ;;  %v8831_v44 = vpop.f32.mrb[13].mxu1  ;;  %v17201_v58 = vld [vmem:[%s22840_s7 + $0x88] ss:$16 sps:$4 sm:$0xff]  }
 0x6e6   : > { %v8979_v47 = vmax.f32 %v7995_v27, %v8831_v44  ;;  %v7997_v39 = vpop.f32.mrb[14].mxu0  ;;  %v8833_v60 = vpop.f32.mrb[14].mxu1  ;;  %v9234_v53 = vrot.slane %v9232_v6, 1  ;;  %v17206_v26 = vld [vmem:[%s22840_s7 + $0xa4] ss:$16 sps:$4 sm:$0xff]  }
 0x6e7   : > { %v8980_v17 = vmax.f32 %v7997_v39, %v8833_v60  ;;  %v7999_v22 = vpop.f32.mrb[15].mxu0  ;;  %v8835_v8 = vpop.f32.mrb[15].mxu1  ;;  %10521 = vmatpush1.bf16.msra.mxu0 %v17180_v0  ;;  %10714 = vmatpush1.bf16.msra.mxu1 %v17183_v13  ;;  %v9227_v54 = vsel %vm9195_vm7, %v9222_v63, %v9226_v28  ;;  %v9238_v10 = vor.u32 %v9236_v49, %v9226_v28  ;;  %v17209_v13 = vld [vmem:[%s22840_s7 + $0xac] ss:$16 sps:$4 sm:$0xff]  }
 0x6e8   : > { %v8981_v20 = vmax.f32 %v7999_v22, %v8835_v8  ;;  %v9235_v36 = vsel %vm9195_vm7, %v9230_v9, %v9234_v53  ;;  %10522 = vmatprep.subr.bf16.mxu0 %v17188_v48  ;;  %10715 = vmatprep.subr.bf16.mxu1 %v17191_v37  ;;  %v9246_v16 = vor.u32 %v9244_v62, %v9234_v53  ;;  %v17207_v37 = vld [vmem:[%s22840_s7 + $0xa8] ss:$16 sps:$4 sm:$0xff]  }
 0x6e9   : > { %v21119_v30 = vpack.c.bf16 %v8980_v17, %v8978_v50  ;;  %9854 = vmatprep.mubr.bf16.mxu0 %v9235_v36  ;;  %10047 = vmatprep.mubr.bf16.mxu1 %v9235_v36 }
 0x6ea   : > { %v21122_v11 = vpack.c.bf16 %v8981_v20, %v8979_v47  ;;  %9855 = vmatmul.mubr.bf16.gmra.mrb[72].mxu0 %v9227_v54  ;;  %10048 = vmatmul.mubr.bf16.gmra.mrb[72].mxu1 %v9227_v54  ;;  %v17215_v47 = vld [vmem:[%s22840_s7 + $0xcc] ss:$16 sps:$4 sm:$0xff]   ;;  %v17210_v54 = vld [vmem:[%s22840_s7 + $0xc0] ss:$16 sps:$4 sm:$0xff]  }
 0x6eb   : > { %v9240_v40 = vshll.u32 %v21119_v30, 16  ;;  %10523 = vmatpush1.bf16.msra.mxu0 %v17186_v1  ;;  %10716 = vmatpush1.bf16.msra.mxu1 %v17189_v56  ;;  %v9252_v39 = vshrl.u32 %v21119_v30, 16 }
 0x6ec   : > { %v8003_v45 = vpop.f32.mrb[16].mxu0  ;;  %v8839_v21 = vpop.f32.mrb[16].mxu1  ;;  %v9248_v12 = vshll.u32 %v21122_v11, 16  ;;  %10524 = vmatprep.subr.bf16.mxu0 %v17194_v42  ;;  %10717 = vmatprep.subr.bf16.mxu1 %v17197_v3  ;;  %v9260_v27 = vshrl.u32 %v21122_v11, 16 }
 0x6ed   : > { %v9242_v34 = vrot.slane %v9240_v40, 1  ;;  %v8982_v38 = vmax.f32 %v8003_v45, %v8839_v21  ;;  %v8005_v41 = vpop.f32.mrb[17].mxu0  ;;  %v8841_v19 = vpop.f32.mrb[17].mxu1  ;;  %v17221_v45 = vld [vmem:[%s22840_s7 + $0xec] ss:$16 sps:$4 sm:$0xff]  }
 0x6ee   : > { %v8983_v43 = vmax.f32 %v8005_v41, %v8841_v19  ;;  %v8007_v24 = vpop.f32.mrb[18].mxu0  ;;  %v8843_v57 = vpop.f32.mrb[18].mxu1  ;;  %v9250_v52 = vrot.slane %v9248_v12, 1 }
 0x6ef   : > { %v8984_v61 = vmax.f32 %v8007_v24, %v8843_v57  ;;  %v8009_v59 = vpop.f32.mrb[19].mxu0  ;;  %v8845_v23 = vpop.f32.mrb[19].mxu1  ;;  %10525 = vmatpush1.bf16.msra.mxu0 %v17192_v33  ;;  %10718 = vmatpush1.bf16.msra.mxu1 %v17195_v51  ;;  %v9243_v14 = vsel %vm9195_vm7, %v9238_v10, %v9242_v34  ;;  %v9254_v3 = vor.u32 %v9252_v39, %v9242_v34  ;;  %v17213_v33 = vld [vmem:[%s22840_s7 + $0xc8] ss:$16 sps:$4 sm:$0xff]   ;;  %v17227_v57 = vld [vmem:[%s22840_s7 + $0x10c] ss:$16 sps:$4 sm:$0xff]  }
 0x6f0   : > { %v8985_v32 = vmax.f32 %v8009_v59, %v8845_v23  ;;  %v9251_v0 = vsel %vm9195_vm7, %v9246_v16, %v9250_v52  ;;  %10526 = vmatprep.subr.bf16.mxu0 %v17200_v7  ;;  %10719 = vmatprep.subr.bf16.mxu1 %v17203_v4  ;;  %v9262_v1 = vor.u32 %v9260_v27, %v9250_v52  ;;  %v17218_v7 = vld [vmem:[%s22840_s7 + $0xe4] ss:$16 sps:$4 sm:$0xff]   ;;  %v17216_v4 = vld [vmem:[%s22840_s7 + $0xe0] ss:$16 sps:$4 sm:$0xff]   ;;  %v17219_v34 = vld [vmem:[%s22840_s7 + $0xe8] ss:$16 sps:$4 sm:$0xff]  }
 0x6f1   : > { %v21153_v48 = vpack.c.bf16 %v8984_v61, %v8982_v38  ;;  %9864 = vmatprep.mubr.bf16.mxu0 %v9251_v0  ;;  %10057 = vmatprep.mubr.bf16.mxu1 %v9251_v0  ;;  %v17224_v38 = vld [vmem:[%s22840_s7 + $0x104] ss:$16 sps:$4 sm:$0xff]   ;;  %v17233_v27 = vld [vmem:[%s22840_s7 + $0x12c] ss:$16 sps:$4 sm:$0xff]  }
 0x6f2   : > { %v21156_v29 = vpack.c.bf16 %v8985_v32, %v8983_v43  ;;  %9865 = vmatmul.mubr.bf16.gmra.mrb[76].mxu0 %v9243_v14  ;;  %10058 = vmatmul.mubr.bf16.gmra.mrb[76].mxu1 %v9243_v14 }
 0x6f3   : > { %v9256_v6 = vshll.u32 %v21153_v48, 16  ;;  %10527 = vmatpush1.bf16.msra.mxu0 %v17198_v25  ;;  %10720 = vmatpush1.bf16.msra.mxu1 %v17201_v58  ;;  %v9268_v16 = vshrl.u32 %v21153_v48, 16 }
 0x6f4   : > { %v8013_v28 = vpop.f32.mrb[20].mxu0  ;;  %v8849_v50 = vpop.f32.mrb[20].mxu1  ;;  %v9264_v44 = vshll.u32 %v21156_v29, 16  ;;  %10528 = vmatprep.subr.bf16.mxu0 %v17206_v26  ;;  %10721 = vmatprep.subr.bf16.mxu1 %v17209_v13  ;;  %v9276_v43 = vshrl.u32 %v21156_v29, 16 }
 0x6f5   : > { %v9258_v60 = vrot.slane %v9256_v6, 1  ;;  %v8986_v9 = vmax.f32 %v8013_v28, %v8849_v50  ;;  %v8015_v53 = vpop.f32.mrb[21].mxu0  ;;  %v8851_v17 = vpop.f32.mrb[21].mxu1  ;;  %v17222_v6 = vld [vmem:[%s22840_s7 + $0x100] ss:$16 sps:$4 sm:$0xff]  }
 0x6f6   : > { %v8987_v22 = vmax.f32 %v8015_v53, %v8851_v17  ;;  %v8017_v8 = vpop.f32.mrb[22].mxu0  ;;  %v8853_v63 = vpop.f32.mrb[22].mxu1  ;;  %v9266_v56 = vrot.slane %v9264_v44, 1  ;;  %v17230_v50 = vld [vmem:[%s22840_s7 + $0x124] ss:$16 sps:$4 sm:$0xff]  }
 0x6f7   : > { %v8988_v20 = vmax.f32 %v8017_v8, %v8853_v63  ;;  %v8019_v36 = vpop.f32.mrb[23].mxu0  ;;  %v8855_v42 = vpop.f32.mrb[23].mxu1  ;;  %10529 = vmatpush1.bf16.msra.mxu0 %v17204_v31  ;;  %10722 = vmatpush1.bf16.msra.mxu1 %v17207_v37  ;;  %v9259_v62 = vsel %vm9195_vm7, %v9254_v3, %v9258_v60  ;;  %v9270_v31 = vor.u32 %v9268_v16, %v9258_v60  ;;  %v17225_v37 = vld [vmem:[%s22840_s7 + $0x108] ss:$16 sps:$4 sm:$0xff]   ;;  %v17228_v60 = vld [vmem:[%s22840_s7 + $0x120] ss:$16 sps:$4 sm:$0xff]  }
 0x6f8   : > { %v8989_v40 = vmax.f32 %v8019_v36, %v8855_v42  ;;  %v9267_v51 = vsel %vm9195_vm7, %v9262_v1, %v9266_v56  ;;  %10530 = vmatprep.subr.bf16.mxu0 %v17212_v18  ;;  %10723 = vmatprep.subr.bf16.mxu1 %v17215_v47  ;;  %v9278_v32 = vor.u32 %v9276_v43, %v9266_v56  ;;  %v17231_v53 = vld [vmem:[%s22840_s7 + $0x128] ss:$16 sps:$4 sm:$0xff]   ;;  %v17236_v17 = vld [vmem:[%s22840_s7 + $0x144] ss:$16 sps:$4 sm:$0xff]   ;;  %v17239_v56 = vld [vmem:[%s22840_s7 + $0x14c] ss:$16 sps:$4 sm:$0xff]  }
 0x6f9   : > { %v21187_v21 = vpack.c.bf16 %v8988_v20, %v8986_v9  ;;  %9874 = vmatprep.mubr.bf16.mxu0 %v9267_v51  ;;  %10067 = vmatprep.mubr.bf16.mxu1 %v9267_v51 }
 0x6fa   : > { %v21190_v12 = vpack.c.bf16 %v8989_v40, %v8987_v22  ;;  %9875 = vmatmul.mubr.bf16.gmra.mrb[80].mxu0 %v9259_v62  ;;  %10068 = vmatmul.mubr.bf16.gmra.mrb[80].mxu1 %v9259_v62 }
 0x6fb   : > { %v9272_v49 = vshll.u32 %v21187_v21, 16  ;;  %10531 = vmatpush1.bf16.msra.mxu0 %v17210_v54  ;;  %10724 = vmatpush1.bf16.msra.mxu1 %v17213_v33  ;;  %v9284_v20 = vshrl.u32 %v21187_v21, 16 }
 0x6fc   : > { %v8023_v41 = vpop.f32.mrb[24].mxu0  ;;  %v8859_v19 = vpop.f32.mrb[24].mxu1  ;;  %v9280_v24 = vshll.u32 %v21190_v12, 16  ;;  %10532 = vmatprep.subr.bf16.mxu0 %v17218_v7  ;;  %10725 = vmatprep.subr.bf16.mxu1 %v17221_v45  ;;  %v9292_v63 = vshrl.u32 %v21190_v12, 16 }
 0x6fd   : > { %v9274_v52 = vrot.slane %v9272_v49, 1  ;;  %v8990_v61 = vmax.f32 %v8023_v41, %v8859_v19  ;;  %v8025_v59 = vpop.f32.mrb[25].mxu0  ;;  %v8861_v23 = vpop.f32.mrb[25].mxu1  ;;  %v17237_v41 = vld [vmem:[%s22840_s7 + $0x148] ss:$16 sps:$4 sm:$0xff]  }
 0x6fe   : > { %v8991_v10 = vmax.f32 %v8025_v59, %v8861_v23  ;;  %v8027_v25 = vpop.f32.mrb[26].mxu0  ;;  %v8863_v58 = vpop.f32.mrb[26].mxu1  ;;  %v9282_v0 = vrot.slane %v9280_v24, 1  ;;  %v17242_v24 = vld [vmem:[%s22840_s7 + $0x164] ss:$16 sps:$4 sm:$0xff]  }
 0x6ff   : > { %v8992_v26 = vmax.f32 %v8027_v25, %v8863_v58  ;;  %v8029_v13 = vpop.f32.mrb[27].mxu0  ;;  %v8865_v14 = vpop.f32.mrb[27].mxu1  ;;  %10533 = vmatpush1.bf16.msra.mxu0 %v17216_v4  ;;  %10726 = vmatpush1.bf16.msra.mxu1 %v17219_v34  ;;  %v9275_v47 = vsel %vm9195_vm7, %v9270_v31, %v9274_v52  ;;  %v9286_v34 = vor.u32 %v9284_v20, %v9274_v52  ;;  %v17240_v59 = vld [vmem:[%s22840_s7 + $0x160] ss:$16 sps:$4 sm:$0xff]   ;;  %v17248_v25 = vld [vmem:[%s22840_s7 + $0x184] ss:$16 sps:$4 sm:$0xff]  }
 0x700   : > { %v8993_v18 = vmax.f32 %v8029_v13, %v8865_v14  ;;  %v9283_v28 = vsel %vm9195_vm7, %v9278_v32, %v9282_v0  ;;  %10534 = vmatprep.subr.bf16.mxu0 %v17224_v38  ;;  %10727 = vmatprep.subr.bf16.mxu1 %v17227_v57  ;;  %v9294_v7 = vor.u32 %v9292_v63, %v9282_v0  ;;  %v17234_v38 = vld [vmem:[%s22840_s7 + $0x140] ss:$16 sps:$4 sm:$0xff]   ;;  %v17245_v57 = vld [vmem:[%s22840_s7 + $0x16c] ss:$16 sps:$4 sm:$0xff]   ;;  %v17249_v63 = vld [vmem:[%s22840_s7 + $0x188] ss:$16 sps:$4 sm:$0xff]  }
 0x701   : > { %v21221_v44 = vpack.c.bf16 %v8992_v26, %v8990_v61  ;;  %9884 = vmatprep.mubr.bf16.mxu0 %v9283_v28  ;;  %10077 = vmatprep.mubr.bf16.mxu1 %v9283_v28  ;;  %v17251_v13 = vld [vmem:[%s22840_s7 + $0x18c] ss:$16 sps:$4 sm:$0xff]   ;;  %v17254_v20 = vld [vmem:[%s22840_s7 + $0x1a4] ss:$16 sps:$4 sm:$0xff]  }
 0x702   : > { %v21224_v39 = vpack.c.bf16 %v8993_v18, %v8991_v10  ;;  %9885 = vmatmul.mubr.bf16.gmra.mrb[84].mxu0 %v9275_v47  ;;  %10078 = vmatmul.mubr.bf16.gmra.mrb[84].mxu1 %v9275_v47  ;;  %v17243_v10 = vld [vmem:[%s22840_s7 + $0x168] ss:$16 sps:$4 sm:$0xff]  }
 0x703   : > { %v9288_v9 = vshll.u32 %v21221_v44, 16  ;;  %10535 = vmatpush1.bf16.msra.mxu0 %v17222_v6  ;;  %10728 = vmatpush1.bf16.msra.mxu1 %v17225_v37  ;;  %v9300_v14 = vshrl.u32 %v21221_v44, 16 }
 0x704   : > { %v8033_v22 = vpop.f32.mrb[28].mxu0  ;;  %v8869_v8 = vpop.f32.mrb[28].mxu1  ;;  %v9296_v1 = vshll.u32 %v21224_v39, 16  ;;  %10536 = vmatprep.subr.bf16.mxu0 %v17230_v50  ;;  %10729 = vmatprep.subr.bf16.mxu1 %v17233_v27  ;;  %v9308_v0 = vshrl.u32 %v21224_v39, 16 }
 0x705   : > { %v9290_v36 = vrot.slane %v9288_v9, 1  ;;  %v8994_v42 = vmax.f32 %v8033_v22, %v8869_v8  ;;  %v8035_v3 = vpop.f32.mrb[29].mxu0  ;;  %v8871_v54 = vpop.f32.mrb[29].mxu1  ;;  %v17246_v8 = vld [vmem:[%s22840_s7 + $0x180] ss:$16 sps:$4 sm:$0xff]  }
 0x706   : > { %v8995_v33 = vmax.f32 %v8035_v3, %v8871_v54  ;;  %v8037_v40 = vpop.f32.mrb[30].mxu0  ;;  %v8873_v51 = vpop.f32.mrb[30].mxu1  ;;  %v9298_v45 = vrot.slane %v9296_v1, 1 }
 0x707   : > { %v8996_v62 = vmax.f32 %v8037_v40, %v8873_v51  ;;  %v8039_v4 = vpop.f32.mrb[31].mxu0  ;;  %v8875_v49 = vpop.f32.mrb[31].mxu1  ;;  %10537 = vmatpush1.bf16.msra.mxu0 %v17228_v60  ;;  %10730 = vmatpush1.bf16.msra.mxu1 %v17231_v53  ;;  %v9291_v52 = vsel %vm9195_vm7, %v9286_v34, %v9290_v36  ;;  %v9302_v22 = vor.u32 %v9300_v14, %v9290_v36  ;;  %v17257_v36 = vld [vmem:[%s22840_s7 + $0x1ac] ss:$16 sps:$4 sm:$0xff]   ;;  %v17255_v51 = vld [vmem:[%s22840_s7 + $0x1a8] ss:$16 sps:$4 sm:$0xff]  }
 0x708   : > { %v8997_v19 = vmax.f32 %v8039_v4, %v8875_v49  ;;  %v9299_v43 = vsel %vm9195_vm7, %v9294_v7, %v9298_v45  ;;  %10538 = vmatprep.subr.bf16.mxu0 %v17236_v17  ;;  %10731 = vmatprep.subr.bf16.mxu1 %v17239_v56  ;;  %v9310_v47 = vor.u32 %v9308_v0, %v9298_v45  ;;  %v17260_v7 = vld [vmem:[%s22840_s7 + $0x1c4] ss:$16 sps:$4 sm:$0xff]   ;;  %v17263_v34 = vld [vmem:[%s22840_s7 + $0x1cc] ss:$16 sps:$4 sm:$0xff]  }
 0x709   : > { %v21255_v16 = vpack.c.bf16 %v8996_v62, %v8994_v42  ;;  %9894 = vmatprep.mubr.bf16.mxu0 %v9299_v43  ;;  %10087 = vmatprep.mubr.bf16.mxu1 %v9299_v43 }
 0x70a   : > { %v21258_v61 = vpack.c.bf16 %v8997_v19, %v8995_v33  ;;  %9895 = vmatmul.mubr.bf16.gmra.mrb[88].mxu0 %v9291_v52  ;;  %10088 = vmatmul.mubr.bf16.gmra.mrb[88].mxu1 %v9291_v52  ;;  %v17252_v33 = vld [vmem:[%s22840_s7 + $0x1a0] ss:$16 sps:$4 sm:$0xff]  }
 0x70b   : > { %v9304_v23 = vshll.u32 %v21255_v16, 16  ;;  %10539 = vmatpush1.bf16.msra.mxu0 %v17234_v38  ;;  %10732 = vmatpush1.bf16.msra.mxu1 %v17237_v41  ;;  %v9316_v38 = vshrl.u32 %v21255_v16, 16 }
 0x70c   : > { %v8043_v58 = vpop.f32.mrb[32].mxu0  ;;  %v8879_v32 = vpop.f32.mrb[32].mxu1  ;;  %v9312_v26 = vshll.u32 %v21258_v61, 16  ;;  %10540 = vmatprep.subr.bf16.mxu0 %v17242_v24  ;;  %10733 = vmatprep.subr.bf16.mxu1 %v17245_v57  ;;  %v9324_v4 = vshrl.u32 %v21258_v61, 16 }
 0x70d   : > { %v9306_v31 = vrot.slane %v9304_v23, 1  ;;  %v8998_v6 = vmax.f32 %v8043_v58, %v8879_v32  ;;  %v8045_v37 = vpop.f32.mrb[33].mxu0  ;;  %v8881_v18 = vpop.f32.mrb[33].mxu1 }
 0x70e   : > { %v8999_v28 = vmax.f32 %v8045_v37, %v8881_v18  ;;  %v8047_v50 = vpop.f32.mrb[34].mxu0  ;;  %v8883_v27 = vpop.f32.mrb[34].mxu1  ;;  %v9314_v60 = vrot.slane %v9312_v26, 1  ;;  %v17258_v26 = vld [vmem:[%s22840_s7 + $0x1c0] ss:$16 sps:$4 sm:$0xff]  }
 0x70f   : > { %v9000_v9 = vmax.f32 %v8047_v50, %v8883_v27  ;;  %v8049_v53 = vpop.f32.mrb[35].mxu0  ;;  %v8885_v17 = vpop.f32.mrb[35].mxu1  ;;  %10541 = vmatpush1.bf16.msra.mxu0 %v17240_v59  ;;  %10734 = vmatpush1.bf16.msra.mxu1 %v17243_v10  ;;  %v9307_v3 = vsel %vm9195_vm7, %v9302_v22, %v9306_v31  ;;  %v9318_v0 = vor.u32 %v9316_v38, %v9306_v31  ;;  %v17266_v37 = vld [vmem:[%s22840_s7 + $0x1e4] ss:$16 sps:$4 sm:$0xff]   ;;  %v17269_v31 = vld [vmem:[%s22840_s7 + $0x1ec] ss:$16 sps:$4 sm:$0xff]  }
 0x710   : > { %v9001_v1 = vmax.f32 %v8049_v53, %v8885_v17  ;;  %v9315_v56 = vsel %vm9195_vm7, %v9310_v47, %v9314_v60  ;;  %10542 = vmatprep.subr.bf16.mxu0 %v17248_v25  ;;  %10735 = vmatprep.subr.bf16.mxu1 %v17251_v13  ;;  %v9326_v23 = vor.u32 %v9324_v4, %v9314_v60  ;;  %v17261_v13 = vld [vmem:[%s22840_s7 + $0x1c8] ss:$16 sps:$4 sm:$0xff]   ;;  %v17264_v47 = vld [vmem:[%s22840_s7 + $0x1e0] ss:$16 sps:$4 sm:$0xff]  }
 0x711   : > { %v21289_v42 = vpack.c.bf16 %v9000_v9, %v8998_v6  ;;  %9904 = vmatprep.mubr.bf16.mxu0 %v9315_v56  ;;  %10097 = vmatprep.mubr.bf16.mxu1 %v9315_v56  ;;  %v17267_v60 = vld [vmem:[%s22840_s7 + $0x1e8] ss:$16 sps:$4 sm:$0xff]  }
 0x712   : > { %v21292_v54 = vpack.c.bf16 %v9001_v1, %v8999_v28  ;;  %9905 = vmatmul.mubr.bf16.gmra.mrb[92].mxu0 %v9307_v3  ;;  %10098 = vmatmul.mubr.bf16.gmra.mrb[92].mxu1 %v9307_v3 }
 0x713   : > { %v9320_v40 = vshll.u32 %v21289_v42, 16  ;;  %10543 = vmatpush1.bf16.msra.mxu0 %v17246_v8  ;;  %10736 = vmatpush1.bf16.msra.mxu1 %v17249_v63  ;;  %v9332_v8 = vshrl.u32 %v21289_v42, 16 }
 0x714   : > { %v8053_v45 = vpop.f32.mrb[36].mxu0  ;;  %v8889_v62 = vpop.f32.mrb[36].mxu1  ;;  %v9328_v49 = vshll.u32 %v21292_v54, 16  ;;  %10544 = vmatprep.subr.bf16.mxu0 %v17254_v20  ;;  %10737 = vmatprep.subr.bf16.mxu1 %v17257_v36  ;;  %v9340_v17 = vshrl.u32 %v21292_v54, 16 }
 0x715   : > { %v9322_v41 = vrot.slane %v9320_v40, 1  ;;  %v9002_v19 = vmax.f32 %v8053_v45, %v8889_v62  ;;  %v8055_v43 = vpop.f32.mrb[37].mxu0  ;;  %v8891_v24 = vpop.f32.mrb[37].mxu1 }
 0x716   : > { %v9003_v57 = vmax.f32 %v8055_v43, %v8891_v24  ;;  %v8057_v52 = vpop.f32.mrb[38].mxu0  ;;  %v8893_v59 = vpop.f32.mrb[38].mxu1  ;;  %v9330_v10 = vrot.slane %v9328_v49, 1  ;;  %v17272_v24 = vld [vmem:[%s22840_s7 + $0x404] ss:$16 sps:$4 sm:$0xff]  }
 0x717   : > { %v9004_v25 = vmax.f32 %v8057_v52, %v8893_v59  ;;  %v8059_v58 = vpop.f32.mrb[39].mxu0  ;;  %v8895_v32 = vpop.f32.mrb[39].mxu1  ;;  %10545 = vmatpush1.bf16.msra.mxu0 %v17252_v33  ;;  %10738 = vmatpush1.bf16.msra.mxu1 %v17255_v51  ;;  %v9323_v28 = vsel %vm9195_vm7, %v9318_v0, %v9322_v41  ;;  %v9334_v4 = vor.u32 %v9332_v8, %v9322_v41 }
 0x718   : > { %v9005_v14 = vmax.f32 %v8059_v58, %v8895_v32  ;;  %v9331_v6 = vsel %vm9195_vm7, %v9326_v23, %v9330_v10  ;;  %10546 = vmatprep.subr.bf16.mxu0 %v17260_v7  ;;  %10739 = vmatprep.subr.bf16.mxu1 %v17263_v34  ;;  %v9342_v40 = vor.u32 %v9340_v17, %v9330_v10 }
 0x719   : > { %v21323_v18 = vpack.c.bf16 %v9004_v25, %v9002_v19  ;;  %9914 = vmatprep.mubr.bf16.mxu0 %v9331_v6  ;;  %10107 = vmatprep.mubr.bf16.mxu1 %v9331_v6 }
 0x71a   : > { %v21326_v50 = vpack.c.bf16 %v9005_v14, %v9003_v57  ;;  %9915 = vmatmul.mubr.bf16.gmra.mrb[96].mxu0 %v9323_v28  ;;  %10108 = vmatmul.mubr.bf16.gmra.mrb[96].mxu1 %v9323_v28  ;;  %v17275_v57 = vld [vmem:[%s22840_s7 + $0x40c] ss:$16 sps:$4 sm:$0xff]  }
 0x71b   : > { %v9336_v27 = vshll.u32 %v21323_v18, 16  ;;  %10547 = vmatpush1.bf16.msra.mxu0 %v17258_v26  ;;  %10740 = vmatpush1.bf16.msra.mxu1 %v17261_v13  ;;  %v9348_v25 = vshrl.u32 %v21323_v18, 16 }
 0x71c   : > { %v8063_v9 = vpop.f32.mrb[40].mxu0  ;;  %v8899_v53 = vpop.f32.mrb[40].mxu1  ;;  %v9344_v22 = vshll.u32 %v21326_v50, 16  ;;  %10548 = vmatprep.subr.bf16.mxu0 %v17266_v37  ;;  %10741 = vmatprep.subr.bf16.mxu1 %v17269_v31  ;;  %v9356_v23 = vshrl.u32 %v21326_v50, 16 }
 0x71d   : > { %v9338_v63 = vrot.slane %v9336_v27, 1  ;;  %v9006_v1 = vmax.f32 %v8063_v9, %v8899_v53  ;;  %v8065_v56 = vpop.f32.mrb[41].mxu0  ;;  %v8901_v20 = vpop.f32.mrb[41].mxu1 }
 0x71e   : > { %v9007_v36 = vmax.f32 %v8065_v56, %v8901_v20  ;;  %v8067_v3 = vpop.f32.mrb[42].mxu0  ;;  %v8903_v33 = vpop.f32.mrb[42].mxu1  ;;  %v9346_v51 = vrot.slane %v9344_v22, 1 }
 0x71f   : > { %v9008_v7 = vmax.f32 %v8067_v3, %v8903_v33  ;;  %v8069_v45 = vpop.f32.mrb[43].mxu0  ;;  %v8905_v62 = vpop.f32.mrb[43].mxu1  ;;  %10549 = vmatpush1.bf16.msra.mxu0 %v17264_v47  ;;  %10742 = vmatpush1.bf16.msra.mxu1 %v17267_v60  ;;  %v9339_v19 = vsel %vm9195_vm7, %v9334_v4, %v9338_v63  ;;  %v9350_v60 = vor.u32 %v9348_v25, %v9338_v63 }
 0x720   : > { %v9009_v49 = vmax.f32 %v8069_v45, %v8905_v62  ;;  %v9347_v34 = vsel %vm9195_vm7, %v9342_v40, %v9346_v51  ;;  %11422 = vmatprep.subr.bf16.mxu0 %v17272_v24  ;;  %11615 = vmatprep.subr.bf16.mxu1 %v17275_v57  ;;  %v9358_v37 = vor.u32 %v9356_v23, %v9346_v51 }
 0x721   : > { %v21339_v38 = vpack.c.bf16 %v9008_v7, %v9006_v1  ;;  %9924 = vmatprep.mubr.bf16.mxu0 %v9347_v34  ;;  %10117 = vmatprep.mubr.bf16.mxu1 %v9347_v34 }
 0x722   : > { %v21342_v43 = vpack.c.bf16 %v9009_v49, %v9007_v36  ;;  %9925 = vmatmul.mubr.bf16.gmra.mrb[100].mxu0 %v9339_v19  ;;  %10118 = vmatmul.mubr.bf16.gmra.mrb[100].mxu1 %v9339_v19 }
 0x723   : > { %v9352_v41 = vshll.u32 %v21339_v38, 16  ;;  %v9364_v3 = vshrl.u32 %v21339_v38, 16 }
 0x724   : > { %v8073_v52 = vpop.f32.mrb[44].mxu0  ;;  %v8909_v59 = vpop.f32.mrb[44].mxu1  ;;  %v9360_v10 = vshll.u32 %v21342_v43, 16  ;;  %v9372_v36 = vshrl.u32 %v21342_v43, 16 }
 0x725   : > { %v9354_v58 = vrot.slane %v9352_v41, 1  ;;  %v9010_v32 = vmax.f32 %v8073_v52, %v8909_v59  ;;  %v8075_v0 = vpop.f32.mrb[45].mxu0  ;;  %v8911_v26 = vpop.f32.mrb[45].mxu1 }
 0x726   : > { %v9011_v13 = vmax.f32 %v8075_v0, %v8911_v26  ;;  %v8077_v14 = vpop.f32.mrb[46].mxu0  ;;  %v8913_v6 = vpop.f32.mrb[46].mxu1  ;;  %v9362_v31 = vrot.slane %v9360_v10, 1 }
 0x727   : > { %v9012_v28 = vmax.f32 %v8077_v14, %v8913_v6  ;;  %v8079_v27 = vpop.f32.mrb[47].mxu0  ;;  %v8915_v47 = vpop.f32.mrb[47].mxu1  ;;  %v9355_v22 = vsel %vm9195_vm7, %v9350_v60, %v9354_v58  ;;  %v9366_v57 = vor.u32 %v9364_v3, %v9354_v58 }
 0x728   : > { %v9013_v9 = vmax.f32 %v8079_v27, %v8915_v47  ;;  %v9363_v53 = vsel %vm9195_vm7, %v9358_v37, %v9362_v31  ;;  %v9374_v49 = vor.u32 %v9372_v36, %v9362_v31 }
 0x729   : > { %v21355_v17 = vpack.c.bf16 %v9012_v28, %v9010_v32  ;;  %9934 = vmatprep.mubr.bf16.mxu0 %v9363_v53  ;;  %10127 = vmatprep.mubr.bf16.mxu1 %v9363_v53 }
 0x72a   : > { %v21358_v8 = vpack.c.bf16 %v9013_v9, %v9011_v13  ;;  %9935 = vmatmul.mubr.bf16.gmra.mrb[104].mxu0 %v9355_v22  ;;  %10128 = vmatmul.mubr.bf16.gmra.mrb[104].mxu1 %v9355_v22 }
 0x72b   : > { %v9368_v1 = vshll.u32 %v21355_v17, 16  ;;  %v9380_v14 = vshrl.u32 %v21355_v17, 16 }
 0x72c   : > { %v8083_v56 = vpop.f32.mrb[48].mxu0  ;;  %v8919_v20 = vpop.f32.mrb[48].mxu1  ;;  %v9376_v63 = vshll.u32 %v21358_v8, 16  ;;  %v9388_v13 = vshrl.u32 %v21358_v8, 16 }
 0x72d   : > { %v9370_v33 = vrot.slane %v9368_v1, 1  ;;  %v9014_v40 = vmax.f32 %v8083_v56, %v8919_v20  ;;  %v8085_v51 = vpop.f32.mrb[49].mxu0  ;;  %v8921_v7 = vpop.f32.mrb[49].mxu1 }
 0x72e   : > { %v9015_v45 = vmax.f32 %v8085_v51, %v8921_v7  ;;  %v8087_v62 = vpop.f32.mrb[50].mxu0  ;;  %v8923_v4 = vpop.f32.mrb[50].mxu1  ;;  %v9378_v34 = vrot.slane %v9376_v63, 1 }
 0x72f   : > { %v9016_v19 = vmax.f32 %v8087_v62, %v8923_v4  ;;  %v8089_v24 = vpop.f32.mrb[51].mxu0  ;;  %v8925_v41 = vpop.f32.mrb[51].mxu1  ;;  %v9371_v10 = vsel %vm9195_vm7, %v9366_v57, %v9370_v33  ;;  %v9382_v20 = vor.u32 %v9380_v14, %v9370_v33 }
 0x730   : > { %v9017_v52 = vmax.f32 %v8089_v24, %v8925_v41  ;;  %v9379_v59 = vsel %vm9195_vm7, %v9374_v49, %v9378_v34  ;;  %v9390_v9 = vor.u32 %v9388_v13, %v9378_v34 }
 0x731   : > { %v21365_v23 = vpack.c.bf16 %v9016_v19, %v9014_v40  ;;  %9944 = vmatprep.mubr.bf16.mxu0 %v9379_v59  ;;  %10137 = vmatprep.mubr.bf16.mxu1 %v9379_v59 }
 0x732   : > { %v21368_v25 = vpack.c.bf16 %v9017_v52, %v9015_v45  ;;  %9945 = vmatmul.mubr.bf16.gmra.mrb[108].mxu0 %v9371_v10  ;;  %10138 = vmatmul.mubr.bf16.gmra.mrb[108].mxu1 %v9371_v10 }
 0x733   : > { %v9384_v32 = vshll.u32 %v21365_v23, 16  ;;  %v9396_v49 = vshrl.u32 %v21365_v23, 16 }
 0x734   : > { %v8093_v0 = vpop.f32.mrb[52].mxu0  ;;  %v8929_v26 = vpop.f32.mrb[52].mxu1  ;;  %v9392_v58 = vshll.u32 %v21368_v25, 16  ;;  %v9404_v4 = vshrl.u32 %v21368_v25, 16 }
 0x735   : > { %v9386_v6 = vrot.slane %v9384_v32, 1  ;;  %v9018_v37 = vmax.f32 %v8093_v0, %v8929_v26  ;;  %v8095_v31 = vpop.f32.mrb[53].mxu0  ;;  %v8931_v28 = vpop.f32.mrb[53].mxu1 }
 0x736   : > { %v9019_v27 = vmax.f32 %v8095_v31, %v8931_v28  ;;  %v8097_v47 = vpop.f32.mrb[54].mxu0  ;;  %v8933_v60 = vpop.f32.mrb[54].mxu1  ;;  %v9394_v53 = vrot.slane %v9392_v58, 1 }
 0x737   : > { %v9020_v22 = vmax.f32 %v8097_v47, %v8933_v60  ;;  %v8099_v1 = vpop.f32.mrb[55].mxu0  ;;  %v8935_v56 = vpop.f32.mrb[55].mxu1  ;;  %v9387_v40 = vsel %vm9195_vm7, %v9382_v20, %v9386_v6  ;;  %v9398_v58 = vor.u32 %v9396_v49, %v9386_v6 }
 0x738   : > { %v9021_v36 = vmax.f32 %v8099_v1, %v8935_v56  ;;  %v9395_v63 = vsel %vm9195_vm7, %v9390_v9, %v9394_v53  ;;  %v9406_v10 = vor.u32 %v9404_v4, %v9394_v53 }
 0x739   : > { %v21375_v3 = vpack.c.bf16 %v9020_v22, %v9018_v37  ;;  %9954 = vmatprep.mubr.bf16.mxu0 %v9395_v63  ;;  %10147 = vmatprep.mubr.bf16.mxu1 %v9395_v63 }
 0x73a   : > { %v21378_v51 = vpack.c.bf16 %v9021_v36, %v9019_v27  ;;  %9955 = vmatmul.mubr.bf16.gmra.mrb[112].mxu0 %v9387_v40  ;;  %10148 = vmatmul.mubr.bf16.gmra.mrb[112].mxu1 %v9387_v40 }
 0x73b   : > { %v9400_v7 = vshll.u32 %v21375_v3, 16  ;;  %v9412_v22 = vshrl.u32 %v21375_v3, 16 }
 0x73c   : > { %v8103_v45 = vpop.f32.mrb[56].mxu0  ;;  %v8939_v62 = vpop.f32.mrb[56].mxu1  ;;  %v9408_v33 = vshll.u32 %v21378_v51, 16  ;;  %v9420_v53 = vshrl.u32 %v21378_v51, 16 }
 0x73d   : > { %v9402_v34 = vrot.slane %v9400_v7, 1  ;;  %v9022_v19 = vmax.f32 %v8103_v45, %v8939_v62  ;;  %v8105_v24 = vpop.f32.mrb[57].mxu0  ;;  %v8941_v41 = vpop.f32.mrb[57].mxu1 }
 0x73e   : > { %v9023_v57 = vmax.f32 %v8105_v24, %v8941_v41  ;;  %v8107_v52 = vpop.f32.mrb[58].mxu0  ;;  %v8943_v59 = vpop.f32.mrb[58].mxu1  ;;  %v9410_v32 = vrot.slane %v9408_v33, 1 }
 0x73f   : > { %v9024_v0 = vmax.f32 %v8107_v52, %v8943_v59  ;;  %v8109_v26 = vpop.f32.mrb[59].mxu0  ;;  %v8945_v13 = vpop.f32.mrb[59].mxu1  ;;  %v9403_v28 = vsel %vm9195_vm7, %v9398_v58, %v9402_v34 }
 0x740   : > { %v9025_v14 = vmax.f32 %v8109_v26, %v8945_v13  ;;  %v9411_v37 = vsel %vm9195_vm7, %v9406_v10, %v9410_v32  ;;  %v9422_v45 = vor.u32 %v9420_v53, %v9410_v32 }
 0x741   : > { %v21385_v31 = vpack.c.bf16 %v9024_v0, %v9022_v19  ;;  %9964 = vmatprep.mubr.bf16.mxu0 %v9411_v37  ;;  %10157 = vmatprep.mubr.bf16.mxu1 %v9411_v37  ;;  %v9414_v19 = vor.u32 %v9412_v22, %v9402_v34 }
 0x742   : > { %v21388_v27 = vpack.c.bf16 %v9025_v14, %v9023_v57  ;;  %9965 = vmatmul.mubr.bf16.gmra.mrb[116].mxu0 %v9403_v28  ;;  %10158 = vmatmul.mubr.bf16.gmra.mrb[116].mxu1 %v9403_v28 }
 0x743   : > { %v9416_v47 = vshll.u32 %v21385_v31, 16  ;;  %v9428_v13 = vshrl.u32 %v21385_v31, 16 }
 0x744   : > { %v8113_v60 = vpop.f32.mrb[60].mxu0  ;;  %v8949_v9 = vpop.f32.mrb[60].mxu1  ;;  %v9424_v6 = vshll.u32 %v21388_v27, 16  ;;  %v9436_v26 = vshrl.u32 %v21388_v27, 16 }
 0x745   : > { %v9418_v1 = vrot.slane %v9416_v47, 1  ;;  %v9026_v56 = vmax.f32 %v8113_v60, %v8949_v9  ;;  %v8115_v20 = vpop.f32.mrb[61].mxu0  ;;  %v8951_v36 = vpop.f32.mrb[61].mxu1 }
 0x746   : > { %v9027_v63 = vmax.f32 %v8115_v20, %v8951_v36  ;;  %v8117_v40 = vpop.f32.mrb[62].mxu0  ;;  %v8953_v7 = vpop.f32.mrb[62].mxu1  ;;  %v9426_v62 = vrot.slane %v9424_v6, 1 }
 0x747   : > { %v9028_v4 = vmax.f32 %v8117_v40, %v8953_v7  ;;  %v8119_v33 = vpop.f32.mrb[63].mxu0  ;;  %v8955_v49 = vpop.f32.mrb[63].mxu1  ;;  %v9419_v52 = vsel %vm9195_vm7, %v9414_v19, %v9418_v1  ;;  %v9430_v36 = vor.u32 %v9428_v13, %v9418_v1  ;;  %v17279_v13 = vld [vmem:[%s22840_s7 + $0x428] ss:$16 sps:$4 sm:$0xff]  }
 0x748   : > { %v9029_v24 = vmax.f32 %v8119_v33, %v8955_v49  ;;  %v9427_v41 = vsel %vm9195_vm7, %v9422_v45, %v9426_v62  ;;  %v9438_v53 = vor.u32 %v9436_v26, %v9426_v62  ;;  %v17281_v26 = vld [vmem:[%s22840_s7 + $0x42c] ss:$16 sps:$4 sm:$0xff]  }
 0x749   : > { %v21395_v57 = vpack.c.bf16 %v9028_v4, %v9026_v56  ;;  %9974 = vmatprep.mubr.bf16.mxu0 %v9427_v41  ;;  %10167 = vmatprep.mubr.bf16.mxu1 %v9427_v41 }
 0x74a   : > { %v21398_v59 = vpack.c.bf16 %v9029_v24, %v9027_v63  ;;  %9975 = vmatmul.mubr.bf16.gmra.mrb[120].mxu0 %v9419_v52  ;;  %10168 = vmatmul.mubr.bf16.gmra.mrb[120].mxu1 %v9419_v52 }
 0x74b   : > { %v9432_v10 = vshll.u32 %v21395_v57, 16  ;;  %v9444_v1 = vshrl.u32 %v21395_v57, 16 }
 0x74c   : > { %v8123_v32 = vpop.f32.mrb[64].mxu0  ;;  %v8959_v0 = vpop.f32.mrb[64].mxu1  ;;  %v9440_v34 = vshll.u32 %v21398_v59, 16  ;;  %v9452_v62 = vshrl.u32 %v21398_v59, 16 }
 0x74d   : > { %v9030_v58 = vmax.f32 %v8123_v32, %v8959_v0  ;;  %v9434_v14 = vrot.slane %v9432_v10, 1  ;;  %v8125_v37 = vpop.f32.mrb[65].mxu0  ;;  %v8961_v28 = vpop.f32.mrb[65].mxu1  ;;  %v17270_v10 = vld [vmem:[%s22840_s7 + $0x400] ss:$16 sps:$4 sm:$0xff]  }
 0x74e   : > { %v9031_v47 = vmax.f32 %v8125_v37, %v8961_v28  ;;  %v8127_v60 = vpop.f32.mrb[66].mxu0  ;;  %v8963_v9 = vpop.f32.mrb[66].mxu1  ;;  %v9442_v6 = vrot.slane %v9440_v34, 1  ;;  %v17273_v32 = vld [vmem:[%s22840_s7 + $0x408] ss:$16 sps:$4 sm:$0xff]  }
 0x74f   : > { %v21404_v22 = vpack.c.bf16 %v9030_v58, %v9030_v58  ;;  %v8128_v56 = vpop.f32.mrb[67].mxu0  ;;  %v8964_v20 = vpop.f32.mrb[67].mxu1  ;;  %v9435_v45 = vsel %vm9195_vm7, %v9430_v36, %v9434_v14  ;;  %v9446_v41 = vor.u32 %v9444_v1, %v9434_v14  ;;  %v17278_v0 = vld [vmem:[%s22840_s7 + $0x424] ss:$16 sps:$4 sm:$0xff]   ;;  %v17276_v34 = vld [vmem:[%s22840_s7 + $0x420] ss:$16 sps:$4 sm:$0xff]  }
 0x750   : > { %v21406_v63 = vpack.c.bf16 %v9031_v47, %v9031_v47  ;;  %v9443_v40 = vsel %vm9195_vm7, %v9438_v53, %v9442_v6  ;;  %v9454_v49 = vor.u32 %v9452_v62, %v9442_v6  ;;  %v17284_v58 = vld [vmem:[%s22840_s7 + $0x444] ss:$16 sps:$4 sm:$0xff]   ;;  %v17287_v14 = vld [vmem:[%s22840_s7 + $0x44c] ss:$16 sps:$4 sm:$0xff]   ;;  %v17282_v37 = vld [vmem:[%s22840_s7 + $0x440] ss:$16 sps:$4 sm:$0xff]  }
 0x751   : > { %v9448_v7 = vshll.u32 %v21404_v22, 16  ;;  %9984 = vmatprep.mubr.bf16.mxu0 %v9443_v40  ;;  %10177 = vmatprep.mubr.bf16.mxu1 %v9443_v40  ;;  %v17285_v28 = vld [vmem:[%s22840_s7 + $0x448] ss:$16 sps:$4 sm:$0xff]   ;;  %v17290_v47 = vld [vmem:[%s22840_s7 + $0x464] ss:$16 sps:$4 sm:$0xff]  }
 0x752   : > { %v9456_v4 = vshll.u32 %v21406_v63, 16  ;;  %9985 = vmatmul.mubr.bf16.gmra.mrb[124].mxu0 %v9435_v45  ;;  %10178 = vmatmul.mubr.bf16.gmra.mrb[124].mxu1 %v9435_v45  ;;  %v17293_v60 = vld [vmem:[%s22840_s7 + $0x46c] ss:$16 sps:$4 sm:$0xff]   ;;  %v17288_v9 = vld [vmem:[%s22840_s7 + $0x460] ss:$16 sps:$4 sm:$0xff]  }
 0x753   : > { %v9450_v19 = vrot.slane %v9448_v7, 1  ;;  %v17291_v53 = vld [vmem:[%s22840_s7 + $0x468] ss:$16 sps:$4 sm:$0xff]   ;;  %v17296_v6 = vld [vmem:[%s22840_s7 + $0x484] ss:$16 sps:$4 sm:$0xff]  }
 0x754   : > { %v9458_v33 = vrot.slane %v9456_v4, 1  ;;  %v17299_v56 = vld [vmem:[%s22840_s7 + $0x48c] ss:$16 sps:$4 sm:$0xff]   ;;  %v17294_v20 = vld [vmem:[%s22840_s7 + $0x480] ss:$16 sps:$4 sm:$0xff]  }
 0x755   : > { %v9451_v52 = vsel %vm9195_vm7, %v9446_v41, %v9450_v19  ;;  %v17297_v36 = vld [vmem:[%s22840_s7 + $0x488] ss:$16 sps:$4 sm:$0xff]   ;;  %v17302_v40 = vld [vmem:[%s22840_s7 + $0x4a4] ss:$16 sps:$4 sm:$0xff]   ;;  %v17305_v7 = vld [vmem:[%s22840_s7 + $0x4ac] ss:$16 sps:$4 sm:$0xff]  }
 0x756   : > { %v9459_v24 = vsel %vm9195_vm7, %v9454_v49, %v9458_v33  ;;  %v17300_v45 = vld [vmem:[%s22840_s7 + $0x4a0] ss:$16 sps:$4 sm:$0xff]   ;;  %v17303_v4 = vld [vmem:[%s22840_s7 + $0x4a8] ss:$16 sps:$4 sm:$0xff]   ;;  %v17308_v62 = vld [vmem:[%s22840_s7 + $0x4c4] ss:$16 sps:$4 sm:$0xff]  }
 0x757   : > { %9994 = vmatprep.mubr.bf16.mxu0 %v9459_v24  ;;  %10187 = vmatprep.mubr.bf16.mxu1 %v9459_v24  ;;  %v17311_v33 = vld [vmem:[%s22840_s7 + $0x4cc] ss:$16 sps:$4 sm:$0xff]   ;;  %v17306_v49 = vld [vmem:[%s22840_s7 + $0x4c0] ss:$16 sps:$4 sm:$0xff]   ;;  %v17309_v1 = vld [vmem:[%s22840_s7 + $0x4c8] ss:$16 sps:$4 sm:$0xff]  }
 0x758   : > { %v17314_v19 = vld [vmem:[%s22840_s7 + $0x4e4] ss:$16 sps:$4 sm:$0xff]   ;;  %v17317_v24 = vld [vmem:[%s22840_s7 + $0x4ec] ss:$16 sps:$4 sm:$0xff]   ;;  %v17312_v41 = vld [vmem:[%s22840_s7 + $0x4e0] ss:$16 sps:$4 sm:$0xff]  }
 0x75a   : > { %9995 = vmatmul.mubr.bf16.gmra.mrb[128].mxu0 %v9451_v52  ;;  %10188 = vmatmul.mubr.bf16.gmra.mrb[128].mxu1 %v9451_v52  ;;  %v17315_v52 = vld [vmem:[%s22840_s7 + $0x4e8] ss:$16 sps:$4 sm:$0xff]  }
 0x75b   : > { %10550 = vmatprep.mubr.bf16.mxu0 %v21060_v15  ;;  %10743 = vmatprep.mubr.bf16.mxu1 %v21060_v15 }
 0x762   : > { %10551 = vmatmul.mubr.bf16.vlgmr.msra.gmra.mrb[68].mxu0 %v21058_v2  ;;  %10744 = vmatmul.mubr.bf16.vlgmr.msra.gmra.mrb[68].mxu1 %v21058_v2 }
 0x763   : > { %10560 = vmatprep.mubr.bf16.mxu0 %v21066_v5  ;;  %10753 = vmatprep.mubr.bf16.mxu1 %v21066_v5 }
 0x764   : > { %11423 = vmatpush1.bf16.msra.mxu0 %v17270_v10  ;;  %11616 = vmatpush1.bf16.msra.mxu1 %v17273_v32  ;;  %v17320_v10 = vld [vmem:[%s22840_s7 + $0x504] ss:$16 sps:$4 sm:$0xff]   ;;  %v17323_v32 = vld [vmem:[%s22840_s7 + $0x50c] ss:$16 sps:$4 sm:$0xff]  }
 0x765   : > { %11424 = vmatprep.subr.bf16.mxu0 %v17278_v0  ;;  %11617 = vmatprep.subr.bf16.mxu1 %v17281_v26  ;;  %v17318_v0 = vld [vmem:[%s22840_s7 + $0x500] ss:$16 sps:$4 sm:$0xff]   ;;  %v17321_v26 = vld [vmem:[%s22840_s7 + $0x508] ss:$16 sps:$4 sm:$0xff]  }
 0x768   : > { %11425 = vmatpush1.bf16.msra.mxu0 %v17276_v34  ;;  %11618 = vmatpush1.bf16.msra.mxu1 %v17279_v13  ;;  %v17326_v34 = vld [vmem:[%s22840_s7 + $0x524] ss:$16 sps:$4 sm:$0xff]   ;;  %v17329_v13 = vld [vmem:[%s22840_s7 + $0x52c] ss:$16 sps:$4 sm:$0xff]  }
 0x769   : > { %11426 = vmatprep.subr.bf16.mxu0 %v17284_v58  ;;  %11619 = vmatprep.subr.bf16.mxu1 %v17287_v14  ;;  %v17324_v58 = vld [vmem:[%s22840_s7 + $0x520] ss:$16 sps:$4 sm:$0xff]   ;;  %v17327_v14 = vld [vmem:[%s22840_s7 + $0x528] ss:$16 sps:$4 sm:$0xff]  }
 0x76a   : > { %10561 = vmatmul.mubr.bf16.gmra.mrb[72].mxu0 %v21064_v46  ;;  %10754 = vmatmul.mubr.bf16.gmra.mrb[72].mxu1 %v21064_v46 }
 0x76b   : > { %10570 = vmatprep.mubr.bf16.mxu0 %v21088_v55  ;;  %10763 = vmatprep.mubr.bf16.mxu1 %v21088_v55 }
 0x76c   : > { %11427 = vmatpush1.bf16.msra.mxu0 %v17282_v37  ;;  %11620 = vmatpush1.bf16.msra.mxu1 %v17285_v28  ;;  %v17332_v37 = vld [vmem:[%s22840_s7 + $0x544] ss:$16 sps:$4 sm:$0xff]   ;;  %v17335_v28 = vld [vmem:[%s22840_s7 + $0x54c] ss:$16 sps:$4 sm:$0xff]  }
 0x76d   : > { %11428 = vmatprep.subr.bf16.mxu0 %v17290_v47  ;;  %11621 = vmatprep.subr.bf16.mxu1 %v17293_v60  ;;  %v17330_v47 = vld [vmem:[%s22840_s7 + $0x540] ss:$16 sps:$4 sm:$0xff]   ;;  %v17333_v60 = vld [vmem:[%s22840_s7 + $0x548] ss:$16 sps:$4 sm:$0xff]  }
 0x770   : > { %11429 = vmatpush1.bf16.msra.mxu0 %v17288_v9  ;;  %11622 = vmatpush1.bf16.msra.mxu1 %v17291_v53  ;;  %v17338_v9 = vld [vmem:[%s22840_s7 + $0x564] ss:$16 sps:$4 sm:$0xff]   ;;  %v17341_v53 = vld [vmem:[%s22840_s7 + $0x56c] ss:$16 sps:$4 sm:$0xff]  }
 0x771   : > { %11430 = vmatprep.subr.bf16.mxu0 %v17296_v6  ;;  %11623 = vmatprep.subr.bf16.mxu1 %v17299_v56  ;;  %v17336_v6 = vld [vmem:[%s22840_s7 + $0x560] ss:$16 sps:$4 sm:$0xff]   ;;  %v17339_v56 = vld [vmem:[%s22840_s7 + $0x568] ss:$16 sps:$4 sm:$0xff]  }
 0x772   : > { %10571 = vmatmul.mubr.bf16.gmra.mrb[76].mxu0 %v21085_v35  ;;  %10764 = vmatmul.mubr.bf16.gmra.mrb[76].mxu1 %v21085_v35 }
 0x773   : > { %10580 = vmatprep.mubr.bf16.mxu0 %v21122_v11  ;;  %10773 = vmatprep.mubr.bf16.mxu1 %v21122_v11 }
 0x774   : > { %11431 = vmatpush1.bf16.msra.mxu0 %v17294_v20  ;;  %11624 = vmatpush1.bf16.msra.mxu1 %v17297_v36  ;;  %v17344_v20 = vld [vmem:[%s22840_s7 + $0x584] ss:$16 sps:$4 sm:$0xff]   ;;  %v17347_v36 = vld [vmem:[%s22840_s7 + $0x58c] ss:$16 sps:$4 sm:$0xff]  }
 0x775   : > { %11432 = vmatprep.subr.bf16.mxu0 %v17302_v40  ;;  %11625 = vmatprep.subr.bf16.mxu1 %v17305_v7  ;;  %v17342_v40 = vld [vmem:[%s22840_s7 + $0x580] ss:$16 sps:$4 sm:$0xff]   ;;  %v17345_v7 = vld [vmem:[%s22840_s7 + $0x588] ss:$16 sps:$4 sm:$0xff]  }
 0x778   : > { %11433 = vmatpush1.bf16.msra.mxu0 %v17300_v45  ;;  %11626 = vmatpush1.bf16.msra.mxu1 %v17303_v4  ;;  %v17350_v45 = vld [vmem:[%s22840_s7 + $0x5a4] ss:$16 sps:$4 sm:$0xff]   ;;  %v17353_v4 = vld [vmem:[%s22840_s7 + $0x5ac] ss:$16 sps:$4 sm:$0xff]  }
 0x779   : > { %11434 = vmatprep.subr.bf16.mxu0 %v17308_v62  ;;  %11627 = vmatprep.subr.bf16.mxu1 %v17311_v33  ;;  %v17348_v62 = vld [vmem:[%s22840_s7 + $0x5a0] ss:$16 sps:$4 sm:$0xff]   ;;  %v17351_v33 = vld [vmem:[%s22840_s7 + $0x5a8] ss:$16 sps:$4 sm:$0xff]  }
 0x77a   : > { %10581 = vmatmul.mubr.bf16.gmra.mrb[80].mxu0 %v21119_v30  ;;  %10774 = vmatmul.mubr.bf16.gmra.mrb[80].mxu1 %v21119_v30 }
 0x77b   : > { %10590 = vmatprep.mubr.bf16.mxu0 %v21156_v29  ;;  %10783 = vmatprep.mubr.bf16.mxu1 %v21156_v29 }
 0x77c   : > { %11435 = vmatpush1.bf16.msra.mxu0 %v17306_v49  ;;  %11628 = vmatpush1.bf16.msra.mxu1 %v17309_v1  ;;  %v17356_v49 = vld [vmem:[%s22840_s7 + $0x5c4] ss:$16 sps:$4 sm:$0xff]   ;;  %v17359_v1 = vld [vmem:[%s22840_s7 + $0x5cc] ss:$16 sps:$4 sm:$0xff]  }
 0x77d   : > { %11436 = vmatprep.subr.bf16.mxu0 %v17314_v19  ;;  %11629 = vmatprep.subr.bf16.mxu1 %v17317_v24  ;;  %v17354_v19 = vld [vmem:[%s22840_s7 + $0x5c0] ss:$16 sps:$4 sm:$0xff]   ;;  %v17357_v24 = vld [vmem:[%s22840_s7 + $0x5c8] ss:$16 sps:$4 sm:$0xff]  }
 0x780   : > { %11437 = vmatpush1.bf16.msra.mxu0 %v17312_v41  ;;  %11630 = vmatpush1.bf16.msra.mxu1 %v17315_v52  ;;  %v17362_v41 = vld [vmem:[%s22840_s7 + $0x5e4] ss:$16 sps:$4 sm:$0xff]   ;;  %v17365_v52 = vld [vmem:[%s22840_s7 + $0x5ec] ss:$16 sps:$4 sm:$0xff]  }
 0x781   : > { %11438 = vmatprep.subr.bf16.mxu0 %v17320_v10  ;;  %11631 = vmatprep.subr.bf16.mxu1 %v17323_v32  ;;  %v17360_v10 = vld [vmem:[%s22840_s7 + $0x5e0] ss:$16 sps:$4 sm:$0xff]   ;;  %v17363_v32 = vld [vmem:[%s22840_s7 + $0x5e8] ss:$16 sps:$4 sm:$0xff]  }
 0x782   : > { %10591 = vmatmul.mubr.bf16.gmra.mrb[84].mxu0 %v21153_v48  ;;  %10784 = vmatmul.mubr.bf16.gmra.mrb[84].mxu1 %v21153_v48 }
 0x783   : > { %10600 = vmatprep.mubr.bf16.mxu0 %v21190_v12  ;;  %10793 = vmatprep.mubr.bf16.mxu1 %v21190_v12 }
 0x784   : > { %11439 = vmatpush1.bf16.msra.mxu0 %v17318_v0  ;;  %11632 = vmatpush1.bf16.msra.mxu1 %v17321_v26  ;;  %v11008_v0 = vrot.slane %v21066_v5, 1  ;;  %v11007_v26 = vrot.slane %v21060_v15, 1  ;;  %v11010_v5 = vrot.slane %v21085_v35, 1 }
 0x785   : > { %11440 = vmatprep.subr.bf16.mxu0 %v17326_v34  ;;  %11633 = vmatprep.subr.bf16.mxu1 %v17329_v13  ;;  %v11005_v13 = vrot.slane %v21064_v46, 1 }
 0x786   : > { %v11009_v34 = vsel %vm608_vm3, %v11007_v26, %v11008_v0 }
 0x788   : > { %11441 = vmatpush1.bf16.msra.mxu0 %v17324_v58  ;;  %11634 = vmatpush1.bf16.msra.mxu1 %v17327_v14  ;;  %v11012_v58 = vrot.slane %v21088_v55, 1  ;;  %v11004_v14 = vrot.slane %v21058_v2, 1  ;;  %v11014_v2 = vrot.slane %v21119_v30, 1  ;;  %v11020_v55 = vrot.slane %v21156_v29, 1 }
 0x789   : > { %11442 = vmatprep.subr.bf16.mxu0 %v17332_v37  ;;  %11635 = vmatprep.subr.bf16.mxu1 %v17335_v28  ;;  %v11016_v28 = vrot.slane %v21122_v11, 1  ;;  %v11018_v11 = vrot.slane %v21153_v48, 1  ;;  %v11022_v29 = vrot.slane %v21187_v21, 1 }
 0x78a   : > { %10601 = vmatmul.mubr.bf16.gmra.mrb[88].mxu0 %v21187_v21  ;;  %10794 = vmatmul.mubr.bf16.gmra.mrb[88].mxu1 %v21187_v21  ;;  %v11006_v37 = vsel %vm608_vm3, %v11004_v14, %v11005_v13  ;;  %v11013_v15 = vsel %vm608_vm3, %v11008_v0, %v11012_v58  ;;  %v11064_v0 = vrot.slane %v21398_v59, 1  ;;  %v22978_v14 = vld [vmem:[#allocation2_spill] sm:$0xff] }
 0x78b   : > { %10610 = vmatprep.mubr.bf16.mxu0 %v21224_v39  ;;  %10803 = vmatprep.mubr.bf16.mxu1 %v21224_v39  ;;  %v11017_v46 = vsel %vm608_vm3, %v11012_v58, %v11016_v28  ;;  %v11021_v35 = vsel %vm608_vm3, %v11016_v28, %v11020_v55  ;;  %v22981_v28 = vsub.s32 1, %v22978_v14 }
 0x78c   : > { %11443 = vmatpush1.bf16.msra.mxu0 %v17330_v47  ;;  %11636 = vmatpush1.bf16.msra.mxu1 %v17333_v60  ;;  %v11011_v47 = vsel %vm608_vm3, %v11005_v13, %v11010_v5  ;;  %v11015_v60 = vsel %vm608_vm3, %v11010_v5, %v11014_v2 }
 0x78d   : > { %11444 = vmatprep.subr.bf16.mxu0 %v17338_v9  ;;  %11637 = vmatprep.subr.bf16.mxu1 %v17341_v53  ;;  %v11024_v9 = vrot.slane %v21190_v12, 1  ;;  %v11019_v53 = vsel %vm608_vm3, %v11014_v2, %v11018_v11  ;;  %v11026_v12 = vrot.slane %v21221_v44, 1 }
 0x78f   : > { %v11025_v30 = vsel %vm608_vm3, %v11020_v55, %v11024_v9 }
 0x790   : > { %11445 = vmatpush1.bf16.msra.mxu0 %v17336_v6  ;;  %11638 = vmatpush1.bf16.msra.mxu1 %v17339_v56  ;;  %v11028_v6 = vrot.slane %v21224_v39, 1  ;;  %v11023_v56 = vsel %vm608_vm3, %v11018_v11, %v11022_v29  ;;  %v11030_v39 = vrot.slane %v21255_v16, 1 }
 0x791   : > { %11446 = vmatprep.subr.bf16.mxu0 %v17344_v20  ;;  %11639 = vmatprep.subr.bf16.mxu1 %v17347_v36  ;;  %v11032_v20 = vrot.slane %v21258_v61, 1  ;;  %v11027_v36 = vsel %vm608_vm3, %v11022_v29, %v11026_v12 }
 0x792   : > { %10611 = vmatmul.mubr.bf16.gmra.mrb[92].mxu0 %v21221_v44  ;;  %10804 = vmatmul.mubr.bf16.gmra.mrb[92].mxu1 %v21221_v44  ;;  %v11029_v48 = vsel %vm608_vm3, %v11024_v9, %v11028_v6 }
 0x793   : > { %10620 = vmatprep.mubr.bf16.mxu0 %v21258_v61  ;;  %10813 = vmatprep.mubr.bf16.mxu1 %v21258_v61  ;;  %v11033_v21 = vsel %vm608_vm3, %v11028_v6, %v11032_v20  ;;  %v11034_v61 = vrot.slane %v21289_v42, 1 }
 0x794   : > { %11447 = vmatpush1.bf16.msra.mxu0 %v17342_v40  ;;  %11640 = vmatpush1.bf16.msra.mxu1 %v17345_v7  ;;  %v11036_v40 = vrot.slane %v21292_v54, 1  ;;  %v11031_v7 = vsel %vm608_vm3, %v11026_v12, %v11030_v39 }
 0x795   : > { %11448 = vmatprep.subr.bf16.mxu0 %v17350_v45  ;;  %11641 = vmatprep.subr.bf16.mxu1 %v17353_v4  ;;  %v11040_v45 = vrot.slane %v21326_v50, 1  ;;  %v11035_v4 = vsel %vm608_vm3, %v11030_v39, %v11034_v61  ;;  %v17368_v39 = vld [vmem:[%s22842_s9 + $0x4] ss:$8 sps:$4 sm:$0xff]  }
 0x796   : > { %v11037_v44 = vsel %vm608_vm3, %v11032_v20, %v11036_v40 }
 0x798   : > { %11449 = vmatpush1.bf16.msra.mxu0 %v17348_v62  ;;  %11642 = vmatpush1.bf16.msra.mxu1 %v17351_v33  ;;  %v11044_v62 = vrot.slane %v21342_v43, 1 }
 0x799   : > { %11450 = vmatprep.subr.bf16.mxu0 %v17356_v49  ;;  %11643 = vmatprep.subr.bf16.mxu1 %v17359_v1  ;;  %v11048_v49 = vrot.slane %v21358_v8, 1 }
 0x79a   : > { %10621 = vmatmul.mubr.bf16.gmra.mrb[96].mxu0 %v21255_v16  ;;  %10814 = vmatmul.mubr.bf16.gmra.mrb[96].mxu1 %v21255_v16  ;;  %v11041_v16 = vsel %vm608_vm3, %v11036_v40, %v11040_v45 }
 0x79b   : > { %10630 = vmatprep.mubr.bf16.mxu0 %v21292_v54  ;;  %10823 = vmatprep.mubr.bf16.mxu1 %v21292_v54  ;;  %v11038_v54 = vrot.slane %v21323_v18, 1 }
 0x79c   : > { %11451 = vmatpush1.bf16.msra.mxu0 %v17354_v19  ;;  %11644 = vmatpush1.bf16.msra.mxu1 %v17357_v24  ;;  %v11052_v19 = vrot.slane %v21368_v25, 1 }
 0x79d   : > { %11452 = vmatprep.subr.bf16.mxu0 %v17362_v41  ;;  %11645 = vmatprep.subr.bf16.mxu1 %v17365_v52  ;;  %v11039_v33 = vsel %vm608_vm3, %v11034_v61, %v11038_v54  ;;  %v11056_v41 = vrot.slane %v21378_v51, 1 }
 0x7a0   : > { %11453 = vmatpush1.bf16.msra.mxu0 %v17360_v10  ;;  %11646 = vmatpush1.bf16.msra.mxu1 %v17363_v32  ;;  %v11060_v10 = vrot.slane %v21388_v27, 1 }
 0x7a2   : > { %10631 = vmatmul.mubr.bf16.gmra.mrb[100].mxu0 %v21289_v42  ;;  %10824 = vmatmul.mubr.bf16.gmra.mrb[100].mxu1 %v21289_v42  ;;  %v11045_v42 = vsel %vm608_vm3, %v11040_v45, %v11044_v62 }
 0x7a3   : > { %10640 = vmatprep.mubr.bf16.mxu0 %v21326_v50  ;;  %10833 = vmatprep.mubr.bf16.mxu1 %v21326_v50  ;;  %v11042_v50 = vrot.slane %v21339_v38, 1 }
 0x7a5   : > { %v11043_v1 = vsel %vm608_vm3, %v11038_v54, %v11042_v50 }
 0x7aa   : > { %10641 = vmatmul.mubr.bf16.gmra.mrb[104].mxu0 %v21323_v18  ;;  %10834 = vmatmul.mubr.bf16.gmra.mrb[104].mxu1 %v21323_v18  ;;  %v11049_v18 = vsel %vm608_vm3, %v11044_v62, %v11048_v49 }
 0x7ab   : > { %10650 = vmatprep.mubr.bf16.mxu0 %v21342_v43  ;;  %10843 = vmatprep.mubr.bf16.mxu1 %v21342_v43  ;;  %v11046_v43 = vrot.slane %v21355_v17, 1 }
 0x7ad   : > { %v11047_v24 = vsel %vm608_vm3, %v11042_v50, %v11046_v43 }
 0x7b2   : > { %10651 = vmatmul.mubr.bf16.gmra.mrb[108].mxu0 %v21339_v38  ;;  %10844 = vmatmul.mubr.bf16.gmra.mrb[108].mxu1 %v21339_v38  ;;  %v11053_v38 = vsel %vm608_vm3, %v11048_v49, %v11052_v19 }
 0x7b3   : > { %10660 = vmatprep.mubr.bf16.mxu0 %v21358_v8  ;;  %10853 = vmatprep.mubr.bf16.mxu1 %v21358_v8  ;;  %v11050_v8 = vrot.slane %v21365_v23, 1 }
 0x7b5   : > { %v11051_v52 = vsel %vm608_vm3, %v11046_v43, %v11050_v8 }
 0x7ba   : > { %10661 = vmatmul.mubr.bf16.gmra.mrb[112].mxu0 %v21355_v17  ;;  %10854 = vmatmul.mubr.bf16.gmra.mrb[112].mxu1 %v21355_v17  ;;  %v11057_v17 = vsel %vm608_vm3, %v11052_v19, %v11056_v41 }
 0x7bb   : > { %10670 = vmatprep.mubr.bf16.mxu0 %v21368_v25  ;;  %10863 = vmatprep.mubr.bf16.mxu1 %v21368_v25  ;;  %v11054_v25 = vrot.slane %v21375_v3, 1 }
 0x7bd   : > { %v11055_v32 = vsel %vm608_vm3, %v11050_v8, %v11054_v25 }
 0x7c2   : > { %10671 = vmatmul.mubr.bf16.gmra.mrb[116].mxu0 %v21365_v23  ;;  %10864 = vmatmul.mubr.bf16.gmra.mrb[116].mxu1 %v21365_v23  ;;  %v11061_v23 = vsel %vm608_vm3, %v11056_v41, %v11060_v10 }
 0x7c3   : > { %10680 = vmatprep.mubr.bf16.mxu0 %v21378_v51  ;;  %10873 = vmatprep.mubr.bf16.mxu1 %v21378_v51  ;;  %v11058_v51 = vrot.slane %v21385_v31, 1 }
 0x7c5   : > { %v11059_v26 = vsel %vm608_vm3, %v11054_v25, %v11058_v51 }
 0x7ca   : > { %10681 = vmatmul.mubr.bf16.gmra.mrb[120].mxu0 %v21375_v3  ;;  %10874 = vmatmul.mubr.bf16.gmra.mrb[120].mxu1 %v21375_v3  ;;  %v11065_v3 = vsel %vm608_vm3, %v11060_v10, %v11064_v0 }
 0x7cb   : > { %10690 = vmatprep.mubr.bf16.mxu0 %v21388_v27  ;;  %10883 = vmatprep.mubr.bf16.mxu1 %v21388_v27  ;;  %v11062_v27 = vrot.slane %v21395_v57, 1 }
 0x7cd   : > { %v11063_v13 = vsel %vm608_vm3, %v11058_v51, %v11062_v27 }
 0x7d2   : > { %10691 = vmatmul.mubr.bf16.gmra.mrb[124].mxu0 %v21385_v31  ;;  %10884 = vmatmul.mubr.bf16.gmra.mrb[124].mxu1 %v21385_v31 }
 0x7d3   : > { %10700 = vmatprep.mubr.bf16.mxu0 %v21398_v59  ;;  %10893 = vmatprep.mubr.bf16.mxu1 %v21398_v59  ;;  %v11066_v59 = vrot.slane %v21404_v22, 1  ;;  %v22982_v22 = vsub.s32 3, %v22978_v14 }
 0x7d5   : > { %v11067_v58 = vsel %vm608_vm3, %v11062_v27, %v11066_v59 }
 0x7da   : > { %10701 = vmatmul.mubr.bf16.gmra.mrb[128].mxu0 %v21395_v57  ;;  %10894 = vmatmul.mubr.bf16.gmra.mrb[128].mxu1 %v21395_v57  ;;  %v11936_v57 = vld [vmem:[%s22841_s8] sm:$0xf] }
 0x7db   : > { %11454 = vmatprep.mubr.bf16.mxu0 %v11009_v34  ;;  %11647 = vmatprep.mubr.bf16.mxu1 %v11009_v34  ;;  %v11068_v34 = vrot.slane %v21406_v63, 1  ;;  %v22979_v63 = vsub.s32 0, %v22978_v14 }
 0x7dd   : > { %v11069_v31 = vsel %vm608_vm3, %v11064_v0, %v11068_v34 }
 0x7e2   : > { %11455 = vmatmul.mubr.bf16.vlgmr.msra.gmra.mrb[68].mxu0 %v11006_v37  ;;  %11648 = vmatmul.mubr.bf16.vlgmr.msra.gmra.mrb[68].mxu1 %v11006_v37  ;;  %v21737_v37 = vrot.slane %v11936_v57, %v22979_v63 }
 0x7e3   : > { %11464 = vmatprep.mubr.bf16.mxu0 %v11013_v15  ;;  %11657 = vmatprep.mubr.bf16.mxu1 %v11013_v15  ;;  %v22980_v15 = vsub.s32 2, %v22978_v14 }
 0x7e5   : > { %v21741_v5 = vrot.slane %v11936_v57, %v22980_v15 }
 0x7ea   : > { %11465 = vmatmul.mubr.bf16.gmra.mrb[72].mxu0 %v11011_v47  ;;  %11658 = vmatmul.mubr.bf16.gmra.mrb[72].mxu1 %v11011_v47  ;;  %v21745_v47 = vrot.slane %v11936_v57, %v22981_v28 }
 0x7eb   : > { %11474 = vmatprep.mubr.bf16.mxu0 %v11017_v46  ;;  %11667 = vmatprep.mubr.bf16.mxu1 %v11017_v46  ;;  %v21749_v46 = vrot.slane %v11936_v57, %v22982_v22 }
 0x7f2   : > { %11475 = vmatmul.mubr.bf16.gmra.mrb[76].mxu0 %v11015_v60  ;;  %11668 = vmatmul.mubr.bf16.gmra.mrb[76].mxu1 %v11015_v60 }
 0x7f3   : > { %11484 = vmatprep.mubr.bf16.mxu0 %v11021_v35  ;;  %11677 = vmatprep.mubr.bf16.mxu1 %v11021_v35 }
 0x7fa   : > { %11485 = vmatmul.mubr.bf16.gmra.mrb[80].mxu0 %v11019_v53  ;;  %11678 = vmatmul.mubr.bf16.gmra.mrb[80].mxu1 %v11019_v53 }
 0x7fb   : > { %11494 = vmatprep.mubr.bf16.mxu0 %v11025_v30  ;;  %11687 = vmatprep.mubr.bf16.mxu1 %v11025_v30 }
 0x802   : > { %11495 = vmatmul.mubr.bf16.gmra.mrb[84].mxu0 %v11023_v56  ;;  %11688 = vmatmul.mubr.bf16.gmra.mrb[84].mxu1 %v11023_v56 }
 0x803   : > { %11504 = vmatprep.mubr.bf16.mxu0 %v11029_v48  ;;  %11697 = vmatprep.mubr.bf16.mxu1 %v11029_v48 }
 0x80a   : > { %11505 = vmatmul.mubr.bf16.gmra.mrb[88].mxu0 %v11027_v36  ;;  %11698 = vmatmul.mubr.bf16.gmra.mrb[88].mxu1 %v11027_v36 }
 0x80b   : > { %11514 = vmatprep.mubr.bf16.mxu0 %v11033_v21  ;;  %11707 = vmatprep.mubr.bf16.mxu1 %v11033_v21 }
 0x812   : > { %11515 = vmatmul.mubr.bf16.gmra.mrb[92].mxu0 %v11031_v7  ;;  %11708 = vmatmul.mubr.bf16.gmra.mrb[92].mxu1 %v11031_v7 }
 0x813   : > { %11524 = vmatprep.mubr.bf16.mxu0 %v11037_v44  ;;  %11717 = vmatprep.mubr.bf16.mxu1 %v11037_v44 }
 0x81a   : > { %11525 = vmatmul.mubr.bf16.gmra.mrb[96].mxu0 %v11035_v4  ;;  %11718 = vmatmul.mubr.bf16.gmra.mrb[96].mxu1 %v11035_v4 }
 0x81b   : > { %11534 = vmatprep.mubr.bf16.mxu0 %v11041_v16  ;;  %11727 = vmatprep.mubr.bf16.mxu1 %v11041_v16 }
 0x822   : > { %11535 = vmatmul.mubr.bf16.gmra.mrb[100].mxu0 %v11039_v33  ;;  %11728 = vmatmul.mubr.bf16.gmra.mrb[100].mxu1 %v11039_v33 }
 0x823   : > { %11544 = vmatprep.mubr.bf16.mxu0 %v11045_v42  ;;  %11737 = vmatprep.mubr.bf16.mxu1 %v11045_v42 }
 0x82a   : > { %11545 = vmatmul.mubr.bf16.gmra.mrb[104].mxu0 %v11043_v1  ;;  %11738 = vmatmul.mubr.bf16.gmra.mrb[104].mxu1 %v11043_v1 }
 0x82b   : > { %11554 = vmatprep.mubr.bf16.mxu0 %v11049_v18  ;;  %11747 = vmatprep.mubr.bf16.mxu1 %v11049_v18 }
 0x832   : > { %11555 = vmatmul.mubr.bf16.gmra.mrb[108].mxu0 %v11047_v24  ;;  %11748 = vmatmul.mubr.bf16.gmra.mrb[108].mxu1 %v11047_v24 }
 0x833   : > { %11564 = vmatprep.mubr.bf16.mxu0 %v11053_v38  ;;  %11757 = vmatprep.mubr.bf16.mxu1 %v11053_v38 }
 0x83a   : > { %11565 = vmatmul.mubr.bf16.gmra.mrb[112].mxu0 %v11051_v52  ;;  %11758 = vmatmul.mubr.bf16.gmra.mrb[112].mxu1 %v11051_v52 }
 0x83b   : > { %11574 = vmatprep.mubr.bf16.mxu0 %v11057_v17  ;;  %11767 = vmatprep.mubr.bf16.mxu1 %v11057_v17 }
 0x842   : > { %11575 = vmatmul.mubr.bf16.gmra.mrb[116].mxu0 %v11055_v32  ;;  %11768 = vmatmul.mubr.bf16.gmra.mrb[116].mxu1 %v11055_v32 }
 0x843   : > { %11584 = vmatprep.mubr.bf16.mxu0 %v11061_v23  ;;  %11777 = vmatprep.mubr.bf16.mxu1 %v11061_v23 }
 0x84a   : > { %11585 = vmatmul.mubr.bf16.gmra.mrb[120].mxu0 %v11059_v26  ;;  %11778 = vmatmul.mubr.bf16.gmra.mrb[120].mxu1 %v11059_v26 }
 0x84b   : > { %11594 = vmatprep.mubr.bf16.mxu0 %v11065_v3  ;;  %11787 = vmatprep.mubr.bf16.mxu1 %v11065_v3 }
 0x852   : > { %11595 = vmatmul.mubr.bf16.gmra.mrb[124].mxu0 %v11063_v13  ;;  %11788 = vmatmul.mubr.bf16.gmra.mrb[124].mxu1 %v11063_v13 }
 0x853   : > { %11604 = vmatprep.mubr.bf16.mxu0 %v11069_v31  ;;  %11797 = vmatprep.mubr.bf16.mxu1 %v11069_v31 }
 0x85a   : > { %11605 = vmatmul.mubr.bf16.gmra.mrb[128].mxu0 %v11067_v58  ;;  %11798 = vmatmul.mubr.bf16.gmra.mrb[128].mxu1 %v11067_v58 }
 0x85b   : > { %12394 = vmatprep.mubr.bf16.mxu0 %v17368_v39  ;;  %12497 = vmatprep.mubr.bf16.mxu1 %v17368_v39 }
 0x8b5   : > { %v11456_v2 = vpop.f32.mrb[68].mxu0  ;;  %v11649_v55 = vpop.f32.mrb[68].mxu1 }
 0x8b6   : > { %v11958_v60 = vadd.f32 %v21737_v37, %v11456_v2  ;;  %v11960_v35 = vadd.f32 %v21741_v5, %v11649_v55  ;;  %v11458_v11 = vpop.f32.mrb[69].mxu0  ;;  %v11651_v9 = vpop.f32.mrb[69].mxu1 }
 0x8b7   : > { %v11959_v53 = vadd.f32 %v21745_v47, %v11458_v11  ;;  %v11961_v30 = vadd.f32 %v21749_v46, %v11651_v9  ;;  %v11460_v29 = vpop.f32.mrb[70].mxu0  ;;  %v11653_v6 = vpop.f32.mrb[70].mxu1 }
 0x8b8   : > { %v11962_v56 = vadd.f32 %v21737_v37, %v11460_v29  ;;  %v11964_v48 = vadd.f32 %v21741_v5, %v11653_v6  ;;  %v11462_v12 = vpop.f32.mrb[71].mxu0  ;;  %v11655_v20 = vpop.f32.mrb[71].mxu1  ;;  %v12086_v40 = vmax.f32 %v11958_v60, 0.0  ;;  %v12088_v7 = vmax.f32 %v11960_v35, 0.0 }
 0x8b9   : > { %v11963_v36 = vadd.f32 %v21745_v47, %v11462_v12  ;;  %v11965_v21 = vadd.f32 %v21749_v46, %v11655_v20  ;;  %v12087_v45 = vmax.f32 %v11959_v53, 0.0  ;;  %v12089_v4 = vmax.f32 %v11961_v30, 0.0 }
 0x8ba   : > { %v12090_v44 = vmax.f32 %v11962_v56, 0.0  ;;  %v12092_v61 = vmax.f32 %v11964_v48, 0.0 }
 0x8bb   : > { %v12091_v16 = vmax.f32 %v11963_v36, 0.0  ;;  %v12093_v54 = vmax.f32 %v11965_v21, 0.0 }
 0x8bc   : > { %v21762_v62 = vpack.c.bf16 %v12090_v44, %v12086_v40  ;;  %v21764_v33 = vpack.c.bf16 %v12092_v61, %v12088_v7 }
 0x8bd   : > { %v21766_v42 = vpack.c.bf16 %v12091_v16, %v12087_v45  ;;  %v21768_v50 = vpack.c.bf16 %v12093_v54, %v12089_v4  ;;  %v11466_v49 = vpop.f32.mrb[72].mxu0  ;;  %v11659_v1 = vpop.f32.mrb[72].mxu1 }
 0x8be   : > { %v11966_v18 = vadd.f32 %v21737_v37, %v11466_v49  ;;  %v11968_v43 = vadd.f32 %v21741_v5, %v11659_v1  ;;  %v11468_v19 = vpop.f32.mrb[73].mxu0  ;;  %v11661_v24 = vpop.f32.mrb[73].mxu1 }
 0x8bf   : > { %v11967_v38 = vadd.f32 %v21745_v47, %v11468_v19  ;;  %v11969_v8 = vadd.f32 %v21749_v46, %v11661_v24  ;;  %v11470_v41 = vpop.f32.mrb[74].mxu0  ;;  %v11663_v52 = vpop.f32.mrb[74].mxu1  ;;  %12362 = vmatprep.subr.bf16.mxu0 %v21766_v42  ;;  %12465 = vmatprep.subr.bf16.mxu1 %v21768_v50 }
 0x8c0   : > { %v11970_v17 = vadd.f32 %v21737_v37, %v11470_v41  ;;  %v11972_v25 = vadd.f32 %v21741_v5, %v11663_v52  ;;  %v11472_v10 = vpop.f32.mrb[75].mxu0  ;;  %v11665_v32 = vpop.f32.mrb[75].mxu1  ;;  %12363 = vmatpush1.bf16.msra.mxu0 %v21762_v62  ;;  %12466 = vmatpush1.bf16.msra.mxu1 %v21764_v33  ;;  %v12094_v0 = vmax.f32 %v11966_v18, 0.0  ;;  %v12096_v26 = vmax.f32 %v11968_v43, 0.0 }
 0x8c1   : > { %v11971_v23 = vadd.f32 %v21745_v47, %v11472_v10  ;;  %v11973_v51 = vadd.f32 %v21749_v46, %v11665_v32  ;;  %v12095_v34 = vmax.f32 %v11967_v38, 0.0  ;;  %v12097_v13 = vmax.f32 %v11969_v8, 0.0 }
 0x8c2   : > { %v12098_v3 = vmax.f32 %v11970_v17, 0.0  ;;  %v12100_v27 = vmax.f32 %v11972_v25, 0.0 }
 0x8c3   : > { %v12099_v31 = vmax.f32 %v11971_v23, 0.0  ;;  %v12101_v59 = vmax.f32 %v11973_v51, 0.0 }
 0x8c4   : > { %v21782_v58 = vpack.c.bf16 %v12098_v3, %v12094_v0  ;;  %v21784_v57 = vpack.c.bf16 %v12100_v27, %v12096_v26 }
 0x8c5   : > { %v21786_v14 = vpack.c.bf16 %v12099_v31, %v12095_v34  ;;  %v21788_v63 = vpack.c.bf16 %v12101_v59, %v12097_v13  ;;  %v11476_v15 = vpop.f32.mrb[76].mxu0  ;;  %v11669_v28 = vpop.f32.mrb[76].mxu1 }
 0x8c6   : > { %v11974_v22 = vadd.f32 %v21737_v37, %v11476_v15  ;;  %v11976_v2 = vadd.f32 %v21741_v5, %v11669_v28  ;;  %v11478_v55 = vpop.f32.mrb[77].mxu0  ;;  %v11671_v60 = vpop.f32.mrb[77].mxu1 }
 0x8c7   : > { %v11975_v35 = vadd.f32 %v21745_v47, %v11478_v55  ;;  %v11977_v11 = vadd.f32 %v21749_v46, %v11671_v60  ;;  %v11480_v9 = vpop.f32.mrb[78].mxu0  ;;  %v11673_v53 = vpop.f32.mrb[78].mxu1  ;;  %12364 = vmatprep.subr.bf16.mxu0 %v21786_v14  ;;  %12467 = vmatprep.subr.bf16.mxu1 %v21788_v63 }
 0x8c8   : > { %v11978_v30 = vadd.f32 %v21737_v37, %v11480_v9  ;;  %v11980_v29 = vadd.f32 %v21741_v5, %v11673_v53  ;;  %v11482_v6 = vpop.f32.mrb[79].mxu0  ;;  %v11675_v56 = vpop.f32.mrb[79].mxu1  ;;  %12365 = vmatpush1.bf16.msra.mxu0 %v21782_v58  ;;  %12468 = vmatpush1.bf16.msra.mxu1 %v21784_v57  ;;  %v12102_v20 = vmax.f32 %v11974_v22, 0.0  ;;  %v12104_v36 = vmax.f32 %v11976_v2, 0.0 }
 0x8c9   : > { %v11979_v48 = vadd.f32 %v21745_v47, %v11482_v6  ;;  %v11981_v12 = vadd.f32 %v21749_v46, %v11675_v56  ;;  %v12103_v40 = vmax.f32 %v11975_v35, 0.0  ;;  %v12105_v7 = vmax.f32 %v11977_v11, 0.0 }
 0x8ca   : > { %v12106_v21 = vmax.f32 %v11978_v30, 0.0  ;;  %v12108_v39 = vmax.f32 %v11980_v29, 0.0 }
 0x8cb   : > { %v12107_v44 = vmax.f32 %v11979_v48, 0.0  ;;  %v12109_v61 = vmax.f32 %v11981_v12, 0.0 }
 0x8cc   : > { %v21802_v45 = vpack.c.bf16 %v12106_v21, %v12102_v20  ;;  %v21804_v4 = vpack.c.bf16 %v12108_v39, %v12104_v36 }
 0x8cd   : > { %v21806_v16 = vpack.c.bf16 %v12107_v44, %v12103_v40  ;;  %v21808_v54 = vpack.c.bf16 %v12109_v61, %v12105_v7  ;;  %v11486_v49 = vpop.f32.mrb[80].mxu0  ;;  %v11679_v1 = vpop.f32.mrb[80].mxu1 }
 0x8ce   : > { %v11982_v18 = vadd.f32 %v21737_v37, %v11486_v49  ;;  %v11984_v43 = vadd.f32 %v21741_v5, %v11679_v1  ;;  %v11488_v19 = vpop.f32.mrb[81].mxu0  ;;  %v11681_v24 = vpop.f32.mrb[81].mxu1 }
 0x8cf   : > { %v11983_v38 = vadd.f32 %v21745_v47, %v11488_v19  ;;  %v11985_v8 = vadd.f32 %v21749_v46, %v11681_v24  ;;  %v11490_v41 = vpop.f32.mrb[82].mxu0  ;;  %v11683_v52 = vpop.f32.mrb[82].mxu1  ;;  %12366 = vmatprep.subr.bf16.mxu0 %v21806_v16  ;;  %12469 = vmatprep.subr.bf16.mxu1 %v21808_v54 }
 0x8d0   : > { %v11986_v17 = vadd.f32 %v21737_v37, %v11490_v41  ;;  %v11988_v25 = vadd.f32 %v21741_v5, %v11683_v52  ;;  %v11492_v10 = vpop.f32.mrb[83].mxu0  ;;  %v11685_v32 = vpop.f32.mrb[83].mxu1  ;;  %12367 = vmatpush1.bf16.msra.mxu0 %v21802_v45  ;;  %12470 = vmatpush1.bf16.msra.mxu1 %v21804_v4  ;;  %v12110_v0 = vmax.f32 %v11982_v18, 0.0  ;;  %v12112_v26 = vmax.f32 %v11984_v43, 0.0 }
 0x8d1   : > { %v11987_v23 = vadd.f32 %v21745_v47, %v11492_v10  ;;  %v11989_v51 = vadd.f32 %v21749_v46, %v11685_v32  ;;  %v12111_v34 = vmax.f32 %v11983_v38, 0.0  ;;  %v12113_v13 = vmax.f32 %v11985_v8, 0.0 }
 0x8d2   : > { %v12114_v3 = vmax.f32 %v11986_v17, 0.0  ;;  %v12116_v27 = vmax.f32 %v11988_v25, 0.0 }
 0x8d3   : > { %v12115_v31 = vmax.f32 %v11987_v23, 0.0  ;;  %v12117_v59 = vmax.f32 %v11989_v51, 0.0 }
 0x8d4   : > { %v21822_v15 = vpack.c.bf16 %v12114_v3, %v12110_v0  ;;  %v21824_v28 = vpack.c.bf16 %v12116_v27, %v12112_v26 }
 0x8d5   : > { %v21826_v22 = vpack.c.bf16 %v12115_v31, %v12111_v34  ;;  %v21828_v2 = vpack.c.bf16 %v12117_v59, %v12113_v13  ;;  %v11496_v55 = vpop.f32.mrb[84].mxu0  ;;  %v11689_v60 = vpop.f32.mrb[84].mxu1 }
 0x8d6   : > { %v11990_v35 = vadd.f32 %v21737_v37, %v11496_v55  ;;  %v11992_v11 = vadd.f32 %v21741_v5, %v11689_v60  ;;  %v11498_v9 = vpop.f32.mrb[85].mxu0  ;;  %v11691_v53 = vpop.f32.mrb[85].mxu1 }
 0x8d7   : > { %v11991_v30 = vadd.f32 %v21745_v47, %v11498_v9  ;;  %v11993_v29 = vadd.f32 %v21749_v46, %v11691_v53  ;;  %v11500_v6 = vpop.f32.mrb[86].mxu0  ;;  %v11693_v56 = vpop.f32.mrb[86].mxu1  ;;  %12368 = vmatprep.subr.bf16.mxu0 %v21826_v22  ;;  %12471 = vmatprep.subr.bf16.mxu1 %v21828_v2 }
 0x8d8   : > { %v11994_v48 = vadd.f32 %v21737_v37, %v11500_v6  ;;  %v11996_v12 = vadd.f32 %v21741_v5, %v11693_v56  ;;  %v11502_v20 = vpop.f32.mrb[87].mxu0  ;;  %v11695_v36 = vpop.f32.mrb[87].mxu1  ;;  %12369 = vmatpush1.bf16.msra.mxu0 %v21822_v15  ;;  %12472 = vmatpush1.bf16.msra.mxu1 %v21824_v28  ;;  %v12118_v40 = vmax.f32 %v11990_v35, 0.0  ;;  %v12120_v7 = vmax.f32 %v11992_v11, 0.0 }
 0x8d9   : > { %v11995_v21 = vadd.f32 %v21745_v47, %v11502_v20  ;;  %v11997_v39 = vadd.f32 %v21749_v46, %v11695_v36  ;;  %v12119_v49 = vmax.f32 %v11991_v30, 0.0  ;;  %v12121_v1 = vmax.f32 %v11993_v29, 0.0 }
 0x8da   : > { %v12122_v44 = vmax.f32 %v11994_v48, 0.0  ;;  %v12124_v61 = vmax.f32 %v11996_v12, 0.0 }
 0x8db   : > { %v12123_v18 = vmax.f32 %v11995_v21, 0.0  ;;  %v12125_v43 = vmax.f32 %v11997_v39, 0.0 }
 0x8dc   : > { %v21842_v19 = vpack.c.bf16 %v12122_v44, %v12118_v40  ;;  %v21844_v24 = vpack.c.bf16 %v12124_v61, %v12120_v7 }
 0x8dd   : > { %v21846_v38 = vpack.c.bf16 %v12123_v18, %v12119_v49  ;;  %v21848_v8 = vpack.c.bf16 %v12125_v43, %v12121_v1  ;;  %v11506_v41 = vpop.f32.mrb[88].mxu0  ;;  %v11699_v52 = vpop.f32.mrb[88].mxu1 }
 0x8de   : > { %v11998_v17 = vadd.f32 %v21737_v37, %v11506_v41  ;;  %v12000_v25 = vadd.f32 %v21741_v5, %v11699_v52  ;;  %v11508_v10 = vpop.f32.mrb[89].mxu0  ;;  %v11701_v32 = vpop.f32.mrb[89].mxu1 }
 0x8df   : > { %v11999_v23 = vadd.f32 %v21745_v47, %v11508_v10  ;;  %v12001_v51 = vadd.f32 %v21749_v46, %v11701_v32  ;;  %v11510_v0 = vpop.f32.mrb[90].mxu0  ;;  %v11703_v26 = vpop.f32.mrb[90].mxu1  ;;  %12370 = vmatprep.subr.bf16.mxu0 %v21846_v38  ;;  %12473 = vmatprep.subr.bf16.mxu1 %v21848_v8 }
 0x8e0   : > { %v12002_v3 = vadd.f32 %v21737_v37, %v11510_v0  ;;  %v12004_v27 = vadd.f32 %v21741_v5, %v11703_v26  ;;  %v11512_v34 = vpop.f32.mrb[91].mxu0  ;;  %v11705_v13 = vpop.f32.mrb[91].mxu1  ;;  %12371 = vmatpush1.bf16.msra.mxu0 %v21842_v19  ;;  %12474 = vmatpush1.bf16.msra.mxu1 %v21844_v24  ;;  %v12126_v55 = vmax.f32 %v11998_v17, 0.0  ;;  %v12128_v60 = vmax.f32 %v12000_v25, 0.0 }
 0x8e1   : > { %v12003_v31 = vadd.f32 %v21745_v47, %v11512_v34  ;;  %v12005_v59 = vadd.f32 %v21749_v46, %v11705_v13  ;;  %v12127_v9 = vmax.f32 %v11999_v23, 0.0  ;;  %v12129_v53 = vmax.f32 %v12001_v51, 0.0 }
 0x8e2   : > { %v12130_v35 = vmax.f32 %v12002_v3, 0.0  ;;  %v12132_v11 = vmax.f32 %v12004_v27, 0.0 }
 0x8e3   : > { %v12131_v30 = vmax.f32 %v12003_v31, 0.0  ;;  %v12133_v29 = vmax.f32 %v12005_v59, 0.0 }
 0x8e4   : > { %v21862_v6 = vpack.c.bf16 %v12130_v35, %v12126_v55  ;;  %v21864_v56 = vpack.c.bf16 %v12132_v11, %v12128_v60 }
 0x8e5   : > { %v21866_v48 = vpack.c.bf16 %v12131_v30, %v12127_v9  ;;  %v21868_v12 = vpack.c.bf16 %v12133_v29, %v12129_v53  ;;  %v11516_v20 = vpop.f32.mrb[92].mxu0  ;;  %v11709_v36 = vpop.f32.mrb[92].mxu1 }
 0x8e6   : > { %v12006_v21 = vadd.f32 %v21737_v37, %v11516_v20  ;;  %v12008_v39 = vadd.f32 %v21741_v5, %v11709_v36  ;;  %v11518_v40 = vpop.f32.mrb[93].mxu0  ;;  %v11711_v7 = vpop.f32.mrb[93].mxu1 }
 0x8e7   : > { %v12007_v44 = vadd.f32 %v21745_v47, %v11518_v40  ;;  %v12009_v61 = vadd.f32 %v21749_v46, %v11711_v7  ;;  %v11520_v49 = vpop.f32.mrb[94].mxu0  ;;  %v11713_v1 = vpop.f32.mrb[94].mxu1  ;;  %12372 = vmatprep.subr.bf16.mxu0 %v21866_v48  ;;  %12475 = vmatprep.subr.bf16.mxu1 %v21868_v12 }
 0x8e8   : > { %v12010_v18 = vadd.f32 %v21737_v37, %v11520_v49  ;;  %v12012_v43 = vadd.f32 %v21741_v5, %v11713_v1  ;;  %v11522_v41 = vpop.f32.mrb[95].mxu0  ;;  %v11715_v52 = vpop.f32.mrb[95].mxu1  ;;  %12373 = vmatpush1.bf16.msra.mxu0 %v21862_v6  ;;  %12476 = vmatpush1.bf16.msra.mxu1 %v21864_v56  ;;  %v12134_v10 = vmax.f32 %v12006_v21, 0.0  ;;  %v12136_v32 = vmax.f32 %v12008_v39, 0.0 }
 0x8e9   : > { %v12011_v17 = vadd.f32 %v21745_v47, %v11522_v41  ;;  %v12013_v25 = vadd.f32 %v21749_v46, %v11715_v52  ;;  %v12135_v0 = vmax.f32 %v12007_v44, 0.0  ;;  %v12137_v26 = vmax.f32 %v12009_v61, 0.0 }
 0x8ea   : > { %v12138_v23 = vmax.f32 %v12010_v18, 0.0  ;;  %v12140_v51 = vmax.f32 %v12012_v43, 0.0 }
 0x8eb   : > { %v12139_v3 = vmax.f32 %v12011_v17, 0.0  ;;  %v12141_v27 = vmax.f32 %v12013_v25, 0.0 }
 0x8ec   : > { %v21882_v34 = vpack.c.bf16 %v12138_v23, %v12134_v10  ;;  %v21884_v13 = vpack.c.bf16 %v12140_v51, %v12136_v32 }
 0x8ed   : > { %v21886_v31 = vpack.c.bf16 %v12139_v3, %v12135_v0  ;;  %v21888_v59 = vpack.c.bf16 %v12141_v27, %v12137_v26  ;;  %v11526_v55 = vpop.f32.mrb[96].mxu0  ;;  %v11719_v60 = vpop.f32.mrb[96].mxu1 }
 0x8ee   : > { %v12014_v35 = vadd.f32 %v21737_v37, %v11526_v55  ;;  %v12016_v11 = vadd.f32 %v21741_v5, %v11719_v60  ;;  %v11528_v9 = vpop.f32.mrb[97].mxu0  ;;  %v11721_v53 = vpop.f32.mrb[97].mxu1 }
 0x8ef   : > { %v12015_v30 = vadd.f32 %v21745_v47, %v11528_v9  ;;  %v12017_v29 = vadd.f32 %v21749_v46, %v11721_v53  ;;  %v11530_v20 = vpop.f32.mrb[98].mxu0  ;;  %v11723_v36 = vpop.f32.mrb[98].mxu1  ;;  %12374 = vmatprep.subr.bf16.mxu0 %v21886_v31  ;;  %12477 = vmatprep.subr.bf16.mxu1 %v21888_v59 }
 0x8f0   : > { %v12018_v21 = vadd.f32 %v21737_v37, %v11530_v20  ;;  %v12020_v39 = vadd.f32 %v21741_v5, %v11723_v36  ;;  %v11532_v40 = vpop.f32.mrb[99].mxu0  ;;  %v11725_v7 = vpop.f32.mrb[99].mxu1  ;;  %12375 = vmatpush1.bf16.msra.mxu0 %v21882_v34  ;;  %12478 = vmatpush1.bf16.msra.mxu1 %v21884_v13  ;;  %v12142_v49 = vmax.f32 %v12014_v35, 0.0  ;;  %v12144_v1 = vmax.f32 %v12016_v11, 0.0 }
 0x8f1   : > { %v12019_v44 = vadd.f32 %v21745_v47, %v11532_v40  ;;  %v12021_v61 = vadd.f32 %v21749_v46, %v11725_v7  ;;  %v12143_v41 = vmax.f32 %v12015_v30, 0.0  ;;  %v12145_v52 = vmax.f32 %v12017_v29, 0.0 }
 0x8f2   : > { %v12146_v18 = vmax.f32 %v12018_v21, 0.0  ;;  %v12148_v43 = vmax.f32 %v12020_v39, 0.0 }
 0x8f3   : > { %v12147_v17 = vmax.f32 %v12019_v44, 0.0  ;;  %v12149_v25 = vmax.f32 %v12021_v61, 0.0 }
 0x8f4   : > { %v21902_v10 = vpack.c.bf16 %v12146_v18, %v12142_v49  ;;  %v21904_v32 = vpack.c.bf16 %v12148_v43, %v12144_v1 }
 0x8f5   : > { %v21906_v23 = vpack.c.bf16 %v12147_v17, %v12143_v41  ;;  %v21908_v51 = vpack.c.bf16 %v12149_v25, %v12145_v52  ;;  %v11536_v0 = vpop.f32.mrb[100].mxu0  ;;  %v11729_v26 = vpop.f32.mrb[100].mxu1 }
 0x8f6   : > { %v12022_v3 = vadd.f32 %v21737_v37, %v11536_v0  ;;  %v12024_v27 = vadd.f32 %v21741_v5, %v11729_v26  ;;  %v11538_v55 = vpop.f32.mrb[101].mxu0  ;;  %v11731_v60 = vpop.f32.mrb[101].mxu1 }
 0x8f7   : > { %v12023_v35 = vadd.f32 %v21745_v47, %v11538_v55  ;;  %v12025_v11 = vadd.f32 %v21749_v46, %v11731_v60  ;;  %v11540_v9 = vpop.f32.mrb[102].mxu0  ;;  %v11733_v53 = vpop.f32.mrb[102].mxu1  ;;  %12376 = vmatprep.subr.bf16.mxu0 %v21906_v23  ;;  %12479 = vmatprep.subr.bf16.mxu1 %v21908_v51 }
 0x8f8   : > { %v12026_v30 = vadd.f32 %v21737_v37, %v11540_v9  ;;  %v12028_v29 = vadd.f32 %v21741_v5, %v11733_v53  ;;  %v11542_v20 = vpop.f32.mrb[103].mxu0  ;;  %v11735_v36 = vpop.f32.mrb[103].mxu1  ;;  %12377 = vmatpush1.bf16.msra.mxu0 %v21902_v10  ;;  %12480 = vmatpush1.bf16.msra.mxu1 %v21904_v32  ;;  %v12150_v40 = vmax.f32 %v12022_v3, 0.0  ;;  %v12152_v7 = vmax.f32 %v12024_v27, 0.0 }
 0x8f9   : > { %v12027_v21 = vadd.f32 %v21745_v47, %v11542_v20  ;;  %v12029_v39 = vadd.f32 %v21749_v46, %v11735_v36  ;;  %v12151_v49 = vmax.f32 %v12023_v35, 0.0  ;;  %v12153_v1 = vmax.f32 %v12025_v11, 0.0 }
 0x8fa   : > { %v12154_v44 = vmax.f32 %v12026_v30, 0.0  ;;  %v12156_v61 = vmax.f32 %v12028_v29, 0.0 }
 0x8fb   : > { %v12155_v18 = vmax.f32 %v12027_v21, 0.0  ;;  %v12157_v43 = vmax.f32 %v12029_v39, 0.0 }
 0x8fc   : > { %v21922_v41 = vpack.c.bf16 %v12154_v44, %v12150_v40  ;;  %v21924_v52 = vpack.c.bf16 %v12156_v61, %v12152_v7 }
 0x8fd   : > { %v21926_v17 = vpack.c.bf16 %v12155_v18, %v12151_v49  ;;  %v21928_v25 = vpack.c.bf16 %v12157_v43, %v12153_v1  ;;  %v11546_v0 = vpop.f32.mrb[104].mxu0  ;;  %v11739_v26 = vpop.f32.mrb[104].mxu1 }
 0x8fe   : > { %v12030_v55 = vadd.f32 %v21737_v37, %v11546_v0  ;;  %v12032_v3 = vadd.f32 %v21741_v5, %v11739_v26  ;;  %v11548_v27 = vpop.f32.mrb[105].mxu0  ;;  %v11741_v60 = vpop.f32.mrb[105].mxu1 }
 0x8ff   : > { %v12031_v35 = vadd.f32 %v21745_v47, %v11548_v27  ;;  %v12033_v11 = vadd.f32 %v21749_v46, %v11741_v60  ;;  %v11550_v9 = vpop.f32.mrb[106].mxu0  ;;  %v11743_v53 = vpop.f32.mrb[106].mxu1  ;;  %12378 = vmatprep.subr.bf16.mxu0 %v21926_v17  ;;  %12481 = vmatprep.subr.bf16.mxu1 %v21928_v25 }
 0x900   : > { %v12034_v30 = vadd.f32 %v21737_v37, %v11550_v9  ;;  %v12036_v29 = vadd.f32 %v21741_v5, %v11743_v53  ;;  %v11552_v20 = vpop.f32.mrb[107].mxu0  ;;  %v11745_v36 = vpop.f32.mrb[107].mxu1  ;;  %12379 = vmatpush1.bf16.msra.mxu0 %v21922_v41  ;;  %12482 = vmatpush1.bf16.msra.mxu1 %v21924_v52  ;;  %v12158_v40 = vmax.f32 %v12030_v55, 0.0  ;;  %v12160_v7 = vmax.f32 %v12032_v3, 0.0 }
 0x901   : > { %v12035_v21 = vadd.f32 %v21745_v47, %v11552_v20  ;;  %v12037_v39 = vadd.f32 %v21749_v46, %v11745_v36  ;;  %v12159_v49 = vmax.f32 %v12031_v35, 0.0  ;;  %v12161_v1 = vmax.f32 %v12033_v11, 0.0 }
 0x902   : > { %v12162_v44 = vmax.f32 %v12034_v30, 0.0  ;;  %v12164_v61 = vmax.f32 %v12036_v29, 0.0 }
 0x903   : > { %v12163_v18 = vmax.f32 %v12035_v21, 0.0  ;;  %v12165_v43 = vmax.f32 %v12037_v39, 0.0 }
 0x904   : > { %v21942_v0 = vpack.c.bf16 %v12162_v44, %v12158_v40  ;;  %v21944_v26 = vpack.c.bf16 %v12164_v61, %v12160_v7 }
 0x905   : > { %v21946_v27 = vpack.c.bf16 %v12163_v18, %v12159_v49  ;;  %v21948_v60 = vpack.c.bf16 %v12165_v43, %v12161_v1  ;;  %v11556_v9 = vpop.f32.mrb[108].mxu0  ;;  %v11749_v53 = vpop.f32.mrb[108].mxu1 }
 0x906   : > { %22983 = vst [vmem:[#allocation4_spill] sm:$0xff] %v21942_v0  ;;  %22984 = vst [vmem:[#allocation3_spill] sm:$0xff] %v21944_v26  ;;  %v12038_v20 = vadd.f32 %v21737_v37, %v11556_v9  ;;  %v12040_v55 = vadd.f32 %v21741_v5, %v11749_v53  ;;  %v11558_v3 = vpop.f32.mrb[109].mxu0  ;;  %v11751_v30 = vpop.f32.mrb[109].mxu1 }
 0x907   : > { %22985 = vst [vmem:[#allocation5_spill] sm:$0xff] %v21948_v60  ;;  %v12039_v35 = vadd.f32 %v21745_v47, %v11558_v3  ;;  %v12041_v11 = vadd.f32 %v21749_v46, %v11751_v30  ;;  %v11560_v29 = vpop.f32.mrb[110].mxu0  ;;  %v11753_v36 = vpop.f32.mrb[110].mxu1  ;;  %12380 = vmatprep.subr.bf16.mxu0 %v21946_v27  ;;  %12483 = vmatprep.subr.bf16.mxu1 %v21948_v60 }
 0x908   : > { %v12042_v21 = vadd.f32 %v21737_v37, %v11560_v29  ;;  %v12044_v39 = vadd.f32 %v21741_v5, %v11753_v36  ;;  %v11562_v40 = vpop.f32.mrb[111].mxu0  ;;  %v11755_v7 = vpop.f32.mrb[111].mxu1  ;;  %12381 = vmatpush1.bf16.msra.mxu0 %v21942_v0  ;;  %12484 = vmatpush1.bf16.msra.mxu1 %v21944_v26  ;;  %v12166_v49 = vmax.f32 %v12038_v20, 0.0  ;;  %v12168_v1 = vmax.f32 %v12040_v55, 0.0 }
 0x909   : > { %v12043_v44 = vadd.f32 %v21745_v47, %v11562_v40  ;;  %v12045_v61 = vadd.f32 %v21749_v46, %v11755_v7  ;;  %v12167_v9 = vmax.f32 %v12039_v35, 0.0  ;;  %v12169_v53 = vmax.f32 %v12041_v11, 0.0 }
 0x90a   : > { %v12170_v18 = vmax.f32 %v12042_v21, 0.0  ;;  %v12172_v43 = vmax.f32 %v12044_v39, 0.0 }
 0x90b   : > { %v12171_v3 = vmax.f32 %v12043_v44, 0.0  ;;  %v12173_v30 = vmax.f32 %v12045_v61, 0.0 }
 0x90c   : > { %v21962_v29 = vpack.c.bf16 %v12170_v18, %v12166_v49  ;;  %v21964_v36 = vpack.c.bf16 %v12172_v43, %v12168_v1 }
 0x90d   : > { %v21966_v60 = vpack.c.bf16 %v12171_v3, %v12167_v9  ;;  %v21968_v0 = vpack.c.bf16 %v12173_v30, %v12169_v53  ;;  %v11566_v26 = vpop.f32.mrb[112].mxu0  ;;  %v11759_v40 = vpop.f32.mrb[112].mxu1 }
 0x90e   : > { %22986 = vst [vmem:[#allocation7_spill] sm:$0xff] %v21962_v29  ;;  %22987 = vst [vmem:[#allocation6_spill] sm:$0xff] %v21964_v36  ;;  %v12046_v7 = vadd.f32 %v21737_v37, %v11566_v26  ;;  %v12048_v20 = vadd.f32 %v21741_v5, %v11759_v40  ;;  %v11568_v55 = vpop.f32.mrb[113].mxu0  ;;  %v11761_v21 = vpop.f32.mrb[113].mxu1 }
 0x90f   : > { %22988 = vst [vmem:[#allocation9_spill] sm:$0xff] %v21966_v60  ;;  %22989 = vst [vmem:[#allocation8_spill] sm:$0xff] %v21968_v0  ;;  %v12047_v35 = vadd.f32 %v21745_v47, %v11568_v55  ;;  %v12049_v11 = vadd.f32 %v21749_v46, %v11761_v21  ;;  %v11570_v39 = vpop.f32.mrb[114].mxu0  ;;  %v11763_v44 = vpop.f32.mrb[114].mxu1  ;;  %12382 = vmatprep.subr.bf16.mxu0 %v21966_v60  ;;  %12485 = vmatprep.subr.bf16.mxu1 %v21968_v0 }
 0x910   : > { %v12050_v61 = vadd.f32 %v21737_v37, %v11570_v39  ;;  %v12052_v49 = vadd.f32 %v21741_v5, %v11763_v44  ;;  %v11572_v1 = vpop.f32.mrb[115].mxu0  ;;  %v11765_v26 = vpop.f32.mrb[115].mxu1  ;;  %12383 = vmatpush1.bf16.msra.mxu0 %v21962_v29  ;;  %12486 = vmatpush1.bf16.msra.mxu1 %v21964_v36  ;;  %v12174_v9 = vmax.f32 %v12046_v7, 0.0  ;;  %v12176_v53 = vmax.f32 %v12048_v20, 0.0 }
 0x911   : > { %v12051_v18 = vadd.f32 %v21745_v47, %v11572_v1  ;;  %v12053_v43 = vadd.f32 %v21749_v46, %v11765_v26  ;;  %v12175_v40 = vmax.f32 %v12047_v35, 0.0  ;;  %v12177_v55 = vmax.f32 %v12049_v11, 0.0 }
 0x912   : > { %v12178_v3 = vmax.f32 %v12050_v61, 0.0  ;;  %v12180_v30 = vmax.f32 %v12052_v49, 0.0 }
 0x913   : > { %v12179_v21 = vmax.f32 %v12051_v18, 0.0  ;;  %v12181_v39 = vmax.f32 %v12053_v43, 0.0 }
 0x914   : > { %v21982_v0 = vpack.c.bf16 %v12178_v3, %v12174_v9  ;;  %v21984_v44 = vpack.c.bf16 %v12180_v30, %v12176_v53 }
 0x915   : > { %v21986_v60 = vpack.c.bf16 %v12179_v21, %v12175_v40  ;;  %v21988_v29 = vpack.c.bf16 %v12181_v39, %v12177_v55  ;;  %v11576_v36 = vpop.f32.mrb[116].mxu0  ;;  %v11769_v1 = vpop.f32.mrb[116].mxu1 }
 0x916   : > { %22990 = vst [vmem:[#allocation11_spill] sm:$0xff] %v21982_v0  ;;  %22991 = vst [vmem:[#allocation10_spill] sm:$0xff] %v21984_v44  ;;  %v12054_v26 = vadd.f32 %v21737_v37, %v11576_v36  ;;  %v12056_v7 = vadd.f32 %v21741_v5, %v11769_v1  ;;  %v11578_v20 = vpop.f32.mrb[117].mxu0  ;;  %v11771_v61 = vpop.f32.mrb[117].mxu1 }
 0x917   : > { %22992 = vst [vmem:[#allocation13_spill] sm:$0xff] %v21986_v60  ;;  %22993 = vst [vmem:[#allocation12_spill] sm:$0xff] %v21988_v29  ;;  %v12055_v35 = vadd.f32 %v21745_v47, %v11578_v20  ;;  %v12057_v11 = vadd.f32 %v21749_v46, %v11771_v61  ;;  %v11580_v49 = vpop.f32.mrb[118].mxu0  ;;  %v11773_v18 = vpop.f32.mrb[118].mxu1  ;;  %12384 = vmatprep.subr.bf16.mxu0 %v21986_v60  ;;  %12487 = vmatprep.subr.bf16.mxu1 %v21988_v29 }
 0x918   : > { %v12058_v43 = vadd.f32 %v21737_v37, %v11580_v49  ;;  %v12060_v9 = vadd.f32 %v21741_v5, %v11773_v18  ;;  %v11582_v53 = vpop.f32.mrb[119].mxu0  ;;  %v11775_v36 = vpop.f32.mrb[119].mxu1  ;;  %12385 = vmatpush1.bf16.msra.mxu0 %v21982_v0  ;;  %12488 = vmatpush1.bf16.msra.mxu1 %v21984_v44  ;;  %v12182_v40 = vmax.f32 %v12054_v26, 0.0  ;;  %v12184_v55 = vmax.f32 %v12056_v7, 0.0 }
 0x919   : > { %v12059_v3 = vadd.f32 %v21745_v47, %v11582_v53  ;;  %v12061_v30 = vadd.f32 %v21749_v46, %v11775_v36  ;;  %v12183_v1 = vmax.f32 %v12055_v35, 0.0  ;;  %v12185_v20 = vmax.f32 %v12057_v11, 0.0 }
 0x91a   : > { %v12186_v21 = vmax.f32 %v12058_v43, 0.0  ;;  %v12188_v39 = vmax.f32 %v12060_v9, 0.0 }
 0x91b   : > { %v12187_v61 = vmax.f32 %v12059_v3, 0.0  ;;  %v12189_v49 = vmax.f32 %v12061_v30, 0.0 }
 0x91c   : > { %v22002_v29 = vpack.c.bf16 %v12186_v21, %v12182_v40  ;;  %v22004_v18 = vpack.c.bf16 %v12188_v39, %v12184_v55 }
 0x91d   : > { %v22006_v60 = vpack.c.bf16 %v12187_v61, %v12183_v1  ;;  %v22008_v0 = vpack.c.bf16 %v12189_v49, %v12185_v20  ;;  %v11586_v44 = vpop.f32.mrb[120].mxu0  ;;  %v11779_v53 = vpop.f32.mrb[120].mxu1 }
 0x91e   : > { %22994 = vst [vmem:[#allocation15_spill] sm:$0xff] %v22002_v29  ;;  %22995 = vst [vmem:[#allocation14_spill] sm:$0xff] %v22004_v18  ;;  %v12062_v36 = vadd.f32 %v21737_v37, %v11586_v44  ;;  %v12064_v26 = vadd.f32 %v21741_v5, %v11779_v53  ;;  %v11588_v7 = vpop.f32.mrb[121].mxu0  ;;  %v11781_v43 = vpop.f32.mrb[121].mxu1 }
 0x91f   : > { %22996 = vst [vmem:[#allocation17_spill] sm:$0xff] %v22006_v60  ;;  %22997 = vst [vmem:[#allocation16_spill] sm:$0xff] %v22008_v0  ;;  %v12063_v35 = vadd.f32 %v21745_v47, %v11588_v7  ;;  %v12065_v11 = vadd.f32 %v21749_v46, %v11781_v43  ;;  %v11590_v9 = vpop.f32.mrb[122].mxu0  ;;  %v11783_v3 = vpop.f32.mrb[122].mxu1  ;;  %12386 = vmatprep.subr.bf16.mxu0 %v22006_v60  ;;  %12489 = vmatprep.subr.bf16.mxu1 %v22008_v0 }
 0x920   : > { %v12066_v30 = vadd.f32 %v21737_v37, %v11590_v9  ;;  %v12068_v40 = vadd.f32 %v21741_v5, %v11783_v3  ;;  %v11592_v55 = vpop.f32.mrb[123].mxu0  ;;  %v11785_v44 = vpop.f32.mrb[123].mxu1  ;;  %12387 = vmatpush1.bf16.msra.mxu0 %v22002_v29  ;;  %12490 = vmatpush1.bf16.msra.mxu1 %v22004_v18  ;;  %v12190_v1 = vmax.f32 %v12062_v36, 0.0  ;;  %v12192_v20 = vmax.f32 %v12064_v26, 0.0 }
 0x921   : > { %v12067_v21 = vadd.f32 %v21745_v47, %v11592_v55  ;;  %v12069_v39 = vadd.f32 %v21749_v46, %v11785_v44  ;;  %v12191_v53 = vmax.f32 %v12063_v35, 0.0  ;;  %v12193_v7 = vmax.f32 %v12065_v11, 0.0 }
 0x922   : > { %v12194_v61 = vmax.f32 %v12066_v30, 0.0  ;;  %v12196_v49 = vmax.f32 %v12068_v40, 0.0 }
 0x923   : > { %v12195_v43 = vmax.f32 %v12067_v21, 0.0  ;;  %v12197_v9 = vmax.f32 %v12069_v39, 0.0 }
 0x924   : > { %v22022_v0 = vpack.c.bf16 %v12194_v61, %v12190_v1  ;;  %v22024_v3 = vpack.c.bf16 %v12196_v49, %v12192_v20 }
 0x925   : > { %v22026_v60 = vpack.c.bf16 %v12195_v43, %v12191_v53  ;;  %v22028_v29 = vpack.c.bf16 %v12197_v9, %v12193_v7  ;;  %v11596_v18 = vpop.f32.mrb[124].mxu0  ;;  %v11789_v55 = vpop.f32.mrb[124].mxu1 }
 0x926   : > { %22998 = vst [vmem:[#allocation19_spill] sm:$0xff] %v22022_v0  ;;  %22999 = vst [vmem:[#allocation18_spill] sm:$0xff] %v22024_v3  ;;  %v12070_v44 = vadd.f32 %v21737_v37, %v11596_v18  ;;  %v12072_v36 = vadd.f32 %v21741_v5, %v11789_v55  ;;  %v11598_v26 = vpop.f32.mrb[125].mxu0  ;;  %v11791_v30 = vpop.f32.mrb[125].mxu1 }
 0x927   : > { %23000 = vst [vmem:[#allocation21_spill] sm:$0xff] %v22026_v60  ;;  %23001 = vst [vmem:[#allocation20_spill] sm:$0xff] %v22028_v29  ;;  %v12071_v35 = vadd.f32 %v21745_v47, %v11598_v26  ;;  %v12073_v11 = vadd.f32 %v21749_v46, %v11791_v30  ;;  %v11600_v40 = vpop.f32.mrb[126].mxu0  ;;  %v11793_v21 = vpop.f32.mrb[126].mxu1  ;;  %12388 = vmatprep.subr.bf16.mxu0 %v22026_v60  ;;  %12491 = vmatprep.subr.bf16.mxu1 %v22028_v29 }
 0x928   : > { %v12074_v39 = vadd.f32 %v21737_v37, %v11600_v40  ;;  %v12076_v1 = vadd.f32 %v21741_v5, %v11793_v21  ;;  %v11602_v20 = vpop.f32.mrb[127].mxu0  ;;  %v11795_v18 = vpop.f32.mrb[127].mxu1  ;;  %12389 = vmatpush1.bf16.msra.mxu0 %v22022_v0  ;;  %12492 = vmatpush1.bf16.msra.mxu1 %v22024_v3  ;;  %v12198_v53 = vmax.f32 %v12070_v44, 0.0  ;;  %v12200_v7 = vmax.f32 %v12072_v36, 0.0 }
 0x929   : > { %v12075_v61 = vadd.f32 %v21745_v47, %v11602_v20  ;;  %v12077_v49 = vadd.f32 %v21749_v46, %v11795_v18  ;;  %v12199_v55 = vmax.f32 %v12071_v35, 0.0  ;;  %v12201_v26 = vmax.f32 %v12073_v11, 0.0 }
 0x92a   : > { %v12202_v43 = vmax.f32 %v12074_v39, 0.0  ;;  %v12204_v9 = vmax.f32 %v12076_v1, 0.0 }
 0x92b   : > { %v12203_v30 = vmax.f32 %v12075_v61, 0.0  ;;  %v12205_v40 = vmax.f32 %v12077_v49, 0.0 }
 0x92c   : > { %v22042_v29 = vpack.c.bf16 %v12202_v43, %v12198_v53  ;;  %v22044_v21 = vpack.c.bf16 %v12204_v9, %v12200_v7 }
 0x92d   : > { %v22046_v60 = vpack.c.bf16 %v12203_v30, %v12199_v55  ;;  %v22048_v0 = vpack.c.bf16 %v12205_v40, %v12201_v26  ;;  %v11606_v3 = vpop.f32.mrb[128].mxu0  ;;  %v11799_v20 = vpop.f32.mrb[128].mxu1 }
 0x92e   : > { %23002 = vst [vmem:[#allocation23_spill] sm:$0xff] %v22042_v29  ;;  %v12078_v18 = vadd.f32 %v21737_v37, %v11606_v3  ;;  %v12080_v44 = vadd.f32 %v21741_v5, %v11799_v20  ;;  %v11608_v36 = vpop.f32.mrb[129].mxu0  ;;  %v11801_v39 = vpop.f32.mrb[129].mxu1 }
 0x92f   : > { %v12079_v35 = vadd.f32 %v21745_v47, %v11608_v36  ;;  %v12081_v11 = vadd.f32 %v21749_v46, %v11801_v39  ;;  %v11610_v1 = vpop.f32.mrb[130].mxu0  ;;  %v11803_v61 = vpop.f32.mrb[130].mxu1  ;;  %12390 = vmatprep.subr.bf16.mxu0 %v22046_v60  ;;  %12493 = vmatprep.subr.bf16.mxu1 %v22048_v0 }
 0x930   : > { %v12082_v49 = vadd.f32 %v21737_v37, %v11610_v1  ;;  %v12084_v53 = vadd.f32 %v21741_v5, %v11803_v61  ;;  %v11612_v7 = vpop.f32.mrb[131].mxu0  ;;  %v11805_v3 = vpop.f32.mrb[131].mxu1  ;;  %12391 = vmatpush1.bf16.msra.mxu0 %v22042_v29  ;;  %12494 = vmatpush1.bf16.msra.mxu1 %v22044_v21  ;;  %v12206_v55 = vmax.f32 %v12078_v18, 0.0  ;;  %v12208_v26 = vmax.f32 %v12080_v44, 0.0  ;;  %v17417_v18 = vld [vmem:[%s22845_s12 + $0x10] ss:$8 sps:$4 sm:$0xff]  }
 0x931   : > { %v12083_v43 = vadd.f32 %v21745_v47, %v11612_v7  ;;  %v12085_v9 = vadd.f32 %v21749_v46, %v11805_v3  ;;  %v12207_v20 = vmax.f32 %v12079_v35, 0.0  ;;  %v12209_v36 = vmax.f32 %v12081_v11, 0.0  ;;  %v17366_v47 = vld [vmem:[%s22842_s9] ss:$8 sps:$4 sm:$0xff]   ;;  %v17371_v46 = vld [vmem:[%s22842_s9 + $0x14] ss:$8 sps:$4 sm:$0xff]  }
 0x932   : > { %v12210_v30 = vmax.f32 %v12082_v49, 0.0  ;;  %v12212_v40 = vmax.f32 %v12084_v53, 0.0  ;;  %v17422_v44 = vld [vmem:[%s22844_s11 + $0x24] ss:$8 sps:$4 sm:$0xff]   ;;  %v17390_v11 = vld [vmem:[%s22843_s10 + $0x10] ss:$8 sps:$4 sm:$0xff]  }
 0x933   : > { %v12211_v39 = vmax.f32 %v12083_v43, 0.0  ;;  %v12213_v37 = vmax.f32 %v12085_v9, 0.0  ;;  %v17425_v35 = vld [vmem:[%s22845_s12 + $0x24] ss:$8 sps:$4 sm:$0xff]   ;;  %v17420_v53 = vld [vmem:[%s22844_s11 + $0x20] ss:$8 sps:$4 sm:$0xff]  }
 0x934   : > { %v22062_v1 = vpack.c.bf16 %v12210_v30, %v12206_v55  ;;  %v22064_v5 = vpack.c.bf16 %v12212_v40, %v12208_v26  ;;  %v17395_v49 = vld [vmem:[%s22843_s10 + $0x24] ss:$8 sps:$4 sm:$0xff]   ;;  %v17423_v7 = vld [vmem:[%s22845_s12 + $0x20] ss:$8 sps:$4 sm:$0xff]   ;;  %v17428_v3 = vld [vmem:[%s22844_s11 + $0x34] ss:$8 sps:$4 sm:$0xff]  }
 0x935   : > { %v22066_v61 = vpack.c.bf16 %v12211_v39, %v12207_v20  ;;  %v22068_v29 = vpack.c.bf16 %v12213_v37, %v12209_v36  ;;  %v17431_v43 = vld [vmem:[%s22845_s12 + $0x34] ss:$8 sps:$4 sm:$0xff]   ;;  %v17426_v9 = vld [vmem:[%s22844_s11 + $0x30] ss:$8 sps:$4 sm:$0xff]   ;;  %v17434_v26 = vld [vmem:[%s22844_s11 + $0x44] ss:$8 sps:$4 sm:$0xff]  }
 0x936   : > { %v17429_v55 = vld [vmem:[%s22845_s12 + $0x30] ss:$8 sps:$4 sm:$0xff]   ;;  %v17437_v30 = vld [vmem:[%s22845_s12 + $0x44] ss:$8 sps:$4 sm:$0xff]   ;;  %v17393_v40 = vld [vmem:[%s22843_s10 + $0x20] ss:$8 sps:$4 sm:$0xff]  }
 0x937   : > { %12392 = vmatprep.subr.bf16.mxu0 %v22066_v61  ;;  %12495 = vmatprep.subr.bf16.mxu1 %v22068_v29  ;;  %v17398_v20 = vld [vmem:[%s22843_s10 + $0x34] ss:$8 sps:$4 sm:$0xff]   ;;  %v17432_v36 = vld [vmem:[%s22844_s11 + $0x40] ss:$8 sps:$4 sm:$0xff]  }
 0x938   : > { %12393 = vmatpush1.bf16.msra.mxu0 %v22062_v1  ;;  %12496 = vmatpush1.bf16.msra.mxu1 %v22064_v5  ;;  %v17435_v39 = vld [vmem:[%s22845_s12 + $0x40] ss:$8 sps:$4 sm:$0xff]   ;;  %v17440_v37 = vld [vmem:[%s22844_s11 + $0x54] ss:$8 sps:$4 sm:$0xff]  }
 0x939   : > { %12652 = vmatprep.subr.bf16.mxu0 %v21766_v42  ;;  %12755 = vmatprep.subr.bf16.mxu1 %v21768_v50  ;;  %v17369_v42 = vld [vmem:[%s22842_s9 + $0x10] ss:$8 sps:$4 sm:$0xff]   ;;  %v17377_v50 = vld [vmem:[%s22842_s9 + $0x34] ss:$8 sps:$4 sm:$0xff]  }
 0x93b   : > { %12395 = vmatmul.mubr.bf16.vlgmr.msra.gmra.mrb[132].mxu0 %v17366_v47  ;;  %12498 = vmatmul.mubr.bf16.vlgmr.msra.gmra.mrb[132].mxu1 %v17366_v47  ;;  %v17446_v47 = vld [vmem:[%s22844_s11 + $0x64] ss:$8 sps:$4 sm:$0xff]  }
 0x93c   : > { %12653 = vmatpush1.bf16.msra.mxu0 %v21762_v62  ;;  %12756 = vmatpush1.bf16.msra.mxu1 %v21764_v33  ;;  %v17374_v62 = vld [vmem:[%s22842_s9 + $0x24] ss:$8 sps:$4 sm:$0xff]   ;;  %v17372_v33 = vld [vmem:[%s22842_s9 + $0x20] ss:$8 sps:$4 sm:$0xff]  }
 0x93d   : > { %12654 = vmatprep.subr.bf16.mxu0 %v21786_v14  ;;  %12757 = vmatprep.subr.bf16.mxu1 %v21788_v63  ;;  %v17378_v14 = vld [vmem:[%s22842_s9 + $0x40] ss:$8 sps:$4 sm:$0xff]   ;;  %v17383_v63 = vld [vmem:[%s22842_s9 + $0x54] ss:$8 sps:$4 sm:$0xff]  }
 0x93e   : > { %12404 = vmatprep.mubr.bf16.mxu0 %v17371_v46  ;;  %12507 = vmatprep.mubr.bf16.mxu1 %v17371_v46  ;;  %v17449_v46 = vld [vmem:[%s22845_s12 + $0x64] ss:$8 sps:$4 sm:$0xff]  }
 0x940   : > { %12655 = vmatpush1.bf16.msra.mxu0 %v21782_v58  ;;  %12758 = vmatpush1.bf16.msra.mxu1 %v21784_v57  ;;  %v17375_v58 = vld [vmem:[%s22842_s9 + $0x30] ss:$8 sps:$4 sm:$0xff]   ;;  %v17380_v57 = vld [vmem:[%s22842_s9 + $0x44] ss:$8 sps:$4 sm:$0xff]  }
 0x941   : > { %12656 = vmatprep.subr.bf16.mxu0 %v21806_v16  ;;  %12759 = vmatprep.subr.bf16.mxu1 %v21808_v54  ;;  %v23004_v16 = vld [vmem:[#allocation4_spill] sm:$0xff]  ;;  %v23005_v54 = vld [vmem:[#allocation3_spill] sm:$0xff] }
 0x943   : > { %12405 = vmatmul.mubr.bf16.gmra.mrb[136].mxu0 %v17369_v42  ;;  %12508 = vmatmul.mubr.bf16.gmra.mrb[136].mxu1 %v17369_v42  ;;  %v17396_v42 = vld [vmem:[%s22843_s10 + $0x30] ss:$8 sps:$4 sm:$0xff]  }
 0x944   : > { %12657 = vmatpush1.bf16.msra.mxu0 %v21802_v45  ;;  %12760 = vmatpush1.bf16.msra.mxu1 %v21804_v4  ;;  %v23003_v45 = vld [vmem:[#allocation5_spill] sm:$0xff] }
 0x945   : > { %12658 = vmatprep.subr.bf16.mxu0 %v21826_v22  ;;  %12761 = vmatprep.subr.bf16.mxu1 %v21828_v2  ;;  %v17381_v4 = vld [vmem:[%s22842_s9 + $0x50] ss:$8 sps:$4 sm:$0xff]   ;;  %v17386_v22 = vld [vmem:[%s22842_s9 + $0x64] ss:$8 sps:$4 sm:$0xff]  }
 0x946   : > { %12414 = vmatprep.mubr.bf16.mxu0 %v17374_v62  ;;  %12517 = vmatprep.mubr.bf16.mxu1 %v17374_v62  ;;  %v23008_v2 = vld [vmem:[#allocation7_spill] sm:$0xff] }
 0x947   : > { %v17401_v62 = vld [vmem:[%s22843_s10 + $0x44] ss:$8 sps:$4 sm:$0xff]  }
 0x948   : > { %12659 = vmatpush1.bf16.msra.mxu0 %v21822_v15  ;;  %12762 = vmatpush1.bf16.msra.mxu1 %v21824_v28  ;;  %v23006_v15 = vld [vmem:[#allocation9_spill] sm:$0xff]  ;;  %v23007_v28 = vld [vmem:[#allocation8_spill] sm:$0xff] }
 0x949   : > { %12660 = vmatprep.subr.bf16.mxu0 %v21846_v38  ;;  %12763 = vmatprep.subr.bf16.mxu1 %v21848_v8  ;;  %v23011_v38 = vld [vmem:[#allocation12_spill] sm:$0xff]  ;;  %v17384_v8 = vld [vmem:[%s22842_s9 + $0x60] ss:$8 sps:$4 sm:$0xff]  }
 0x94b   : > { %12415 = vmatmul.mubr.bf16.gmra.mrb[140].mxu0 %v17372_v33  ;;  %12518 = vmatmul.mubr.bf16.gmra.mrb[140].mxu1 %v17372_v33  ;;  %v17444_v33 = vld [vmem:[%s22844_s11 + $0x60] ss:$8 sps:$4 sm:$0xff]  }
 0x94c   : > { %12661 = vmatpush1.bf16.msra.mxu0 %v21842_v19  ;;  %12764 = vmatpush1.bf16.msra.mxu1 %v21844_v24  ;;  %v23009_v19 = vld [vmem:[#allocation6_spill] sm:$0xff]  ;;  %v23010_v24 = vld [vmem:[#allocation13_spill] sm:$0xff] }
 0x94d   : > { %12662 = vmatprep.subr.bf16.mxu0 %v21866_v48  ;;  %12765 = vmatprep.subr.bf16.mxu1 %v21868_v12  ;;  %v23014_v48 = vld [vmem:[#allocation17_spill] sm:$0xff]  ;;  %v23015_v12 = vld [vmem:[#allocation16_spill] sm:$0xff] }
 0x94e   : > { %12424 = vmatprep.mubr.bf16.mxu0 %v17377_v50  ;;  %12527 = vmatprep.mubr.bf16.mxu1 %v17377_v50  ;;  %v17447_v50 = vld [vmem:[%s22845_s12 + $0x60] ss:$8 sps:$4 sm:$0xff]  }
 0x950   : > { %12663 = vmatpush1.bf16.msra.mxu0 %v21862_v6  ;;  %12766 = vmatpush1.bf16.msra.mxu1 %v21864_v56  ;;  %v23012_v6 = vld [vmem:[#allocation11_spill] sm:$0xff]  ;;  %v23013_v56 = vld [vmem:[#allocation10_spill] sm:$0xff] }
 0x951   : > { %12664 = vmatprep.subr.bf16.mxu0 %v21886_v31  ;;  %12767 = vmatprep.subr.bf16.mxu1 %v21888_v59  ;;  %v23017_v31 = vld [vmem:[#allocation14_spill] sm:$0xff]  ;;  %v23018_v59 = vld [vmem:[#allocation21_spill] sm:$0xff] }
 0x953   : > { %12425 = vmatmul.mubr.bf16.gmra.mrb[144].mxu0 %v17375_v58  ;;  %12528 = vmatmul.mubr.bf16.gmra.mrb[144].mxu1 %v17375_v58  ;;  %v17452_v58 = vld [vmem:[%s22844_s11 + $0x74] ss:$8 sps:$4 sm:$0xff]  }
 0x954   : > { %12665 = vmatpush1.bf16.msra.mxu0 %v21882_v34  ;;  %12768 = vmatpush1.bf16.msra.mxu1 %v21884_v13  ;;  %v17389_v34 = vld [vmem:[%s22843_s10 + $0x4] ss:$8 sps:$4 sm:$0xff]  }
 0x955   : > { %12666 = vmatprep.subr.bf16.mxu0 %v21906_v23  ;;  %12769 = vmatprep.subr.bf16.mxu1 %v21908_v51  ;;  %v23016_v13 = vld [vmem:[#allocation15_spill] sm:$0xff]  ;;  %v23021_v23 = vld [vmem:[#allocation18_spill] sm:$0xff] }
 0x956   : > { %12434 = vmatprep.mubr.bf16.mxu0 %v17380_v57  ;;  %12537 = vmatprep.mubr.bf16.mxu1 %v17380_v57  ;;  %v23022_v51 = vld [vmem:[#allocation23_spill] sm:$0xff]  ;;  %v17455_v57 = vld [vmem:[%s22845_s12 + $0x74] ss:$8 sps:$4 sm:$0xff]  }
 0x958   : > { %12667 = vmatpush1.bf16.msra.mxu0 %v21902_v10  ;;  %12770 = vmatpush1.bf16.msra.mxu1 %v21904_v32  ;;  %v23019_v10 = vld [vmem:[#allocation20_spill] sm:$0xff]  ;;  %v23020_v32 = vld [vmem:[#allocation19_spill] sm:$0xff] }
 0x959   : > { %12668 = vmatprep.subr.bf16.mxu0 %v21926_v17  ;;  %12771 = vmatprep.subr.bf16.mxu1 %v21928_v25  ;;  %v17387_v17 = vld [vmem:[%s22843_s10] ss:$8 sps:$4 sm:$0xff]   ;;  %v17392_v25 = vld [vmem:[%s22843_s10 + $0x14] ss:$8 sps:$4 sm:$0xff]  }
 0x95b   : > { %12435 = vmatmul.mubr.bf16.gmra.mrb[148].mxu0 %v17378_v14  ;;  %12538 = vmatmul.mubr.bf16.gmra.mrb[148].mxu1 %v17378_v14  ;;  %v17450_v14 = vld [vmem:[%s22844_s11 + $0x70] ss:$8 sps:$4 sm:$0xff]  }
 0x95c   : > { %12669 = vmatpush1.bf16.msra.mxu0 %v21922_v41  ;;  %12772 = vmatpush1.bf16.msra.mxu1 %v21924_v52  ;;  %v17410_v41 = vld [vmem:[%s22844_s11 + $0x4] ss:$8 sps:$4 sm:$0xff]  }
 0x95d   : > { %12670 = vmatprep.subr.bf16.mxu0 %v21946_v27  ;;  %12773 = vmatprep.subr.bf16.mxu1 %v23003_v45  ;;  %v17413_v52 = vld [vmem:[%s22845_s12 + $0x4] ss:$8 sps:$4 sm:$0xff]   ;;  %v17411_v27 = vld [vmem:[%s22845_s12] ss:$8 sps:$4 sm:$0xff]  }
 0x95e   : > { %12444 = vmatprep.mubr.bf16.mxu0 %v17383_v63  ;;  %12547 = vmatprep.mubr.bf16.mxu1 %v17383_v63  ;;  %v17453_v63 = vld [vmem:[%s22845_s12 + $0x70] ss:$8 sps:$4 sm:$0xff]   ;;  %v17399_v45 = vld [vmem:[%s22843_s10 + $0x40] ss:$8 sps:$4 sm:$0xff]  }
 0x960   : > { %12671 = vmatpush1.bf16.msra.mxu0 %v23004_v16  ;;  %12774 = vmatpush1.bf16.msra.mxu1 %v23005_v54  ;;  %v17404_v16 = vld [vmem:[%s22843_s10 + $0x54] ss:$8 sps:$4 sm:$0xff]   ;;  %v17461_v54 = vld [vmem:[%s22845_s12 + $0x84] ss:$8 sps:$4 sm:$0xff]  }
 0x961   : > { %12672 = vmatprep.subr.bf16.mxu0 %v23006_v15  ;;  %12775 = vmatprep.subr.bf16.mxu1 %v23007_v28  ;;  %v17456_v15 = vld [vmem:[%s22844_s11 + $0x80] ss:$8 sps:$4 sm:$0xff]  }
 0x962   : > { %v17459_v28 = vld [vmem:[%s22845_s12 + $0x80] ss:$8 sps:$4 sm:$0xff]  }
 0x963   : > { %12445 = vmatmul.mubr.bf16.gmra.mrb[152].mxu0 %v17381_v4  ;;  %12548 = vmatmul.mubr.bf16.gmra.mrb[152].mxu1 %v17381_v4  ;;  %v17458_v4 = vld [vmem:[%s22844_s11 + $0x84] ss:$8 sps:$4 sm:$0xff]  }
 0x964   : > { %12673 = vmatpush1.bf16.msra.mxu0 %v23008_v2  ;;  %12776 = vmatpush1.bf16.msra.mxu1 %v23009_v19  ;;  %v17462_v2 = vld [vmem:[%s22844_s11 + $0x90] ss:$8 sps:$4 sm:$0xff]   ;;  %v17464_v19 = vld [vmem:[%s22844_s11 + $0x94] ss:$8 sps:$4 sm:$0xff]  }
 0x965   : > { %12674 = vmatprep.subr.bf16.mxu0 %v23010_v24  ;;  %12777 = vmatprep.subr.bf16.mxu1 %v23011_v38  ;;  %v17407_v24 = vld [vmem:[%s22843_s10 + $0x64] ss:$8 sps:$4 sm:$0xff]   ;;  %v17467_v38 = vld [vmem:[%s22845_s12 + $0x94] ss:$8 sps:$4 sm:$0xff]  }
 0x966   : > { %12454 = vmatprep.mubr.bf16.mxu0 %v17386_v22  ;;  %12557 = vmatprep.mubr.bf16.mxu1 %v17386_v22  ;;  %v17402_v22 = vld [vmem:[%s22843_s10 + $0x50] ss:$8 sps:$4 sm:$0xff]  }
 0x968   : > { %12675 = vmatpush1.bf16.msra.mxu0 %v23012_v6  ;;  %12778 = vmatpush1.bf16.msra.mxu1 %v23013_v56  ;;  %v17405_v6 = vld [vmem:[%s22843_s10 + $0x60] ss:$8 sps:$4 sm:$0xff]  }
 0x969   : > { %12676 = vmatprep.subr.bf16.mxu0 %v23014_v48  ;;  %12779 = vmatprep.subr.bf16.mxu1 %v23015_v12  ;;  %v17468_v56 = vld [vmem:[%s22844_s11 + $0xa0] ss:$8 sps:$4 sm:$0xff]   ;;  %v17470_v48 = vld [vmem:[%s22844_s11 + $0xa4] ss:$8 sps:$4 sm:$0xff]  }
 0x96a   : > { %v17471_v12 = vld [vmem:[%s22845_s12 + $0xa0] ss:$8 sps:$4 sm:$0xff]  }
 0x96b   : > { %12455 = vmatmul.mubr.bf16.gmra.mrb[156].mxu0 %v17384_v8  ;;  %12558 = vmatmul.mubr.bf16.gmra.mrb[156].mxu1 %v17384_v8  ;;  %v17465_v8 = vld [vmem:[%s22845_s12 + $0x90] ss:$8 sps:$4 sm:$0xff]  }
 0x96c   : > { %12677 = vmatpush1.bf16.msra.mxu0 %v23016_v13  ;;  %12780 = vmatpush1.bf16.msra.mxu1 %v23017_v31  ;;  %v17474_v13 = vld [vmem:[%s22844_s11 + $0xb0] ss:$8 sps:$4 sm:$0xff]   ;;  %v17476_v31 = vld [vmem:[%s22844_s11 + $0xb4] ss:$8 sps:$4 sm:$0xff]  }
 0x96d   : > { %12678 = vmatprep.subr.bf16.mxu0 %v23018_v59  ;;  %12781 = vmatprep.subr.bf16.mxu1 %v23019_v10  ;;  %v17477_v59 = vld [vmem:[%s22845_s12 + $0xb0] ss:$8 sps:$4 sm:$0xff]   ;;  %v17479_v10 = vld [vmem:[%s22845_s12 + $0xb4] ss:$8 sps:$4 sm:$0xff]  }
 0x96e   : > { %12684 = vmatprep.mubr.bf16.mxu0 %v17389_v34  ;;  %12787 = vmatprep.mubr.bf16.mxu1 %v17389_v34  ;;  %v17473_v34 = vld [vmem:[%s22845_s12 + $0xa4] ss:$8 sps:$4 sm:$0xff]  }
 0x970   : > { %12679 = vmatpush1.bf16.msra.mxu0 %v23020_v32  ;;  %12782 = vmatpush1.bf16.msra.mxu1 %v23021_v23  ;;  %v17480_v32 = vld [vmem:[%s22844_s11 + $0xc0] ss:$8 sps:$4 sm:$0xff]   ;;  %v17482_v23 = vld [vmem:[%s22844_s11 + $0xc4] ss:$8 sps:$4 sm:$0xff]  }
 0x971   : > { %12680 = vmatprep.subr.bf16.mxu0 %v22046_v60  ;;  %12783 = vmatprep.subr.bf16.mxu1 %v22048_v0  ;;  %v17408_v0 = vld [vmem:[%s22844_s11] ss:$8 sps:$4 sm:$0xff]   ;;  %v17416_v60 = vld [vmem:[%s22844_s11 + $0x14] ss:$8 sps:$4 sm:$0xff]  }
 0x974   : > { %12681 = vmatpush1.bf16.msra.mxu0 %v23022_v51  ;;  %12784 = vmatpush1.bf16.msra.mxu1 %v22044_v21  ;;  %v17414_v21 = vld [vmem:[%s22844_s11 + $0x10] ss:$8 sps:$4 sm:$0xff]   ;;  %v17483_v51 = vld [vmem:[%s22845_s12 + $0xc0] ss:$8 sps:$4 sm:$0xff]  }
 0x975   : > { %12682 = vmatprep.subr.bf16.mxu0 %v22066_v61  ;;  %12785 = vmatprep.subr.bf16.mxu1 %v22068_v29  ;;  %v17419_v29 = vld [vmem:[%s22845_s12 + $0x14] ss:$8 sps:$4 sm:$0xff]   ;;  %v17441_v61 = vld [vmem:[%s22845_s12 + $0x50] ss:$8 sps:$4 sm:$0xff]  }
 0x978   : > { %12683 = vmatpush1.bf16.msra.mxu0 %v22062_v1  ;;  %12786 = vmatpush1.bf16.msra.mxu1 %v22064_v5  ;;  %v17443_v1 = vld [vmem:[%s22845_s12 + $0x54] ss:$8 sps:$4 sm:$0xff]   ;;  %v17438_v5 = vld [vmem:[%s22844_s11 + $0x50] ss:$8 sps:$4 sm:$0xff]  }
 0x979   : > { %13299 = vmatprep.subr.bf16.mxu0 %v17410_v41  ;;  %13841 = vmatprep.subr.bf16.mxu1 %v17413_v52  ;;  %v17485_v41 = vld [vmem:[%s22845_s12 + $0xc4] ss:$8 sps:$4 sm:$0xff]   ;;  %v17486_v52 = vld [vmem:[%s22844_s11 + $0xd0] ss:$8 sps:$4 sm:$0xff]  }
 0x97b   : > { %12685 = vmatmul.mubr.bf16.vlgmr.msra.gmra.mrb[160].mxu0 %v17387_v17  ;;  %12788 = vmatmul.mubr.bf16.vlgmr.msra.gmra.mrb[160].mxu1 %v17387_v17  ;;  %v17488_v17 = vld [vmem:[%s22844_s11 + $0xd4] ss:$8 sps:$4 sm:$0xff]  }
 0x97c   : > { %12694 = vmatprep.mubr.bf16.mxu0 %v17392_v25  ;;  %12797 = vmatprep.mubr.bf16.mxu1 %v17392_v25  ;;  %v17489_v25 = vld [vmem:[%s22845_s12 + $0xd0] ss:$8 sps:$4 sm:$0xff]  }
 0x97d   : > { %13300 = vmatpush1.bf16.msra.mxu0 %v17408_v0  ;;  %13842 = vmatpush1.bf16.msra.mxu1 %v17411_v27  ;;  %v17491_v0 = vld [vmem:[%s22845_s12 + $0xd4] ss:$8 sps:$4 sm:$0xff]   ;;  %v17494_v27 = vld [vmem:[%s22844_s11 + $0xe4] ss:$8 sps:$4 sm:$0xff]  }
 0x97e   : > { %13301 = vmatprep.subr.bf16.mxu0 %v17416_v60  ;;  %13843 = vmatprep.subr.bf16.mxu1 %v17419_v29  ;;  %v17497_v60 = vld [vmem:[%s22845_s12 + $0xe4] ss:$8 sps:$4 sm:$0xff]   ;;  %v17492_v29 = vld [vmem:[%s22844_s11 + $0xe0] ss:$8 sps:$4 sm:$0xff]  }
 0x981   : > { %13302 = vmatpush1.bf16.msra.mxu0 %v17414_v21  ;;  %13844 = vmatpush1.bf16.msra.mxu1 %v17417_v18  ;;  %v17495_v21 = vld [vmem:[%s22845_s12 + $0xe0] ss:$8 sps:$4 sm:$0xff]   ;;  %v17500_v18 = vld [vmem:[%s22844_s11 + $0xf4] ss:$8 sps:$4 sm:$0xff]  }
 0x982   : > { %13303 = vmatprep.subr.bf16.mxu0 %v17422_v44  ;;  %13845 = vmatprep.subr.bf16.mxu1 %v17425_v35  ;;  %v17503_v44 = vld [vmem:[%s22845_s12 + $0xf4] ss:$8 sps:$4 sm:$0xff]   ;;  %v17498_v35 = vld [vmem:[%s22844_s11 + $0xf0] ss:$8 sps:$4 sm:$0xff]  }
 0x983   : > { %12695 = vmatmul.mubr.bf16.gmra.mrb[164].mxu0 %v17390_v11  ;;  %12798 = vmatmul.mubr.bf16.gmra.mrb[164].mxu1 %v17390_v11  ;;  %v17501_v11 = vld [vmem:[%s22845_s12 + $0xf0] ss:$8 sps:$4 sm:$0xff]  }
 0x984   : > { %12704 = vmatprep.mubr.bf16.mxu0 %v17395_v49  ;;  %12807 = vmatprep.mubr.bf16.mxu1 %v17395_v49  ;;  %v17506_v49 = vld [vmem:[%s22844_s11 + $0x104] ss:$8 sps:$4 sm:$0xff]  }
 0x985   : > { %13304 = vmatpush1.bf16.msra.mxu0 %v17420_v53  ;;  %13846 = vmatpush1.bf16.msra.mxu1 %v17423_v7  ;;  %v17509_v53 = vld [vmem:[%s22845_s12 + $0x104] ss:$8 sps:$4 sm:$0xff]  }
 0x986   : > { %13305 = vmatprep.subr.bf16.mxu0 %v17428_v3  ;;  %13847 = vmatprep.subr.bf16.mxu1 %v17431_v43 }
 0x989   : > { %13306 = vmatpush1.bf16.msra.mxu0 %v17426_v9  ;;  %13848 = vmatpush1.bf16.msra.mxu1 %v17429_v55 }
 0x98a   : > { %13307 = vmatprep.subr.bf16.mxu0 %v17434_v26  ;;  %13849 = vmatprep.subr.bf16.mxu1 %v17437_v30 }
 0x98b   : > { %12705 = vmatmul.mubr.bf16.gmra.mrb[168].mxu0 %v17393_v40  ;;  %12808 = vmatmul.mubr.bf16.gmra.mrb[168].mxu1 %v17393_v40 }
 0x98c   : > { %12714 = vmatprep.mubr.bf16.mxu0 %v17398_v20  ;;  %12817 = vmatprep.mubr.bf16.mxu1 %v17398_v20 }
 0x98d   : > { %13308 = vmatpush1.bf16.msra.mxu0 %v17432_v36  ;;  %13850 = vmatpush1.bf16.msra.mxu1 %v17435_v39 }
 0x98e   : > { %13309 = vmatprep.subr.bf16.mxu0 %v17440_v37  ;;  %13851 = vmatprep.subr.bf16.mxu1 %v17443_v1 }
 0x991   : > { %13310 = vmatpush1.bf16.msra.mxu0 %v17438_v5  ;;  %13852 = vmatpush1.bf16.msra.mxu1 %v17441_v61 }
 0x992   : > { %13311 = vmatprep.subr.bf16.mxu0 %v17446_v47  ;;  %13853 = vmatprep.subr.bf16.mxu1 %v17449_v46 }
 0x993   : > { %12715 = vmatmul.mubr.bf16.gmra.mrb[172].mxu0 %v17396_v42  ;;  %12818 = vmatmul.mubr.bf16.gmra.mrb[172].mxu1 %v17396_v42 }
 0x994   : > { %12724 = vmatprep.mubr.bf16.mxu0 %v17401_v62  ;;  %12827 = vmatprep.mubr.bf16.mxu1 %v17401_v62 }
 0x995   : > { %13312 = vmatpush1.bf16.msra.mxu0 %v17444_v33  ;;  %13854 = vmatpush1.bf16.msra.mxu1 %v17447_v50 }
 0x996   : > { %13313 = vmatprep.subr.bf16.mxu0 %v17452_v58  ;;  %13855 = vmatprep.subr.bf16.mxu1 %v17455_v57 }
 0x999   : > { %13314 = vmatpush1.bf16.msra.mxu0 %v17450_v14  ;;  %13856 = vmatpush1.bf16.msra.mxu1 %v17453_v63 }
 0x99a   : > { %13315 = vmatprep.subr.bf16.mxu0 %v17458_v4  ;;  %13857 = vmatprep.subr.bf16.mxu1 %v17461_v54 }
 0x99b   : > { %12725 = vmatmul.mubr.bf16.gmra.mrb[176].mxu0 %v17399_v45  ;;  %12828 = vmatmul.mubr.bf16.gmra.mrb[176].mxu1 %v17399_v45 }
 0x99c   : > { %12734 = vmatprep.mubr.bf16.mxu0 %v17404_v16  ;;  %12837 = vmatprep.mubr.bf16.mxu1 %v17404_v16 }
 0x99d   : > { %13316 = vmatpush1.bf16.msra.mxu0 %v17456_v15  ;;  %13858 = vmatpush1.bf16.msra.mxu1 %v17459_v28 }
 0x99e   : > { %13317 = vmatprep.subr.bf16.mxu0 %v17464_v19  ;;  %13859 = vmatprep.subr.bf16.mxu1 %v17467_v38 }
 0x9a1   : > { %13318 = vmatpush1.bf16.msra.mxu0 %v17462_v2  ;;  %13860 = vmatpush1.bf16.msra.mxu1 %v17465_v8 }
 0x9a2   : > { %13319 = vmatprep.subr.bf16.mxu0 %v17470_v48  ;;  %13861 = vmatprep.subr.bf16.mxu1 %v17473_v34 }
 0x9a3   : > { %12735 = vmatmul.mubr.bf16.gmra.mrb[180].mxu0 %v17402_v22  ;;  %12838 = vmatmul.mubr.bf16.gmra.mrb[180].mxu1 %v17402_v22 }
 0x9a4   : > { %12744 = vmatprep.mubr.bf16.mxu0 %v17407_v24  ;;  %12847 = vmatprep.mubr.bf16.mxu1 %v17407_v24 }
 0x9a5   : > { %13320 = vmatpush1.bf16.msra.mxu0 %v17468_v56  ;;  %13862 = vmatpush1.bf16.msra.mxu1 %v17471_v12 }
 0x9a6   : > { %13321 = vmatprep.subr.bf16.mxu0 %v17476_v31  ;;  %13863 = vmatprep.subr.bf16.mxu1 %v17479_v10 }
 0x9a9   : > { %13322 = vmatpush1.bf16.msra.mxu0 %v17474_v13  ;;  %13864 = vmatpush1.bf16.msra.mxu1 %v17477_v59 }
 0x9aa   : > { %13323 = vmatprep.subr.bf16.mxu0 %v17482_v23  ;;  %13865 = vmatprep.subr.bf16.mxu1 %v17485_v41 }
 0x9ab   : > { %12745 = vmatmul.mubr.bf16.gmra.mrb[184].mxu0 %v17405_v6  ;;  %12848 = vmatmul.mubr.bf16.gmra.mrb[184].mxu1 %v17405_v6 }
 0x9ad   : > { %13324 = vmatpush1.bf16.msra.mxu0 %v17480_v32  ;;  %13866 = vmatpush1.bf16.msra.mxu1 %v17483_v51 }
 0x9ae   : > { %13325 = vmatprep.subr.bf16.mxu0 %v17488_v17  ;;  %13867 = vmatprep.subr.bf16.mxu1 %v17491_v0 }
 0x9b1   : > { %13326 = vmatpush1.bf16.msra.mxu0 %v17486_v52  ;;  %13868 = vmatpush1.bf16.msra.mxu1 %v17489_v25 }
 0x9b2   : > { %13327 = vmatprep.subr.bf16.mxu0 %v17494_v27  ;;  %13869 = vmatprep.subr.bf16.mxu1 %v17497_v60 }
 0x9b5   : > { %13328 = vmatpush1.bf16.msra.mxu0 %v17492_v29  ;;  %13870 = vmatpush1.bf16.msra.mxu1 %v17495_v21 }
 0x9b6   : > { %13329 = vmatprep.subr.bf16.mxu0 %v17500_v18  ;;  %13871 = vmatprep.subr.bf16.mxu1 %v17503_v44 }
 0x9b9   : > { %13330 = vmatpush1.bf16.msra.mxu0 %v17498_v35  ;;  %13872 = vmatpush1.bf16.msra.mxu1 %v17501_v11 }
 0x9ba   : > { %13402 = vmatprep.subr.bf16.mxu0 %v17506_v49  ;;  %13944 = vmatprep.subr.bf16.mxu1 %v17509_v53 }
 0xa0e   : > { %v22417_v7 = vpop.f32.mrb[132].mxu0  ;;  %v22419_v3 = vpop.f32.mrb[132].mxu1 }
 0xa0f   : > { %v22421_v43 = vpop.f32.mrb[133].mxu0  ;;  %v22423_v9 = vpop.f32.mrb[133].mxu1 }
 0xa10   : > { %v22425_v55 = vpop.f32.mrb[134].mxu0  ;;  %v22427_v26 = vpop.f32.mrb[134].mxu1 }
 0xa11   : > { %v22429_v30 = vpop.f32.mrb[135].mxu0  ;;  %v22431_v40 = vpop.f32.mrb[135].mxu1 }
 0xa16   : > { %v22433_v20 = vpop.f32.mrb[136].mxu0  ;;  %v22435_v36 = vpop.f32.mrb[136].mxu1 }
 0xa17   : > { %v22437_v39 = vpop.f32.mrb[137].mxu0  ;;  %v22439_v37 = vpop.f32.mrb[137].mxu1 }
 0xa18   : > { %v22441_v1 = vpop.f32.mrb[138].mxu0  ;;  %v22443_v5 = vpop.f32.mrb[138].mxu1 }
 0xa19   : > { %v22445_v61 = vpop.f32.mrb[139].mxu0  ;;  %v22447_v47 = vpop.f32.mrb[139].mxu1 }
 0xa1e   : > { %v22449_v46 = vpop.f32.mrb[140].mxu0  ;;  %v22451_v42 = vpop.f32.mrb[140].mxu1 }
 0xa1f   : > { %v22453_v62 = vpop.f32.mrb[141].mxu0  ;;  %v22455_v33 = vpop.f32.mrb[141].mxu1 }
 0xa20   : > { %v22457_v50 = vpop.f32.mrb[142].mxu0  ;;  %v22459_v58 = vpop.f32.mrb[142].mxu1 }
 0xa21   : > { %v22461_v57 = vpop.f32.mrb[143].mxu0  ;;  %v22463_v14 = vpop.f32.mrb[143].mxu1 }
 0xa26   : > { %v22465_v63 = vpop.f32.mrb[144].mxu0  ;;  %v22467_v45 = vpop.f32.mrb[144].mxu1 }
 0xa27   : > { %v22469_v4 = vpop.f32.mrb[145].mxu0  ;;  %v22471_v16 = vpop.f32.mrb[145].mxu1 }
 0xa28   : > { %v22473_v54 = vpop.f32.mrb[146].mxu0  ;;  %v22475_v15 = vpop.f32.mrb[146].mxu1 }
 0xa29   : > { %v22477_v28 = vpop.f32.mrb[147].mxu0  ;;  %v22479_v22 = vpop.f32.mrb[147].mxu1 }
 0xa2e   : > { %v22481_v2 = vpop.f32.mrb[148].mxu0  ;;  %v22483_v19 = vpop.f32.mrb[148].mxu1 }
 0xa2f   : > { %v22485_v24 = vpop.f32.mrb[149].mxu0  ;;  %v22487_v38 = vpop.f32.mrb[149].mxu1 }
 0xa30   : > { %v22489_v8 = vpop.f32.mrb[150].mxu0  ;;  %v22491_v6 = vpop.f32.mrb[150].mxu1 }
 0xa31   : > { %v22493_v56 = vpop.f32.mrb[151].mxu0  ;;  %v22495_v48 = vpop.f32.mrb[151].mxu1 }
 0xa36   : > { %v22497_v12 = vpop.f32.mrb[152].mxu0  ;;  %v22499_v34 = vpop.f32.mrb[152].mxu1 }
 0xa37   : > { %v22501_v13 = vpop.f32.mrb[153].mxu0  ;;  %v22503_v31 = vpop.f32.mrb[153].mxu1 }
 0xa38   : > { %v22505_v59 = vpop.f32.mrb[154].mxu0  ;;  %v22507_v10 = vpop.f32.mrb[154].mxu1 }
 0xa39   : > { %v22509_v32 = vpop.f32.mrb[155].mxu0  ;;  %v22511_v23 = vpop.f32.mrb[155].mxu1 }
 0xa3e   : > { %v22513_v51 = vpop.f32.mrb[156].mxu0  ;;  %v22515_v41 = vpop.f32.mrb[156].mxu1 }
 0xa3f   : > { %23023 = vst [vmem:[#allocation22_spill] sm:$0xff] %v22513_v51  ;;  %23024 = vst [vmem:[#allocation25_spill] sm:$0xff] %v22515_v41  ;;  %v22517_v52 = vpop.f32.mrb[157].mxu0  ;;  %v22519_v17 = vpop.f32.mrb[157].mxu1 }
 0xa40   : > { %23025 = vst [vmem:[#allocation24_spill] sm:$0xff] %v22517_v52  ;;  %23026 = vst [vmem:[#allocation27_spill] sm:$0xff] %v22519_v17  ;;  %v22521_v25 = vpop.f32.mrb[158].mxu0  ;;  %v22523_v0 = vpop.f32.mrb[158].mxu1 }
 0xa41   : > { %23027 = vst [vmem:[#allocation26_spill] sm:$0xff] %v22521_v25  ;;  %23028 = vst [vmem:[#allocation29_spill] sm:$0xff] %v22523_v0  ;;  %v22525_v27 = vpop.f32.mrb[159].mxu0  ;;  %v22527_v60 = vpop.f32.mrb[159].mxu1 }
 0xa42   : > { %23029 = vst [vmem:[#allocation28_spill] sm:$0xff] %v22525_v27  ;;  %23030 = vst [vmem:[#allocation31_spill] sm:$0xff] %v22527_v60 }
 0xa4e   : > { %v12686_v29 = vpop.f32.mrb[160].mxu0  ;;  %v12789_v21 = vpop.f32.mrb[160].mxu1 }
 0xa4f   : > { %v12858_v18 = vmax.f32 %v22417_v7, %v12686_v29  ;;  %v12688_v44 = vpop.f32.mrb[161].mxu0  ;;  %v12860_v35 = vmax.f32 %v22419_v3, %v12789_v21  ;;  %v12791_v11 = vpop.f32.mrb[161].mxu1  ;;  %v17510_v21 = vld [vmem:[%s22844_s11 + $0x110] ss:$8 sps:$4 sm:$0xff]  }
 0xa50   : > { %v12859_v49 = vmax.f32 %v22421_v43, %v12688_v44  ;;  %v12690_v53 = vpop.f32.mrb[162].mxu0  ;;  %v12861_v17 = vmax.f32 %v22423_v9, %v12791_v11  ;;  %v12793_v25 = vpop.f32.mrb[162].mxu1  ;;  %v17504_v43 = vld [vmem:[%s22844_s11 + $0x100] ss:$8 sps:$4 sm:$0xff]   ;;  %v17521_v11 = vld [vmem:[%s22845_s12 + $0x124] ss:$8 sps:$4 sm:$0xff]  }
 0xa51   : > { %v12862_v0 = vmax.f32 %v22425_v55, %v12690_v53  ;;  %v12692_v52 = vpop.f32.mrb[163].mxu0  ;;  %v12864_v27 = vmax.f32 %v22427_v26, %v12793_v25  ;;  %v12795_v60 = vpop.f32.mrb[163].mxu1  ;;  %v17507_v9 = vld [vmem:[%s22845_s12 + $0x100] ss:$8 sps:$4 sm:$0xff]   ;;  %v17512_v26 = vld [vmem:[%s22844_s11 + $0x114] ss:$8 sps:$4 sm:$0xff]  }
 0xa52   : > { %v12863_v41 = vmax.f32 %v22429_v30, %v12692_v52  ;;  %v12865_v7 = vmax.f32 %v22431_v40, %v12795_v60  ;;  %v17515_v30 = vld [vmem:[%s22845_s12 + $0x114] ss:$8 sps:$4 sm:$0xff]  }
 0xa53   : > { %v12914_v29 = vpack.c.bf16 %v12862_v0, %v12858_v18  ;;  %v22537_v51 = vpack.c.bf16 %v12864_v27, %v12860_v35  ;;  %v17513_v18 = vld [vmem:[%s22845_s12 + $0x110] ss:$8 sps:$4 sm:$0xff]  }
 0xa54   : > { %v12915_v3 = vpack.c.bf16 %v12863_v41, %v12859_v49  ;;  %v22545_v55 = vpack.c.bf16 %v12865_v7, %v12861_v17 }
 0xa56   : > { %v12696_v40 = vpop.f32.mrb[164].mxu0  ;;  %13331 = vmatprep.mubr.bf16.mxu0 %v12915_v3  ;;  %13873 = vmatprep.mubr.bf16.mxu1 %v12915_v3  ;;  %v12799_v41 = vpop.f32.mrb[164].mxu1 }
 0xa57   : > { %v12866_v52 = vmax.f32 %v22433_v20, %v12696_v40  ;;  %v12698_v25 = vpop.f32.mrb[165].mxu0  ;;  %13332 = vmatmul.mubr.bf16.vlgmr.msra.gmra.mrb[188].mxu0 %v12914_v29  ;;  %13874 = vmatmul.mubr.bf16.vlgmr.msra.gmra.mrb[188].mxu1 %v12914_v29  ;;  %v12868_v17 = vmax.f32 %v22435_v36, %v12799_v41  ;;  %v12801_v0 = vpop.f32.mrb[165].mxu1 }
 0xa58   : > { %v12867_v27 = vmax.f32 %v22437_v39, %v12698_v25  ;;  %v12700_v60 = vpop.f32.mrb[166].mxu0  ;;  %13403 = vmatpush1.bf16.msra.mxu0 %v17504_v43  ;;  %13945 = vmatpush1.bf16.msra.mxu1 %v17507_v9  ;;  %v12869_v20 = vmax.f32 %v22439_v37, %v12801_v0  ;;  %v12803_v44 = vpop.f32.mrb[166].mxu1  ;;  %v17518_v39 = vld [vmem:[%s22844_s11 + $0x124] ss:$8 sps:$4 sm:$0xff]   ;;  %v17516_v43 = vld [vmem:[%s22844_s11 + $0x120] ss:$8 sps:$4 sm:$0xff]  }
 0xa59   : > { %v12870_v35 = vmax.f32 %v22441_v1, %v12700_v60  ;;  %v12702_v36 = vpop.f32.mrb[167].mxu0  ;;  %13404 = vmatprep.subr.bf16.mxu0 %v17512_v26  ;;  %13946 = vmatprep.subr.bf16.mxu1 %v17515_v30  ;;  %v12872_v49 = vmax.f32 %v22443_v5, %v12803_v44  ;;  %v12805_v53 = vpop.f32.mrb[167].mxu1  ;;  %v17519_v9 = vld [vmem:[%s22845_s12 + $0x120] ss:$8 sps:$4 sm:$0xff]   ;;  %v17525_v60 = vld [vmem:[%s22845_s12 + $0x130] ss:$8 sps:$4 sm:$0xff]  }
 0xa5a   : > { %v12871_v7 = vmax.f32 %v22445_v61, %v12702_v36  ;;  %v12873_v37 = vmax.f32 %v22447_v47, %v12805_v53  ;;  %v17524_v61 = vld [vmem:[%s22844_s11 + $0x134] ss:$8 sps:$4 sm:$0xff]   ;;  %v17531_v53 = vld [vmem:[%s22845_s12 + $0x140] ss:$8 sps:$4 sm:$0xff]  }
 0xa5b   : > { %v12918_v29 = vpack.c.bf16 %v12870_v35, %v12866_v52  ;;  %v22573_v1 = vpack.c.bf16 %v12872_v49, %v12868_v17  ;;  %v17527_v47 = vld [vmem:[%s22845_s12 + $0x134] ss:$8 sps:$4 sm:$0xff]   ;;  %v17528_v49 = vld [vmem:[%s22844_s11 + $0x140] ss:$8 sps:$4 sm:$0xff]  }
 0xa5c   : > { %v12919_v3 = vpack.c.bf16 %v12871_v7, %v12867_v27  ;;  %13405 = vmatpush1.bf16.msra.mxu0 %v17510_v21  ;;  %13947 = vmatpush1.bf16.msra.mxu1 %v17513_v18  ;;  %v22581_v5 = vpack.c.bf16 %v12873_v37, %v12869_v20  ;;  %v17522_v27 = vld [vmem:[%s22844_s11 + $0x130] ss:$8 sps:$4 sm:$0xff]   ;;  %v17533_v20 = vld [vmem:[%s22845_s12 + $0x144] ss:$8 sps:$4 sm:$0xff]  }
 0xa5d   : > { %13406 = vmatprep.subr.bf16.mxu0 %v17518_v39  ;;  %13948 = vmatprep.subr.bf16.mxu1 %v17521_v11 }
 0xa5e   : > { %v12706_v26 = vpop.f32.mrb[168].mxu0  ;;  %13341 = vmatprep.mubr.bf16.mxu0 %v12919_v3  ;;  %13883 = vmatprep.mubr.bf16.mxu1 %v12919_v3  ;;  %v12809_v30 = vpop.f32.mrb[168].mxu1 }
 0xa5f   : > { %v12874_v40 = vmax.f32 %v22449_v46, %v12706_v26  ;;  %v12708_v41 = vpop.f32.mrb[169].mxu0  ;;  %13342 = vmatmul.mubr.bf16.gmra.mrb[192].mxu0 %v12918_v29  ;;  %13884 = vmatmul.mubr.bf16.gmra.mrb[192].mxu1 %v12918_v29  ;;  %v12876_v52 = vmax.f32 %v22451_v42, %v12809_v30  ;;  %v12811_v25 = vpop.f32.mrb[169].mxu1  ;;  %v17534_v26 = vld [vmem:[%s22844_s11 + $0x150] ss:$8 sps:$4 sm:$0xff]  }
 0xa60   : > { %v12875_v17 = vmax.f32 %v22453_v62, %v12708_v41  ;;  %v12710_v0 = vpop.f32.mrb[170].mxu0  ;;  %13407 = vmatpush1.bf16.msra.mxu0 %v17516_v43  ;;  %13949 = vmatpush1.bf16.msra.mxu1 %v17519_v9  ;;  %v12877_v46 = vmax.f32 %v22455_v33, %v12811_v25  ;;  %v12813_v21 = vpop.f32.mrb[170].mxu1  ;;  %v17530_v62 = vld [vmem:[%s22844_s11 + $0x144] ss:$8 sps:$4 sm:$0xff]   ;;  %v17537_v30 = vld [vmem:[%s22845_s12 + $0x150] ss:$8 sps:$4 sm:$0xff]  }
 0xa61   : > { %v12878_v18 = vmax.f32 %v22457_v50, %v12710_v0  ;;  %v12712_v42 = vpop.f32.mrb[171].mxu0  ;;  %13408 = vmatprep.subr.bf16.mxu0 %v17524_v61  ;;  %13950 = vmatprep.subr.bf16.mxu1 %v17527_v47  ;;  %v12880_v44 = vmax.f32 %v22459_v58, %v12813_v21  ;;  %v12815_v35 = vpop.f32.mrb[171].mxu1  ;;  %v17543_v21 = vld [vmem:[%s22845_s12 + $0x160] ss:$8 sps:$4 sm:$0xff]  }
 0xa62   : > { %v12879_v36 = vmax.f32 %v22461_v57, %v12712_v42  ;;  %v12881_v33 = vmax.f32 %v22463_v14, %v12815_v35  ;;  %v17536_v57 = vld [vmem:[%s22844_s11 + $0x154] ss:$8 sps:$4 sm:$0xff]  }
 0xa63   : > { %v12922_v39 = vpack.c.bf16 %v12878_v18, %v12874_v40  ;;  %v22609_v50 = vpack.c.bf16 %v12880_v44, %v12876_v52  ;;  %v17539_v14 = vld [vmem:[%s22845_s12 + $0x154] ss:$8 sps:$4 sm:$0xff]   ;;  %v17545_v52 = vld [vmem:[%s22845_s12 + $0x164] ss:$8 sps:$4 sm:$0xff]  }
 0xa64   : > { %v12923_v11 = vpack.c.bf16 %v12879_v36, %v12875_v17  ;;  %13409 = vmatpush1.bf16.msra.mxu0 %v17522_v27  ;;  %13951 = vmatpush1.bf16.msra.mxu1 %v17525_v60  ;;  %v22617_v58 = vpack.c.bf16 %v12881_v33, %v12877_v46  ;;  %v17540_v46 = vld [vmem:[%s22844_s11 + $0x160] ss:$8 sps:$4 sm:$0xff]  }
 0xa65   : > { %13410 = vmatprep.subr.bf16.mxu0 %v17530_v62  ;;  %13952 = vmatprep.subr.bf16.mxu1 %v17533_v20 }
 0xa66   : > { %v12716_v7 = vpop.f32.mrb[172].mxu0  ;;  %13351 = vmatprep.mubr.bf16.mxu0 %v12923_v11  ;;  %13893 = vmatprep.mubr.bf16.mxu1 %v12923_v11  ;;  %v12819_v37 = vpop.f32.mrb[172].mxu1  ;;  %v17549_v11 = vld [vmem:[%s22845_s12 + $0x170] ss:$8 sps:$4 sm:$0xff]  }
 0xa67   : > { %v12882_v29 = vmax.f32 %v22465_v63, %v12716_v7  ;;  %v12718_v3 = vpop.f32.mrb[173].mxu0  ;;  %13352 = vmatmul.mubr.bf16.gmra.mrb[196].mxu0 %v12922_v39  ;;  %13894 = vmatmul.mubr.bf16.gmra.mrb[196].mxu1 %v12922_v39  ;;  %v12884_v43 = vmax.f32 %v22467_v45, %v12819_v37  ;;  %v12821_v9 = vpop.f32.mrb[173].mxu1  ;;  %v17546_v39 = vld [vmem:[%s22844_s11 + $0x170] ss:$8 sps:$4 sm:$0xff]  }
 0xa68   : > { %v12883_v61 = vmax.f32 %v22469_v4, %v12718_v3  ;;  %v12720_v47 = vpop.f32.mrb[174].mxu0  ;;  %13411 = vmatpush1.bf16.msra.mxu0 %v17528_v49  ;;  %13953 = vmatpush1.bf16.msra.mxu1 %v17531_v53  ;;  %v12885_v63 = vmax.f32 %v22471_v16, %v12821_v9  ;;  %v12823_v40 = vpop.f32.mrb[174].mxu1  ;;  %v17542_v4 = vld [vmem:[%s22844_s11 + $0x164] ss:$8 sps:$4 sm:$0xff]   ;;  %v17555_v9 = vld [vmem:[%s22845_s12 + $0x180] ss:$8 sps:$4 sm:$0xff]  }
 0xa69   : > { %v12886_v41 = vmax.f32 %v22473_v54, %v12720_v47  ;;  %v12722_v45 = vpop.f32.mrb[175].mxu0  ;;  %13412 = vmatprep.subr.bf16.mxu0 %v17536_v57  ;;  %13954 = vmatprep.subr.bf16.mxu1 %v17539_v14  ;;  %v12888_v25 = vmax.f32 %v22475_v15, %v12823_v40  ;;  %v12825_v17 = vpop.f32.mrb[175].mxu1  ;;  %v17557_v57 = vld [vmem:[%s22845_s12 + $0x184] ss:$8 sps:$4 sm:$0xff]  }
 0xa6a   : > { %v12887_v0 = vmax.f32 %v22477_v28, %v12722_v45  ;;  %v12889_v16 = vmax.f32 %v22479_v22, %v12825_v17  ;;  %v17548_v28 = vld [vmem:[%s22844_s11 + $0x174] ss:$8 sps:$4 sm:$0xff]  }
 0xa6b   : > { %v12926_v27 = vpack.c.bf16 %v12886_v41, %v12882_v29  ;;  %v22645_v54 = vpack.c.bf16 %v12888_v25, %v12884_v43  ;;  %v17551_v22 = vld [vmem:[%s22845_s12 + $0x174] ss:$8 sps:$4 sm:$0xff]   ;;  %v17552_v43 = vld [vmem:[%s22844_s11 + $0x180] ss:$8 sps:$4 sm:$0xff]  }
 0xa6c   : > { %v12927_v60 = vpack.c.bf16 %v12887_v0, %v12883_v61  ;;  %13413 = vmatpush1.bf16.msra.mxu0 %v17534_v26  ;;  %13955 = vmatpush1.bf16.msra.mxu1 %v17537_v30  ;;  %v22653_v15 = vpack.c.bf16 %v12889_v16, %v12885_v63  ;;  %v17569_v0 = vld [vmem:[%s22845_s12 + $0x1a4] ss:$8 sps:$4 sm:$0xff]  }
 0xa6d   : > { %13414 = vmatprep.subr.bf16.mxu0 %v17542_v4  ;;  %13956 = vmatprep.subr.bf16.mxu1 %v17545_v52  ;;  %v17558_v4 = vld [vmem:[%s22844_s11 + $0x190] ss:$8 sps:$4 sm:$0xff]  }
 0xa6e   : > { %v12726_v18 = vpop.f32.mrb[176].mxu0  ;;  %13361 = vmatprep.mubr.bf16.mxu0 %v12927_v60  ;;  %13903 = vmatprep.mubr.bf16.mxu1 %v12927_v60  ;;  %v12829_v42 = vpop.f32.mrb[176].mxu1  ;;  %v17561_v52 = vld [vmem:[%s22845_s12 + $0x190] ss:$8 sps:$4 sm:$0xff]  }
 0xa6f   : > { %v12890_v62 = vmax.f32 %v22481_v2, %v12726_v18  ;;  %v12728_v20 = vpop.f32.mrb[177].mxu0  ;;  %13362 = vmatmul.mubr.bf16.gmra.mrb[200].mxu0 %v12926_v27  ;;  %13904 = vmatmul.mubr.bf16.gmra.mrb[200].mxu1 %v12926_v27  ;;  %v12892_v44 = vmax.f32 %v22483_v19, %v12829_v42  ;;  %v12831_v35 = vpop.f32.mrb[177].mxu1 }
 0xa70   : > { %v12891_v36 = vmax.f32 %v22485_v24, %v12728_v20  ;;  %v12730_v33 = vpop.f32.mrb[178].mxu0  ;;  %13415 = vmatpush1.bf16.msra.mxu0 %v17540_v46  ;;  %13957 = vmatpush1.bf16.msra.mxu1 %v17543_v21  ;;  %v12893_v2 = vmax.f32 %v22487_v38, %v12831_v35  ;;  %v12833_v49 = vpop.f32.mrb[178].mxu1  ;;  %v17554_v24 = vld [vmem:[%s22844_s11 + $0x184] ss:$8 sps:$4 sm:$0xff]   ;;  %v23032_v35 = vld [vmem:[#allocation25_spill] sm:$0xff] }
 0xa71   : > { %v12894_v53 = vmax.f32 %v22489_v8, %v12730_v33  ;;  %v12732_v19 = vpop.f32.mrb[179].mxu0  ;;  %13416 = vmatprep.subr.bf16.mxu0 %v17548_v28  ;;  %13958 = vmatprep.subr.bf16.mxu1 %v17551_v22  ;;  %v12896_v14 = vmax.f32 %v22491_v6, %v12833_v49  ;;  %v12835_v7 = vpop.f32.mrb[179].mxu1  ;;  %v17564_v28 = vld [vmem:[%s22844_s11 + $0x1a0] ss:$8 sps:$4 sm:$0xff]   ;;  %v17570_v49 = vld [vmem:[%s22844_s11 + $0x1b0] ss:$8 sps:$4 sm:$0xff]  }
 0xa72   : > { %v12895_v37 = vmax.f32 %v22493_v56, %v12732_v19  ;;  %v12897_v38 = vmax.f32 %v22495_v48, %v12835_v7  ;;  %v17560_v56 = vld [vmem:[%s22844_s11 + $0x194] ss:$8 sps:$4 sm:$0xff]   ;;  %v17567_v22 = vld [vmem:[%s22845_s12 + $0x1a0] ss:$8 sps:$4 sm:$0xff]  }
 0xa73   : > { %v12930_v29 = vpack.c.bf16 %v12894_v53, %v12890_v62  ;;  %v22681_v8 = vpack.c.bf16 %v12896_v14, %v12892_v44  ;;  %v17563_v48 = vld [vmem:[%s22845_s12 + $0x194] ss:$8 sps:$4 sm:$0xff]   ;;  %v23031_v62 = vld [vmem:[#allocation22_spill] sm:$0xff]  ;;  %v17573_v53 = vld [vmem:[%s22845_s12 + $0x1b0] ss:$8 sps:$4 sm:$0xff]  }
 0xa74   : > { %v12931_v3 = vpack.c.bf16 %v12895_v37, %v12891_v36  ;;  %13417 = vmatpush1.bf16.msra.mxu0 %v17546_v39  ;;  %13959 = vmatpush1.bf16.msra.mxu1 %v17549_v11  ;;  %v22689_v6 = vpack.c.bf16 %v12897_v38, %v12893_v2  ;;  %v23033_v39 = vld [vmem:[#allocation24_spill] sm:$0xff]  ;;  %v23034_v19 = vld [vmem:[#allocation27_spill] sm:$0xff]  ;;  %v23035_v14 = vld [vmem:[#allocation26_spill] sm:$0xff] }
 0xa75   : > { %13418 = vmatprep.subr.bf16.mxu0 %v17554_v24  ;;  %13960 = vmatprep.subr.bf16.mxu1 %v17557_v57  ;;  %v23036_v38 = vld [vmem:[#allocation29_spill] sm:$0xff] }
 0xa76   : > { %v12736_v61 = vpop.f32.mrb[180].mxu0  ;;  %13371 = vmatprep.mubr.bf16.mxu0 %v12931_v3  ;;  %13913 = vmatprep.mubr.bf16.mxu1 %v12931_v3  ;;  %v12839_v47 = vpop.f32.mrb[180].mxu1 }
 0xa77   : > { %v12898_v26 = vmax.f32 %v22497_v12, %v12736_v61  ;;  %v12738_v30 = vpop.f32.mrb[181].mxu0  ;;  %13372 = vmatmul.mubr.bf16.gmra.mrb[204].mxu0 %v12930_v29  ;;  %13914 = vmatmul.mubr.bf16.gmra.mrb[204].mxu1 %v12930_v29  ;;  %v12900_v63 = vmax.f32 %v22499_v34, %v12839_v47  ;;  %v12841_v40 = vpop.f32.mrb[181].mxu1 }
 0xa78   : > { %v12899_v41 = vmax.f32 %v22501_v13, %v12738_v30  ;;  %v12740_v45 = vpop.f32.mrb[182].mxu0  ;;  %13419 = vmatpush1.bf16.msra.mxu0 %v17552_v43  ;;  %13961 = vmatpush1.bf16.msra.mxu1 %v17555_v9  ;;  %v12901_v12 = vmax.f32 %v22503_v31, %v12841_v40  ;;  %v12843_v25 = vpop.f32.mrb[182].mxu1  ;;  %v17566_v13 = vld [vmem:[%s22844_s11 + $0x1a4] ss:$8 sps:$4 sm:$0xff]   ;;  %v23037_v43 = vld [vmem:[#allocation28_spill] sm:$0xff] }
 0xa79   : > { %v12902_v17 = vmax.f32 %v22505_v59, %v12740_v45  ;;  %v12742_v34 = vpop.f32.mrb[183].mxu0  ;;  %13420 = vmatprep.subr.bf16.mxu0 %v17560_v56  ;;  %13962 = vmatprep.subr.bf16.mxu1 %v17563_v48  ;;  %v12904_v16 = vmax.f32 %v22507_v10, %v12843_v25  ;;  %v12845_v27 = vpop.f32.mrb[183].mxu1  ;;  %v23038_v56 = vld [vmem:[#allocation31_spill] sm:$0xff] }
 0xa7a   : > { %v12903_v60 = vmax.f32 %v22509_v32, %v12742_v34  ;;  %v12905_v31 = vmax.f32 %v22511_v23, %v12845_v27  ;;  %v17572_v32 = vld [vmem:[%s22844_s11 + $0x1b4] ss:$8 sps:$4 sm:$0xff]  }
 0xa7b   : > { %v12934_v46 = vpack.c.bf16 %v12902_v17, %v12898_v26  ;;  %v22717_v59 = vpack.c.bf16 %v12904_v16, %v12900_v63  ;;  %v17575_v23 = vld [vmem:[%s22845_s12 + $0x1b4] ss:$8 sps:$4 sm:$0xff]  }
 0xa7c   : > { %v12935_v21 = vpack.c.bf16 %v12903_v60, %v12899_v41  ;;  %13421 = vmatpush1.bf16.msra.mxu0 %v17558_v4  ;;  %13963 = vmatpush1.bf16.msra.mxu1 %v17561_v52  ;;  %v12937_v10 = vpack.c.bf16 %v12905_v31, %v12901_v12 }
 0xa7d   : > { %13422 = vmatprep.subr.bf16.mxu0 %v17566_v13  ;;  %13964 = vmatprep.subr.bf16.mxu1 %v17569_v0 }
 0xa7e   : > { %v12746_v18 = vpop.f32.mrb[184].mxu0  ;;  %13381 = vmatprep.mubr.bf16.mxu0 %v12935_v21  ;;  %13923 = vmatprep.mubr.bf16.mxu1 %v12935_v21  ;;  %v12849_v42 = vpop.f32.mrb[184].mxu1 }
 0xa7f   : > { %v12906_v20 = vmax.f32 %v23031_v62, %v12746_v18  ;;  %v12748_v44 = vpop.f32.mrb[185].mxu0  ;;  %13382 = vmatmul.mubr.bf16.gmra.mrb[208].mxu0 %v12934_v46  ;;  %13924 = vmatmul.mubr.bf16.gmra.mrb[208].mxu1 %v12934_v46  ;;  %v12908_v36 = vmax.f32 %v23032_v35, %v12849_v42  ;;  %v12851_v33 = vpop.f32.mrb[185].mxu1 }
 0xa80   : > { %v12907_v11 = vmax.f32 %v23033_v39, %v12748_v44  ;;  %v12750_v2 = vpop.f32.mrb[186].mxu0  ;;  %13423 = vmatpush1.bf16.msra.mxu0 %v17564_v28  ;;  %13965 = vmatpush1.bf16.msra.mxu1 %v17567_v22  ;;  %v12909_v24 = vmax.f32 %v23034_v19, %v12851_v33  ;;  %v12853_v57 = vpop.f32.mrb[186].mxu1 }
 0xa81   : > { %v12910_v7 = vmax.f32 %v23035_v14, %v12750_v2  ;;  %v12752_v37 = vpop.f32.mrb[187].mxu0  ;;  %13424 = vmatprep.subr.bf16.mxu0 %v17572_v32  ;;  %13966 = vmatprep.subr.bf16.mxu1 %v17575_v23  ;;  %v12912_v29 = vmax.f32 %v23036_v38, %v12853_v57  ;;  %v12855_v3 = vpop.f32.mrb[187].mxu1 }
 0xa82   : > { %v12911_v9 = vmax.f32 %v23037_v43, %v12752_v37  ;;  %v12913_v48 = vmax.f32 %v23038_v56, %v12855_v3 }
 0xa83   : > { %v12938_v61 = vpack.c.bf16 %v12910_v7, %v12906_v20  ;;  %v12940_v47 = vpack.c.bf16 %v12912_v29, %v12908_v36 }
 0xa84   : > { %v12939_v26 = vpack.c.bf16 %v12911_v9, %v12907_v11  ;;  %13425 = vmatpush1.bf16.msra.mxu0 %v17570_v49  ;;  %13967 = vmatpush1.bf16.msra.mxu1 %v17573_v53  ;;  %v12941_v30 = vpack.c.bf16 %v12913_v48, %v12909_v24 }
 0xa86   : > { %13391 = vmatprep.mubr.bf16.mxu0 %v12939_v26  ;;  %13933 = vmatprep.mubr.bf16.mxu1 %v12939_v26 }
 0xa87   : > { %13392 = vmatmul.mubr.bf16.gmra.mrb[212].mxu0 %v12938_v61  ;;  %13934 = vmatmul.mubr.bf16.gmra.mrb[212].mxu1 %v12938_v61 }
 0xa88   : > { %15351 = vmatprep.mubr.msk.bf16.mxu0 %vm5250_vm5, %v22545_v55  ;;  %15414 = vmatprep.mubr.msk.bf16.mxu1 %vm5250_vm5, %v22545_v55 }
 0xa8f   : > { %13435 = vmatmul.mubr.bf16.vlgmr.msra.gmra.mrb[188].mxu0 %v22537_v51  ;;  %13977 = vmatmul.mubr.bf16.vlgmr.msra.gmra.mrb[188].mxu1 %v22537_v51 }
 0xa90   : > { %15352 = vmatprep.mubr.msk.bf16.mxu0 %vm5250_vm5, %v22581_v5  ;;  %15415 = vmatprep.mubr.msk.bf16.mxu1 %vm5250_vm5, %v22581_v5 }
 0xa97   : > { %13445 = vmatmul.mubr.bf16.gmra.mrb[192].mxu0 %v22573_v1  ;;  %13987 = vmatmul.mubr.bf16.gmra.mrb[192].mxu1 %v22573_v1 }
 0xa98   : > { %15353 = vmatprep.mubr.msk.bf16.mxu0 %vm5250_vm5, %v22617_v58  ;;  %15416 = vmatprep.mubr.msk.bf16.mxu1 %vm5250_vm5, %v22617_v58 }
 0xa9f   : > { %13455 = vmatmul.mubr.bf16.gmra.mrb[196].mxu0 %v22609_v50  ;;  %13997 = vmatmul.mubr.bf16.gmra.mrb[196].mxu1 %v22609_v50 }
 0xaa0   : > { %15354 = vmatprep.mubr.msk.bf16.mxu0 %vm5250_vm5, %v22653_v15  ;;  %15417 = vmatprep.mubr.msk.bf16.mxu1 %vm5250_vm5, %v22653_v15 }
 0xaa7   : > { %13465 = vmatmul.mubr.bf16.gmra.mrb[200].mxu0 %v22645_v54  ;;  %14007 = vmatmul.mubr.bf16.gmra.mrb[200].mxu1 %v22645_v54 }
 0xaa8   : > { %15355 = vmatprep.mubr.msk.bf16.mxu0 %vm5250_vm5, %v22689_v6  ;;  %15418 = vmatprep.mubr.msk.bf16.mxu1 %vm5250_vm5, %v22689_v6 }
 0xaaf   : > { %13475 = vmatmul.mubr.bf16.gmra.mrb[204].mxu0 %v22681_v8  ;;  %14017 = vmatmul.mubr.bf16.gmra.mrb[204].mxu1 %v22681_v8 }
 0xab0   : > { %15356 = vmatprep.mubr.msk.bf16.mxu0 %vm5250_vm5, %v12937_v10  ;;  %15419 = vmatprep.mubr.msk.bf16.mxu1 %vm5250_vm5, %v12937_v10 }
 0xab7   : > { %13485 = vmatmul.mubr.bf16.gmra.mrb[208].mxu0 %v22717_v59  ;;  %14027 = vmatmul.mubr.bf16.gmra.mrb[208].mxu1 %v22717_v59 }
 0xab8   : > { %15357 = vmatprep.mubr.msk.bf16.mxu0 %vm5250_vm5, %v12941_v30  ;;  %15420 = vmatprep.mubr.msk.bf16.mxu1 %vm5250_vm5, %v12941_v30 }
 0xabf   : > { %13495 = vmatmul.mubr.bf16.gmra.mrb[212].mxu0 %v12940_v47  ;;  %14037 = vmatmul.mubr.bf16.gmra.mrb[212].mxu1 %v12940_v47 }
 0xb62   : > { %v13436_v51 = vpop.f32.mrb[188].mxu0  ;;  %v13978_v55 = vpop.f32.mrb[188].mxu1 }
 0xb63   : > { %v14047_v1 = vmax.f32 %v13436_v51, %v13978_v55  ;;  %v13438_v5 = vpop.f32.mrb[189].mxu0  ;;  %v13980_v50 = vpop.f32.mrb[189].mxu1 }
 0xb64   : > { %v14048_v58 = vmax.f32 %v13438_v5, %v13980_v50  ;;  %v13440_v54 = vpop.f32.mrb[190].mxu0  ;;  %v13982_v15 = vpop.f32.mrb[190].mxu1 }
 0xb65   : > { %14075 = vst [vmem:[%s22786_s27] sm:$0xff] %v14047_v1  ;;  %v14049_v8 = vmax.f32 %v13440_v54, %v13982_v15  ;;  %v13442_v6 = vpop.f32.mrb[191].mxu0  ;;  %v13984_v63 = vpop.f32.mrb[191].mxu1 }
 0xb66   : > { %14077 = vst.msk [vmem:[%s22786_s27 + $0x8] sm:$0xff] %vm14076_vm8, %v14048_v58  ;;  %v14050_v40 = vmax.f32 %v13442_v6, %v13984_v63 }
 0xb67   : > { %14078 = vst [vmem:[%s22786_s27 + $0x10] sm:$0xff] %v14049_v8 }
 0xb68   : > { %14079 = vst.msk [vmem:[%s22786_s27 + $0x18] sm:$0xff] %vm14076_vm8, %v14050_v40 }
 0xb6a   : > { %v13446_v41 = vpop.f32.mrb[192].mxu0  ;;  %v13988_v45 = vpop.f32.mrb[192].mxu1 }
 0xb6b   : > { %v14051_v4 = vmax.f32 %v13446_v41, %v13988_v45  ;;  %v13448_v52 = vpop.f32.mrb[193].mxu0  ;;  %v13990_v12 = vpop.f32.mrb[193].mxu1 }
 0xb6c   : > { %v14052_v25 = vmax.f32 %v13448_v52, %v13990_v12  ;;  %v13450_v17 = vpop.f32.mrb[194].mxu0  ;;  %v13992_v34 = vpop.f32.mrb[194].mxu1 }
 0xb6d   : > { %14080 = vst [vmem:[%s22786_s27 + $0x20] sm:$0xff] %v14051_v4  ;;  %v14053_v13 = vmax.f32 %v13450_v17, %v13992_v34  ;;  %v13452_v0 = vpop.f32.mrb[195].mxu0  ;;  %v13994_v16 = vpop.f32.mrb[195].mxu1 }
 0xb6e   : > { %14081 = vst.msk [vmem:[%s22786_s27 + $0x28] sm:$0xff] %vm14076_vm8, %v14052_v25  ;;  %v14054_v27 = vmax.f32 %v13452_v0, %v13994_v16 }
 0xb6f   : > { %14082 = vst [vmem:[%s22786_s27 + $0x30] sm:$0xff] %v14053_v13 }
 0xb70   : > { %14083 = vst.msk [vmem:[%s22786_s27 + $0x38] sm:$0xff] %vm14076_vm8, %v14054_v27 }
 0xb72   : > { %v13456_v60 = vpop.f32.mrb[196].mxu0  ;;  %v13998_v31 = vpop.f32.mrb[196].mxu1 }
 0xb73   : > { %v14055_v46 = vmax.f32 %v13456_v60, %v13998_v31  ;;  %v13458_v59 = vpop.f32.mrb[197].mxu0  ;;  %v14000_v21 = vpop.f32.mrb[197].mxu1 }
 0xb74   : > { %v14056_v28 = vmax.f32 %v13458_v59, %v14000_v21  ;;  %v13460_v22 = vpop.f32.mrb[198].mxu0  ;;  %v14002_v10 = vpop.f32.mrb[198].mxu1 }
 0xb75   : > { %14084 = vst [vmem:[%s22786_s27 + $0x40] sm:$0xff] %v14055_v46  ;;  %v14057_v32 = vmax.f32 %v13460_v22, %v14002_v10  ;;  %v13462_v23 = vpop.f32.mrb[199].mxu0  ;;  %v14004_v18 = vpop.f32.mrb[199].mxu1 }
 0xb76   : > { %14085 = vst.msk [vmem:[%s22786_s27 + $0x48] sm:$0xff] %vm14076_vm8, %v14056_v28  ;;  %v14058_v42 = vmax.f32 %v13462_v23, %v14004_v18 }
 0xb77   : > { %14086 = vst [vmem:[%s22786_s27 + $0x50] sm:$0xff] %v14057_v32 }
 0xb78   : > { %14087 = vst.msk [vmem:[%s22786_s27 + $0x58] sm:$0xff] %vm14076_vm8, %v14058_v42 }
 0xb7a   : > { %v13466_v62 = vpop.f32.mrb[200].mxu0  ;;  %v14008_v20 = vpop.f32.mrb[200].mxu1 }
 0xb7b   : > { %v14059_v44 = vmax.f32 %v13466_v62, %v14008_v20  ;;  %v13468_v35 = vpop.f32.mrb[201].mxu0  ;;  %v14010_v36 = vpop.f32.mrb[201].mxu1 }
 0xb7c   : > { %v14060_v33 = vmax.f32 %v13468_v35, %v14010_v36  ;;  %v13470_v39 = vpop.f32.mrb[202].mxu0  ;;  %v14012_v11 = vpop.f32.mrb[202].mxu1 }
 0xb7d   : > { %14088 = vst [vmem:[%s22786_s27 + $0x60] sm:$0xff] %v14059_v44  ;;  %v14061_v2 = vmax.f32 %v13470_v39, %v14012_v11  ;;  %v13472_v49 = vpop.f32.mrb[203].mxu0  ;;  %v14014_v53 = vpop.f32.mrb[203].mxu1 }
 0xb7e   : > { %14089 = vst.msk [vmem:[%s22786_s27 + $0x68] sm:$0xff] %vm14076_vm8, %v14060_v33  ;;  %v14062_v19 = vmax.f32 %v13472_v49, %v14014_v53 }
 0xb7f   : > { %14090 = vst [vmem:[%s22786_s27 + $0x70] sm:$0xff] %v14061_v2 }
 0xb80   : > { %14091 = vst.msk [vmem:[%s22786_s27 + $0x78] sm:$0xff] %vm14076_vm8, %v14062_v19 }
 0xb82   : > { %v13476_v24 = vpop.f32.mrb[204].mxu0  ;;  %v14018_v57 = vpop.f32.mrb[204].mxu1 }
 0xb83   : > { %v14063_v14 = vmax.f32 %v13476_v24, %v14018_v57  ;;  %v13478_v7 = vpop.f32.mrb[205].mxu0  ;;  %v14020_v37 = vpop.f32.mrb[205].mxu1 }
 0xb84   : > { %v14064_v38 = vmax.f32 %v13478_v7, %v14020_v37  ;;  %v13480_v29 = vpop.f32.mrb[206].mxu0  ;;  %v14022_v3 = vpop.f32.mrb[206].mxu1 }
 0xb85   : > { %14092 = vst [vmem:[%s22786_s27 + $0x80] sm:$0xff] %v14063_v14  ;;  %v14065_v43 = vmax.f32 %v13480_v29, %v14022_v3  ;;  %v13482_v9 = vpop.f32.mrb[207].mxu0  ;;  %v14024_v56 = vpop.f32.mrb[207].mxu1 }
 0xb86   : > { %14093 = vst.msk [vmem:[%s22786_s27 + $0x88] sm:$0xff] %vm14076_vm8, %v14064_v38  ;;  %v14066_v48 = vmax.f32 %v13482_v9, %v14024_v56 }
 0xb87   : > { %14094 = vst [vmem:[%s22786_s27 + $0x90] sm:$0xff] %v14065_v43 }
 0xb88   : > { %14095 = vst.msk [vmem:[%s22786_s27 + $0x98] sm:$0xff] %vm14076_vm8, %v14066_v48 }
 0xb8a   : > { %v13486_v61 = vpop.f32.mrb[208].mxu0  ;;  %v14028_v47 = vpop.f32.mrb[208].mxu1 }
 0xb8b   : > { %v14067_v26 = vmax.f32 %v13486_v61, %v14028_v47  ;;  %v13488_v30 = vpop.f32.mrb[209].mxu0  ;;  %v14030_v51 = vpop.f32.mrb[209].mxu1 }
 0xb8c   : > { %v14068_v55 = vmax.f32 %v13488_v30, %v14030_v51  ;;  %v13490_v1 = vpop.f32.mrb[210].mxu0  ;;  %v14032_v5 = vpop.f32.mrb[210].mxu1 }
 0xb8d   : > { %14096 = vst [vmem:[%s22786_s27 + $0xa0] sm:$0xff] %v14067_v26  ;;  %v14069_v50 = vmax.f32 %v13490_v1, %v14032_v5  ;;  %v13492_v58 = vpop.f32.mrb[211].mxu0  ;;  %v14034_v54 = vpop.f32.mrb[211].mxu1 }
 0xb8e   : > { %14097 = vst.msk [vmem:[%s22786_s27 + $0xa8] sm:$0xff] %vm14076_vm8, %v14068_v55  ;;  %v14070_v15 = vmax.f32 %v13492_v58, %v14034_v54 }
 0xb8f   : > { %14098 = vst [vmem:[%s22786_s27 + $0xb0] sm:$0xff] %v14069_v50 }
 0xb90   : > { %14099 = vst.msk [vmem:[%s22786_s27 + $0xb8] sm:$0xff] %vm14076_vm8, %v14070_v15 }
 0xb92   : > { %v13496_v8 = vpop.f32.mrb[212].mxu0  ;;  %v14038_v6 = vpop.f32.mrb[212].mxu1 }
 0xb93   : > { %v14071_v63 = vmax.f32 %v13496_v8, %v14038_v6  ;;  %v13498_v40 = vpop.f32.mrb[213].mxu0  ;;  %v14040_v41 = vpop.f32.mrb[213].mxu1 }
 0xb94   : > { %v14072_v45 = vmax.f32 %v13498_v40, %v14040_v41  ;;  %v13500_v4 = vpop.f32.mrb[214].mxu0  ;;  %v14042_v52 = vpop.f32.mrb[214].mxu1 }
 0xb95   : > { %14100 = vst [vmem:[%s22786_s27 + $0xc0] sm:$0xff] %v14071_v63  ;;  %v14073_v12 = vmax.f32 %v13500_v4, %v14042_v52  ;;  %v13502_v25 = vpop.f32.mrb[215].mxu0  ;;  %v14044_v17 = vpop.f32.mrb[215].mxu1 }
 0xb96   : > { %14101 = vst.msk [vmem:[%s22786_s27 + $0xc8] sm:$0xff] %vm14076_vm8, %v14072_v45  ;;  %v14074_v34 = vmax.f32 %v13502_v25, %v14044_v17 }
 0xb97   : > { %14102 = vst [vmem:[%s22786_s27 + $0xd0] sm:$0xff] %v14073_v12 }
 0xb98   : > { %14103 = vst.msk [vmem:[%s22786_s27 + $0xd8] sm:$0xff] %vm14076_vm8, %v14074_v34 }
 0xb99 PF: > { %s23_s25 = sadd.s32 1, %s17646_s25  }
 0xb9a   : > { %p20_p5 = scmp.ge.s32.totalorder %s23_s25, 4  }
 0xb9c   :  { %22 = sbr.rel (!%p20_p5) target bundleno = 1 (0x1), region = 106 }

</bundles_post_ra>
